<compile_context>
chip_gen: v7x
topology: tpu7x:2x2x1
jax: 0.10.0
libtpu: 0.0.40
codegen_flags: <defaults>
</compile_context>

<pallas_src>
import numpy as np
import jax
import jax.numpy as jnp
from jax.experimental import pallas as pl
from jax.experimental.pallas import tpu as pltpu


# ---------------- configuration (small, shape-consistent with the module) ----------------
B = 2            # batch
N = 16           # num_of_vertices
T_IN = 8         # input_length
C_IN = 2         # raw input channels (forward keeps only channel 0)
NHID = 32        # nhid == first_layer_embedding_size == input_features_num
GCN_NUM = 2      # gcn_num
LAYER_NUM = 2    # layer_num
STRIDES = 3      # strides (local spatio-temporal graph of 3 time steps)
HORIZON = 3      # predict_length
FC_HID = 128     # hidden width of output_layer.fully_1
V = STRIDES * N                                      # 48, local graph size
LAYER_T = tuple(T_IN - 2 * l for l in range(LAYER_NUM))   # (8, 6)
T_FINAL = T_IN - 2 * LAYER_NUM                            # 4
DIN = T_FINAL * NHID                                      # 128, head input features
PFC = HORIZON * FC_HID                                    # 384, folded head width


# ---------------- construct_adj (host-side, numpy) ----------------
def construct_adj_np(edge_index, edge_weight, steps):
    n = int(edge_index.max()) + 1
    A = np.zeros((n, n), dtype=np.float32)
    A[edge_index[0], edge_index[1]] = edge_weight
    adj = np.zeros((n * steps, n * steps), dtype=np.float32)
    for i in range(steps):
        adj[i * n:(i + 1) * n, i * n:(i + 1) * n] = A
    for i in range(n):
        for k in range(steps - 1):
            adj[k * n + i, (k + 1) * n + i] = 1.0
            adj[(k + 1) * n + i, k * n + i] = 1.0
    for i in range(len(adj)):
        adj[i, i] = 1.0
    return adj


# ---------------- parameter packing layouts (shared by init and kernel) ----------------
def _small_layout():
    # flat f32 pack of every small parameter, lane width = NHID, 8-row aligned sections
    items = [("win", 1), ("bin", 1)]
    for l, tl in enumerate(LAYER_T):
        items += [(f"temb{l}", tl), (f"semb{l}", B * N)]
        for j in range(GCN_NUM):
            items += [(f"ba{l}_{j}", tl - 2), (f"bb{l}_{j}", tl - 2)]
    off, r = {}, 0
    for name, rows in items:
        off[name] = r
        r += ((rows + 7) // 8) * 8
    return off, r


def _glu_layout():
    # flat bf16 pack of every per-window GLU weight matrix (NHID rows each)
    off, r = {}, 0
    for l, tl in enumerate(LAYER_T):
        for j in range(GCN_NUM):
            for ab in ("a", "b"):
                off[(l, j, ab)] = r
                r += (tl - 2) * NHID
    return off, r


SMALL_OFF, SMALL_ROWS = _small_layout()
GLU_OFF, GLU_ROWS = _glu_layout()


# ---------------- fully fused Pallas kernel ----------------
def stsgcn_kernel(x_ref, adj_ref, small_ref, gluw_ref, w1_ref, hb_ref, y_ref):
    f32, bf16 = jnp.float32, jnp.bfloat16
    adj = adj_ref[...]                                        # (V, V) bf16, pre-masked

    # -- input 1x1 conv + relu: data[t] is (B*N, F), rows b*N + v --
    win = small_ref[SMALL_OFF["win"]:SMALL_OFF["win"] + 1, :]     # (1, F)
    bin_ = small_ref[SMALL_OFF["bin"]:SMALL_OFF["bin"] + 1, :]    # (1, F)
    xin = x_ref[...]                                          # (B*N, T_in) f32
    data = [jnp.maximum(xin[:, t:t + 1] * win + bin_, 0.0) for t in range(T_IN)]

    # -- stacked spatio-temporal synchronous GCN layers (fully unrolled, VMEM-resident) --
    for l, t_cur in enumerate(LAYER_T):
        n_win = t_cur - 2
        to = SMALL_OFF[f"temb{l}"]
        so = SMALL_OFF[f"semb{l}"]
        temb = small_ref[to:to + t_cur, :]                    # (t_cur, F)
        semb = small_ref[so:so + B * N, :]                    # (B*N, F), batch-tiled
        xemb = [data[t] + temb[t:t + 1, :] + semb for t in range(t_cur)]

        # lane-pack every window: xs[b*V + k*N + v, i*F + f]
        cols = []
        for i in range(n_win):
            cols.append(jnp.concatenate(
                [jnp.concatenate([xemb[i + k][b * N:(b + 1) * N, :]
                                  for k in range(STRIDES)], axis=0)
                 for b in range(B)], axis=0))                 # (B*V, F)
        xs = jnp.concatenate(cols, axis=1)                    # (B*V, n_win*F)

        agg = [None] * n_win
        for j in range(GCN_NUM):
            # ONE shared-adjacency matmul per batch, covering all windows at once
            ax = jnp.concatenate(
                [jnp.dot(adj, xs[b * V:(b + 1) * V, :].astype(bf16),
                         preferred_element_type=f32) for b in range(B)],
                axis=0)                                       # (B*V, n_win*F) f32
            bao = SMALL_OFF[f"ba{l}_{j}"]
            bbo = SMALL_OFF[f"bb{l}_{j}"]
            ba = small_ref[bao:bao + n_win, :]                # (n_win, F)
            bb = small_ref[bbo:bbo + n_win, :]
            wa0 = GLU_OFF[(l, j, "a")]
            wb0 = GLU_OFF[(l, j, "b")]
            new_cols = []
            for i in range(n_win):                            # per-window GLU (own weights)
                axi = ax[:, i * NHID:(i + 1) * NHID].astype(bf16)              # (B*V, F)
                wa = gluw_ref[wa0 + i * NHID: wa0 + (i + 1) * NHID, :]          # (F, F) bf16
                wb = gluw_ref[wb0 + i * NHID: wb0 + (i + 1) * NHID, :]
                za = jnp.dot(axi, wa, preferred_element_type=f32) + ba[i:i + 1, :]
                zb = jnp.dot(axi, wb, preferred_element_type=f32) + bb[i:i + 1, :]
                g = za * jax.nn.sigmoid(zb)                    # GLU, (B*V, F) f32
                mid = jnp.concatenate(                         # keep middle time step
                    [g[b * V + N: b * V + 2 * N, :] for b in range(B)], axis=0)  # (B*N, F)
                agg[i] = mid if j == 0 else jnp.maximum(agg[i], mid)
                new_cols.append(g)
            xs = jnp.concatenate(new_cols, axis=1)            # input of next gcn stage
        data = agg

    # -- fused output heads: relu(feat @ W1_all + b1), per-head weighted lane-reduce --
    hb = hb_ref[...]                                          # (3, P*FC) f32
    feat = jnp.concatenate(data, axis=1).astype(bf16)         # (B*N, T_f*F), lanes t*F+f
    h = jnp.maximum(
        jnp.dot(feat, w1_ref[...], preferred_element_type=f32) + hb[0:1, :], 0.0)   # (B*N, P*FC)
    prod = h * hb[1:2, :]                                     # multiply by flattened w2
    ys = [jnp.sum(prod[:, p * FC_HID:(p + 1) * FC_HID], axis=1, keepdims=True)
          for p in range(HORIZON)]
    y = jnp.concatenate(ys, axis=1) + hb[2:3, 0:HORIZON]      # (B*N, P)
    y_ref[...] = y.astype(y_ref.dtype)


# ---------------- deterministic parameter init (packed for the kernel) ----------------
def init_params(key):
    ks = iter(jax.random.split(key, 64))

    def rnd(shape, scale=0.05):
        return scale * np.asarray(jax.random.normal(next(ks), shape, jnp.float32))

    # adjacency from a deterministic ring graph on N nodes, pre-masked (adj = mask * A)
    src = np.arange(N)
    dst = (src + 1) % N
    edge_index = np.stack([np.concatenate([src, dst]), np.concatenate([dst, src])])
    edge_weight = np.ones(edge_index.shape[1], dtype=np.float32)
    A = construct_adj_np(edge_index, edge_weight, STRIDES)
    mask = np.asarray(jax.random.uniform(next(ks), (V, V), jnp.float32))
    adj = mask * A

    # flat f32 small-parameter pack
    small = np.zeros((SMALL_ROWS, NHID), np.float32)

    def put(name, arr):
        small[SMALL_OFF[name]:SMALL_OFF[name] + arr.shape[0], :] = arr

    put("win", rnd((1, NHID), 0.1))        # input 1x1 conv weight (per output channel)
    put("bin", rnd((1, NHID), 0.1))        # input 1x1 conv bias

    # flat bf16 GLU-weight pack (value/gate halves pre-split, dense — no batch kron)
    gluw = np.zeros((GLU_ROWS, NHID), np.float32)
    for l, tl in enumerate(LAYER_T):
        tw = tl - 2
        put(f"temb{l}", rnd((tl, NHID), 3e-4))
        put(f"semb{l}", np.tile(rnd((N, NHID), 3e-4), (B, 1)))   # rows b*N + v
        for j in range(GCN_NUM):
            w = rnd((tw, NHID, 2 * NHID))
            b = rnd((tw, 2 * NHID))
            put(f"ba{l}_{j}", b[:, :NHID])
            put(f"bb{l}_{j}", b[:, NHID:])
            for i in range(tw):
                ra = GLU_OFF[(l, j, "a")] + i * NHID
                rb = GLU_OFF[(l, j, "b")] + i * NHID
                gluw[ra:ra + NHID, :] = w[i, :, :NHID]
                gluw[rb:rb + NHID, :] = w[i, :, NHID:]

    # prediction heads, folded: dense W1 (DIN, P*FC); w2 / biases in one small f32 pack
    w1 = rnd((HORIZON, DIN, FC_HID))
    b1 = rnd((HORIZON, FC_HID))
    w2 = rnd((HORIZON, FC_HID))
    b2 = rnd((HORIZON,))
    w1_packed = np.transpose(w1, (1, 0, 2)).reshape(DIN, PFC)   # cols p*FC + c
    hb = np.zeros((3, PFC), np.float32)
    hb[0, :] = b1.reshape(-1)          # fully_1 bias, index p*FC + c
    hb[1, :] = w2.reshape(-1)          # fully_2 weight, flattened per head
    hb[2, :HORIZON] = b2               # fully_2 bias

    return {
        "adj": jnp.asarray(adj, dtype=jnp.bfloat16),
        "small": jnp.asarray(small),
        "gluw": jnp.asarray(gluw, dtype=jnp.bfloat16),
        "w1": jnp.asarray(w1_packed, dtype=jnp.bfloat16),
        "hb": jnp.asarray(hb),
    }


# ---------------- full forward pass ----------------
def stsgcn_forward(x, params):
    # x: (B, N, T, C_in); only channel 0 is used (matches the torch forward)
    x2d = x[..., 0].reshape(B * N, T_IN)                      # rows b*N + v, lanes t

    y = pl.pallas_call(
        stsgcn_kernel,
        out_shape=jax.ShapeDtypeStruct((B * N, HORIZON), jnp.float32),
        in_specs=[pl.BlockSpec(memory_space=pltpu.MemorySpace.VMEM)] * 6,
        out_specs=pl.BlockSpec(memory_space=pltpu.MemorySpace.VMEM),
    )(x2d, params["adj"], params["small"], params["gluw"], params["w1"], params["hb"])

    # y[b*N + v, p] -> (B, N, P, 1)  (matches torch output permute(0, 2, 1, 3))
    return y.reshape(B, N, HORIZON)[..., None]


if __name__ == "__main__":
    key = jax.random.PRNGKey(0)
    kx, kp = jax.random.split(key)
    x = jax.random.normal(kx, (B, N, T_IN, C_IN), dtype=jnp.float32)
    params = init_params(kp)

    fwd = jax.jit(stsgcn_forward)
    out = jax.block_until_ready(fwd(x, params))

    assert out.shape == (B, N, HORIZON, 1), out.shape
    assert bool(jnp.all(jnp.isfinite(out)))
    print("KERNEL_OK")
</pallas_src>

<mosaic_0001>
module attributes {stable_mosaic.version = 11 : i64} {
  func.func @stsgcn_kernel(%arg0: memref<32x8xf32, #tpu.memory_space<vmem>>, %arg1: memref<48x48xbf16, #tpu.memory_space<vmem>>, %arg2: memref<160x32xf32, #tpu.memory_space<vmem>>, %arg3: memref<1280x32xbf16, #tpu.memory_space<vmem>>, %arg4: memref<128x384xbf16, #tpu.memory_space<vmem>>, %arg5: memref<3x384xf32, #tpu.memory_space<vmem>>, %arg6: memref<32x3xf32, #tpu.memory_space<vmem>>) attributes {dimension_semantics = [], scalar_prefetch = 0 : i64, scratch_operands = 0 : i64, tpu.core_type = #tpu.core_type<tc>} {
    %c0 = arith.constant 0 : index
    %c0_0 = arith.constant 0 : index
    %0 = vector.load %arg1[%c0, %c0_0] : memref<48x48xbf16, #tpu.memory_space<vmem>>, vector<48x48xbf16>
    %c0_1 = arith.constant 0 : index
    %c0_2 = arith.constant 0 : index
    %1 = vector.load %arg2[%c0_1, %c0_2] : memref<160x32xf32, #tpu.memory_space<vmem>>, vector<1x32xf32>
    %c8 = arith.constant 8 : index
    %c0_3 = arith.constant 0 : index
    %2 = vector.load %arg2[%c8, %c0_3] : memref<160x32xf32, #tpu.memory_space<vmem>>, vector<1x32xf32>
    %c0_4 = arith.constant 0 : index
    %c0_5 = arith.constant 0 : index
    %3 = vector.load %arg0[%c0_4, %c0_5] : memref<32x8xf32, #tpu.memory_space<vmem>>, vector<32x8xf32>
    %4 = vector.extract_strided_slice %3 {offsets = [0, 0], sizes = [32, 1], strides = [1, 1]} : vector<32x8xf32> to vector<32x1xf32>
    %5 = vector.broadcast %4 : vector<32x1xf32> to vector<32x32xf32>
    %6 = vector.broadcast %1 : vector<1x32xf32> to vector<32x32xf32>
    %7 = arith.mulf %5, %6 : vector<32x32xf32>
    %8 = vector.broadcast %2 : vector<1x32xf32> to vector<32x32xf32>
    %9 = arith.addf %7, %8 : vector<32x32xf32>
    %cst = arith.constant 0.000000e+00 : f32
    %10 = vector.broadcast %cst : f32 to vector<32x32xf32>
    %11 = arith.maximumf %9, %10 : vector<32x32xf32>
    %12 = vector.extract_strided_slice %3 {offsets = [0, 1], sizes = [32, 1], strides = [1, 1]} : vector<32x8xf32> to vector<32x1xf32>
    %13 = vector.broadcast %12 : vector<32x1xf32> to vector<32x32xf32>
    %14 = vector.broadcast %1 : vector<1x32xf32> to vector<32x32xf32>
    %15 = arith.mulf %13, %14 : vector<32x32xf32>
    %16 = vector.broadcast %2 : vector<1x32xf32> to vector<32x32xf32>
    %17 = arith.addf %15, %16 : vector<32x32xf32>
    %cst_6 = arith.constant 0.000000e+00 : f32
    %18 = vector.broadcast %cst_6 : f32 to vector<32x32xf32>
    %19 = arith.maximumf %17, %18 : vector<32x32xf32>
    %20 = vector.extract_strided_slice %3 {offsets = [0, 2], sizes = [32, 1], strides = [1, 1]} : vector<32x8xf32> to vector<32x1xf32>
    %21 = vector.broadcast %20 : vector<32x1xf32> to vector<32x32xf32>
    %22 = vector.broadcast %1 : vector<1x32xf32> to vector<32x32xf32>
    %23 = arith.mulf %21, %22 : vector<32x32xf32>
    %24 = vector.broadcast %2 : vector<1x32xf32> to vector<32x32xf32>
    %25 = arith.addf %23, %24 : vector<32x32xf32>
    %cst_7 = arith.constant 0.000000e+00 : f32
    %26 = vector.broadcast %cst_7 : f32 to vector<32x32xf32>
    %27 = arith.maximumf %25, %26 : vector<32x32xf32>
    %28 = vector.extract_strided_slice %3 {offsets = [0, 3], sizes = [32, 1], strides = [1, 1]} : vector<32x8xf32> to vector<32x1xf32>
    %29 = vector.broadcast %28 : vector<32x1xf32> to vector<32x32xf32>
    %30 = vector.broadcast %1 : vector<1x32xf32> to vector<32x32xf32>
    %31 = arith.mulf %29, %30 : vector<32x32xf32>
    %32 = vector.broadcast %2 : vector<1x32xf32> to vector<32x32xf32>
    %33 = arith.addf %31, %32 : vector<32x32xf32>
    %cst_8 = arith.constant 0.000000e+00 : f32
    %34 = vector.broadcast %cst_8 : f32 to vector<32x32xf32>
    %35 = arith.maximumf %33, %34 : vector<32x32xf32>
    %36 = vector.extract_strided_slice %3 {offsets = [0, 4], sizes = [32, 1], strides = [1, 1]} : vector<32x8xf32> to vector<32x1xf32>
    %37 = vector.broadcast %36 : vector<32x1xf32> to vector<32x32xf32>
    %38 = vector.broadcast %1 : vector<1x32xf32> to vector<32x32xf32>
    %39 = arith.mulf %37, %38 : vector<32x32xf32>
    %40 = vector.broadcast %2 : vector<1x32xf32> to vector<32x32xf32>
    %41 = arith.addf %39, %40 : vector<32x32xf32>
    %cst_9 = arith.constant 0.000000e+00 : f32
    %42 = vector.broadcast %cst_9 : f32 to vector<32x32xf32>
    %43 = arith.maximumf %41, %42 : vector<32x32xf32>
    %44 = vector.extract_strided_slice %3 {offsets = [0, 5], sizes = [32, 1], strides = [1, 1]} : vector<32x8xf32> to vector<32x1xf32>
    %45 = vector.broadcast %44 : vector<32x1xf32> to vector<32x32xf32>
    %46 = vector.broadcast %1 : vector<1x32xf32> to vector<32x32xf32>
    %47 = arith.mulf %45, %46 : vector<32x32xf32>
    %48 = vector.broadcast %2 : vector<1x32xf32> to vector<32x32xf32>
    %49 = arith.addf %47, %48 : vector<32x32xf32>
    %cst_10 = arith.constant 0.000000e+00 : f32
    %50 = vector.broadcast %cst_10 : f32 to vector<32x32xf32>
    %51 = arith.maximumf %49, %50 : vector<32x32xf32>
    %52 = vector.extract_strided_slice %3 {offsets = [0, 6], sizes = [32, 1], strides = [1, 1]} : vector<32x8xf32> to vector<32x1xf32>
    %53 = vector.broadcast %52 : vector<32x1xf32> to vector<32x32xf32>
    %54 = vector.broadcast %1 : vector<1x32xf32> to vector<32x32xf32>
    %55 = arith.mulf %53, %54 : vector<32x32xf32>
    %56 = vector.broadcast %2 : vector<1x32xf32> to vector<32x32xf32>
    %57 = arith.addf %55, %56 : vector<32x32xf32>
    %cst_11 = arith.constant 0.000000e+00 : f32
    %58 = vector.broadcast %cst_11 : f32 to vector<32x32xf32>
    %59 = arith.maximumf %57, %58 : vector<32x32xf32>
    %60 = vector.extract_strided_slice %3 {offsets = [0, 7], sizes = [32, 1], strides = [1, 1]} : vector<32x8xf32> to vector<32x1xf32>
    %61 = vector.broadcast %60 : vector<32x1xf32> to vector<32x32xf32>
    %62 = vector.broadcast %1 : vector<1x32xf32> to vector<32x32xf32>
    %63 = arith.mulf %61, %62 : vector<32x32xf32>
    %64 = vector.broadcast %2 : vector<1x32xf32> to vector<32x32xf32>
    %65 = arith.addf %63, %64 : vector<32x32xf32>
    %cst_12 = arith.constant 0.000000e+00 : f32
    %66 = vector.broadcast %cst_12 : f32 to vector<32x32xf32>
    %67 = arith.maximumf %65, %66 : vector<32x32xf32>
    %c16 = arith.constant 16 : index
    %c0_13 = arith.constant 0 : index
    %68 = vector.load %arg2[%c16, %c0_13] : memref<160x32xf32, #tpu.memory_space<vmem>>, vector<8x32xf32>
    %c24 = arith.constant 24 : index
    %c0_14 = arith.constant 0 : index
    %69 = vector.load %arg2[%c24, %c0_14] : memref<160x32xf32, #tpu.memory_space<vmem>>, vector<32x32xf32>
    %70 = vector.extract_strided_slice %68 {offsets = [0, 0], sizes = [1, 32], strides = [1, 1]} : vector<8x32xf32> to vector<1x32xf32>
    %71 = vector.broadcast %70 : vector<1x32xf32> to vector<32x32xf32>
    %72 = arith.addf %11, %71 : vector<32x32xf32>
    %73 = arith.addf %72, %69 : vector<32x32xf32>
    %74 = vector.extract_strided_slice %68 {offsets = [1, 0], sizes = [1, 32], strides = [1, 1]} : vector<8x32xf32> to vector<1x32xf32>
    %75 = vector.broadcast %74 : vector<1x32xf32> to vector<32x32xf32>
    %76 = arith.addf %19, %75 : vector<32x32xf32>
    %77 = arith.addf %76, %69 : vector<32x32xf32>
    %78 = vector.extract_strided_slice %68 {offsets = [2, 0], sizes = [1, 32], strides = [1, 1]} : vector<8x32xf32> to vector<1x32xf32>
    %79 = vector.broadcast %78 : vector<1x32xf32> to vector<32x32xf32>
    %80 = arith.addf %27, %79 : vector<32x32xf32>
    %81 = arith.addf %80, %69 : vector<32x32xf32>
    %82 = vector.extract_strided_slice %68 {offsets = [3, 0], sizes = [1, 32], strides = [1, 1]} : vector<8x32xf32> to vector<1x32xf32>
    %83 = vector.broadcast %82 : vector<1x32xf32> to vector<32x32xf32>
    %84 = arith.addf %35, %83 : vector<32x32xf32>
    %85 = arith.addf %84, %69 : vector<32x32xf32>
    %86 = vector.extract_strided_slice %68 {offsets = [4, 0], sizes = [1, 32], strides = [1, 1]} : vector<8x32xf32> to vector<1x32xf32>
    %87 = vector.broadcast %86 : vector<1x32xf32> to vector<32x32xf32>
    %88 = arith.addf %43, %87 : vector<32x32xf32>
    %89 = arith.addf %88, %69 : vector<32x32xf32>
    %90 = vector.extract_strided_slice %68 {offsets = [5, 0], sizes = [1, 32], strides = [1, 1]} : vector<8x32xf32> to vector<1x32xf32>
    %91 = vector.broadcast %90 : vector<1x32xf32> to vector<32x32xf32>
    %92 = arith.addf %51, %91 : vector<32x32xf32>
    %93 = arith.addf %92, %69 : vector<32x32xf32>
    %94 = vector.extract_strided_slice %68 {offsets = [6, 0], sizes = [1, 32], strides = [1, 1]} : vector<8x32xf32> to vector<1x32xf32>
    %95 = vector.broadcast %94 : vector<1x32xf32> to vector<32x32xf32>
    %96 = arith.addf %59, %95 : vector<32x32xf32>
    %97 = arith.addf %96, %69 : vector<32x32xf32>
    %98 = vector.extract_strided_slice %68 {offsets = [7, 0], sizes = [1, 32], strides = [1, 1]} : vector<8x32xf32> to vector<1x32xf32>
    %99 = vector.broadcast %98 : vector<1x32xf32> to vector<32x32xf32>
    %100 = arith.addf %67, %99 : vector<32x32xf32>
    %101 = arith.addf %100, %69 : vector<32x32xf32>
    %102 = vector.extract_strided_slice %73 {offsets = [0, 0], sizes = [16, 32], strides = [1, 1]} : vector<32x32xf32> to vector<16x32xf32>
    %103 = vector.extract_strided_slice %77 {offsets = [0, 0], sizes = [16, 32], strides = [1, 1]} : vector<32x32xf32> to vector<16x32xf32>
    %104 = vector.extract_strided_slice %81 {offsets = [0, 0], sizes = [16, 32], strides = [1, 1]} : vector<32x32xf32> to vector<16x32xf32>
    %105 = tpu.concatenate %102, %103, %104 in 0 : vector<16x32xf32>, vector<16x32xf32>, vector<16x32xf32> -> vector<48x32xf32>
    %106 = vector.extract_strided_slice %73 {offsets = [16, 0], sizes = [16, 32], strides = [1, 1]} : vector<32x32xf32> to vector<16x32xf32>
    %107 = vector.extract_strided_slice %77 {offsets = [16, 0], sizes = [16, 32], strides = [1, 1]} : vector<32x32xf32> to vector<16x32xf32>
    %108 = vector.extract_strided_slice %81 {offsets = [16, 0], sizes = [16, 32], strides = [1, 1]} : vector<32x32xf32> to vector<16x32xf32>
    %109 = tpu.concatenate %106, %107, %108 in 0 : vector<16x32xf32>, vector<16x32xf32>, vector<16x32xf32> -> vector<48x32xf32>
    %110 = tpu.concatenate %105, %109 in 0 : vector<48x32xf32>, vector<48x32xf32> -> vector<96x32xf32>
    %111 = vector.extract_strided_slice %77 {offsets = [0, 0], sizes = [16, 32], strides = [1, 1]} : vector<32x32xf32> to vector<16x32xf32>
    %112 = vector.extract_strided_slice %81 {offsets = [0, 0], sizes = [16, 32], strides = [1, 1]} : vector<32x32xf32> to vector<16x32xf32>
    %113 = vector.extract_strided_slice %85 {offsets = [0, 0], sizes = [16, 32], strides = [1, 1]} : vector<32x32xf32> to vector<16x32xf32>
    %114 = tpu.concatenate %111, %112, %113 in 0 : vector<16x32xf32>, vector<16x32xf32>, vector<16x32xf32> -> vector<48x32xf32>
    %115 = vector.extract_strided_slice %77 {offsets = [16, 0], sizes = [16, 32], strides = [1, 1]} : vector<32x32xf32> to vector<16x32xf32>
    %116 = vector.extract_strided_slice %81 {offsets = [16, 0], sizes = [16, 32], strides = [1, 1]} : vector<32x32xf32> to vector<16x32xf32>
    %117 = vector.extract_strided_slice %85 {offsets = [16, 0], sizes = [16, 32], strides = [1, 1]} : vector<32x32xf32> to vector<16x32xf32>
    %118 = tpu.concatenate %115, %116, %117 in 0 : vector<16x32xf32>, vector<16x32xf32>, vector<16x32xf32> -> vector<48x32xf32>
    %119 = tpu.concatenate %114, %118 in 0 : vector<48x32xf32>, vector<48x32xf32> -> vector<96x32xf32>
    %120 = vector.extract_strided_slice %81 {offsets = [0, 0], sizes = [16, 32], strides = [1, 1]} : vector<32x32xf32> to vector<16x32xf32>
    %121 = vector.extract_strided_slice %85 {offsets = [0, 0], sizes = [16, 32], strides = [1, 1]} : vector<32x32xf32> to vector<16x32xf32>
    %122 = vector.extract_strided_slice %89 {offsets = [0, 0], sizes = [16, 32], strides = [1, 1]} : vector<32x32xf32> to vector<16x32xf32>
    %123 = tpu.concatenate %120, %121, %122 in 0 : vector<16x32xf32>, vector<16x32xf32>, vector<16x32xf32> -> vector<48x32xf32>
    %124 = vector.extract_strided_slice %81 {offsets = [16, 0], sizes = [16, 32], strides = [1, 1]} : vector<32x32xf32> to vector<16x32xf32>
    %125 = vector.extract_strided_slice %85 {offsets = [16, 0], sizes = [16, 32], strides = [1, 1]} : vector<32x32xf32> to vector<16x32xf32>
    %126 = vector.extract_strided_slice %89 {offsets = [16, 0], sizes = [16, 32], strides = [1, 1]} : vector<32x32xf32> to vector<16x32xf32>
    %127 = tpu.concatenate %124, %125, %126 in 0 : vector<16x32xf32>, vector<16x32xf32>, vector<16x32xf32> -> vector<48x32xf32>
    %128 = tpu.concatenate %123, %127 in 0 : vector<48x32xf32>, vector<48x32xf32> -> vector<96x32xf32>
    %129 = vector.extract_strided_slice %85 {offsets = [0, 0], sizes = [16, 32], strides = [1, 1]} : vector<32x32xf32> to vector<16x32xf32>
    %130 = vector.extract_strided_slice %89 {offsets = [0, 0], sizes = [16, 32], strides = [1, 1]} : vector<32x32xf32> to vector<16x32xf32>
    %131 = vector.extract_strided_slice %93 {offsets = [0, 0], sizes = [16, 32], strides = [1, 1]} : vector<32x32xf32> to vector<16x32xf32>
    %132 = tpu.concatenate %129, %130, %131 in 0 : vector<16x32xf32>, vector<16x32xf32>, vector<16x32xf32> -> vector<48x32xf32>
    %133 = vector.extract_strided_slice %85 {offsets = [16, 0], sizes = [16, 32], strides = [1, 1]} : vector<32x32xf32> to vector<16x32xf32>
    %134 = vector.extract_strided_slice %89 {offsets = [16, 0], sizes = [16, 32], strides = [1, 1]} : vector<32x32xf32> to vector<16x32xf32>
    %135 = vector.extract_strided_slice %93 {offsets = [16, 0], sizes = [16, 32], strides = [1, 1]} : vector<32x32xf32> to vector<16x32xf32>
    %136 = tpu.concatenate %133, %134, %135 in 0 : vector<16x32xf32>, vector<16x32xf32>, vector<16x32xf32> -> vector<48x32xf32>
    %137 = tpu.concatenate %132, %136 in 0 : vector<48x32xf32>, vector<48x32xf32> -> vector<96x32xf32>
    %138 = vector.extract_strided_slice %89 {offsets = [0, 0], sizes = [16, 32], strides = [1, 1]} : vector<32x32xf32> to vector<16x32xf32>
    %139 = vector.extract_strided_slice %93 {offsets = [0, 0], sizes = [16, 32], strides = [1, 1]} : vector<32x32xf32> to vector<16x32xf32>
    %140 = vector.extract_strided_slice %97 {offsets = [0, 0], sizes = [16, 32], strides = [1, 1]} : vector<32x32xf32> to vector<16x32xf32>
    %141 = tpu.concatenate %138, %139, %140 in 0 : vector<16x32xf32>, vector<16x32xf32>, vector<16x32xf32> -> vector<48x32xf32>
    %142 = vector.extract_strided_slice %89 {offsets = [16, 0], sizes = [16, 32], strides = [1, 1]} : vector<32x32xf32> to vector<16x32xf32>
    %143 = vector.extract_strided_slice %93 {offsets = [16, 0], sizes = [16, 32], strides = [1, 1]} : vector<32x32xf32> to vector<16x32xf32>
    %144 = vector.extract_strided_slice %97 {offsets = [16, 0], sizes = [16, 32], strides = [1, 1]} : vector<32x32xf32> to vector<16x32xf32>
    %145 = tpu.concatenate %142, %143, %144 in 0 : vector<16x32xf32>, vector<16x32xf32>, vector<16x32xf32> -> vector<48x32xf32>
    %146 = tpu.concatenate %141, %145 in 0 : vector<48x32xf32>, vector<48x32xf32> -> vector<96x32xf32>
    %147 = vector.extract_strided_slice %93 {offsets = [0, 0], sizes = [16, 32], strides = [1, 1]} : vector<32x32xf32> to vector<16x32xf32>
    %148 = vector.extract_strided_slice %97 {offsets = [0, 0], sizes = [16, 32], strides = [1, 1]} : vector<32x32xf32> to vector<16x32xf32>
    %149 = vector.extract_strided_slice %101 {offsets = [0, 0], sizes = [16, 32], strides = [1, 1]} : vector<32x32xf32> to vector<16x32xf32>
    %150 = tpu.concatenate %147, %148, %149 in 0 : vector<16x32xf32>, vector<16x32xf32>, vector<16x32xf32> -> vector<48x32xf32>
    %151 = vector.extract_strided_slice %93 {offsets = [16, 0], sizes = [16, 32], strides = [1, 1]} : vector<32x32xf32> to vector<16x32xf32>
    %152 = vector.extract_strided_slice %97 {offsets = [16, 0], sizes = [16, 32], strides = [1, 1]} : vector<32x32xf32> to vector<16x32xf32>
    %153 = vector.extract_strided_slice %101 {offsets = [16, 0], sizes = [16, 32], strides = [1, 1]} : vector<32x32xf32> to vector<16x32xf32>
    %154 = tpu.concatenate %151, %152, %153 in 0 : vector<16x32xf32>, vector<16x32xf32>, vector<16x32xf32> -> vector<48x32xf32>
    %155 = tpu.concatenate %150, %154 in 0 : vector<48x32xf32>, vector<48x32xf32> -> vector<96x32xf32>
    %156 = tpu.concatenate %110, %119, %128, %137, %146, %155 in 1 : vector<96x32xf32>, vector<96x32xf32>, vector<96x32xf32>, vector<96x32xf32>, vector<96x32xf32>, vector<96x32xf32> -> vector<96x192xf32>
    %157 = vector.extract_strided_slice %156 {offsets = [0, 0], sizes = [48, 192], strides = [1, 1]} : vector<96x192xf32> to vector<48x192xf32>
    %158 = arith.truncf %157 : vector<48x192xf32> to vector<48x192xbf16>
    %cst_15 = arith.constant dense<0.000000e+00> : vector<48x192xf32>
    %159 = tpu.matmul %0, %158, %cst_15 {dimension_numbers = #tpu.dot_dimension_numbers<[1], [0], [0], [1], [0, 0, 1, 1], [], []>} : vector<48x48xbf16>, vector<48x192xbf16>, vector<48x192xf32> -> vector<48x192xf32>
    %160 = vector.extract_strided_slice %156 {offsets = [48, 0], sizes = [48, 192], strides = [1, 1]} : vector<96x192xf32> to vector<48x192xf32>
    %161 = arith.truncf %160 : vector<48x192xf32> to vector<48x192xbf16>
    %cst_16 = arith.constant dense<0.000000e+00> : vector<48x192xf32>
    %162 = tpu.matmul %0, %161, %cst_16 {dimension_numbers = #tpu.dot_dimension_numbers<[1], [0], [0], [1], [0, 0, 1, 1], [], []>} : vector<48x48xbf16>, vector<48x192xbf16>, vector<48x192xf32> -> vector<48x192xf32>
    %163 = tpu.concatenate %159, %162 in 0 : vector<48x192xf32>, vector<48x192xf32> -> vector<96x192xf32>
    %c56 = arith.constant 56 : index
    %c0_17 = arith.constant 0 : index
    %164 = vector.load %arg2[%c56, %c0_17] : memref<160x32xf32, #tpu.memory_space<vmem>>, vector<6x32xf32>
    %c64 = arith.constant 64 : index
    %c0_18 = arith.constant 0 : index
    %165 = vector.load %arg2[%c64, %c0_18] : memref<160x32xf32, #tpu.memory_space<vmem>>, vector<6x32xf32>
    %166 = vector.extract_strided_slice %163 {offsets = [0, 0], sizes = [96, 32], strides = [1, 1]} : vector<96x192xf32> to vector<96x32xf32>
    %167 = arith.truncf %166 : vector<96x32xf32> to vector<96x32xbf16>
    %c0_19 = arith.constant 0 : index
    %c0_20 = arith.constant 0 : index
    %168 = vector.load %arg3[%c0_19, %c0_20] : memref<1280x32xbf16, #tpu.memory_space<vmem>>, vector<32x32xbf16>
    %c192 = arith.constant 192 : index
    %c0_21 = arith.constant 0 : index
    %169 = vector.load %arg3[%c192, %c0_21] : memref<1280x32xbf16, #tpu.memory_space<vmem>>, vector<32x32xbf16>
    %cst_22 = arith.constant dense<0.000000e+00> : vector<96x32xf32>
    %170 = tpu.matmul %167, %168, %cst_22 {dimension_numbers = #tpu.dot_dimension_numbers<[1], [0], [0], [1], [0, 0, 1, 1], [], []>} : vector<96x32xbf16>, vector<32x32xbf16>, vector<96x32xf32> -> vector<96x32xf32>
    %171 = vector.extract_strided_slice %164 {offsets = [0, 0], sizes = [1, 32], strides = [1, 1]} : vector<6x32xf32> to vector<1x32xf32>
    %172 = vector.broadcast %171 : vector<1x32xf32> to vector<96x32xf32>
    %173 = arith.addf %170, %172 : vector<96x32xf32>
    %cst_23 = arith.constant dense<0.000000e+00> : vector<96x32xf32>
    %174 = tpu.matmul %167, %169, %cst_23 {dimension_numbers = #tpu.dot_dimension_numbers<[1], [0], [0], [1], [0, 0, 1, 1], [], []>} : vector<96x32xbf16>, vector<32x32xbf16>, vector<96x32xf32> -> vector<96x32xf32>
    %175 = vector.extract_strided_slice %165 {offsets = [0, 0], sizes = [1, 32], strides = [1, 1]} : vector<6x32xf32> to vector<1x32xf32>
    %176 = vector.broadcast %175 : vector<1x32xf32> to vector<96x32xf32>
    %177 = arith.addf %174, %176 : vector<96x32xf32>
    %178 = arith.negf %177 : vector<96x32xf32>
    %179 = math.exp %178 : vector<96x32xf32>
    %cst_24 = arith.constant 1.000000e+00 : f32
    %180 = vector.broadcast %cst_24 : f32 to vector<96x32xf32>
    %181 = arith.addf %180, %179 : vector<96x32xf32>
    %182 = arith.divf %180, %181 : vector<96x32xf32>
    %183 = arith.mulf %173, %182 : vector<96x32xf32>
    %184 = vector.extract_strided_slice %183 {offsets = [16, 0], sizes = [16, 32], strides = [1, 1]} : vector<96x32xf32> to vector<16x32xf32>
    %185 = vector.extract_strided_slice %183 {offsets = [64, 0], sizes = [16, 32], strides = [1, 1]} : vector<96x32xf32> to vector<16x32xf32>
    %186 = tpu.concatenate %184, %185 in 0 : vector<16x32xf32>, vector<16x32xf32> -> vector<32x32xf32>
    %187 = vector.extract_strided_slice %163 {offsets = [0, 32], sizes = [96, 32], strides = [1, 1]} : vector<96x192xf32> to vector<96x32xf32>
    %188 = arith.truncf %187 : vector<96x32xf32> to vector<96x32xbf16>
    %c32 = arith.constant 32 : index
    %c0_25 = arith.constant 0 : index
    %189 = vector.load %arg3[%c32, %c0_25] : memref<1280x32xbf16, #tpu.memory_space<vmem>>, vector<32x32xbf16>
    %c224 = arith.constant 224 : index
    %c0_26 = arith.constant 0 : index
    %190 = vector.load %arg3[%c224, %c0_26] : memref<1280x32xbf16, #tpu.memory_space<vmem>>, vector<32x32xbf16>
    %cst_27 = arith.constant dense<0.000000e+00> : vector<96x32xf32>
    %191 = tpu.matmul %188, %189, %cst_27 {dimension_numbers = #tpu.dot_dimension_numbers<[1], [0], [0], [1], [0, 0, 1, 1], [], []>} : vector<96x32xbf16>, vector<32x32xbf16>, vector<96x32xf32> -> vector<96x32xf32>
    %192 = vector.extract_strided_slice %164 {offsets = [1, 0], sizes = [1, 32], strides = [1, 1]} : vector<6x32xf32> to vector<1x32xf32>
    %193 = vector.broadcast %192 : vector<1x32xf32> to vector<96x32xf32>
    %194 = arith.addf %191, %193 : vector<96x32xf32>
    %cst_28 = arith.constant dense<0.000000e+00> : vector<96x32xf32>
    %195 = tpu.matmul %188, %190, %cst_28 {dimension_numbers = #tpu.dot_dimension_numbers<[1], [0], [0], [1], [0, 0, 1, 1], [], []>} : vector<96x32xbf16>, vector<32x32xbf16>, vector<96x32xf32> -> vector<96x32xf32>
    %196 = vector.extract_strided_slice %165 {offsets = [1, 0], sizes = [1, 32], strides = [1, 1]} : vector<6x32xf32> to vector<1x32xf32>
    %197 = vector.broadcast %196 : vector<1x32xf32> to vector<96x32xf32>
    %198 = arith.addf %195, %197 : vector<96x32xf32>
    %199 = arith.negf %198 : vector<96x32xf32>
    %200 = math.exp %199 : vector<96x32xf32>
    %cst_29 = arith.constant 1.000000e+00 : f32
    %201 = vector.broadcast %cst_29 : f32 to vector<96x32xf32>
    %202 = arith.addf %201, %200 : vector<96x32xf32>
    %203 = arith.divf %201, %202 : vector<96x32xf32>
    %204 = arith.mulf %194, %203 : vector<96x32xf32>
    %205 = vector.extract_strided_slice %204 {offsets = [16, 0], sizes = [16, 32], strides = [1, 1]} : vector<96x32xf32> to vector<16x32xf32>
    %206 = vector.extract_strided_slice %204 {offsets = [64, 0], sizes = [16, 32], strides = [1, 1]} : vector<96x32xf32> to vector<16x32xf32>
    %207 = tpu.concatenate %205, %206 in 0 : vector<16x32xf32>, vector<16x32xf32> -> vector<32x32xf32>
    %208 = vector.extract_strided_slice %163 {offsets = [0, 64], sizes = [96, 32], strides = [1, 1]} : vector<96x192xf32> to vector<96x32xf32>
    %209 = arith.truncf %208 : vector<96x32xf32> to vector<96x32xbf16>
    %c64_30 = arith.constant 64 : index
    %c0_31 = arith.constant 0 : index
    %210 = vector.load %arg3[%c64_30, %c0_31] : memref<1280x32xbf16, #tpu.memory_space<vmem>>, vector<32x32xbf16>
    %c256 = arith.constant 256 : index
    %c0_32 = arith.constant 0 : index
    %211 = vector.load %arg3[%c256, %c0_32] : memref<1280x32xbf16, #tpu.memory_space<vmem>>, vector<32x32xbf16>
    %cst_33 = arith.constant dense<0.000000e+00> : vector<96x32xf32>
    %212 = tpu.matmul %209, %210, %cst_33 {dimension_numbers = #tpu.dot_dimension_numbers<[1], [0], [0], [1], [0, 0, 1, 1], [], []>} : vector<96x32xbf16>, vector<32x32xbf16>, vector<96x32xf32> -> vector<96x32xf32>
    %213 = vector.extract_strided_slice %164 {offsets = [2, 0], sizes = [1, 32], strides = [1, 1]} : vector<6x32xf32> to vector<1x32xf32>
    %214 = vector.broadcast %213 : vector<1x32xf32> to vector<96x32xf32>
    %215 = arith.addf %212, %214 : vector<96x32xf32>
    %cst_34 = arith.constant dense<0.000000e+00> : vector<96x32xf32>
    %216 = tpu.matmul %209, %211, %cst_34 {dimension_numbers = #tpu.dot_dimension_numbers<[1], [0], [0], [1], [0, 0, 1, 1], [], []>} : vector<96x32xbf16>, vector<32x32xbf16>, vector<96x32xf32> -> vector<96x32xf32>
    %217 = vector.extract_strided_slice %165 {offsets = [2, 0], sizes = [1, 32], strides = [1, 1]} : vector<6x32xf32> to vector<1x32xf32>
    %218 = vector.broadcast %217 : vector<1x32xf32> to vector<96x32xf32>
    %219 = arith.addf %216, %218 : vector<96x32xf32>
    %220 = arith.negf %219 : vector<96x32xf32>
    %221 = math.exp %220 : vector<96x32xf32>
    %cst_35 = arith.constant 1.000000e+00 : f32
    %222 = vector.broadcast %cst_35 : f32 to vector<96x32xf32>
    %223 = arith.addf %222, %221 : vector<96x32xf32>
    %224 = arith.divf %222, %223 : vector<96x32xf32>
    %225 = arith.mulf %215, %224 : vector<96x32xf32>
    %226 = vector.extract_strided_slice %225 {offsets = [16, 0], sizes = [16, 32], strides = [1, 1]} : vector<96x32xf32> to vector<16x32xf32>
    %227 = vector.extract_strided_slice %225 {offsets = [64, 0], sizes = [16, 32], strides = [1, 1]} : vector<96x32xf32> to vector<16x32xf32>
    %228 = tpu.concatenate %226, %227 in 0 : vector<16x32xf32>, vector<16x32xf32> -> vector<32x32xf32>
    %229 = vector.extract_strided_slice %163 {offsets = [0, 96], sizes = [96, 32], strides = [1, 1]} : vector<96x192xf32> to vector<96x32xf32>
    %230 = arith.truncf %229 : vector<96x32xf32> to vector<96x32xbf16>
    %c96 = arith.constant 96 : index
    %c0_36 = arith.constant 0 : index
    %231 = vector.load %arg3[%c96, %c0_36] : memref<1280x32xbf16, #tpu.memory_space<vmem>>, vector<32x32xbf16>
    %c288 = arith.constant 288 : index
    %c0_37 = arith.constant 0 : index
    %232 = vector.load %arg3[%c288, %c0_37] : memref<1280x32xbf16, #tpu.memory_space<vmem>>, vector<32x32xbf16>
    %cst_38 = arith.constant dense<0.000000e+00> : vector<96x32xf32>
    %233 = tpu.matmul %230, %231, %cst_38 {dimension_numbers = #tpu.dot_dimension_numbers<[1], [0], [0], [1], [0, 0, 1, 1], [], []>} : vector<96x32xbf16>, vector<32x32xbf16>, vector<96x32xf32> -> vector<96x32xf32>
    %234 = vector.extract_strided_slice %164 {offsets = [3, 0], sizes = [1, 32], strides = [1, 1]} : vector<6x32xf32> to vector<1x32xf32>
    %235 = vector.broadcast %234 : vector<1x32xf32> to vector<96x32xf32>
    %236 = arith.addf %233, %235 : vector<96x32xf32>
    %cst_39 = arith.constant dense<0.000000e+00> : vector<96x32xf32>
    %237 = tpu.matmul %230, %232, %cst_39 {dimension_numbers = #tpu.dot_dimension_numbers<[1], [0], [0], [1], [0, 0, 1, 1], [], []>} : vector<96x32xbf16>, vector<32x32xbf16>, vector<96x32xf32> -> vector<96x32xf32>
    %238 = vector.extract_strided_slice %165 {offsets = [3, 0], sizes = [1, 32], strides = [1, 1]} : vector<6x32xf32> to vector<1x32xf32>
    %239 = vector.broadcast %238 : vector<1x32xf32> to vector<96x32xf32>
    %240 = arith.addf %237, %239 : vector<96x32xf32>
    %241 = arith.negf %240 : vector<96x32xf32>
    %242 = math.exp %241 : vector<96x32xf32>
    %cst_40 = arith.constant 1.000000e+00 : f32
    %243 = vector.broadcast %cst_40 : f32 to vector<96x32xf32>
    %244 = arith.addf %243, %242 : vector<96x32xf32>
    %245 = arith.divf %243, %244 : vector<96x32xf32>
    %246 = arith.mulf %236, %245 : vector<96x32xf32>
    %247 = vector.extract_strided_slice %246 {offsets = [16, 0], sizes = [16, 32], strides = [1, 1]} : vector<96x32xf32> to vector<16x32xf32>
    %248 = vector.extract_strided_slice %246 {offsets = [64, 0], sizes = [16, 32], strides = [1, 1]} : vector<96x32xf32> to vector<16x32xf32>
    %249 = tpu.concatenate %247, %248 in 0 : vector<16x32xf32>, vector<16x32xf32> -> vector<32x32xf32>
    %250 = vector.extract_strided_slice %163 {offsets = [0, 128], sizes = [96, 32], strides = [1, 1]} : vector<96x192xf32> to vector<96x32xf32>
    %251 = arith.truncf %250 : vector<96x32xf32> to vector<96x32xbf16>
    %c128 = arith.constant 128 : index
    %c0_41 = arith.constant 0 : index
    %252 = vector.load %arg3[%c128, %c0_41] : memref<1280x32xbf16, #tpu.memory_space<vmem>>, vector<32x32xbf16>
    %c320 = arith.constant 320 : index
    %c0_42 = arith.constant 0 : index
    %253 = vector.load %arg3[%c320, %c0_42] : memref<1280x32xbf16, #tpu.memory_space<vmem>>, vector<32x32xbf16>
    %cst_43 = arith.constant dense<0.000000e+00> : vector<96x32xf32>
    %254 = tpu.matmul %251, %252, %cst_43 {dimension_numbers = #tpu.dot_dimension_numbers<[1], [0], [0], [1], [0, 0, 1, 1], [], []>} : vector<96x32xbf16>, vector<32x32xbf16>, vector<96x32xf32> -> vector<96x32xf32>
    %255 = vector.extract_strided_slice %164 {offsets = [4, 0], sizes = [1, 32], strides = [1, 1]} : vector<6x32xf32> to vector<1x32xf32>
    %256 = vector.broadcast %255 : vector<1x32xf32> to vector<96x32xf32>
    %257 = arith.addf %254, %256 : vector<96x32xf32>
    %cst_44 = arith.constant dense<0.000000e+00> : vector<96x32xf32>
    %258 = tpu.matmul %251, %253, %cst_44 {dimension_numbers = #tpu.dot_dimension_numbers<[1], [0], [0], [1], [0, 0, 1, 1], [], []>} : vector<96x32xbf16>, vector<32x32xbf16>, vector<96x32xf32> -> vector<96x32xf32>
    %259 = vector.extract_strided_slice %165 {offsets = [4, 0], sizes = [1, 32], strides = [1, 1]} : vector<6x32xf32> to vector<1x32xf32>
    %260 = vector.broadcast %259 : vector<1x32xf32> to vector<96x32xf32>
    %261 = arith.addf %258, %260 : vector<96x32xf32>
    %262 = arith.negf %261 : vector<96x32xf32>
    %263 = math.exp %262 : vector<96x32xf32>
    %cst_45 = arith.constant 1.000000e+00 : f32
    %264 = vector.broadcast %cst_45 : f32 to vector<96x32xf32>
    %265 = arith.addf %264, %263 : vector<96x32xf32>
    %266 = arith.divf %264, %265 : vector<96x32xf32>
    %267 = arith.mulf %257, %266 : vector<96x32xf32>
    %268 = vector.extract_strided_slice %267 {offsets = [16, 0], sizes = [16, 32], strides = [1, 1]} : vector<96x32xf32> to vector<16x32xf32>
    %269 = vector.extract_strided_slice %267 {offsets = [64, 0], sizes = [16, 32], strides = [1, 1]} : vector<96x32xf32> to vector<16x32xf32>
    %270 = tpu.concatenate %268, %269 in 0 : vector<16x32xf32>, vector<16x32xf32> -> vector<32x32xf32>
    %271 = vector.extract_strided_slice %163 {offsets = [0, 160], sizes = [96, 32], strides = [1, 1]} : vector<96x192xf32> to vector<96x32xf32>
    %272 = arith.truncf %271 : vector<96x32xf32> to vector<96x32xbf16>
    %c160 = arith.constant 160 : index
    %c0_46 = arith.constant 0 : index
    %273 = vector.load %arg3[%c160, %c0_46] : memref<1280x32xbf16, #tpu.memory_space<vmem>>, vector<32x32xbf16>
    %c352 = arith.constant 352 : index
    %c0_47 = arith.constant 0 : index
    %274 = vector.load %arg3[%c352, %c0_47] : memref<1280x32xbf16, #tpu.memory_space<vmem>>, vector<32x32xbf16>
    %cst_48 = arith.constant dense<0.000000e+00> : vector<96x32xf32>
    %275 = tpu.matmul %272, %273, %cst_48 {dimension_numbers = #tpu.dot_dimension_numbers<[1], [0], [0], [1], [0, 0, 1, 1], [], []>} : vector<96x32xbf16>, vector<32x32xbf16>, vector<96x32xf32> -> vector<96x32xf32>
    %276 = vector.extract_strided_slice %164 {offsets = [5, 0], sizes = [1, 32], strides = [1, 1]} : vector<6x32xf32> to vector<1x32xf32>
    %277 = vector.broadcast %276 : vector<1x32xf32> to vector<96x32xf32>
    %278 = arith.addf %275, %277 : vector<96x32xf32>
    %cst_49 = arith.constant dense<0.000000e+00> : vector<96x32xf32>
    %279 = tpu.matmul %272, %274, %cst_49 {dimension_numbers = #tpu.dot_dimension_numbers<[1], [0], [0], [1], [0, 0, 1, 1], [], []>} : vector<96x32xbf16>, vector<32x32xbf16>, vector<96x32xf32> -> vector<96x32xf32>
    %280 = vector.extract_strided_slice %165 {offsets = [5, 0], sizes = [1, 32], strides = [1, 1]} : vector<6x32xf32> to vector<1x32xf32>
    %281 = vector.broadcast %280 : vector<1x32xf32> to vector<96x32xf32>
    %282 = arith.addf %279, %281 : vector<96x32xf32>
    %283 = arith.negf %282 : vector<96x32xf32>
    %284 = math.exp %283 : vector<96x32xf32>
    %cst_50 = arith.constant 1.000000e+00 : f32
    %285 = vector.broadcast %cst_50 : f32 to vector<96x32xf32>
    %286 = arith.addf %285, %284 : vector<96x32xf32>
    %287 = arith.divf %285, %286 : vector<96x32xf32>
    %288 = arith.mulf %278, %287 : vector<96x32xf32>
    %289 = vector.extract_strided_slice %288 {offsets = [16, 0], sizes = [16, 32], strides = [1, 1]} : vector<96x32xf32> to vector<16x32xf32>
    %290 = vector.extract_strided_slice %288 {offsets = [64, 0], sizes = [16, 32], strides = [1, 1]} : vector<96x32xf32> to vector<16x32xf32>
    %291 = tpu.concatenate %289, %290 in 0 : vector<16x32xf32>, vector<16x32xf32> -> vector<32x32xf32>
    %292 = tpu.concatenate %183, %204, %225, %246, %267, %288 in 1 : vector<96x32xf32>, vector<96x32xf32>, vector<96x32xf32>, vector<96x32xf32>, vector<96x32xf32>, vector<96x32xf32> -> vector<96x192xf32>
    %293 = vector.extract_strided_slice %292 {offsets = [0, 0], sizes = [48, 192], strides = [1, 1]} : vector<96x192xf32> to vector<48x192xf32>
    %294 = arith.truncf %293 : vector<48x192xf32> to vector<48x192xbf16>
    %cst_51 = arith.constant dense<0.000000e+00> : vector<48x192xf32>
    %295 = tpu.matmul %0, %294, %cst_51 {dimension_numbers = #tpu.dot_dimension_numbers<[1], [0], [0], [1], [0, 0, 1, 1], [], []>} : vector<48x48xbf16>, vector<48x192xbf16>, vector<48x192xf32> -> vector<48x192xf32>
    %296 = vector.extract_strided_slice %292 {offsets = [48, 0], sizes = [48, 192], strides = [1, 1]} : vector<96x192xf32> to vector<48x192xf32>
    %297 = arith.truncf %296 : vector<48x192xf32> to vector<48x192xbf16>
    %cst_52 = arith.constant dense<0.000000e+00> : vector<48x192xf32>
    %298 = tpu.matmul %0, %297, %cst_52 {dimension_numbers = #tpu.dot_dimension_numbers<[1], [0], [0], [1], [0, 0, 1, 1], [], []>} : vector<48x48xbf16>, vector<48x192xbf16>, vector<48x192xf32> -> vector<48x192xf32>
    %299 = tpu.concatenate %295, %298 in 0 : vector<48x192xf32>, vector<48x192xf32> -> vector<96x192xf32>
    %c72 = arith.constant 72 : index
    %c0_53 = arith.constant 0 : index
    %300 = vector.load %arg2[%c72, %c0_53] : memref<160x32xf32, #tpu.memory_space<vmem>>, vector<6x32xf32>
    %c80 = arith.constant 80 : index
    %c0_54 = arith.constant 0 : index
    %301 = vector.load %arg2[%c80, %c0_54] : memref<160x32xf32, #tpu.memory_space<vmem>>, vector<6x32xf32>
    %302 = vector.extract_strided_slice %299 {offsets = [0, 0], sizes = [96, 32], strides = [1, 1]} : vector<96x192xf32> to vector<96x32xf32>
    %303 = arith.truncf %302 : vector<96x32xf32> to vector<96x32xbf16>
    %c384 = arith.constant 384 : index
    %c0_55 = arith.constant 0 : index
    %304 = vector.load %arg3[%c384, %c0_55] : memref<1280x32xbf16, #tpu.memory_space<vmem>>, vector<32x32xbf16>
    %c576 = arith.constant 576 : index
    %c0_56 = arith.constant 0 : index
    %305 = vector.load %arg3[%c576, %c0_56] : memref<1280x32xbf16, #tpu.memory_space<vmem>>, vector<32x32xbf16>
    %cst_57 = arith.constant dense<0.000000e+00> : vector<96x32xf32>
    %306 = tpu.matmul %303, %304, %cst_57 {dimension_numbers = #tpu.dot_dimension_numbers<[1], [0], [0], [1], [0, 0, 1, 1], [], []>} : vector<96x32xbf16>, vector<32x32xbf16>, vector<96x32xf32> -> vector<96x32xf32>
    %307 = vector.extract_strided_slice %300 {offsets = [0, 0], sizes = [1, 32], strides = [1, 1]} : vector<6x32xf32> to vector<1x32xf32>
    %308 = vector.broadcast %307 : vector<1x32xf32> to vector<96x32xf32>
    %309 = arith.addf %306, %308 : vector<96x32xf32>
    %cst_58 = arith.constant dense<0.000000e+00> : vector<96x32xf32>
    %310 = tpu.matmul %303, %305, %cst_58 {dimension_numbers = #tpu.dot_dimension_numbers<[1], [0], [0], [1], [0, 0, 1, 1], [], []>} : vector<96x32xbf16>, vector<32x32xbf16>, vector<96x32xf32> -> vector<96x32xf32>
    %311 = vector.extract_strided_slice %301 {offsets = [0, 0], sizes = [1, 32], strides = [1, 1]} : vector<6x32xf32> to vector<1x32xf32>
    %312 = vector.broadcast %311 : vector<1x32xf32> to vector<96x32xf32>
    %313 = arith.addf %310, %312 : vector<96x32xf32>
    %314 = arith.negf %313 : vector<96x32xf32>
    %315 = math.exp %314 : vector<96x32xf32>
    %cst_59 = arith.constant 1.000000e+00 : f32
    %316 = vector.broadcast %cst_59 : f32 to vector<96x32xf32>
    %317 = arith.addf %316, %315 : vector<96x32xf32>
    %318 = arith.divf %316, %317 : vector<96x32xf32>
    %319 = arith.mulf %309, %318 : vector<96x32xf32>
    %320 = vector.extract_strided_slice %319 {offsets = [16, 0], sizes = [16, 32], strides = [1, 1]} : vector<96x32xf32> to vector<16x32xf32>
    %321 = vector.extract_strided_slice %319 {offsets = [64, 0], sizes = [16, 32], strides = [1, 1]} : vector<96x32xf32> to vector<16x32xf32>
    %322 = tpu.concatenate %320, %321 in 0 : vector<16x32xf32>, vector<16x32xf32> -> vector<32x32xf32>
    %323 = arith.maximumf %186, %322 : vector<32x32xf32>
    %324 = vector.extract_strided_slice %299 {offsets = [0, 32], sizes = [96, 32], strides = [1, 1]} : vector<96x192xf32> to vector<96x32xf32>
    %325 = arith.truncf %324 : vector<96x32xf32> to vector<96x32xbf16>
    %c416 = arith.constant 416 : index
    %c0_60 = arith.constant 0 : index
    %326 = vector.load %arg3[%c416, %c0_60] : memref<1280x32xbf16, #tpu.memory_space<vmem>>, vector<32x32xbf16>
    %c608 = arith.constant 608 : index
    %c0_61 = arith.constant 0 : index
    %327 = vector.load %arg3[%c608, %c0_61] : memref<1280x32xbf16, #tpu.memory_space<vmem>>, vector<32x32xbf16>
    %cst_62 = arith.constant dense<0.000000e+00> : vector<96x32xf32>
    %328 = tpu.matmul %325, %326, %cst_62 {dimension_numbers = #tpu.dot_dimension_numbers<[1], [0], [0], [1], [0, 0, 1, 1], [], []>} : vector<96x32xbf16>, vector<32x32xbf16>, vector<96x32xf32> -> vector<96x32xf32>
    %329 = vector.extract_strided_slice %300 {offsets = [1, 0], sizes = [1, 32], strides = [1, 1]} : vector<6x32xf32> to vector<1x32xf32>
    %330 = vector.broadcast %329 : vector<1x32xf32> to vector<96x32xf32>
    %331 = arith.addf %328, %330 : vector<96x32xf32>
    %cst_63 = arith.constant dense<0.000000e+00> : vector<96x32xf32>
    %332 = tpu.matmul %325, %327, %cst_63 {dimension_numbers = #tpu.dot_dimension_numbers<[1], [0], [0], [1], [0, 0, 1, 1], [], []>} : vector<96x32xbf16>, vector<32x32xbf16>, vector<96x32xf32> -> vector<96x32xf32>
    %333 = vector.extract_strided_slice %301 {offsets = [1, 0], sizes = [1, 32], strides = [1, 1]} : vector<6x32xf32> to vector<1x32xf32>
    %334 = vector.broadcast %333 : vector<1x32xf32> to vector<96x32xf32>
    %335 = arith.addf %332, %334 : vector<96x32xf32>
    %336 = arith.negf %335 : vector<96x32xf32>
    %337 = math.exp %336 : vector<96x32xf32>
    %cst_64 = arith.constant 1.000000e+00 : f32
    %338 = vector.broadcast %cst_64 : f32 to vector<96x32xf32>
    %339 = arith.addf %338, %337 : vector<96x32xf32>
    %340 = arith.divf %338, %339 : vector<96x32xf32>
    %341 = arith.mulf %331, %340 : vector<96x32xf32>
    %342 = vector.extract_strided_slice %341 {offsets = [16, 0], sizes = [16, 32], strides = [1, 1]} : vector<96x32xf32> to vector<16x32xf32>
    %343 = vector.extract_strided_slice %341 {offsets = [64, 0], sizes = [16, 32], strides = [1, 1]} : vector<96x32xf32> to vector<16x32xf32>
    %344 = tpu.concatenate %342, %343 in 0 : vector<16x32xf32>, vector<16x32xf32> -> vector<32x32xf32>
    %345 = arith.maximumf %207, %344 : vector<32x32xf32>
    %346 = vector.extract_strided_slice %299 {offsets = [0, 64], sizes = [96, 32], strides = [1, 1]} : vector<96x192xf32> to vector<96x32xf32>
    %347 = arith.truncf %346 : vector<96x32xf32> to vector<96x32xbf16>
    %c448 = arith.constant 448 : index
    %c0_65 = arith.constant 0 : index
    %348 = vector.load %arg3[%c448, %c0_65] : memref<1280x32xbf16, #tpu.memory_space<vmem>>, vector<32x32xbf16>
    %c640 = arith.constant 640 : index
    %c0_66 = arith.constant 0 : index
    %349 = vector.load %arg3[%c640, %c0_66] : memref<1280x32xbf16, #tpu.memory_space<vmem>>, vector<32x32xbf16>
    %cst_67 = arith.constant dense<0.000000e+00> : vector<96x32xf32>
    %350 = tpu.matmul %347, %348, %cst_67 {dimension_numbers = #tpu.dot_dimension_numbers<[1], [0], [0], [1], [0, 0, 1, 1], [], []>} : vector<96x32xbf16>, vector<32x32xbf16>, vector<96x32xf32> -> vector<96x32xf32>
    %351 = vector.extract_strided_slice %300 {offsets = [2, 0], sizes = [1, 32], strides = [1, 1]} : vector<6x32xf32> to vector<1x32xf32>
    %352 = vector.broadcast %351 : vector<1x32xf32> to vector<96x32xf32>
    %353 = arith.addf %350, %352 : vector<96x32xf32>
    %cst_68 = arith.constant dense<0.000000e+00> : vector<96x32xf32>
    %354 = tpu.matmul %347, %349, %cst_68 {dimension_numbers = #tpu.dot_dimension_numbers<[1], [0], [0], [1], [0, 0, 1, 1], [], []>} : vector<96x32xbf16>, vector<32x32xbf16>, vector<96x32xf32> -> vector<96x32xf32>
    %355 = vector.extract_strided_slice %301 {offsets = [2, 0], sizes = [1, 32], strides = [1, 1]} : vector<6x32xf32> to vector<1x32xf32>
    %356 = vector.broadcast %355 : vector<1x32xf32> to vector<96x32xf32>
    %357 = arith.addf %354, %356 : vector<96x32xf32>
    %358 = arith.negf %357 : vector<96x32xf32>
    %359 = math.exp %358 : vector<96x32xf32>
    %cst_69 = arith.constant 1.000000e+00 : f32
    %360 = vector.broadcast %cst_69 : f32 to vector<96x32xf32>
    %361 = arith.addf %360, %359 : vector<96x32xf32>
    %362 = arith.divf %360, %361 : vector<96x32xf32>
    %363 = arith.mulf %353, %362 : vector<96x32xf32>
    %364 = vector.extract_strided_slice %363 {offsets = [16, 0], sizes = [16, 32], strides = [1, 1]} : vector<96x32xf32> to vector<16x32xf32>
    %365 = vector.extract_strided_slice %363 {offsets = [64, 0], sizes = [16, 32], strides = [1, 1]} : vector<96x32xf32> to vector<16x32xf32>
    %366 = tpu.concatenate %364, %365 in 0 : vector<16x32xf32>, vector<16x32xf32> -> vector<32x32xf32>
    %367 = arith.maximumf %228, %366 : vector<32x32xf32>
    %368 = vector.extract_strided_slice %299 {offsets = [0, 96], sizes = [96, 32], strides = [1, 1]} : vector<96x192xf32> to vector<96x32xf32>
    %369 = arith.truncf %368 : vector<96x32xf32> to vector<96x32xbf16>
    %c480 = arith.constant 480 : index
    %c0_70 = arith.constant 0 : index
    %370 = vector.load %arg3[%c480, %c0_70] : memref<1280x32xbf16, #tpu.memory_space<vmem>>, vector<32x32xbf16>
    %c672 = arith.constant 672 : index
    %c0_71 = arith.constant 0 : index
    %371 = vector.load %arg3[%c672, %c0_71] : memref<1280x32xbf16, #tpu.memory_space<vmem>>, vector<32x32xbf16>
    %cst_72 = arith.constant dense<0.000000e+00> : vector<96x32xf32>
    %372 = tpu.matmul %369, %370, %cst_72 {dimension_numbers = #tpu.dot_dimension_numbers<[1], [0], [0], [1], [0, 0, 1, 1], [], []>} : vector<96x32xbf16>, vector<32x32xbf16>, vector<96x32xf32> -> vector<96x32xf32>
    %373 = vector.extract_strided_slice %300 {offsets = [3, 0], sizes = [1, 32], strides = [1, 1]} : vector<6x32xf32> to vector<1x32xf32>
    %374 = vector.broadcast %373 : vector<1x32xf32> to vector<96x32xf32>
    %375 = arith.addf %372, %374 : vector<96x32xf32>
    %cst_73 = arith.constant dense<0.000000e+00> : vector<96x32xf32>
    %376 = tpu.matmul %369, %371, %cst_73 {dimension_numbers = #tpu.dot_dimension_numbers<[1], [0], [0], [1], [0, 0, 1, 1], [], []>} : vector<96x32xbf16>, vector<32x32xbf16>, vector<96x32xf32> -> vector<96x32xf32>
    %377 = vector.extract_strided_slice %301 {offsets = [3, 0], sizes = [1, 32], strides = [1, 1]} : vector<6x32xf32> to vector<1x32xf32>
    %378 = vector.broadcast %377 : vector<1x32xf32> to vector<96x32xf32>
    %379 = arith.addf %376, %378 : vector<96x32xf32>
    %380 = arith.negf %379 : vector<96x32xf32>
    %381 = math.exp %380 : vector<96x32xf32>
    %cst_74 = arith.constant 1.000000e+00 : f32
    %382 = vector.broadcast %cst_74 : f32 to vector<96x32xf32>
    %383 = arith.addf %382, %381 : vector<96x32xf32>
    %384 = arith.divf %382, %383 : vector<96x32xf32>
    %385 = arith.mulf %375, %384 : vector<96x32xf32>
    %386 = vector.extract_strided_slice %385 {offsets = [16, 0], sizes = [16, 32], strides = [1, 1]} : vector<96x32xf32> to vector<16x32xf32>
    %387 = vector.extract_strided_slice %385 {offsets = [64, 0], sizes = [16, 32], strides = [1, 1]} : vector<96x32xf32> to vector<16x32xf32>
    %388 = tpu.concatenate %386, %387 in 0 : vector<16x32xf32>, vector<16x32xf32> -> vector<32x32xf32>
    %389 = arith.maximumf %249, %388 : vector<32x32xf32>
    %390 = vector.extract_strided_slice %299 {offsets = [0, 128], sizes = [96, 32], strides = [1, 1]} : vector<96x192xf32> to vector<96x32xf32>
    %391 = arith.truncf %390 : vector<96x32xf32> to vector<96x32xbf16>
    %c512 = arith.constant 512 : index
    %c0_75 = arith.constant 0 : index
    %392 = vector.load %arg3[%c512, %c0_75] : memref<1280x32xbf16, #tpu.memory_space<vmem>>, vector<32x32xbf16>
    %c704 = arith.constant 704 : index
    %c0_76 = arith.constant 0 : index
    %393 = vector.load %arg3[%c704, %c0_76] : memref<1280x32xbf16, #tpu.memory_space<vmem>>, vector<32x32xbf16>
    %cst_77 = arith.constant dense<0.000000e+00> : vector<96x32xf32>
    %394 = tpu.matmul %391, %392, %cst_77 {dimension_numbers = #tpu.dot_dimension_numbers<[1], [0], [0], [1], [0, 0, 1, 1], [], []>} : vector<96x32xbf16>, vector<32x32xbf16>, vector<96x32xf32> -> vector<96x32xf32>
    %395 = vector.extract_strided_slice %300 {offsets = [4, 0], sizes = [1, 32], strides = [1, 1]} : vector<6x32xf32> to vector<1x32xf32>
    %396 = vector.broadcast %395 : vector<1x32xf32> to vector<96x32xf32>
    %397 = arith.addf %394, %396 : vector<96x32xf32>
    %cst_78 = arith.constant dense<0.000000e+00> : vector<96x32xf32>
    %398 = tpu.matmul %391, %393, %cst_78 {dimension_numbers = #tpu.dot_dimension_numbers<[1], [0], [0], [1], [0, 0, 1, 1], [], []>} : vector<96x32xbf16>, vector<32x32xbf16>, vector<96x32xf32> -> vector<96x32xf32>
    %399 = vector.extract_strided_slice %301 {offsets = [4, 0], sizes = [1, 32], strides = [1, 1]} : vector<6x32xf32> to vector<1x32xf32>
    %400 = vector.broadcast %399 : vector<1x32xf32> to vector<96x32xf32>
    %401 = arith.addf %398, %400 : vector<96x32xf32>
    %402 = arith.negf %401 : vector<96x32xf32>
    %403 = math.exp %402 : vector<96x32xf32>
    %cst_79 = arith.constant 1.000000e+00 : f32
    %404 = vector.broadcast %cst_79 : f32 to vector<96x32xf32>
    %405 = arith.addf %404, %403 : vector<96x32xf32>
    %406 = arith.divf %404, %405 : vector<96x32xf32>
    %407 = arith.mulf %397, %406 : vector<96x32xf32>
    %408 = vector.extract_strided_slice %407 {offsets = [16, 0], sizes = [16, 32], strides = [1, 1]} : vector<96x32xf32> to vector<16x32xf32>
    %409 = vector.extract_strided_slice %407 {offsets = [64, 0], sizes = [16, 32], strides = [1, 1]} : vector<96x32xf32> to vector<16x32xf32>
    %410 = tpu.concatenate %408, %409 in 0 : vector<16x32xf32>, vector<16x32xf32> -> vector<32x32xf32>
    %411 = arith.maximumf %270, %410 : vector<32x32xf32>
    %412 = vector.extract_strided_slice %299 {offsets = [0, 160], sizes = [96, 32], strides = [1, 1]} : vector<96x192xf32> to vector<96x32xf32>
    %413 = arith.truncf %412 : vector<96x32xf32> to vector<96x32xbf16>
    %c544 = arith.constant 544 : index
    %c0_80 = arith.constant 0 : index
    %414 = vector.load %arg3[%c544, %c0_80] : memref<1280x32xbf16, #tpu.memory_space<vmem>>, vector<32x32xbf16>
    %c736 = arith.constant 736 : index
    %c0_81 = arith.constant 0 : index
    %415 = vector.load %arg3[%c736, %c0_81] : memref<1280x32xbf16, #tpu.memory_space<vmem>>, vector<32x32xbf16>
    %cst_82 = arith.constant dense<0.000000e+00> : vector<96x32xf32>
    %416 = tpu.matmul %413, %414, %cst_82 {dimension_numbers = #tpu.dot_dimension_numbers<[1], [0], [0], [1], [0, 0, 1, 1], [], []>} : vector<96x32xbf16>, vector<32x32xbf16>, vector<96x32xf32> -> vector<96x32xf32>
    %417 = vector.extract_strided_slice %300 {offsets = [5, 0], sizes = [1, 32], strides = [1, 1]} : vector<6x32xf32> to vector<1x32xf32>
    %418 = vector.broadcast %417 : vector<1x32xf32> to vector<96x32xf32>
    %419 = arith.addf %416, %418 : vector<96x32xf32>
    %cst_83 = arith.constant dense<0.000000e+00> : vector<96x32xf32>
    %420 = tpu.matmul %413, %415, %cst_83 {dimension_numbers = #tpu.dot_dimension_numbers<[1], [0], [0], [1], [0, 0, 1, 1], [], []>} : vector<96x32xbf16>, vector<32x32xbf16>, vector<96x32xf32> -> vector<96x32xf32>
    %421 = vector.extract_strided_slice %301 {offsets = [5, 0], sizes = [1, 32], strides = [1, 1]} : vector<6x32xf32> to vector<1x32xf32>
    %422 = vector.broadcast %421 : vector<1x32xf32> to vector<96x32xf32>
    %423 = arith.addf %420, %422 : vector<96x32xf32>
    %424 = arith.negf %423 : vector<96x32xf32>
    %425 = math.exp %424 : vector<96x32xf32>
    %cst_84 = arith.constant 1.000000e+00 : f32
    %426 = vector.broadcast %cst_84 : f32 to vector<96x32xf32>
    %427 = arith.addf %426, %425 : vector<96x32xf32>
    %428 = arith.divf %426, %427 : vector<96x32xf32>
    %429 = arith.mulf %419, %428 : vector<96x32xf32>
    %430 = vector.extract_strided_slice %429 {offsets = [16, 0], sizes = [16, 32], strides = [1, 1]} : vector<96x32xf32> to vector<16x32xf32>
    %431 = vector.extract_strided_slice %429 {offsets = [64, 0], sizes = [16, 32], strides = [1, 1]} : vector<96x32xf32> to vector<16x32xf32>
    %432 = tpu.concatenate %430, %431 in 0 : vector<16x32xf32>, vector<16x32xf32> -> vector<32x32xf32>
    %433 = arith.maximumf %291, %432 : vector<32x32xf32>
    %c88 = arith.constant 88 : index
    %c0_85 = arith.constant 0 : index
    %434 = vector.load %arg2[%c88, %c0_85] : memref<160x32xf32, #tpu.memory_space<vmem>>, vector<6x32xf32>
    %c96_86 = arith.constant 96 : index
    %c0_87 = arith.constant 0 : index
    %435 = vector.load %arg2[%c96_86, %c0_87] : memref<160x32xf32, #tpu.memory_space<vmem>>, vector<32x32xf32>
    %436 = vector.extract_strided_slice %434 {offsets = [0, 0], sizes = [1, 32], strides = [1, 1]} : vector<6x32xf32> to vector<1x32xf32>
    %437 = vector.broadcast %436 : vector<1x32xf32> to vector<32x32xf32>
    %438 = arith.addf %323, %437 : vector<32x32xf32>
    %439 = arith.addf %438, %435 : vector<32x32xf32>
    %440 = vector.extract_strided_slice %434 {offsets = [1, 0], sizes = [1, 32], strides = [1, 1]} : vector<6x32xf32> to vector<1x32xf32>
    %441 = vector.broadcast %440 : vector<1x32xf32> to vector<32x32xf32>
    %442 = arith.addf %345, %441 : vector<32x32xf32>
    %443 = arith.addf %442, %435 : vector<32x32xf32>
    %444 = vector.extract_strided_slice %434 {offsets = [2, 0], sizes = [1, 32], strides = [1, 1]} : vector<6x32xf32> to vector<1x32xf32>
    %445 = vector.broadcast %444 : vector<1x32xf32> to vector<32x32xf32>
    %446 = arith.addf %367, %445 : vector<32x32xf32>
    %447 = arith.addf %446, %435 : vector<32x32xf32>
    %448 = vector.extract_strided_slice %434 {offsets = [3, 0], sizes = [1, 32], strides = [1, 1]} : vector<6x32xf32> to vector<1x32xf32>
    %449 = vector.broadcast %448 : vector<1x32xf32> to vector<32x32xf32>
    %450 = arith.addf %389, %449 : vector<32x32xf32>
    %451 = arith.addf %450, %435 : vector<32x32xf32>
    %452 = vector.extract_strided_slice %434 {offsets = [4, 0], sizes = [1, 32], strides = [1, 1]} : vector<6x32xf32> to vector<1x32xf32>
    %453 = vector.broadcast %452 : vector<1x32xf32> to vector<32x32xf32>
    %454 = arith.addf %411, %453 : vector<32x32xf32>
    %455 = arith.addf %454, %435 : vector<32x32xf32>
    %456 = vector.extract_strided_slice %434 {offsets = [5, 0], sizes = [1, 32], strides = [1, 1]} : vector<6x32xf32> to vector<1x32xf32>
    %457 = vector.broadcast %456 : vector<1x32xf32> to vector<32x32xf32>
    %458 = arith.addf %433, %457 : vector<32x32xf32>
    %459 = arith.addf %458, %435 : vector<32x32xf32>
    %460 = vector.extract_strided_slice %439 {offsets = [0, 0], sizes = [16, 32], strides = [1, 1]} : vector<32x32xf32> to vector<16x32xf32>
    %461 = vector.extract_strided_slice %443 {offsets = [0, 0], sizes = [16, 32], strides = [1, 1]} : vector<32x32xf32> to vector<16x32xf32>
    %462 = vector.extract_strided_slice %447 {offsets = [0, 0], sizes = [16, 32], strides = [1, 1]} : vector<32x32xf32> to vector<16x32xf32>
    %463 = tpu.concatenate %460, %461, %462 in 0 : vector<16x32xf32>, vector<16x32xf32>, vector<16x32xf32> -> vector<48x32xf32>
    %464 = vector.extract_strided_slice %439 {offsets = [16, 0], sizes = [16, 32], strides = [1, 1]} : vector<32x32xf32> to vector<16x32xf32>
    %465 = vector.extract_strided_slice %443 {offsets = [16, 0], sizes = [16, 32], strides = [1, 1]} : vector<32x32xf32> to vector<16x32xf32>
    %466 = vector.extract_strided_slice %447 {offsets = [16, 0], sizes = [16, 32], strides = [1, 1]} : vector<32x32xf32> to vector<16x32xf32>
    %467 = tpu.concatenate %464, %465, %466 in 0 : vector<16x32xf32>, vector<16x32xf32>, vector<16x32xf32> -> vector<48x32xf32>
    %468 = tpu.concatenate %463, %467 in 0 : vector<48x32xf32>, vector<48x32xf32> -> vector<96x32xf32>
    %469 = vector.extract_strided_slice %443 {offsets = [0, 0], sizes = [16, 32], strides = [1, 1]} : vector<32x32xf32> to vector<16x32xf32>
    %470 = vector.extract_strided_slice %447 {offsets = [0, 0], sizes = [16, 32], strides = [1, 1]} : vector<32x32xf32> to vector<16x32xf32>
    %471 = vector.extract_strided_slice %451 {offsets = [0, 0], sizes = [16, 32], strides = [1, 1]} : vector<32x32xf32> to vector<16x32xf32>
    %472 = tpu.concatenate %469, %470, %471 in 0 : vector<16x32xf32>, vector<16x32xf32>, vector<16x32xf32> -> vector<48x32xf32>
    %473 = vector.extract_strided_slice %443 {offsets = [16, 0], sizes = [16, 32], strides = [1, 1]} : vector<32x32xf32> to vector<16x32xf32>
    %474 = vector.extract_strided_slice %447 {offsets = [16, 0], sizes = [16, 32], strides = [1, 1]} : vector<32x32xf32> to vector<16x32xf32>
    %475 = vector.extract_strided_slice %451 {offsets = [16, 0], sizes = [16, 32], strides = [1, 1]} : vector<32x32xf32> to vector<16x32xf32>
    %476 = tpu.concatenate %473, %474, %475 in 0 : vector<16x32xf32>, vector<16x32xf32>, vector<16x32xf32> -> vector<48x32xf32>
    %477 = tpu.concatenate %472, %476 in 0 : vector<48x32xf32>, vector<48x32xf32> -> vector<96x32xf32>
    %478 = vector.extract_strided_slice %447 {offsets = [0, 0], sizes = [16, 32], strides = [1, 1]} : vector<32x32xf32> to vector<16x32xf32>
    %479 = vector.extract_strided_slice %451 {offsets = [0, 0], sizes = [16, 32], strides = [1, 1]} : vector<32x32xf32> to vector<16x32xf32>
    %480 = vector.extract_strided_slice %455 {offsets = [0, 0], sizes = [16, 32], strides = [1, 1]} : vector<32x32xf32> to vector<16x32xf32>
    %481 = tpu.concatenate %478, %479, %480 in 0 : vector<16x32xf32>, vector<16x32xf32>, vector<16x32xf32> -> vector<48x32xf32>
    %482 = vector.extract_strided_slice %447 {offsets = [16, 0], sizes = [16, 32], strides = [1, 1]} : vector<32x32xf32> to vector<16x32xf32>
    %483 = vector.extract_strided_slice %451 {offsets = [16, 0], sizes = [16, 32], strides = [1, 1]} : vector<32x32xf32> to vector<16x32xf32>
    %484 = vector.extract_strided_slice %455 {offsets = [16, 0], sizes = [16, 32], strides = [1, 1]} : vector<32x32xf32> to vector<16x32xf32>
    %485 = tpu.concatenate %482, %483, %484 in 0 : vector<16x32xf32>, vector<16x32xf32>, vector<16x32xf32> -> vector<48x32xf32>
    %486 = tpu.concatenate %481, %485 in 0 : vector<48x32xf32>, vector<48x32xf32> -> vector<96x32xf32>
    %487 = vector.extract_strided_slice %451 {offsets = [0, 0], sizes = [16, 32], strides = [1, 1]} : vector<32x32xf32> to vector<16x32xf32>
    %488 = vector.extract_strided_slice %455 {offsets = [0, 0], sizes = [16, 32], strides = [1, 1]} : vector<32x32xf32> to vector<16x32xf32>
    %489 = vector.extract_strided_slice %459 {offsets = [0, 0], sizes = [16, 32], strides = [1, 1]} : vector<32x32xf32> to vector<16x32xf32>
    %490 = tpu.concatenate %487, %488, %489 in 0 : vector<16x32xf32>, vector<16x32xf32>, vector<16x32xf32> -> vector<48x32xf32>
    %491 = vector.extract_strided_slice %451 {offsets = [16, 0], sizes = [16, 32], strides = [1, 1]} : vector<32x32xf32> to vector<16x32xf32>
    %492 = vector.extract_strided_slice %455 {offsets = [16, 0], sizes = [16, 32], strides = [1, 1]} : vector<32x32xf32> to vector<16x32xf32>
    %493 = vector.extract_strided_slice %459 {offsets = [16, 0], sizes = [16, 32], strides = [1, 1]} : vector<32x32xf32> to vector<16x32xf32>
    %494 = tpu.concatenate %491, %492, %493 in 0 : vector<16x32xf32>, vector<16x32xf32>, vector<16x32xf32> -> vector<48x32xf32>
    %495 = tpu.concatenate %490, %494 in 0 : vector<48x32xf32>, vector<48x32xf32> -> vector<96x32xf32>
    %496 = tpu.concatenate %468, %477, %486, %495 in 1 : vector<96x32xf32>, vector<96x32xf32>, vector<96x32xf32>, vector<96x32xf32> -> vector<96x128xf32>
    %497 = vector.extract_strided_slice %496 {offsets = [0, 0], sizes = [48, 128], strides = [1, 1]} : vector<96x128xf32> to vector<48x128xf32>
    %498 = arith.truncf %497 : vector<48x128xf32> to vector<48x128xbf16>
    %cst_88 = arith.constant dense<0.000000e+00> : vector<48x128xf32>
    %499 = tpu.matmul %0, %498, %cst_88 {dimension_numbers = #tpu.dot_dimension_numbers<[1], [0], [0], [1], [0, 0, 1, 1], [], []>} : vector<48x48xbf16>, vector<48x128xbf16>, vector<48x128xf32> -> vector<48x128xf32>
    %500 = vector.extract_strided_slice %496 {offsets = [48, 0], sizes = [48, 128], strides = [1, 1]} : vector<96x128xf32> to vector<48x128xf32>
    %501 = arith.truncf %500 : vector<48x128xf32> to vector<48x128xbf16>
    %cst_89 = arith.constant dense<0.000000e+00> : vector<48x128xf32>
    %502 = tpu.matmul %0, %501, %cst_89 {dimension_numbers = #tpu.dot_dimension_numbers<[1], [0], [0], [1], [0, 0, 1, 1], [], []>} : vector<48x48xbf16>, vector<48x128xbf16>, vector<48x128xf32> -> vector<48x128xf32>
    %503 = tpu.concatenate %499, %502 in 0 : vector<48x128xf32>, vector<48x128xf32> -> vector<96x128xf32>
    %c128_90 = arith.constant 128 : index
    %c0_91 = arith.constant 0 : index
    %504 = vector.load %arg2[%c128_90, %c0_91] : memref<160x32xf32, #tpu.memory_space<vmem>>, vector<4x32xf32>
    %c136 = arith.constant 136 : index
    %c0_92 = arith.constant 0 : index
    %505 = vector.load %arg2[%c136, %c0_92] : memref<160x32xf32, #tpu.memory_space<vmem>>, vector<4x32xf32>
    %506 = vector.extract_strided_slice %503 {offsets = [0, 0], sizes = [96, 32], strides = [1, 1]} : vector<96x128xf32> to vector<96x32xf32>
    %507 = arith.truncf %506 : vector<96x32xf32> to vector<96x32xbf16>
    %c768 = arith.constant 768 : index
    %c0_93 = arith.constant 0 : index
    %508 = vector.load %arg3[%c768, %c0_93] : memref<1280x32xbf16, #tpu.memory_space<vmem>>, vector<32x32xbf16>
    %c896 = arith.constant 896 : index
    %c0_94 = arith.constant 0 : index
    %509 = vector.load %arg3[%c896, %c0_94] : memref<1280x32xbf16, #tpu.memory_space<vmem>>, vector<32x32xbf16>
    %cst_95 = arith.constant dense<0.000000e+00> : vector<96x32xf32>
    %510 = tpu.matmul %507, %508, %cst_95 {dimension_numbers = #tpu.dot_dimension_numbers<[1], [0], [0], [1], [0, 0, 1, 1], [], []>} : vector<96x32xbf16>, vector<32x32xbf16>, vector<96x32xf32> -> vector<96x32xf32>
    %511 = vector.extract_strided_slice %504 {offsets = [0, 0], sizes = [1, 32], strides = [1, 1]} : vector<4x32xf32> to vector<1x32xf32>
    %512 = vector.broadcast %511 : vector<1x32xf32> to vector<96x32xf32>
    %513 = arith.addf %510, %512 : vector<96x32xf32>
    %cst_96 = arith.constant dense<0.000000e+00> : vector<96x32xf32>
    %514 = tpu.matmul %507, %509, %cst_96 {dimension_numbers = #tpu.dot_dimension_numbers<[1], [0], [0], [1], [0, 0, 1, 1], [], []>} : vector<96x32xbf16>, vector<32x32xbf16>, vector<96x32xf32> -> vector<96x32xf32>
    %515 = vector.extract_strided_slice %505 {offsets = [0, 0], sizes = [1, 32], strides = [1, 1]} : vector<4x32xf32> to vector<1x32xf32>
    %516 = vector.broadcast %515 : vector<1x32xf32> to vector<96x32xf32>
    %517 = arith.addf %514, %516 : vector<96x32xf32>
    %518 = arith.negf %517 : vector<96x32xf32>
    %519 = math.exp %518 : vector<96x32xf32>
    %cst_97 = arith.constant 1.000000e+00 : f32
    %520 = vector.broadcast %cst_97 : f32 to vector<96x32xf32>
    %521 = arith.addf %520, %519 : vector<96x32xf32>
    %522 = arith.divf %520, %521 : vector<96x32xf32>
    %523 = arith.mulf %513, %522 : vector<96x32xf32>
    %524 = vector.extract_strided_slice %523 {offsets = [16, 0], sizes = [16, 32], strides = [1, 1]} : vector<96x32xf32> to vector<16x32xf32>
    %525 = vector.extract_strided_slice %523 {offsets = [64, 0], sizes = [16, 32], strides = [1, 1]} : vector<96x32xf32> to vector<16x32xf32>
    %526 = tpu.concatenate %524, %525 in 0 : vector<16x32xf32>, vector<16x32xf32> -> vector<32x32xf32>
    %527 = vector.extract_strided_slice %503 {offsets = [0, 32], sizes = [96, 32], strides = [1, 1]} : vector<96x128xf32> to vector<96x32xf32>
    %528 = arith.truncf %527 : vector<96x32xf32> to vector<96x32xbf16>
    %c800 = arith.constant 800 : index
    %c0_98 = arith.constant 0 : index
    %529 = vector.load %arg3[%c800, %c0_98] : memref<1280x32xbf16, #tpu.memory_space<vmem>>, vector<32x32xbf16>
    %c928 = arith.constant 928 : index
    %c0_99 = arith.constant 0 : index
    %530 = vector.load %arg3[%c928, %c0_99] : memref<1280x32xbf16, #tpu.memory_space<vmem>>, vector<32x32xbf16>
    %cst_100 = arith.constant dense<0.000000e+00> : vector<96x32xf32>
    %531 = tpu.matmul %528, %529, %cst_100 {dimension_numbers = #tpu.dot_dimension_numbers<[1], [0], [0], [1], [0, 0, 1, 1], [], []>} : vector<96x32xbf16>, vector<32x32xbf16>, vector<96x32xf32> -> vector<96x32xf32>
    %532 = vector.extract_strided_slice %504 {offsets = [1, 0], sizes = [1, 32], strides = [1, 1]} : vector<4x32xf32> to vector<1x32xf32>
    %533 = vector.broadcast %532 : vector<1x32xf32> to vector<96x32xf32>
    %534 = arith.addf %531, %533 : vector<96x32xf32>
    %cst_101 = arith.constant dense<0.000000e+00> : vector<96x32xf32>
    %535 = tpu.matmul %528, %530, %cst_101 {dimension_numbers = #tpu.dot_dimension_numbers<[1], [0], [0], [1], [0, 0, 1, 1], [], []>} : vector<96x32xbf16>, vector<32x32xbf16>, vector<96x32xf32> -> vector<96x32xf32>
    %536 = vector.extract_strided_slice %505 {offsets = [1, 0], sizes = [1, 32], strides = [1, 1]} : vector<4x32xf32> to vector<1x32xf32>
    %537 = vector.broadcast %536 : vector<1x32xf32> to vector<96x32xf32>
    %538 = arith.addf %535, %537 : vector<96x32xf32>
    %539 = arith.negf %538 : vector<96x32xf32>
    %540 = math.exp %539 : vector<96x32xf32>
    %cst_102 = arith.constant 1.000000e+00 : f32
    %541 = vector.broadcast %cst_102 : f32 to vector<96x32xf32>
    %542 = arith.addf %541, %540 : vector<96x32xf32>
    %543 = arith.divf %541, %542 : vector<96x32xf32>
    %544 = arith.mulf %534, %543 : vector<96x32xf32>
    %545 = vector.extract_strided_slice %544 {offsets = [16, 0], sizes = [16, 32], strides = [1, 1]} : vector<96x32xf32> to vector<16x32xf32>
    %546 = vector.extract_strided_slice %544 {offsets = [64, 0], sizes = [16, 32], strides = [1, 1]} : vector<96x32xf32> to vector<16x32xf32>
    %547 = tpu.concatenate %545, %546 in 0 : vector<16x32xf32>, vector<16x32xf32> -> vector<32x32xf32>
    %548 = vector.extract_strided_slice %503 {offsets = [0, 64], sizes = [96, 32], strides = [1, 1]} : vector<96x128xf32> to vector<96x32xf32>
    %549 = arith.truncf %548 : vector<96x32xf32> to vector<96x32xbf16>
    %c832 = arith.constant 832 : index
    %c0_103 = arith.constant 0 : index
    %550 = vector.load %arg3[%c832, %c0_103] : memref<1280x32xbf16, #tpu.memory_space<vmem>>, vector<32x32xbf16>
    %c960 = arith.constant 960 : index
    %c0_104 = arith.constant 0 : index
    %551 = vector.load %arg3[%c960, %c0_104] : memref<1280x32xbf16, #tpu.memory_space<vmem>>, vector<32x32xbf16>
    %cst_105 = arith.constant dense<0.000000e+00> : vector<96x32xf32>
    %552 = tpu.matmul %549, %550, %cst_105 {dimension_numbers = #tpu.dot_dimension_numbers<[1], [0], [0], [1], [0, 0, 1, 1], [], []>} : vector<96x32xbf16>, vector<32x32xbf16>, vector<96x32xf32> -> vector<96x32xf32>
    %553 = vector.extract_strided_slice %504 {offsets = [2, 0], sizes = [1, 32], strides = [1, 1]} : vector<4x32xf32> to vector<1x32xf32>
    %554 = vector.broadcast %553 : vector<1x32xf32> to vector<96x32xf32>
    %555 = arith.addf %552, %554 : vector<96x32xf32>
    %cst_106 = arith.constant dense<0.000000e+00> : vector<96x32xf32>
    %556 = tpu.matmul %549, %551, %cst_106 {dimension_numbers = #tpu.dot_dimension_numbers<[1], [0], [0], [1], [0, 0, 1, 1], [], []>} : vector<96x32xbf16>, vector<32x32xbf16>, vector<96x32xf32> -> vector<96x32xf32>
    %557 = vector.extract_strided_slice %505 {offsets = [2, 0], sizes = [1, 32], strides = [1, 1]} : vector<4x32xf32> to vector<1x32xf32>
    %558 = vector.broadcast %557 : vector<1x32xf32> to vector<96x32xf32>
    %559 = arith.addf %556, %558 : vector<96x32xf32>
    %560 = arith.negf %559 : vector<96x32xf32>
    %561 = math.exp %560 : vector<96x32xf32>
    %cst_107 = arith.constant 1.000000e+00 : f32
    %562 = vector.broadcast %cst_107 : f32 to vector<96x32xf32>
    %563 = arith.addf %562, %561 : vector<96x32xf32>
    %564 = arith.divf %562, %563 : vector<96x32xf32>
    %565 = arith.mulf %555, %564 : vector<96x32xf32>
    %566 = vector.extract_strided_slice %565 {offsets = [16, 0], sizes = [16, 32], strides = [1, 1]} : vector<96x32xf32> to vector<16x32xf32>
    %567 = vector.extract_strided_slice %565 {offsets = [64, 0], sizes = [16, 32], strides = [1, 1]} : vector<96x32xf32> to vector<16x32xf32>
    %568 = tpu.concatenate %566, %567 in 0 : vector<16x32xf32>, vector<16x32xf32> -> vector<32x32xf32>
    %569 = vector.extract_strided_slice %503 {offsets = [0, 96], sizes = [96, 32], strides = [1, 1]} : vector<96x128xf32> to vector<96x32xf32>
    %570 = arith.truncf %569 : vector<96x32xf32> to vector<96x32xbf16>
    %c864 = arith.constant 864 : index
    %c0_108 = arith.constant 0 : index
    %571 = vector.load %arg3[%c864, %c0_108] : memref<1280x32xbf16, #tpu.memory_space<vmem>>, vector<32x32xbf16>
    %c992 = arith.constant 992 : index
    %c0_109 = arith.constant 0 : index
    %572 = vector.load %arg3[%c992, %c0_109] : memref<1280x32xbf16, #tpu.memory_space<vmem>>, vector<32x32xbf16>
    %cst_110 = arith.constant dense<0.000000e+00> : vector<96x32xf32>
    %573 = tpu.matmul %570, %571, %cst_110 {dimension_numbers = #tpu.dot_dimension_numbers<[1], [0], [0], [1], [0, 0, 1, 1], [], []>} : vector<96x32xbf16>, vector<32x32xbf16>, vector<96x32xf32> -> vector<96x32xf32>
    %574 = vector.extract_strided_slice %504 {offsets = [3, 0], sizes = [1, 32], strides = [1, 1]} : vector<4x32xf32> to vector<1x32xf32>
    %575 = vector.broadcast %574 : vector<1x32xf32> to vector<96x32xf32>
    %576 = arith.addf %573, %575 : vector<96x32xf32>
    %cst_111 = arith.constant dense<0.000000e+00> : vector<96x32xf32>
    %577 = tpu.matmul %570, %572, %cst_111 {dimension_numbers = #tpu.dot_dimension_numbers<[1], [0], [0], [1], [0, 0, 1, 1], [], []>} : vector<96x32xbf16>, vector<32x32xbf16>, vector<96x32xf32> -> vector<96x32xf32>
    %578 = vector.extract_strided_slice %505 {offsets = [3, 0], sizes = [1, 32], strides = [1, 1]} : vector<4x32xf32> to vector<1x32xf32>
    %579 = vector.broadcast %578 : vector<1x32xf32> to vector<96x32xf32>
    %580 = arith.addf %577, %579 : vector<96x32xf32>
    %581 = arith.negf %580 : vector<96x32xf32>
    %582 = math.exp %581 : vector<96x32xf32>
    %cst_112 = arith.constant 1.000000e+00 : f32
    %583 = vector.broadcast %cst_112 : f32 to vector<96x32xf32>
    %584 = arith.addf %583, %582 : vector<96x32xf32>
    %585 = arith.divf %583, %584 : vector<96x32xf32>
    %586 = arith.mulf %576, %585 : vector<96x32xf32>
    %587 = vector.extract_strided_slice %586 {offsets = [16, 0], sizes = [16, 32], strides = [1, 1]} : vector<96x32xf32> to vector<16x32xf32>
    %588 = vector.extract_strided_slice %586 {offsets = [64, 0], sizes = [16, 32], strides = [1, 1]} : vector<96x32xf32> to vector<16x32xf32>
    %589 = tpu.concatenate %587, %588 in 0 : vector<16x32xf32>, vector<16x32xf32> -> vector<32x32xf32>
    %590 = tpu.concatenate %523, %544, %565, %586 in 1 : vector<96x32xf32>, vector<96x32xf32>, vector<96x32xf32>, vector<96x32xf32> -> vector<96x128xf32>
    %591 = vector.extract_strided_slice %590 {offsets = [0, 0], sizes = [48, 128], strides = [1, 1]} : vector<96x128xf32> to vector<48x128xf32>
    %592 = arith.truncf %591 : vector<48x128xf32> to vector<48x128xbf16>
    %cst_113 = arith.constant dense<0.000000e+00> : vector<48x128xf32>
    %593 = tpu.matmul %0, %592, %cst_113 {dimension_numbers = #tpu.dot_dimension_numbers<[1], [0], [0], [1], [0, 0, 1, 1], [], []>} : vector<48x48xbf16>, vector<48x128xbf16>, vector<48x128xf32> -> vector<48x128xf32>
    %594 = vector.extract_strided_slice %590 {offsets = [48, 0], sizes = [48, 128], strides = [1, 1]} : vector<96x128xf32> to vector<48x128xf32>
    %595 = arith.truncf %594 : vector<48x128xf32> to vector<48x128xbf16>
    %cst_114 = arith.constant dense<0.000000e+00> : vector<48x128xf32>
    %596 = tpu.matmul %0, %595, %cst_114 {dimension_numbers = #tpu.dot_dimension_numbers<[1], [0], [0], [1], [0, 0, 1, 1], [], []>} : vector<48x48xbf16>, vector<48x128xbf16>, vector<48x128xf32> -> vector<48x128xf32>
    %597 = tpu.concatenate %593, %596 in 0 : vector<48x128xf32>, vector<48x128xf32> -> vector<96x128xf32>
    %c144 = arith.constant 144 : index
    %c0_115 = arith.constant 0 : index
    %598 = vector.load %arg2[%c144, %c0_115] : memref<160x32xf32, #tpu.memory_space<vmem>>, vector<4x32xf32>
    %c152 = arith.constant 152 : index
    %c0_116 = arith.constant 0 : index
    %599 = vector.load %arg2[%c152, %c0_116] : memref<160x32xf32, #tpu.memory_space<vmem>>, vector<4x32xf32>
    %600 = vector.extract_strided_slice %597 {offsets = [0, 0], sizes = [96, 32], strides = [1, 1]} : vector<96x128xf32> to vector<96x32xf32>
    %601 = arith.truncf %600 : vector<96x32xf32> to vector<96x32xbf16>
    %c1024 = arith.constant 1024 : index
    %c0_117 = arith.constant 0 : index
    %602 = vector.load %arg3[%c1024, %c0_117] : memref<1280x32xbf16, #tpu.memory_space<vmem>>, vector<32x32xbf16>
    %c1152 = arith.constant 1152 : index
    %c0_118 = arith.constant 0 : index
    %603 = vector.load %arg3[%c1152, %c0_118] : memref<1280x32xbf16, #tpu.memory_space<vmem>>, vector<32x32xbf16>
    %cst_119 = arith.constant dense<0.000000e+00> : vector<96x32xf32>
    %604 = tpu.matmul %601, %602, %cst_119 {dimension_numbers = #tpu.dot_dimension_numbers<[1], [0], [0], [1], [0, 0, 1, 1], [], []>} : vector<96x32xbf16>, vector<32x32xbf16>, vector<96x32xf32> -> vector<96x32xf32>
    %605 = vector.extract_strided_slice %598 {offsets = [0, 0], sizes = [1, 32], strides = [1, 1]} : vector<4x32xf32> to vector<1x32xf32>
    %606 = vector.broadcast %605 : vector<1x32xf32> to vector<96x32xf32>
    %607 = arith.addf %604, %606 : vector<96x32xf32>
    %cst_120 = arith.constant dense<0.000000e+00> : vector<96x32xf32>
    %608 = tpu.matmul %601, %603, %cst_120 {dimension_numbers = #tpu.dot_dimension_numbers<[1], [0], [0], [1], [0, 0, 1, 1], [], []>} : vector<96x32xbf16>, vector<32x32xbf16>, vector<96x32xf32> -> vector<96x32xf32>
    %609 = vector.extract_strided_slice %599 {offsets = [0, 0], sizes = [1, 32], strides = [1, 1]} : vector<4x32xf32> to vector<1x32xf32>
    %610 = vector.broadcast %609 : vector<1x32xf32> to vector<96x32xf32>
    %611 = arith.addf %608, %610 : vector<96x32xf32>
    %612 = arith.negf %611 : vector<96x32xf32>
    %613 = math.exp %612 : vector<96x32xf32>
    %cst_121 = arith.constant 1.000000e+00 : f32
    %614 = vector.broadcast %cst_121 : f32 to vector<96x32xf32>
    %615 = arith.addf %614, %613 : vector<96x32xf32>
    %616 = arith.divf %614, %615 : vector<96x32xf32>
    %617 = arith.mulf %607, %616 : vector<96x32xf32>
    %618 = vector.extract_strided_slice %617 {offsets = [16, 0], sizes = [16, 32], strides = [1, 1]} : vector<96x32xf32> to vector<16x32xf32>
    %619 = vector.extract_strided_slice %617 {offsets = [64, 0], sizes = [16, 32], strides = [1, 1]} : vector<96x32xf32> to vector<16x32xf32>
    %620 = tpu.concatenate %618, %619 in 0 : vector<16x32xf32>, vector<16x32xf32> -> vector<32x32xf32>
    %621 = arith.maximumf %526, %620 : vector<32x32xf32>
    %622 = vector.extract_strided_slice %597 {offsets = [0, 32], sizes = [96, 32], strides = [1, 1]} : vector<96x128xf32> to vector<96x32xf32>
    %623 = arith.truncf %622 : vector<96x32xf32> to vector<96x32xbf16>
    %c1056 = arith.constant 1056 : index
    %c0_122 = arith.constant 0 : index
    %624 = vector.load %arg3[%c1056, %c0_122] : memref<1280x32xbf16, #tpu.memory_space<vmem>>, vector<32x32xbf16>
    %c1184 = arith.constant 1184 : index
    %c0_123 = arith.constant 0 : index
    %625 = vector.load %arg3[%c1184, %c0_123] : memref<1280x32xbf16, #tpu.memory_space<vmem>>, vector<32x32xbf16>
    %cst_124 = arith.constant dense<0.000000e+00> : vector<96x32xf32>
    %626 = tpu.matmul %623, %624, %cst_124 {dimension_numbers = #tpu.dot_dimension_numbers<[1], [0], [0], [1], [0, 0, 1, 1], [], []>} : vector<96x32xbf16>, vector<32x32xbf16>, vector<96x32xf32> -> vector<96x32xf32>
    %627 = vector.extract_strided_slice %598 {offsets = [1, 0], sizes = [1, 32], strides = [1, 1]} : vector<4x32xf32> to vector<1x32xf32>
    %628 = vector.broadcast %627 : vector<1x32xf32> to vector<96x32xf32>
    %629 = arith.addf %626, %628 : vector<96x32xf32>
    %cst_125 = arith.constant dense<0.000000e+00> : vector<96x32xf32>
    %630 = tpu.matmul %623, %625, %cst_125 {dimension_numbers = #tpu.dot_dimension_numbers<[1], [0], [0], [1], [0, 0, 1, 1], [], []>} : vector<96x32xbf16>, vector<32x32xbf16>, vector<96x32xf32> -> vector<96x32xf32>
    %631 = vector.extract_strided_slice %599 {offsets = [1, 0], sizes = [1, 32], strides = [1, 1]} : vector<4x32xf32> to vector<1x32xf32>
    %632 = vector.broadcast %631 : vector<1x32xf32> to vector<96x32xf32>
    %633 = arith.addf %630, %632 : vector<96x32xf32>
    %634 = arith.negf %633 : vector<96x32xf32>
    %635 = math.exp %634 : vector<96x32xf32>
    %cst_126 = arith.constant 1.000000e+00 : f32
    %636 = vector.broadcast %cst_126 : f32 to vector<96x32xf32>
    %637 = arith.addf %636, %635 : vector<96x32xf32>
    %638 = arith.divf %636, %637 : vector<96x32xf32>
    %639 = arith.mulf %629, %638 : vector<96x32xf32>
    %640 = vector.extract_strided_slice %639 {offsets = [16, 0], sizes = [16, 32], strides = [1, 1]} : vector<96x32xf32> to vector<16x32xf32>
    %641 = vector.extract_strided_slice %639 {offsets = [64, 0], sizes = [16, 32], strides = [1, 1]} : vector<96x32xf32> to vector<16x32xf32>
    %642 = tpu.concatenate %640, %641 in 0 : vector<16x32xf32>, vector<16x32xf32> -> vector<32x32xf32>
    %643 = arith.maximumf %547, %642 : vector<32x32xf32>
    %644 = vector.extract_strided_slice %597 {offsets = [0, 64], sizes = [96, 32], strides = [1, 1]} : vector<96x128xf32> to vector<96x32xf32>
    %645 = arith.truncf %644 : vector<96x32xf32> to vector<96x32xbf16>
    %c1088 = arith.constant 1088 : index
    %c0_127 = arith.constant 0 : index
    %646 = vector.load %arg3[%c1088, %c0_127] : memref<1280x32xbf16, #tpu.memory_space<vmem>>, vector<32x32xbf16>
    %c1216 = arith.constant 1216 : index
    %c0_128 = arith.constant 0 : index
    %647 = vector.load %arg3[%c1216, %c0_128] : memref<1280x32xbf16, #tpu.memory_space<vmem>>, vector<32x32xbf16>
    %cst_129 = arith.constant dense<0.000000e+00> : vector<96x32xf32>
    %648 = tpu.matmul %645, %646, %cst_129 {dimension_numbers = #tpu.dot_dimension_numbers<[1], [0], [0], [1], [0, 0, 1, 1], [], []>} : vector<96x32xbf16>, vector<32x32xbf16>, vector<96x32xf32> -> vector<96x32xf32>
    %649 = vector.extract_strided_slice %598 {offsets = [2, 0], sizes = [1, 32], strides = [1, 1]} : vector<4x32xf32> to vector<1x32xf32>
    %650 = vector.broadcast %649 : vector<1x32xf32> to vector<96x32xf32>
    %651 = arith.addf %648, %650 : vector<96x32xf32>
    %cst_130 = arith.constant dense<0.000000e+00> : vector<96x32xf32>
    %652 = tpu.matmul %645, %647, %cst_130 {dimension_numbers = #tpu.dot_dimension_numbers<[1], [0], [0], [1], [0, 0, 1, 1], [], []>} : vector<96x32xbf16>, vector<32x32xbf16>, vector<96x32xf32> -> vector<96x32xf32>
    %653 = vector.extract_strided_slice %599 {offsets = [2, 0], sizes = [1, 32], strides = [1, 1]} : vector<4x32xf32> to vector<1x32xf32>
    %654 = vector.broadcast %653 : vector<1x32xf32> to vector<96x32xf32>
    %655 = arith.addf %652, %654 : vector<96x32xf32>
    %656 = arith.negf %655 : vector<96x32xf32>
    %657 = math.exp %656 : vector<96x32xf32>
    %cst_131 = arith.constant 1.000000e+00 : f32
    %658 = vector.broadcast %cst_131 : f32 to vector<96x32xf32>
    %659 = arith.addf %658, %657 : vector<96x32xf32>
    %660 = arith.divf %658, %659 : vector<96x32xf32>
    %661 = arith.mulf %651, %660 : vector<96x32xf32>
    %662 = vector.extract_strided_slice %661 {offsets = [16, 0], sizes = [16, 32], strides = [1, 1]} : vector<96x32xf32> to vector<16x32xf32>
    %663 = vector.extract_strided_slice %661 {offsets = [64, 0], sizes = [16, 32], strides = [1, 1]} : vector<96x32xf32> to vector<16x32xf32>
    %664 = tpu.concatenate %662, %663 in 0 : vector<16x32xf32>, vector<16x32xf32> -> vector<32x32xf32>
    %665 = arith.maximumf %568, %664 : vector<32x32xf32>
    %666 = vector.extract_strided_slice %597 {offsets = [0, 96], sizes = [96, 32], strides = [1, 1]} : vector<96x128xf32> to vector<96x32xf32>
    %667 = arith.truncf %666 : vector<96x32xf32> to vector<96x32xbf16>
    %c1120 = arith.constant 1120 : index
    %c0_132 = arith.constant 0 : index
    %668 = vector.load %arg3[%c1120, %c0_132] : memref<1280x32xbf16, #tpu.memory_space<vmem>>, vector<32x32xbf16>
    %c1248 = arith.constant 1248 : index
    %c0_133 = arith.constant 0 : index
    %669 = vector.load %arg3[%c1248, %c0_133] : memref<1280x32xbf16, #tpu.memory_space<vmem>>, vector<32x32xbf16>
    %cst_134 = arith.constant dense<0.000000e+00> : vector<96x32xf32>
    %670 = tpu.matmul %667, %668, %cst_134 {dimension_numbers = #tpu.dot_dimension_numbers<[1], [0], [0], [1], [0, 0, 1, 1], [], []>} : vector<96x32xbf16>, vector<32x32xbf16>, vector<96x32xf32> -> vector<96x32xf32>
    %671 = vector.extract_strided_slice %598 {offsets = [3, 0], sizes = [1, 32], strides = [1, 1]} : vector<4x32xf32> to vector<1x32xf32>
    %672 = vector.broadcast %671 : vector<1x32xf32> to vector<96x32xf32>
    %673 = arith.addf %670, %672 : vector<96x32xf32>
    %cst_135 = arith.constant dense<0.000000e+00> : vector<96x32xf32>
    %674 = tpu.matmul %667, %669, %cst_135 {dimension_numbers = #tpu.dot_dimension_numbers<[1], [0], [0], [1], [0, 0, 1, 1], [], []>} : vector<96x32xbf16>, vector<32x32xbf16>, vector<96x32xf32> -> vector<96x32xf32>
    %675 = vector.extract_strided_slice %599 {offsets = [3, 0], sizes = [1, 32], strides = [1, 1]} : vector<4x32xf32> to vector<1x32xf32>
    %676 = vector.broadcast %675 : vector<1x32xf32> to vector<96x32xf32>
    %677 = arith.addf %674, %676 : vector<96x32xf32>
    %678 = arith.negf %677 : vector<96x32xf32>
    %679 = math.exp %678 : vector<96x32xf32>
    %cst_136 = arith.constant 1.000000e+00 : f32
    %680 = vector.broadcast %cst_136 : f32 to vector<96x32xf32>
    %681 = arith.addf %680, %679 : vector<96x32xf32>
    %682 = arith.divf %680, %681 : vector<96x32xf32>
    %683 = arith.mulf %673, %682 : vector<96x32xf32>
    %684 = vector.extract_strided_slice %683 {offsets = [16, 0], sizes = [16, 32], strides = [1, 1]} : vector<96x32xf32> to vector<16x32xf32>
    %685 = vector.extract_strided_slice %683 {offsets = [64, 0], sizes = [16, 32], strides = [1, 1]} : vector<96x32xf32> to vector<16x32xf32>
    %686 = tpu.concatenate %684, %685 in 0 : vector<16x32xf32>, vector<16x32xf32> -> vector<32x32xf32>
    %687 = arith.maximumf %589, %686 : vector<32x32xf32>
    %c0_137 = arith.constant 0 : index
    %c0_138 = arith.constant 0 : index
    %688 = vector.load %arg5[%c0_137, %c0_138] : memref<3x384xf32, #tpu.memory_space<vmem>>, vector<3x384xf32>
    %689 = tpu.concatenate %621, %643, %665, %687 in 1 : vector<32x32xf32>, vector<32x32xf32>, vector<32x32xf32>, vector<32x32xf32> -> vector<32x128xf32>
    %690 = arith.truncf %689 : vector<32x128xf32> to vector<32x128xbf16>
    %c0_139 = arith.constant 0 : index
    %c0_140 = arith.constant 0 : index
    %691 = vector.load %arg4[%c0_139, %c0_140] : memref<128x384xbf16, #tpu.memory_space<vmem>>, vector<128x384xbf16>
    %cst_141 = arith.constant dense<0.000000e+00> : vector<32x384xf32>
    %692 = tpu.matmul %690, %691, %cst_141 {dimension_numbers = #tpu.dot_dimension_numbers<[1], [0], [0], [1], [0, 0, 1, 1], [], []>} : vector<32x128xbf16>, vector<128x384xbf16>, vector<32x384xf32> -> vector<32x384xf32>
    %693 = vector.extract_strided_slice %688 {offsets = [0, 0], sizes = [1, 384], strides = [1, 1]} : vector<3x384xf32> to vector<1x384xf32>
    %694 = vector.broadcast %693 : vector<1x384xf32> to vector<32x384xf32>
    %695 = arith.addf %692, %694 : vector<32x384xf32>
    %cst_142 = arith.constant 0.000000e+00 : f32
    %696 = vector.broadcast %cst_142 : f32 to vector<32x384xf32>
    %697 = arith.maximumf %695, %696 : vector<32x384xf32>
    %698 = vector.extract_strided_slice %688 {offsets = [1, 0], sizes = [1, 384], strides = [1, 1]} : vector<3x384xf32> to vector<1x384xf32>
    %699 = vector.broadcast %698 : vector<1x384xf32> to vector<32x384xf32>
    %700 = arith.mulf %697, %699 : vector<32x384xf32>
    %701 = vector.extract_strided_slice %700 {offsets = [0, 0], sizes = [32, 128], strides = [1, 1]} : vector<32x384xf32> to vector<32x128xf32>
    %cst_143 = arith.constant dense<0.000000e+00> : vector<32xf32>
    %702 = vector.multi_reduction <add>, %701, %cst_143 [1] : vector<32x128xf32> to vector<32xf32>
    %703 = vector.shape_cast %702 : vector<32xf32> to vector<32x1xf32>
    %704 = vector.extract_strided_slice %700 {offsets = [0, 128], sizes = [32, 128], strides = [1, 1]} : vector<32x384xf32> to vector<32x128xf32>
    %cst_144 = arith.constant dense<0.000000e+00> : vector<32xf32>
    %705 = vector.multi_reduction <add>, %704, %cst_144 [1] : vector<32x128xf32> to vector<32xf32>
    %706 = vector.shape_cast %705 : vector<32xf32> to vector<32x1xf32>
    %707 = vector.extract_strided_slice %700 {offsets = [0, 256], sizes = [32, 128], strides = [1, 1]} : vector<32x384xf32> to vector<32x128xf32>
    %cst_145 = arith.constant dense<0.000000e+00> : vector<32xf32>
    %708 = vector.multi_reduction <add>, %707, %cst_145 [1] : vector<32x128xf32> to vector<32xf32>
    %709 = vector.shape_cast %708 : vector<32xf32> to vector<32x1xf32>
    %710 = tpu.concatenate %703, %706, %709 in 1 : vector<32x1xf32>, vector<32x1xf32>, vector<32x1xf32> -> vector<32x3xf32>
    %711 = vector.extract_strided_slice %688 {offsets = [2, 0], sizes = [1, 3], strides = [1, 1]} : vector<3x384xf32> to vector<1x3xf32>
    %712 = vector.broadcast %711 : vector<1x3xf32> to vector<32x3xf32>
    %713 = arith.addf %710, %712 : vector<32x3xf32>
    %c0_146 = arith.constant 0 : index
    %c0_147 = arith.constant 0 : index
    %714 = vector.load %arg6[%c0_146, %c0_147] : memref<32x3xf32, #tpu.memory_space<vmem>>, vector<32x3xf32>
    tpu.vector_store %arg6[%c0_146, %c0_147], %713 {strides = array<i32>} : memref<32x3xf32, #tpu.memory_space<vmem>>, vector<32x3xf32>,
    return
  }
}

</mosaic_0001>

<bundles_post_ra>
// kernel: stsgcn_forward.1
= control target key start
LH: loop header
LB: loop body
LE: loop exit
PB: predicated region body
PF: predicated region fallthrough
CT: control target
= control target key end

     0   :  { %v10774_v0 = vmov 3   ;;  %v10775_v1 = vmov 2   ;;  %v13605_v4 = vmov 0   ;;  %v10777_v5 = vmov 4   ;;  %s10782_s14 = smov 64   ;;  %s10783_s15 = smov 32   ;;  %s13598_s0 = inlined_call_operand.vmem [shape: f32[32,8], index: 0, kind: input, shape index: {}]   ;;  %s13599_s2 = inlined_call_operand.vmem [shape: f32[160,32], index: 2, kind: input, shape index: {}]   ;;  %s13600_s1 = inlined_call_operand.vmem [shape: bf16[48,48], index: 1, kind: input, shape index: {}]   ;;  %s13601_s3 = inlined_call_operand.vmem [shape: bf16[1280,32], index: 3, kind: input, shape index: {}]   ;;  %s13602_s4 = inlined_call_operand.vmem [shape: bf16[128,384], index: 4, kind: input, shape index: {}]   ;;  %s13603_s5 = inlined_call_operand.vmem [shape: f32[3,384], index: 5, kind: input, shape index: {}]   ;;  %s13604_s6 = inlined_call_operand.vmem [shape: f32[32,3], index: 6, kind: output, shape index: {}]  }
   0x1   :  { %9538 = vset.pattern.permute.xlu0 %v10774_v0  ;;  %9535 = vset.pattern.permute.xlu1 %v10775_v1  ;;  %v33_v2 = vld [vmem:[%s13598_s0 + $0x8] sm:$0xff]  ;;  %v32_v3 = vld [vmem:[%s13598_s0] sm:$0xff]  ;;  %v10778_v6 = vmov 5   ;;  %v10779_v7 = vmov 1   ;;  %v35_v8 = vld [vmem:[%s13598_s0 + $0x18] sm:$0xff]  ;;  %v10780_v9 = vmov 6   ;;  %v277_v12 = vlaneseq }
   0x2   :  { %137 = vperm.xlu0 %9538, %v33_v2   ;;  %105 = vperm.xlu1 %9535, %v32_v3   ;;  %v34_v10 = vld [vmem:[%s13598_s0 + $0x10] sm:$0xff]  ;;  %v10781_v11 = vmov 7   ;;  %v10843_v14 = vld [vmem:[%s13599_s2] ss:$0 sm:$0xff]  ;;  %v10848_v15 = vld [vmem:[%s13599_s2 + $0x8] ss:$0 sm:$0xff] }
   0x3   :  { %659 = vmatprep.mubr.bf16.mxu0 %v13605_v4  ;;  %728 = vmatprep.mubr.bf16.mxu1 %v13605_v4  ;;  %v10838_v13 = vshrl.u32 %v277_v12, 7  ;;  %v10857_v20 = vld [vmem:[%s13599_s2 + $0x10] sm:$0xff]  ;;  %v10874_v33 = vld [vmem:[%s13599_s2 + $0x18] sm:$0xff]  ;;  %v10879_v34 = vld [vmem:[%s13599_s2 + $0x20] sm:$0xff]  ;;  %s10784_s16 = smov 96   ;;  %vm545_vm0 = vcmask 261120  }
   0x4   :  { %vm558_vm1 = vcmask 523264   ;;  %vm571_vm2 = vcmask 785408   ;;  %vm617_vm3 = vcmask 392192   ;;  %vm10786_vm4 = vmmov 0  }
   0x5   :  { %v10851_v18 = vsub.s32 2, %v10838_v13  ;;  %v10869_v31 = vsub.s32 1, %v10838_v13  ;;  %v10882_v35 = vsub.s32 3, %v10838_v13  ;;  %vm7876_vm5 = vcmask 7168  }
   0x6   :  { %9540 = vset.pattern.permute.xlu0 %v10777_v5  ;;  %109 = vperm.xlu1 %9535, %v33_v2   ;;  %vm7881_vm6 = vcmask 15360   ;;  %vm7894_vm7 = vcmask 23552  }
   0x7   :  { %161 = vperm.xlu0 %9540, %v32_v3   ;;  %13637 = vst [vmem:[#allocation2_spill] sm:$0xff] %v10851_v18  ;;  %v10862_v23 = vrot.slane %v10857_v20, %v10851_v18  ;;  %13638 = vst [vmem:[#allocation3_spill] sm:$0xff] %v10869_v31  ;;  %v10895_v42 = vrot.slane %v10857_v20, %v10869_v31  ;;  %v10900_v44 = vrot.slane %v10857_v20, %v10882_v35 }
   0x8   :  { %13639 = vst [vmem:[#allocation4_spill] sm:$0xff] %v10882_v35 }
   0xa   :  { %9536 = vset.pattern.permute.xlu1 %v10778_v6 }
   0xb   :  { %9541 = vset.pattern.permute.xlu0 %v10779_v7  ;;  %193 = vperm.xlu1 %9536, %v33_v2  }
   0xc   :  { %77 = vperm.xlu0 %9541, %v32_v3  }
   0xf   :  { %9537 = vset.pattern.permute.xlu1 %v10774_v0 }
  0x10   :  { %81 = vperm.xlu0 %9541, %v33_v2   ;;  %133 = vperm.xlu1 %9537, %v32_v3  }
  0x14   :  { %89 = vperm.xlu0 %9541, %v35_v8   ;;  %9539 = vset.pattern.permute.xlu1 %v10780_v9 }
  0x15   :  { %217 = vperm.xlu1 %9539, %v32_v3  }
  0x18   :  { %9545 = vset.pattern.permute.xlu0 %v10775_v1 }
  0x19   :  { %113 = vperm.xlu0 %9545, %v34_v10   ;;  %221 = vperm.xlu1 %9539, %v33_v2  }
  0x1d   :  { %9546 = vset.pattern.permute.xlu0 %v10778_v6  ;;  %9542 = vset.pattern.permute.xlu1 %v10777_v5 }
  0x1e   :  { %189 = vperm.xlu0 %9546, %v32_v3   ;;  %165 = vperm.xlu1 %9542, %v33_v2  }
  0x22   :  { %9543 = vset.pattern.permute.xlu1 %v10779_v7  ;;  %201 = vperm.xlu0 %9546, %v35_v8   ;;  %v10927_v7 = vsub.s32 4, %v10838_v13 }
  0x23   :  { %85 = vperm.xlu1 %9543, %v34_v10  }
  0x24   :  { %13640 = vst [vmem:[#allocation5_spill] sm:$0xff] %v10927_v7 }
  0x26   :  { %9550 = vset.pattern.permute.xlu0 %v10780_v9 }
  0x27   :  { %9544 = vset.pattern.permute.xlu1 %v10781_v11  ;;  %225 = vperm.xlu0 %9550, %v34_v10  }
  0x28   :  { %245 = vperm.xlu1 %9544, %v32_v3  }
  0x2b   :  { %9553 = vset.pattern.permute.xlu0 %v10777_v5 }
  0x2c   :  { %249 = vperm.xlu1 %9544, %v33_v2   ;;  %173 = vperm.xlu0 %9553, %v35_v8  }
  0x30   :  { %9547 = vset.pattern.permute.xlu1 %v10775_v1  ;;  %9555 = vset.pattern.permute.xlu0 %v13605_v4 }
  0x31   :  { %117 = vperm.xlu1 %9547, %v35_v8   ;;  %38 = vperm.xlu0 %9555, %v32_v3  }
  0x35   :  { %9548 = vset.pattern.permute.xlu1 %v10778_v6  ;;  %53 = vperm.xlu0 %9555, %v35_v8  }
  0x36   :  { %197 = vperm.xlu1 %9548, %v34_v10  }
  0x39   :  { %10007 = vset.pattern.permute.xlu0 %v10781_v11 }
  0x3a   :  { %9549 = vset.pattern.permute.xlu1 %v10774_v0 }
  0x3b   :  { %141 = vperm.xlu1 %9549, %v34_v10  }
  0x3f   :  { %145 = vperm.xlu1 %9549, %v35_v8  }
  0x43   :  { %9551 = vset.pattern.permute.xlu1 %v10780_v9  ;;  %v10931_v9 = vsub.s32 5, %v10838_v13 }
  0x44   :  { %229 = vperm.xlu1 %9551, %v35_v8  }
  0x45   :  { %13641 = vst [vmem:[#allocation6_spill] sm:$0xff] %v10931_v9 }
  0x48   :  { %9552 = vset.pattern.permute.xlu1 %v10777_v5 }
  0x49   :  { %169 = vperm.xlu1 %9552, %v34_v10  }
  0x4d   :  { %9554 = vset.pattern.permute.xlu1 %v10781_v11 }
  0x4e   :  { %253 = vperm.xlu1 %9554, %v34_v10  }
  0x52   :  { %257 = vperm.xlu1 %9554, %v35_v8  }
  0x56   :  { %9556 = vset.pattern.permute.xlu1 %v13605_v4 }
  0x57   :  { %43 = vperm.xlu1 %9556, %v33_v2  }
  0x5b   :  { %48 = vperm.xlu1 %9556, %v34_v10  }
  0x81   :  { %v106_v16 = vpop.permute.xlu1 %105  ;;  %v138_v17 = vpop.permute.xlu0 %137 }
  0x82   :  { %v120_v19 = vmul.f32 %v10843_v14, %v106_v16  ;;  %v149_v27 = vmul.f32 %v10843_v14, %v138_v17 }
  0x84   :  { %v124_v21 = vadd.f32 %v10848_v15, %v120_v19  ;;  %v153_v36 = vadd.f32 %v10848_v15, %v149_v27  ;;  %v10945_v19 = vrot.slane %v10857_v20, %v10927_v7 }
  0x85   :  { %v110_v22 = vpop.permute.xlu1 %109 }
  0x86   :  { %v128_v24 = vmax.f32 %v124_v21, 0.0  ;;  %v121_v25 = vmul.f32 %v10843_v14, %v110_v22  ;;  %v162_v26 = vpop.permute.xlu0 %161  ;;  %v157_v45 = vmax.f32 %v153_v36, 0.0  ;;  %v10949_v22 = vrot.slane %v10857_v20, %v10931_v9 }
  0x87   :  { %v176_v60 = vmul.f32 %v10843_v14, %v162_v26 }
  0x88   :  { %v125_v28 = vadd.f32 %v10848_v15, %v121_v25  ;;  %v305_v29 = vadd.f32 %v10862_v23, %v128_v24  ;;  %v318_v56 = vadd.f32 %v10900_v44, %v157_v45 }
  0x89   :  { %v180_v8 = vadd.f32 %v10848_v15, %v176_v60 }
  0x8a   :  { %v129_v30 = vmax.f32 %v125_v28, 0.0  ;;  %v194_v32 = vpop.permute.xlu1 %193  ;;  %v10888_v40 = vadd.f32 %v305_v29, %v10874_v33  ;;  %v322_v1 = vadd.f32 %v318_v56, %v10879_v34 }
  0x8b   :  { %v78_v37 = vpop.permute.xlu0 %77  ;;  %v205_v61 = vmul.f32 %v10843_v14, %v194_v32  ;;  %v184_v21 = vmax.f32 %v180_v8, 0.0  ;;  %v10989_v8 = vld [vmem:[%s13599_s2 + $0x28] sm:$0xff] }
  0x8c   :  { %v306_v38 = vadd.f32 %v10862_v23, %v129_v30  ;;  %v92_v39 = vmul.f32 %v10843_v14, %v78_v37 }
  0x8d   :  { %v209_v10 = vadd.f32 %v10848_v15, %v205_v61 }
  0x8e   :  { %v10891_v41 = vadd.f32 %v306_v38, %v10879_v34  ;;  %v96_v43 = vadd.f32 %v10848_v15, %v92_v39  ;;  %v329_v38 = vadd.f32 %v10945_v19, %v184_v21  ;;  %v351_v39 = vsub.s32 6, %v10838_v13 }
  0x8f   :  { %v82_v46 = vpop.permute.xlu0 %81  ;;  %v134_v47 = vpop.permute.xlu1 %133  ;;  %v213_v24 = vmax.f32 %v209_v10, 0.0 }
  0x90   :  { %v100_v48 = vmax.f32 %v96_v43, 0.0  ;;  %v93_v49 = vmul.f32 %v10843_v14, %v82_v46  ;;  %v148_v50 = vmul.f32 %v10843_v14, %v134_v47  ;;  %v10906_v51 = vpack.i.bf16 %v10891_v41, %v10888_v40 }
  0x91   :  { %v342_v43 = vadd.f32 %v10949_v22, %v213_v24  ;;  %v10971_v56 = vrot.slane %v10857_v20, %v351_v39 }
  0x92   :  { %v293_v52 = vadd.f32 %v10895_v42, %v100_v48  ;;  %v97_v53 = vadd.f32 %v10848_v15, %v93_v49  ;;  %v152_v54 = vadd.f32 %v10848_v15, %v148_v50  ;;  %9563 = vrot.lane.b32.xlu0 %v10906_v51, %s10782_s14 }
  0x93   :  { %v90_v55 = vpop.permute.xlu0 %89 }
  0x94   :  { %v101_v57 = vmax.f32 %v97_v53, 0.0  ;;  %v156_v58 = vmax.f32 %v152_v54, 0.0  ;;  %v218_v59 = vpop.permute.xlu1 %217  ;;  %v10919_v0 = vadd.f32 %v293_v52, %v10874_v33  ;;  %v95_v16 = vmul.f32 %v10843_v14, %v90_v55 }
  0x95   :  { %v232_v27 = vmul.f32 %v10843_v14, %v218_v59  ;;  %v10968_v55 = vadd.f32 %v329_v38, %v10874_v33 }
  0x96   :  { %v294_v62 = vadd.f32 %v10895_v42, %v101_v57  ;;  %v317_v63 = vadd.f32 %v10900_v44, %v156_v58  ;;  %v99_v30 = vadd.f32 %v10848_v15, %v95_v16  ;;  %v10975_v58 = vadd.f32 %v342_v43, %v10879_v34 }
  0x97   :  { %v236_v45 = vadd.f32 %v10848_v15, %v232_v27 }
  0x98   :  { %v321_v2 = vadd.f32 %v317_v63, %v10874_v33  ;;  %v222_v3 = vpop.permute.xlu1 %221  ;;  %v114_v5 = vpop.permute.xlu0 %113  ;;  %v10924_v6 = vadd.f32 %v294_v62, %v10879_v34  ;;  %v103_v49 = vmax.f32 %v99_v30, 0.0 }
  0x99   :  { %v233_v17 = vmul.f32 %v10843_v14, %v222_v3  ;;  %v240_v59 = vmax.f32 %v236_v45, 0.0  ;;  %v122_v21 = vmul.f32 %v10843_v14, %v114_v5 }
  0x9a   :  { %v9557_v11 = vpack.i.bf16 %v10924_v6, %v10919_v0  ;;  %v10936_v12 = vpack.i.bf16 %v322_v1, %v321_v2  ;;  %v296_v62 = vadd.f32 %v10895_v42, %v103_v49  ;;  %v363_v1 = vsub.s32 7, %v10838_v13 }
  0x9b   :  { %v237_v32 = vadd.f32 %v10848_v15, %v233_v17 }
  0x9c   :  { %9558 = vrot.lane.b32.xlu1 %v9557_v11, %s10783_s15  ;;  %9573 = vrot.lane.b32.xlu0 %v10936_v12, %s10784_s16  ;;  %v10995_v11 = vld [vmem:[%s13599_s2 + $0x30] sm:$0xff]  ;;  %v11008_v27 = vrot.slane %v10857_v20, %v363_v1 }
  0x9d   :  { %v190_v25 = vpop.permute.xlu0 %189  ;;  %v166_v26 = vpop.permute.xlu1 %165  ;;  %v241_v52 = vmax.f32 %v237_v32, 0.0  ;;  %v11014_v5 = vadd.f32 %v296_v62, %v10995_v11 }
  0x9e   :  { %v204_v28 = vmul.f32 %v10843_v14, %v190_v25  ;;  %v177_v29 = vmul.f32 %v10843_v14, %v166_v26  ;;  %v353_v25 = vadd.f32 %v10971_v56, %v240_v59 }
  0x9f   :  { %v354_v3 = vadd.f32 %v10971_v56, %v241_v52 }
  0xa0   :  { %v208_v36 = vadd.f32 %v10848_v15, %v204_v28  ;;  %v181_v37 = vadd.f32 %v10848_v15, %v177_v29  ;;  %9583 = vrot.lane.b32.xlu0 %v10936_v12, %s10782_s14  ;;  %v11028_v45 = vadd.f32 %v353_v25, %v10874_v33 }
  0xa1   :  { %v202_v28 = vpop.permute.xlu0 %201 }
  0xa2   :  { %v212_v46 = vmax.f32 %v208_v36, 0.0  ;;  %v185_v47 = vmax.f32 %v181_v37, 0.0  ;;  %v86_v48 = vpop.permute.xlu1 %85  ;;  %v11018_v36 = vadd.f32 %v354_v3, %v10879_v34  ;;  %v126_v37 = vadd.f32 %v10848_v15, %v122_v21 }
  0xa3   :  { %v94_v50 = vmul.f32 %v10843_v14, %v86_v48  ;;  %v207_v39 = vmul.f32 %v10843_v14, %v202_v28 }
  0xa4   :  { %v341_v53 = vadd.f32 %v10949_v22, %v212_v46  ;;  %v330_v54 = vadd.f32 %v10945_v19, %v185_v47  ;;  %v9587_v49 = vpack.i.bf16 %v11018_v36, %v11028_v45 }
  0xa5   :  { %v98_v57 = vadd.f32 %v10848_v15, %v94_v50  ;;  %v130_v50 = vmax.f32 %v126_v37, 0.0 }
  0xa6   :  { %v10978_v60 = vadd.f32 %v341_v53, %v10874_v33  ;;  %v10981_v61 = vadd.f32 %v330_v54, %v10879_v34  ;;  %v211_v53 = vadd.f32 %v10848_v15, %v207_v39  ;;  %v226_v21 = vpop.permute.xlu0 %225 }
  0xa7   :  { %v102_v63 = vmax.f32 %v98_v57, 0.0  ;;  %v246_v2 = vpop.permute.xlu1 %245  ;;  %v307_v62 = vadd.f32 %v10862_v23, %v130_v50 }
  0xa8   :  { %v260_v10 = vmul.f32 %v10843_v14, %v246_v2  ;;  %v9567_v16 = vpack.i.bf16 %v10975_v58, %v10978_v60  ;;  %v9592_v17 = vpack.i.bf16 %v10981_v61, %v10968_v55  ;;  %v215_v2 = vmax.f32 %v211_v53, 0.0 }
  0xa9   :  { %v295_v24 = vadd.f32 %v10895_v42, %v102_v63 }
  0xaa   :  { %v264_v26 = vadd.f32 %v10848_v15, %v260_v10  ;;  %9568 = vrot.lane.b32.xlu1 %v9567_v16, %s10783_s15  ;;  %9593 = vrot.lane.b32.xlu0 %v9592_v17, %s10784_s16 }
  0xab   :  { %v250_v29 = vpop.permute.xlu1 %249  ;;  %v11011_v30 = vadd.f32 %v295_v24, %v10989_v8  ;;  %v174_v39 = vpop.permute.xlu0 %173 }
  0xac   :  { %v268_v42 = vmax.f32 %v264_v26, 0.0  ;;  %v261_v32 = vmul.f32 %v10843_v14, %v250_v29  ;;  %v11049_v26 = vadd.f32 %v307_v62, %v10989_v8  ;;  %v344_v29 = vadd.f32 %v10949_v22, %v215_v2 }
  0xad   :  { %v9602_v38 = vpack.i.bf16 %v11014_v5, %v11011_v30 }
  0xae   :  { %v265_v43 = vadd.f32 %v10848_v15, %v261_v32  ;;  %9578 = vrot.lane.b32.xlu1 %v10906_v51, %s10783_s15  ;;  %v365_v46 = vadd.f32 %v11008_v27, %v268_v42  ;;  %v234_v32 = vmul.f32 %v10843_v14, %v226_v21 }
  0xaf   :  { %9603 = vrot.lane.b32.xlu0 %v9602_v38, %s10783_s15 }
  0xb0   :  { %v269_v47 = vmax.f32 %v265_v43, 0.0  ;;  %v118_v48 = vpop.permute.xlu1 %117  ;;  %v369_v57 = vadd.f32 %v365_v46, %v10874_v33  ;;  %v11064_v46 = vadd.f32 %v344_v29, %v10995_v11 }
  0xb1   :  { %v123_v52 = vmul.f32 %v10843_v14, %v118_v48  ;;  %v238_v48 = vadd.f32 %v10848_v15, %v234_v32 }
  0xb2   :  { %v366_v54 = vadd.f32 %v11008_v27, %v269_v47  ;;  %9588 = vrot.lane.b32.xlu1 %v9587_v49, %s10783_s15 }
  0xb3   :  { %v127_v51 = vadd.f32 %v10848_v15, %v123_v52  ;;  %v242_v53 = vmax.f32 %v238_v48, 0.0 }
  0xb4   :  { %v370_v59 = vadd.f32 %v366_v54, %v10879_v34 }
  0xb5   :  { %v131_v63 = vmax.f32 %v127_v51, 0.0  ;;  %v198_v1 = vpop.permute.xlu1 %197 }
  0xb6   :  { %v206_v3 = vmul.f32 %v10843_v14, %v198_v1  ;;  %9598 = vrot.lane.b32.xlu1 %v10936_v12, %s10783_s15  ;;  %v9612_v10 = vpack.i.bf16 %v370_v59, %v369_v57  ;;  %v355_v1 = vadd.f32 %v10971_v56, %v242_v53 }
  0xb7   :  { %v308_v24 = vadd.f32 %v10862_v23, %v131_v63 }
  0xb8   :  { %v210_v25 = vadd.f32 %v10848_v15, %v206_v3  ;;  %9613 = vrot.lane.b32.xlu0 %v9612_v10, %s10783_s15 }
  0xb9   :  { %v11052_v28 = vadd.f32 %v308_v24, %v10995_v11 }
  0xba   :  { %v214_v42 = vmax.f32 %v210_v25, 0.0  ;;  %9608 = vrot.lane.b32.xlu1 %v9592_v17, %s10782_s14  ;;  %v142_v12 = vpop.permute.xlu1 %141 }
  0xbb   :  { %v150_v23 = vmul.f32 %v10843_v14, %v142_v12  ;;  %v9617_v37 = vpack.i.bf16 %v11052_v28, %v11049_v26 }
  0xbc   :  { %v343_v38 = vadd.f32 %v10949_v22, %v214_v42  ;;  %9623 = vrot.lane.b32.xlu0 %v9567_v16, %s10784_s16  ;;  %v179_v22 = vmul.f32 %v10843_v14, %v174_v39 }
  0xbd   :  { %v154_v43 = vadd.f32 %v10848_v15, %v150_v23 }
  0xbe   :  { %v11067_v17 = vadd.f32 %v343_v38, %v10989_v8  ;;  %9618 = vrot.lane.b32.xlu1 %v9617_v37, %s10782_s14  ;;  %v146_v47 = vpop.permute.xlu1 %145  ;;  %v183_v59 = vadd.f32 %v10848_v15, %v179_v22 }
  0xbf   :  { %v158_v49 = vmax.f32 %v154_v43, 0.0  ;;  %v151_v50 = vmul.f32 %v10843_v14, %v146_v47 }
  0xc0   :  { %v9627_v16 = vpack.i.bf16 %v11064_v46, %v11067_v17  ;;  %v187_v21 = vmax.f32 %v183_v59, 0.0 }
  0xc1   :  { %v155_v52 = vadd.f32 %v10848_v15, %v151_v50  ;;  %v319_v54 = vadd.f32 %v10900_v44, %v158_v49 }
  0xc2   :  { %9628 = vrot.lane.b32.xlu1 %v9627_v16, %s10783_s15  ;;  %v332_v32 = vadd.f32 %v10945_v19, %v187_v21 }
  0xc3   :  { %v159_v51 = vmax.f32 %v155_v52, 0.0  ;;  %v230_v57 = vpop.permute.xlu1 %229  ;;  %v323_v3 = vadd.f32 %v319_v54, %v10989_v8 }
  0xc4   :  { %v235_v62 = vmul.f32 %v10843_v14, %v230_v57 }
  0xc5   :  { %v320_v63 = vadd.f32 %v10900_v44, %v159_v51  ;;  %v11089_v44 = vadd.f32 %v355_v1, %v10989_v8 }
  0xc6   :  { %v239_v2 = vadd.f32 %v10848_v15, %v235_v62  ;;  %9638 = vrot.lane.b32.xlu1 %v9617_v37, %s10783_s15 }
  0xc7   :  { %v324_v10 = vadd.f32 %v320_v63, %v10995_v11 }
  0xc8   :  { %v243_v24 = vmax.f32 %v239_v2, 0.0  ;;  %v170_v25 = vpop.permute.xlu1 %169 }
  0xc9   :  { %v178_v29 = vmul.f32 %v10843_v14, %v170_v25  ;;  %v9632_v42 = vpack.i.bf16 %v324_v10, %v323_v3  ;;  %v39_v3 = vpop.permute.xlu0 %38 }
  0xca   :  { %v356_v12 = vadd.f32 %v10971_v56, %v243_v24  ;;  %v11101_v56 = vadd.f32 %v332_v32, %v10995_v11  ;;  %v60_v10 = vmul.f32 %v10843_v14, %v39_v3  ;;  %v11126_v24 = vsub.s32 0, %v10838_v13 }
  0xcb   :  { %v182_v23 = vadd.f32 %v10848_v15, %v178_v29  ;;  %9633 = vrot.lane.b32.xlu0 %v9632_v42, %s10784_s16 }
  0xcc   :  { %v11095_v37 = vadd.f32 %v356_v12, %v10995_v11  ;;  %13642 = vst [vmem:[#allocation7_spill] sm:$0xff] %v11126_v24 }
  0xcd   :  { %v186_v38 = vmax.f32 %v182_v23, 0.0  ;;  %v254_v39 = vpop.permute.xlu1 %253  ;;  %v54_v12 = vpop.permute.xlu0 %53 }
  0xce   :  { %v262_v43 = vmul.f32 %v10843_v14, %v254_v39  ;;  %v9647_v47 = vpack.i.bf16 %v11095_v37, %v11089_v44 }
  0xcf   :  { %v331_v48 = vadd.f32 %v10945_v19, %v186_v38  ;;  %9643 = vrot.lane.b32.xlu0 %v9632_v42, %s10782_s14 }
  0xd0   :  { %v266_v49 = vadd.f32 %v10848_v15, %v262_v43  ;;  %9648 = vrot.lane.b32.xlu1 %v9647_v47, %s10783_s15 }
  0xd1   :  { %v11108_v50 = vadd.f32 %v331_v48, %v10989_v8  ;;  %v258_v22 = vpop.permute.xlu1 %257 }
  0xd2   :  { %v270_v52 = vmax.f32 %v266_v49, 0.0  ;;  %v263_v53 = vmul.f32 %v10843_v14, %v258_v22 }
  0xd3   :  { %v9652_v54 = vpack.i.bf16 %v11101_v56, %v11108_v50 }
  0xd4   :  { %v267_v51 = vadd.f32 %v10848_v15, %v263_v53  ;;  %9658 = vrot.lane.b32.xlu1 %v9632_v42, %s10783_s15  ;;  %v367_v19 = vadd.f32 %v11008_v27, %v270_v52  ;;  %v11132_v42 = vrot.slane %v10857_v20, %v11126_v24 }
  0xd5   :  { %9653 = vrot.lane.b32.xlu0 %v9652_v54, %s10784_s16 }
  0xd6   :  { %v271_v57 = vmax.f32 %v267_v51, 0.0  ;;  %v371_v62 = vadd.f32 %v367_v19, %v10989_v8  ;;  %v44_v2 = vpop.permute.xlu1 %43 }
  0xd7   :  { %v61_v21 = vmul.f32 %v10843_v14, %v44_v2 }
  0xd8   :  { %v368_v59 = vadd.f32 %v11008_v27, %v271_v57  ;;  %v68_v27 = vadd.f32 %v10848_v15, %v60_v10 }
  0xd9   :  { %9663 = vrot.lane.b32.xlu0 %v9652_v54, %s10782_s14  ;;  %v69_v25 = vadd.f32 %v10848_v15, %v61_v21 }
  0xda   :  { %v372_v63 = vadd.f32 %v368_v59, %v10995_v11  ;;  %v49_v29 = vpop.permute.xlu1 %48 }
  0xdb   :  { %v73_v32 = vmax.f32 %v69_v25, 0.0 }
  0xdc   :  { %v9667_v1 = vpack.i.bf16 %v372_v63, %v371_v62 }
  0xdd   :  { %9673 = vrot.lane.b32.xlu0 %v9627_v16, %s10784_s16  ;;  %v72_v16 = vmax.f32 %v68_v27, 0.0  ;;  %v282_v38 = vadd.f32 %v11132_v42, %v73_v32 }
  0xde   :  { %9668 = vrot.lane.b32.xlu1 %v9667_v1, %s10783_s15 }
  0xdf   :  { %v281_v23 = vadd.f32 %v11132_v42, %v72_v16  ;;  %v286_v47 = vadd.f32 %v282_v38, %v10879_v34 }
  0xe1   :  { %v285_v13 = vadd.f32 %v281_v23, %v10874_v33 }
 0x104   :  { %v9564_v43 = vpop.permute.xlu0 %9563 }
 0x105   :  { %v9566_v53 = vunpack.i.h.bf16 %v9564_v43  ;;  %v9565_v54 = vunpack.i.l.bf16 %v9564_v43 }
 0x10e   :  { %v9559_v39 = vpop.permute.xlu1 %9558  ;;  %v9574_v22 = vpop.permute.xlu0 %9573 }
 0x10f   :  { %v9561_v48 = vunpack.i.h.bf16 %v9559_v39  ;;  %v9560_v49 = vunpack.i.l.bf16 %v9559_v39  ;;  %v9576_v57 = vunpack.i.h.bf16 %v9574_v22  ;;  %v9575_v33 = vunpack.i.l.bf16 %v9574_v22 }
 0x111   :  { %v546_v20 = vsel %vm545_vm0, %v285_v13, %v9560_v49  ;;  %v547_v52 = vsel %vm545_vm0, %v286_v47, %v9561_v48 }
 0x112   :  { %v559_v51 = vsel %vm558_vm1, %v546_v20, %v9565_v54  ;;  %v560_v19 = vsel %vm558_vm1, %v547_v52, %v9566_v53  ;;  %v9584_v59 = vpop.permute.xlu0 %9583 }
 0x113   :  { %v572_v1 = vsel %vm571_vm2, %v559_v51, %v9575_v33  ;;  %v573_v2 = vsel %vm571_vm2, %v560_v19, %v9576_v57  ;;  %v9586_v38 = vunpack.i.h.bf16 %v9584_v59  ;;  %v9585_v39 = vunpack.i.l.bf16 %v9584_v59 }
 0x114   :  { %v596_v23 = vpack.c.bf16 %v573_v2, %v572_v1  ;;  %v63_v51 = vmul.f32 %v10843_v14, %v54_v12  ;;  %v62_v59 = vmul.f32 %v10843_v14, %v49_v29 }
 0x116   :  { %v70_v14 = vadd.f32 %v10848_v15, %v62_v59 }
 0x11c   :  { %v9569_v34 = vpop.permute.xlu1 %9568  ;;  %v9594_v21 = vpop.permute.xlu0 %9593 }
 0x11d   :  { %v9571_v62 = vunpack.i.h.bf16 %v9569_v34  ;;  %v9570_v63 = vunpack.i.l.bf16 %v9569_v34  ;;  %v9595_v47 = vunpack.i.l.bf16 %v9594_v21 }
 0x11f   :  { %v584_v3 = vsel %vm545_vm0, %v10968_v55, %v9570_v63  ;;  %v585_v10 = vsel %vm545_vm0, %v10981_v61, %v9571_v62  ;;  %v9596_v55 = vunpack.i.h.bf16 %v9594_v21 }
 0x120   :  { %v9579_v27 = vpop.permute.xlu1 %9578  ;;  %v597_v25 = vpack.c.bf16 %v585_v10, %v584_v3  ;;  %v71_v3 = vadd.f32 %v10848_v15, %v63_v51 }
 0x121   :  { %v9581_v16 = vunpack.i.h.bf16 %v9579_v27  ;;  %v9580_v32 = vunpack.i.l.bf16 %v9579_v27  ;;  %v11154_v52 = vpop.permute.xlu0 %9603 }
 0x122   :  { %627 = vmatprep.subr.bf16.mxu0 %v597_v25 }
 0x123   :  { %v549_v43 = vsel %vm545_vm0, %v10924_v6, %v9581_v16  ;;  %v548_v13 = vsel %vm545_vm0, %v10919_v0, %v9580_v32  ;;  %628 = vmatpush1.bf16.msra.mxu0 %v596_v23 }
 0x124   :  { %v9589_v48 = vpop.permute.xlu1 %9588  ;;  %v561_v61 = vsel %vm558_vm1, %v548_v13, %v9585_v39  ;;  %v562_v49 = vsel %vm558_vm1, %v549_v43, %v9586_v38  ;;  %v75_v43 = vmax.f32 %v71_v3, 0.0  ;;  %v74_v13 = vmax.f32 %v70_v14, 0.0 }
 0x125   :  { %v9591_v22 = vunpack.i.h.bf16 %v9589_v48  ;;  %v9590_v20 = vunpack.i.l.bf16 %v9589_v48  ;;  %v574_v53 = vsel %vm571_vm2, %v561_v61, %v9595_v47  ;;  %v575_v54 = vsel %vm571_vm2, %v562_v49, %v9596_v55 }
 0x126   :  { %v598_v33 = vpack.c.bf16 %v575_v54, %v574_v53  ;;  %v284_v61 = vadd.f32 %v11132_v42, %v75_v43  ;;  %v283_v49 = vadd.f32 %v11132_v42, %v74_v13  ;;  %v9605_v42 = vunpack.i.l.bf16 %v11154_v52 }
 0x127   :  { %v586_v6 = vsel %vm545_vm0, %v10978_v60, %v9590_v20  ;;  %v587_v0 = vsel %vm545_vm0, %v10975_v58, %v9591_v22 }
 0x128   :  { %v9599_v19 = vpop.permute.xlu1 %9598  ;;  %v599_v57 = vpack.c.bf16 %v587_v0, %v586_v6  ;;  %v288_v54 = vadd.f32 %v284_v61, %v10995_v11  ;;  %v287_v6 = vadd.f32 %v283_v49, %v10989_v8  ;;  %v9606_v0 = vunpack.i.h.bf16 %v11154_v52 }
 0x129   :  { %v9601_v34 = vunpack.i.h.bf16 %v9599_v19  ;;  %v9600_v62 = vunpack.i.l.bf16 %v9599_v19 }
 0x12a   :  { %v9614_v63 = vpop.permute.xlu0 %9613  ;;  %629 = vmatprep.subr.bf16.mxu0 %v599_v57  ;;  %v552_v11 = vsel %vm545_vm0, %v287_v6, %v9605_v42  ;;  %v553_v8 = vsel %vm545_vm0, %v288_v54, %v9606_v0 }
 0x12b   :  { %v9616_v1 = vunpack.i.h.bf16 %v9614_v63  ;;  %v9615_v2 = vunpack.i.l.bf16 %v9614_v63  ;;  %630 = vmatpush1.bf16.msra.mxu0 %v598_v33  ;;  %v551_v29 = vsel %vm545_vm0, %v10891_v41, %v9601_v34  ;;  %v550_v27 = vsel %vm545_vm0, %v10888_v40, %v9600_v62  ;;  %v11181_v40 = vld [vmem:[%s13600_s1] sm:$0xff]  }
 0x12c   :  { %v9609_v60 = vpop.permute.xlu1 %9608 }
 0x12d   :  { %v9611_v10 = vunpack.i.h.bf16 %v9609_v60  ;;  %v9610_v21 = vunpack.i.l.bf16 %v9609_v60  ;;  %v588_v58 = vsel %vm545_vm0, %v11028_v45, %v9615_v2  ;;  %v589_v12 = vsel %vm545_vm0, %v11018_v36, %v9616_v1 }
 0x12e   :  { %v9624_v25 = vpop.permute.xlu0 %9623  ;;  %v601_v16 = vpack.c.bf16 %v589_v12, %v588_v58 }
 0x12f   :  { %v9626_v32 = vunpack.i.h.bf16 %v9624_v25  ;;  %v9625_v23 = vunpack.i.l.bf16 %v9624_v25  ;;  %v563_v38 = vsel %vm558_vm1, %v550_v27, %v9610_v21  ;;  %v564_v39 = vsel %vm558_vm1, %v551_v29, %v9611_v10  ;;  %v10010_v21 = vld [vmem:[%s13600_s1 + $0x10] sm:$0xff]  }
 0x130   :  { %v9619_v45 = vpop.permute.xlu1 %9618  ;;  %631 = vmatprep.subr.bf16.mxu0 %v601_v16 }
 0x131   :  { %v576_v36 = vsel %vm571_vm2, %v563_v38, %v9625_v23  ;;  %v577_v15 = vsel %vm571_vm2, %v564_v39, %v9626_v32  ;;  %v9621_v51 = vunpack.i.h.bf16 %v9619_v45  ;;  %v9620_v19 = vunpack.i.l.bf16 %v9619_v45 }
 0x132   :  { %v600_v41 = vpack.c.bf16 %v577_v15, %v576_v36 }
 0x133   :  { %v565_v52 = vsel %vm558_vm1, %v552_v11, %v9620_v19  ;;  %v566_v34 = vsel %vm558_vm1, %v553_v8, %v9621_v51  ;;  %v10017_v11 = vld [vmem:[%s13601_s3 + $0x10] sm:$0xff]  }
 0x134   :  { %v9629_v55 = vpop.permute.xlu1 %9628  ;;  %632 = vmatpush1.bf16.msra.mxu0 %v600_v41 }
 0x135   :  { %v9631_v47 = vunpack.i.h.bf16 %v9629_v55  ;;  %v9630_v48 = vunpack.i.l.bf16 %v9629_v55 }
 0x137   :  { %7908 = vmatmul.mubr.msk.bf16.vlgmr.msra.gmra.mrb[0].mxu0 %vm617_vm3, %v11181_v40  ;;  %v590_v22 = vsel %vm545_vm0, %v11108_v50, %v9630_v48  ;;  %v591_v20 = vsel %vm545_vm0, %v11101_v56, %v9631_v47  ;;  %v11199_v50 = vld [vmem:[%s13600_s1 + $0x8] sm:$0xff]  }
 0x138   :  { %v691_v53 = vpack.c.bf16 %v591_v20, %v590_v22  ;;  %669 = vmatprep.mubr.bf16.mxu0 %v13605_v4  ;;  %v9639_v57 = vpop.permute.xlu1 %9638 }
 0x139   :  { %v9641_v58 = vunpack.i.h.bf16 %v9639_v57  ;;  %v9640_v12 = vunpack.i.l.bf16 %v9639_v57 }
 0x13a   :  { %696 = vmatprep.subr.bf16.mxu1 %v691_v53 }
 0x13b   :  { %v555_v23 = vsel %vm545_vm0, %v11014_v5, %v9641_v58  ;;  %v554_v38 = vsel %vm545_vm0, %v11011_v30, %v9640_v12  ;;  %v10018_v12 = vld [vmem:[%s13601_s3 + $0x18] sm:$0xff]  }
 0x13d   :  { %v9634_v56 = vpop.permute.xlu0 %9633 }
 0x13e   :  { %v9636_v33 = vunpack.i.h.bf16 %v9634_v56  ;;  %v9635_v59 = vunpack.i.l.bf16 %v9634_v56 }
 0x13f   :  { %7909 = vmatmul.mubr.msk.bf16.gmra.mrb[4].mxu0 %vm617_vm3, %v11199_v50 }
 0x140   :  { %v578_v62 = vsel %vm571_vm2, %v565_v52, %v9635_v59  ;;  %v579_v63 = vsel %vm571_vm2, %v566_v34, %v9636_v33  ;;  %679 = vmatprep.mubr.bf16.mxu0 %v13605_v4  ;;  %v10015_v33 = vld [vmem:[%s13601_s3 + $0x70] sm:$0xff]  }
 0x141   :  { %v690_v1 = vpack.c.bf16 %v579_v63, %v578_v62  ;;  %v9644_v2 = vpop.permute.xlu0 %9643 }
 0x142   :  { %v9649_v3 = vpop.permute.xlu1 %9648  ;;  %v9646_v14 = vunpack.i.h.bf16 %v9644_v2  ;;  %v9645_v29 = vunpack.i.l.bf16 %v9644_v2 }
 0x143   :  { %v9651_v60 = vunpack.i.h.bf16 %v9649_v3  ;;  %v9650_v10 = vunpack.i.l.bf16 %v9649_v3  ;;  %697 = vmatpush1.bf16.msra.mxu1 %v690_v1 }
 0x144   :  { %v567_v15 = vsel %vm558_vm1, %v554_v38, %v9645_v29  ;;  %v10019_v38 = vld [vmem:[%s13601_s3 + $0x80] sm:$0xff]  }
 0x145   :  { %v592_v27 = vsel %vm545_vm0, %v11067_v17, %v9650_v10  ;;  %v593_v25 = vsel %vm545_vm0, %v11064_v46, %v9651_v60  ;;  %v568_v17 = vsel %vm558_vm1, %v555_v23, %v9646_v14 }
 0x146   :  { %v693_v16 = vpack.c.bf16 %v593_v25, %v592_v27  ;;  %v9659_v36 = vpop.permute.xlu1 %9658 }
 0x147   :  { %v9654_v32 = vpop.permute.xlu0 %9653  ;;  %7910 = vmatmul.mubr.msk.bf16.gmra.mrb[8].mxu0 %vm617_vm3, %v10010_v21  ;;  %v9661_v55 = vunpack.i.h.bf16 %v9659_v36  ;;  %v9660_v47 = vunpack.i.l.bf16 %v9659_v36 }
 0x148   :  { %v9656_v39 = vunpack.i.h.bf16 %v9654_v32  ;;  %v9655_v45 = vunpack.i.l.bf16 %v9654_v32  ;;  %698 = vmatprep.subr.bf16.mxu1 %v693_v16 }
 0x149   :  { %v557_v61 = vsel %vm545_vm0, %v11052_v28, %v9661_v55  ;;  %v556_v49 = vsel %vm545_vm0, %v11049_v26, %v9660_v47 }
 0x14a   :  { %v580_v46 = vsel %vm571_vm2, %v567_v15, %v9655_v45  ;;  %v581_v43 = vsel %vm571_vm2, %v568_v17, %v9656_v39 }
 0x14b   :  { %v9664_v13 = vpop.permute.xlu0 %9663  ;;  %v692_v41 = vpack.c.bf16 %v581_v43, %v580_v46  ;;  %v10020_v46 = vld [vmem:[%s13601_s3 + $0x20] sm:$0xff]  }
 0x14c   :  { %v9666_v5 = vunpack.i.h.bf16 %v9664_v13  ;;  %v9665_v48 = vunpack.i.l.bf16 %v9664_v13 }
 0x14d   :  { %699 = vmatpush1.bf16.msra.mxu1 %v692_v41 }
 0x14e   :  { %v569_v0 = vsel %vm558_vm1, %v556_v49, %v9665_v48  ;;  %v570_v42 = vsel %vm558_vm1, %v557_v61, %v9666_v5 }
 0x14f   :  { %v9674_v30 = vpop.permute.xlu0 %9673 }
 0x150   :  { %v9676_v22 = vunpack.i.h.bf16 %v9674_v30  ;;  %v9675_v20 = vunpack.i.l.bf16 %v9674_v30  ;;  %v9669_v53 = vpop.permute.xlu1 %9668 }
 0x151   :  { %v9671_v54 = vunpack.i.h.bf16 %v9669_v53  ;;  %v9670_v6 = vunpack.i.l.bf16 %v9669_v53 }
 0x152   :  { %v582_v51 = vsel %vm571_vm2, %v569_v0, %v9675_v20  ;;  %v583_v19 = vsel %vm571_vm2, %v570_v42, %v9676_v22  ;;  %v10023_v42 = vld [vmem:[%s13601_s3 + $0x90] sm:$0xff]  }
 0x153   :  { %v594_v56 = vsel %vm545_vm0, %v11089_v44, %v9670_v6  ;;  %v595_v28 = vsel %vm545_vm0, %v11095_v37, %v9671_v54  ;;  %v694_v57 = vpack.c.bf16 %v583_v19, %v582_v51  ;;  %v10011_v44 = vld [vmem:[%s13601_s3 + $0x60] sm:$0xff]   ;;  %v10012_v37 = vld [vmem:[%s13601_s3 + $0x68] sm:$0xff]   ;;  %v10024_v51 = vld [vmem:[%s13601_s3 + $0x30] sm:$0xff]  }
 0x154   :  { %v695_v26 = vpack.c.bf16 %v595_v28, %v594_v56  ;;  %v10021_v54 = vld [vmem:[%s13601_s3 + $0x28] sm:$0xff]  }
 0x155   :  { %v10022_v6 = vld [vmem:[%s13601_s3 + $0x88] sm:$0xff]  }
 0x156   :  { %700 = vmatprep.subr.bf16.mxu1 %v695_v26 }
 0x157   :  { %701 = vmatpush1.bf16.msra.mxu1 %v694_v57 }
 0x158   :  { %8806 = vmatprep.subr.bf16.mxu1 %v10011_v44 }
 0x15a   :  { %7911 = vmatmul.mubr.msk.bf16.vlgmr.msra.gmra.mrb[0].mxu1 %vm617_vm3, %v11181_v40  ;;  %v10013_v40 = vld [vmem:[%s13601_s3] sm:$0xff]  }
 0x15b   :  { %738 = vmatprep.mubr.bf16.mxu1 %v13605_v4  ;;  %8807 = vmatpush3.bf16.msra.mxu1 %v10011_v44 }
 0x15c   :  { %8808 = vmatprep.subr.bf16.mxu1 %v10012_v37  ;;  %8790 = vmatprep.subr.bf16.mxu0 %v10013_v40 }
 0x15d   :  { %8791 = vmatpush3.bf16.msra.mxu0 %v10013_v40  ;;  %v10026_v40 = vld [vmem:[%s13601_s3 + $0x98] sm:$0xff]  }
 0x15f   :  { %8809 = vmatpush3.bf16.msra.mxu1 %v10012_v37  ;;  %v10025_v37 = vld [vmem:[%s13601_s3 + $0x38] sm:$0xff]  }
 0x160   :  { %8838 = vmatprep.subr.bf16.mxu1 %v10015_v33 }
 0x162   :  { %7912 = vmatmul.mubr.msk.bf16.gmra.mrb[4].mxu1 %vm617_vm3, %v11199_v50  ;;  %v10014_v50 = vld [vmem:[%s13601_s3 + $0x8] sm:$0xff]  }
 0x163   :  { %748 = vmatprep.mubr.bf16.mxu1 %v13605_v4  ;;  %8792 = vmatprep.subr.bf16.mxu0 %v10014_v50 }
 0x164   :  { %8793 = vmatpush3.bf16.msra.mxu0 %v10014_v50 }
 0x165   :  { %8822 = vmatprep.subr.bf16.mxu0 %v10017_v11 }
 0x16a   :  { %7913 = vmatmul.mubr.msk.bf16.gmra.mrb[8].mxu1 %vm617_vm3, %v10010_v21  ;;  %v10016_v21 = vld [vmem:[%s13601_s3 + $0x78] sm:$0xff]  }
 0x20a   :  { %v661_v59 = vpop.f32.mrb[0].mxu0 }
 0x20b   :  { %v663_v8 = vpop.f32.mrb[1].mxu0 }
 0x20c   :  { %v665_v52 = vpop.f32.mrb[2].mxu0 }
 0x20d   :  { %v11263_v34 = vpack.c.bf16 %v665_v52, %v661_v59  ;;  %v667_v62 = vpop.f32.mrb[3].mxu0  ;;  %v10028_v59 = vld [vmem:[%s13601_s3 + $0x40] sm:$0xff]  }
 0x20e   :  { %v11265_v63 = vpack.c.bf16 %v667_v62, %v663_v8 }
 0x20f   :  { %1089 = vrot.lane.b32.xlu1 %v11263_v34, %s10784_s16  ;;  %8810 = vmatprep.mubr.msk.bf16.mxu1 %vm545_vm0, %v11263_v34 }
 0x210   :  { %8794 = vmatprep.mubr.msk.bf16.mxu0 %vm545_vm0, %v11263_v34 }
 0x212   :  { %v671_v1 = vpop.f32.mrb[4].mxu0 }
 0x213   :  { %v673_v2 = vpop.f32.mrb[5].mxu0 }
 0x214   :  { %v675_v3 = vpop.f32.mrb[6].mxu0 }
 0x215   :  { %v762_v60 = vpack.c.bf16 %v675_v3, %v671_v1  ;;  %v677_v10 = vpop.f32.mrb[7].mxu0  ;;  %v10029_v1 = vld [vmem:[%s13601_s3 + $0x48] sm:$0xff]  }
 0x216   :  { %v11276_v58 = vpack.c.bf16 %v677_v10, %v673_v2  ;;  %v10030_v2 = vld [vmem:[%s13601_s3 + $0xa8] sm:$0xff]   ;;  %v10032_v10 = vld [vmem:[%s13601_s3 + $0x50] sm:$0xff]  }
 0x217   :  { %1091 = vrot.lane.b32.xlu0 %v762_v60, %s10784_s16  ;;  %8811 = vmatmul.mubr.msk.bf16.vlgmr.msra.gmra.mrb[12].mxu1 %vm545_vm0, %v762_v60 }
 0x218   :  { %8795 = vmatmul.mubr.msk.bf16.vlgmr.msra.gmra.mrb[12].mxu0 %vm545_vm0, %v762_v60  ;;  %8839 = vmatpush3.bf16.msra.mxu1 %v10015_v33  ;;  %v10027_v33 = vld [vmem:[%s13601_s3 + $0xa0] sm:$0xff]  }
 0x219   :  { %8840 = vmatprep.subr.bf16.mxu1 %v10016_v21  ;;  %8823 = vmatpush3.bf16.msra.mxu0 %v10017_v11 }
 0x21a   :  { %v681_v14 = vpop.f32.mrb[8].mxu0  ;;  %8824 = vmatprep.subr.bf16.mxu0 %v10018_v12 }
 0x21b   :  { %v683_v29 = vpop.f32.mrb[9].mxu0 }
 0x21c   :  { %v685_v27 = vpop.f32.mrb[10].mxu0  ;;  %8841 = vmatpush3.bf16.msra.mxu1 %v10016_v21 }
 0x21d   :  { %v763_v25 = vpack.c.bf16 %v685_v27, %v681_v14  ;;  %v687_v16 = vpop.f32.mrb[11].mxu0  ;;  %8825 = vmatpush3.bf16.msra.mxu0 %v10018_v12  ;;  %8870 = vmatprep.subr.bf16.mxu1 %v10019_v38 }
 0x21e   :  { %v11284_v32 = vpack.c.bf16 %v687_v16, %v683_v29  ;;  %8854 = vmatprep.subr.bf16.mxu0 %v10020_v46  ;;  %v11409_v29 = vld [vmem:[%s13599_s2 + $0x40] sm:$0x3f] }
 0x21f   :  { %1093 = vrot.lane.b32.xlu1 %v763_v25, %s10784_s16  ;;  %8798 = vmatprep.mubr.msk.bf16.mxu0 %vm545_vm0, %v763_v25  ;;  %v11419_v27 = vrot.slane %v11409_v29, %v11126_v24 }
 0x220   :  { %8814 = vmatprep.mubr.msk.bf16.mxu1 %vm545_vm0, %v763_v25 }
 0x22d   :  { %v730_v23 = vpop.f32.mrb[0].mxu1 }
 0x22e   :  { %v732_v39 = vpop.f32.mrb[1].mxu1 }
 0x22f   :  { %v734_v45 = vpop.f32.mrb[2].mxu1 }
 0x230   :  { %v764_v36 = vpack.c.bf16 %v734_v45, %v730_v23  ;;  %v736_v15 = vpop.f32.mrb[3].mxu1 }
 0x231   :  { %v11292_v17 = vpack.c.bf16 %v736_v15, %v732_v39  ;;  %v10033_v15 = vld [vmem:[%s13601_s3 + $0x58] sm:$0xff]  }
 0x232   :  { %1095 = vrot.lane.b32.xlu0 %v764_v36, %s10784_s16  ;;  %8799 = vmatmul.mubr.msk.bf16.gmra.mrb[16].mxu0 %vm545_vm0, %v764_v36 }
 0x233   :  { %8815 = vmatmul.mubr.msk.bf16.gmra.mrb[16].mxu1 %vm545_vm0, %v764_v36 }
 0x235   :  { %v740_v43 = vpop.f32.mrb[4].mxu1 }
 0x236   :  { %v742_v13 = vpop.f32.mrb[5].mxu1 }
 0x237   :  { %v744_v41 = vpop.f32.mrb[6].mxu1 }
 0x238   :  { %v765_v55 = vpack.c.bf16 %v744_v41, %v740_v43  ;;  %v746_v47 = vpop.f32.mrb[7].mxu1 }
 0x239   :  { %v11300_v5 = vpack.c.bf16 %v746_v47, %v742_v13 }
 0x23a   :  { %1097 = vrot.lane.b32.xlu1 %v765_v55, %s10784_s16  ;;  %8802 = vmatprep.mubr.msk.bf16.mxu0 %vm545_vm0, %v765_v55 }
 0x23b   :  { %8818 = vmatprep.mubr.msk.bf16.mxu1 %vm545_vm0, %v765_v55 }
 0x23d   :  { %v750_v48 = vpop.f32.mrb[8].mxu1 }
 0x23e   :  { %v752_v30 = vpop.f32.mrb[9].mxu1  ;;  %1405 = vrot.lane.b32.xlu1 %v11263_v34, %s10782_s14 }
 0x23f   :  { %v754_v61 = vpop.f32.mrb[10].mxu1 }
 0x240   :  { %v766_v49 = vpack.c.bf16 %v754_v61, %v750_v48  ;;  %v756_v22 = vpop.f32.mrb[11].mxu1 }
 0x241   :  { %v11307_v20 = vpack.c.bf16 %v756_v22, %v752_v30 }
 0x242   :  { %1099 = vrot.lane.b32.xlu0 %v766_v49, %s10784_s16  ;;  %1409 = vrot.lane.b32.xlu1 %v763_v25, %s10782_s14 }
 0x243   :  { %8803 = vmatmul.mubr.msk.bf16.gmra.mrb[20].mxu0 %vm545_vm0, %v766_v49  ;;  %8819 = vmatmul.mubr.msk.bf16.gmra.mrb[20].mxu1 %vm545_vm0, %v766_v49 }
 0x246   :  { %1407 = vrot.lane.b32.xlu0 %v762_v60, %s10782_s14  ;;  %1413 = vrot.lane.b32.xlu1 %v765_v55, %s10782_s14 }
 0x24a   :  { %1411 = vrot.lane.b32.xlu0 %v764_v36, %s10782_s14  ;;  %1721 = vrot.lane.b32.xlu1 %v11263_v34, %s10783_s15 }
 0x24e   :  { %1415 = vrot.lane.b32.xlu0 %v766_v49, %s10782_s14  ;;  %1725 = vrot.lane.b32.xlu1 %v763_v25, %s10783_s15 }
 0x252   :  { %1723 = vrot.lane.b32.xlu0 %v762_v60, %s10783_s15  ;;  %1729 = vrot.lane.b32.xlu1 %v765_v55, %s10783_s15  ;;  %v10031_v60 = vld [vmem:[%s13601_s3 + $0xb0] sm:$0xff]  }
 0x256   :  { %1727 = vrot.lane.b32.xlu0 %v764_v36, %s10783_s15  ;;  %2353 = vrot.lane.b32.xlu1 %v11265_v63, %s10784_s16 }
 0x25a   :  { %1731 = vrot.lane.b32.xlu0 %v766_v49, %s10783_s15  ;;  %2357 = vrot.lane.b32.xlu1 %v11284_v32, %s10784_s16 }
 0x25e   :  { %2355 = vrot.lane.b32.xlu0 %v11276_v58, %s10784_s16  ;;  %2361 = vrot.lane.b32.xlu1 %v11300_v5, %s10784_s16 }
 0x262   :  { %2359 = vrot.lane.b32.xlu0 %v11292_v17, %s10784_s16 }
 0x266   :  { %2363 = vrot.lane.b32.xlu0 %v11307_v20, %s10784_s16 }
 0x281   :  { %v1090_v53 = vpop.permute.xlu1 %1089 }
 0x282   :  { %8842 = vmatprep.mubr.msk.bf16.mxu1 %vm545_vm0, %v1090_v53  ;;  %8826 = vmatprep.mubr.msk.bf16.mxu0 %vm545_vm0, %v1090_v53 }
 0x289   :  { %v1092_v0 = vpop.permute.xlu0 %1091 }
 0x28a   :  { %8843 = vmatmul.mubr.msk.bf16.vlgmr.msra.gmra.mrb[24].mxu1 %vm545_vm0, %v1092_v0  ;;  %8827 = vmatmul.mubr.msk.bf16.vlgmr.msra.gmra.mrb[24].mxu0 %vm545_vm0, %v1092_v0 }
 0x28b   :  { %8871 = vmatpush3.bf16.msra.mxu1 %v10019_v38  ;;  %8855 = vmatpush3.bf16.msra.mxu0 %v10020_v46 }
 0x28c   :  { %8856 = vmatprep.subr.bf16.mxu0 %v10021_v54  ;;  %8872 = vmatprep.subr.bf16.mxu1 %v10022_v6 }
 0x28f   :  { %8857 = vmatpush3.bf16.msra.mxu0 %v10021_v54  ;;  %8873 = vmatpush3.bf16.msra.mxu1 %v10022_v6 }
 0x290   :  { %8902 = vmatprep.subr.bf16.mxu1 %v10023_v42  ;;  %8886 = vmatprep.subr.bf16.mxu0 %v10024_v51 }
 0x291   :  { %v1094_v19 = vpop.permute.xlu1 %1093 }
 0x292   :  { %8830 = vmatprep.mubr.msk.bf16.mxu0 %vm545_vm0, %v1094_v19  ;;  %8846 = vmatprep.mubr.msk.bf16.mxu1 %vm545_vm0, %v1094_v19 }
 0x2a4   :  { %v1096_v56 = vpop.permute.xlu0 %1095 }
 0x2a5   :  { %8831 = vmatmul.mubr.msk.bf16.gmra.mrb[28].mxu0 %vm545_vm0, %v1096_v56  ;;  %8847 = vmatmul.mubr.msk.bf16.gmra.mrb[28].mxu1 %vm545_vm0, %v1096_v56 }
 0x2ac   :  { %v1098_v28 = vpop.permute.xlu1 %1097 }
 0x2ad   :  { %8834 = vmatprep.mubr.msk.bf16.mxu0 %vm545_vm0, %v1098_v28  ;;  %8850 = vmatprep.mubr.msk.bf16.mxu1 %vm545_vm0, %v1098_v28 }
 0x2b0   :  { %v1406_v57 = vpop.permute.xlu1 %1405 }
 0x2b4   :  { %v1100_v26 = vpop.permute.xlu0 %1099  ;;  %v1410_v50 = vpop.permute.xlu1 %1409 }
 0x2b5   :  { %8835 = vmatmul.mubr.msk.bf16.gmra.mrb[32].mxu0 %vm545_vm0, %v1100_v26  ;;  %8851 = vmatmul.mubr.msk.bf16.gmra.mrb[32].mxu1 %vm545_vm0, %v1100_v26 }
 0x2b6   :  { %8858 = vmatprep.mubr.msk.bf16.mxu0 %vm545_vm0, %v1406_v57  ;;  %8874 = vmatprep.mubr.msk.bf16.mxu1 %vm545_vm0, %v1406_v57 }
 0x2b8   :  { %v1408_v44 = vpop.permute.xlu0 %1407  ;;  %v1414_v8 = vpop.permute.xlu1 %1413 }
 0x2bc   :  { %v1412_v11 = vpop.permute.xlu0 %1411  ;;  %v1722_v34 = vpop.permute.xlu1 %1721 }
 0x2bd   :  { %8859 = vmatmul.mubr.msk.bf16.vlgmr.msra.gmra.mrb[36].mxu0 %vm545_vm0, %v1408_v44  ;;  %8875 = vmatmul.mubr.msk.bf16.vlgmr.msra.gmra.mrb[36].mxu1 %vm545_vm0, %v1408_v44 }
 0x2be   :  { %8862 = vmatprep.mubr.msk.bf16.mxu0 %vm545_vm0, %v1410_v50  ;;  %8878 = vmatprep.mubr.msk.bf16.mxu1 %vm545_vm0, %v1410_v50 }
 0x2bf   :  { %8903 = vmatpush3.bf16.msra.mxu1 %v10023_v42  ;;  %8887 = vmatpush3.bf16.msra.mxu0 %v10024_v51 }
 0x2c0   :  { %8888 = vmatprep.subr.bf16.mxu0 %v10025_v37  ;;  %8904 = vmatprep.subr.bf16.mxu1 %v10026_v40  ;;  %v1416_v52 = vpop.permute.xlu0 %1415  ;;  %v1726_v3 = vpop.permute.xlu1 %1725 }
 0x2c3   :  { %8889 = vmatpush3.bf16.msra.mxu0 %v10025_v37  ;;  %8905 = vmatpush3.bf16.msra.mxu1 %v10026_v40 }
 0x2c4   :  { %8934 = vmatprep.subr.bf16.mxu1 %v10027_v33  ;;  %8918 = vmatprep.subr.bf16.mxu0 %v10028_v59  ;;  %v1724_v62 = vpop.permute.xlu0 %1723  ;;  %v1730_v12 = vpop.permute.xlu1 %1729 }
 0x2c5   :  { %8863 = vmatmul.mubr.msk.bf16.gmra.mrb[40].mxu0 %vm545_vm0, %v1412_v11  ;;  %8879 = vmatmul.mubr.msk.bf16.gmra.mrb[40].mxu1 %vm545_vm0, %v1412_v11 }
 0x2c6   :  { %8866 = vmatprep.mubr.msk.bf16.mxu0 %vm545_vm0, %v1414_v8  ;;  %8882 = vmatprep.mubr.msk.bf16.mxu1 %vm545_vm0, %v1414_v8 }
 0x2c8   :  { %v1728_v21 = vpop.permute.xlu0 %1727  ;;  %v2354_v0 = vpop.permute.xlu1 %2353 }
 0x2cc   :  { %v1732_v14 = vpop.permute.xlu0 %1731  ;;  %v2358_v19 = vpop.permute.xlu1 %2357 }
 0x2cd   :  { %8867 = vmatmul.mubr.msk.bf16.gmra.mrb[44].mxu0 %vm545_vm0, %v1416_v52  ;;  %8883 = vmatmul.mubr.msk.bf16.gmra.mrb[44].mxu1 %vm545_vm0, %v1416_v52 }
 0x2ce   :  { %8890 = vmatprep.mubr.msk.bf16.mxu0 %vm545_vm0, %v1722_v34  ;;  %8906 = vmatprep.mubr.msk.bf16.mxu1 %vm545_vm0, %v1722_v34 }
 0x2d0   :  { %v2356_v51 = vpop.permute.xlu0 %2355 }
 0x2d5   :  { %8891 = vmatmul.mubr.msk.bf16.vlgmr.msra.gmra.mrb[48].mxu0 %vm545_vm0, %v1724_v62  ;;  %8907 = vmatmul.mubr.msk.bf16.vlgmr.msra.gmra.mrb[48].mxu1 %vm545_vm0, %v1724_v62 }
 0x2d6   :  { %8894 = vmatprep.mubr.msk.bf16.mxu0 %vm545_vm0, %v1726_v3  ;;  %8910 = vmatprep.mubr.msk.bf16.mxu1 %vm545_vm0, %v1726_v3 }
 0x2d7   :  { %8935 = vmatpush3.bf16.msra.mxu1 %v10027_v33  ;;  %8919 = vmatpush3.bf16.msra.mxu0 %v10028_v59 }
 0x2d8   :  { %8920 = vmatprep.subr.bf16.mxu0 %v10029_v1  ;;  %8936 = vmatprep.subr.bf16.mxu1 %v10030_v2 }
 0x2db   :  { %8921 = vmatpush3.bf16.msra.mxu0 %v10029_v1  ;;  %8937 = vmatpush3.bf16.msra.mxu1 %v10030_v2 }
 0x2dc   :  { %8966 = vmatprep.subr.bf16.mxu1 %v10031_v60  ;;  %8950 = vmatprep.subr.bf16.mxu0 %v10032_v10 }
 0x2dd   :  { %8895 = vmatmul.mubr.msk.bf16.gmra.mrb[52].mxu0 %vm545_vm0, %v1728_v21  ;;  %8911 = vmatmul.mubr.msk.bf16.gmra.mrb[52].mxu1 %vm545_vm0, %v1728_v21 }
 0x2de   :  { %8898 = vmatprep.mubr.msk.bf16.mxu0 %vm545_vm0, %v1730_v12  ;;  %8914 = vmatprep.mubr.msk.bf16.mxu1 %vm545_vm0, %v1730_v12 }
 0x2e5   :  { %8899 = vmatmul.mubr.msk.bf16.gmra.mrb[56].mxu0 %vm545_vm0, %v1732_v14  ;;  %8915 = vmatmul.mubr.msk.bf16.gmra.mrb[56].mxu1 %vm545_vm0, %v1732_v14 }
 0x2e6   :  { %8922 = vmatprep.mubr.msk.bf16.mxu0 %vm545_vm0, %v11265_v63  ;;  %8938 = vmatprep.mubr.msk.bf16.mxu1 %vm545_vm0, %v11265_v63  ;;  %v10034_v63 = vld [vmem:[%s13601_s3 + $0xb8] sm:$0xff]  }
 0x2ea   :  { %v8812_v25 = vpop.f32.mrb[12].mxu1 }
 0x2eb   :  { %v949_v16 = vadd.f32 %v8812_v25, %v11419_v27  ;;  %v940_v23 = vpop.f32.mrb[13].mxu1  ;;  %v8796_v38 = vpop.f32.mrb[12].mxu0 }
 0x2ec   :  { %v941_v39 = vadd.f32 %v940_v23, %v11419_v27  ;;  %v8813_v45 = vpop.f32.mrb[14].mxu1  ;;  %v843_v36 = vpop.f32.mrb[13].mxu0 }
 0x2ed   :  { %v7932_v46 = vmul.f32 -1.442695, %v949_v16  ;;  %v952_v43 = vadd.f32 %v8813_v45, %v11419_v27  ;;  %v943_v13 = vpop.f32.mrb[15].mxu1  ;;  %8923 = vmatmul.mubr.msk.bf16.vlgmr.msra.gmra.mrb[60].mxu0 %vm545_vm0, %v11276_v58  ;;  %8939 = vmatmul.mubr.msk.bf16.vlgmr.msra.gmra.mrb[60].mxu1 %vm545_vm0, %v11276_v58  ;;  %v8797_v41 = vpop.f32.mrb[14].mxu0 }
 0x2ee   :  { %v7930_v55 = vmul.f32 -1.442695, %v941_v39  ;;  %v944_v47 = vadd.f32 %v943_v13, %v11419_v27  ;;  %8926 = vmatprep.mubr.msk.bf16.mxu0 %vm545_vm0, %v11284_v32  ;;  %8942 = vmatprep.mubr.msk.bf16.mxu1 %vm545_vm0, %v11284_v32  ;;  %v846_v48 = vpop.f32.mrb[15].mxu0  ;;  %v2362_v45 = vpop.permute.xlu1 %2361 }
 0x2ef   :  { %10123 = vpow2.f32 %v7932_v46  ;;  %v7933_v30 = vmul.f32 -1.442695, %v952_v43  ;;  %8967 = vmatpush3.bf16.msra.mxu1 %v10031_v60  ;;  %8951 = vmatpush3.bf16.msra.mxu0 %v10032_v10 }
 0x2f0   :  { %10125 = vpow2.f32 %v7930_v55  ;;  %v7931_v61 = vmul.f32 -1.442695, %v944_v47  ;;  %8952 = vmatprep.subr.bf16.mxu0 %v10033_v15  ;;  %8968 = vmatprep.subr.bf16.mxu1 %v10034_v63 }
 0x2f1   :  { %10127 = vpow2.f32 %v7933_v30 }
 0x2f2   :  { %10129 = vpow2.f32 %v7931_v61 }
 0x2f3   :  { %8953 = vmatpush3.bf16.msra.mxu0 %v10033_v15  ;;  %8969 = vmatpush3.bf16.msra.mxu1 %v10034_v63 }
 0x2f5   :  { %8927 = vmatmul.mubr.msk.bf16.gmra.mrb[64].mxu0 %vm545_vm0, %v11292_v17  ;;  %8943 = vmatmul.mubr.msk.bf16.gmra.mrb[64].mxu1 %vm545_vm0, %v11292_v17  ;;  %v11456_v17 = vld [vmem:[%s13599_s2 + $0x38] sm:$0x3f] }
 0x2f6   :  { %8930 = vmatprep.mubr.msk.bf16.mxu0 %vm545_vm0, %v11300_v5  ;;  %8946 = vmatprep.mubr.msk.bf16.mxu1 %vm545_vm0, %v11300_v5  ;;  %v11460_v5 = vrot.slane %v11456_v17, %v11126_v24 }
 0x2f8   :  { %v852_v56 = vadd.f32 %v8796_v38, %v11460_v5  ;;  %v844_v26 = vadd.f32 %v843_v36, %v11460_v5  ;;  %v855_v50 = vadd.f32 %v8797_v41, %v11460_v5  ;;  %v847_v34 = vadd.f32 %v846_v48, %v11460_v5  ;;  %v2360_v38 = vpop.permute.xlu0 %2359 }
 0x2f9   :  { %v10124_v58 = vpop.eup %10123 }
 0x2fa   :  { %v10126_v32 = vpop.eup %10125  ;;  %v1025_v49 = vadd.f32 1.0, %v10124_v58 }
 0x2fb   :  { %v10128_v22 = vpop.eup %10127  ;;  %v1023_v53 = vadd.f32 1.0, %v10126_v32 }
 0x2fc   :  { %v10130_v54 = vpop.eup %10129  ;;  %10131 = vrcp.f32 %v1025_v49  ;;  %v1026_v6 = vadd.f32 1.0, %v10128_v22  ;;  %v2364_v36 = vpop.permute.xlu0 %2363 }
 0x2fd   :  { %10133 = vrcp.f32 %v1023_v53  ;;  %v1024_v42 = vadd.f32 1.0, %v10130_v54  ;;  %8931 = vmatmul.mubr.msk.bf16.gmra.mrb[68].mxu0 %vm545_vm0, %v11307_v20  ;;  %8947 = vmatmul.mubr.msk.bf16.gmra.mrb[68].mxu1 %vm545_vm0, %v11307_v20 }
 0x2fe   :  { %10135 = vrcp.f32 %v1026_v6  ;;  %8954 = vmatprep.mubr.msk.bf16.mxu0 %vm545_vm0, %v2354_v0  ;;  %8970 = vmatprep.mubr.msk.bf16.mxu1 %vm545_vm0, %v2354_v0 }
 0x2ff   :  { %10137 = vrcp.f32 %v1024_v42 }
 0x305   :  { %v11463_v20 = vpop.f32.mrb[16].mxu0  ;;  %8955 = vmatmul.mubr.msk.bf16.vlgmr.msra.gmra.mrb[72].mxu0 %vm545_vm0, %v2356_v51  ;;  %8971 = vmatmul.mubr.msk.bf16.vlgmr.msra.gmra.mrb[72].mxu1 %vm545_vm0, %v2356_v51 }
 0x306   :  { %v10132_v28 = vpop.eup %10131  ;;  %v8816_v57 = vpop.f32.mrb[16].mxu1  ;;  %8958 = vmatprep.mubr.msk.bf16.mxu0 %vm545_vm0, %v2358_v19  ;;  %8974 = vmatprep.mubr.msk.bf16.mxu1 %vm545_vm0, %v2358_v19 }
 0x307   :  { %v11468_v44 = vpop.f32.mrb[17].mxu0  ;;  %v10134_v37 = vpop.eup %10133  ;;  %v11472_v40 = vmul.f32 %v10132_v28, %v852_v56  ;;  %v965_v33 = vadd.f32 %v8816_v57, %v11419_v27 }
 0x308   :  { %v956_v59 = vpop.f32.mrb[17].mxu1  ;;  %v11476_v11 = vpop.f32.mrb[18].mxu0  ;;  %v11478_v52 = vmul.f32 %v10134_v37, %v844_v26  ;;  %v868_v26 = vadd.f32 %v11463_v20, %v11460_v5  ;;  %v860_v37 = vadd.f32 %v11468_v44, %v11460_v5 }
 0x309   :  { %v10136_v8 = vpop.eup %10135  ;;  %v957_v62 = vadd.f32 %v956_v59, %v11419_v27  ;;  %v8817_v1 = vpop.f32.mrb[18].mxu1  ;;  %v7936_v10 = vmul.f32 -1.442695, %v965_v33  ;;  %v871_v33 = vadd.f32 %v11476_v11, %v11460_v5 }
 0x30a   :  { %v11482_v2 = vpop.f32.mrb[19].mxu0  ;;  %v10138_v3 = vpop.eup %10137  ;;  %v11484_v60 = vmul.f32 %v10136_v8, %v855_v50  ;;  %v968_v21 = vadd.f32 %v8817_v1, %v11419_v27 }
 0x30b   :  { %v959_v12 = vpop.f32.mrb[19].mxu1  ;;  %v11487_v14 = vmul.f32 %v10138_v3, %v847_v34  ;;  %v7934_v25 = vmul.f32 -1.442695, %v957_v62  ;;  %10139 = vpow2.f32 %v7936_v10  ;;  %v863_v8 = vadd.f32 %v11482_v2, %v11460_v5 }
 0x30c   :  { %v960_v16 = vadd.f32 %v959_v12, %v11419_v27  ;;  %v7937_v23 = vmul.f32 -1.442695, %v968_v21 }
 0x30d   :  { %10141 = vpow2.f32 %v7934_v25  ;;  %8959 = vmatmul.mubr.msk.bf16.gmra.mrb[76].mxu0 %vm545_vm0, %v2360_v38  ;;  %8975 = vmatmul.mubr.msk.bf16.gmra.mrb[76].mxu1 %vm545_vm0, %v2360_v38 }
 0x30e   :  { %v7935_v39 = vmul.f32 -1.442695, %v960_v16  ;;  %10143 = vpow2.f32 %v7937_v23  ;;  %8962 = vmatprep.mubr.msk.bf16.mxu0 %vm545_vm0, %v2362_v45  ;;  %8978 = vmatprep.mubr.msk.bf16.mxu1 %vm545_vm0, %v2362_v45 }
 0x310   :  { %10145 = vpow2.f32 %v7935_v39 }
 0x315   :  { %v10140_v15 = vpop.eup %10139  ;;  %8963 = vmatmul.mubr.msk.bf16.gmra.mrb[80].mxu0 %vm545_vm0, %v2364_v36  ;;  %8979 = vmatmul.mubr.msk.bf16.gmra.mrb[80].mxu1 %vm545_vm0, %v2364_v36 }
 0x316   :  { %v1029_v46 = vadd.f32 1.0, %v10140_v15  ;;  %v8804_v43 = vpop.f32.mrb[20].mxu0  ;;  %v8820_v13 = vpop.f32.mrb[20].mxu1  ;;  %2935 = vmatprep.mubr.bf16.mxu0 %v13605_v4  ;;  %3004 = vmatprep.mubr.bf16.mxu1 %v13605_v4 }
 0x317   :  { %v10142_v63 = vpop.eup %10141  ;;  %v981_v47 = vadd.f32 %v8820_v13, %v11419_v27  ;;  %v875_v48 = vpop.f32.mrb[21].mxu0  ;;  %v884_v2 = vadd.f32 %v8804_v43, %v11460_v5  ;;  %v11532_v43 = vrot.slane %v11409_v29, %v10869_v31 }
 0x318   :  { %v10144_v41 = vpop.eup %10143  ;;  %v1027_v55 = vadd.f32 1.0, %v10142_v63  ;;  %v972_v30 = vpop.f32.mrb[21].mxu1  ;;  %10147 = vrcp.f32 %v1029_v46  ;;  %v876_v38 = vadd.f32 %v875_v48, %v11460_v5 }
 0x319   :  { %v1030_v58 = vadd.f32 1.0, %v10144_v41  ;;  %v973_v32 = vadd.f32 %v972_v30, %v11419_v27  ;;  %v8805_v49 = vpop.f32.mrb[22].mxu0  ;;  %v8821_v22 = vpop.f32.mrb[22].mxu1  ;;  %v7940_v54 = vmul.f32 -1.442695, %v981_v47 }
 0x31a   :  { %v10146_v61 = vpop.eup %10145  ;;  %10149 = vrcp.f32 %v1027_v55  ;;  %v878_v6 = vpop.f32.mrb[23].mxu0  ;;  %v984_v51 = vadd.f32 %v8821_v22, %v11419_v27  ;;  %v887_v45 = vadd.f32 %v8805_v49, %v11460_v5 }
 0x31b   :  { %v1028_v53 = vadd.f32 1.0, %v10146_v61  ;;  %v975_v0 = vpop.f32.mrb[23].mxu1  ;;  %10151 = vrcp.f32 %v1030_v58  ;;  %v7938_v42 = vmul.f32 -1.442695, %v973_v32  ;;  %v879_v63 = vadd.f32 %v878_v6, %v11460_v5 }
 0x31c   :  { %v976_v19 = vadd.f32 %v975_v0, %v11419_v27  ;;  %v7941_v56 = vmul.f32 -1.442695, %v984_v51 }
 0x31d   :  { %10153 = vrcp.f32 %v1028_v53 }
 0x31e   :  { %10155 = vpow2.f32 %v7940_v54  ;;  %v7939_v28 = vmul.f32 -1.442695, %v976_v19 }
 0x31f   :  { %10157 = vpow2.f32 %v7938_v42 }
 0x320   :  { %10159 = vpow2.f32 %v7941_v56 }
 0x321   :  { %10161 = vpow2.f32 %v7939_v28 }
 0x322   :  { %v10148_v57 = vpop.eup %10147 }
 0x323   :  { %v11508_v59 = vmul.f32 %v10148_v57, %v868_v26 }
 0x324   :  { %v10150_v50 = vpop.eup %10149 }
 0x325   :  { %v10152_v27 = vpop.eup %10151  ;;  %v11512_v34 = vmul.f32 %v10150_v50, %v860_v37 }
 0x326   :  { %v11514_v1 = vmul.f32 %v10152_v27, %v871_v33 }
 0x327   :  { %v10154_v62 = vpop.eup %10153 }
 0x328   :  { %v10156_v20 = vpop.eup %10155  ;;  %v11516_v3 = vmul.f32 %v10154_v62, %v863_v8  ;;  %v11540_v8 = vrot.slane %v11456_v17, %v10869_v31 }
 0x329   :  { %v10158_v10 = vpop.eup %10157  ;;  %v1033_v44 = vadd.f32 1.0, %v10156_v20 }
 0x32a   :  { %v10160_v21 = vpop.eup %10159  ;;  %v1031_v12 = vadd.f32 1.0, %v10158_v10 }
 0x32b   :  { %v10162_v25 = vpop.eup %10161  ;;  %10163 = vrcp.f32 %v1033_v44  ;;  %v1034_v11 = vadd.f32 1.0, %v10160_v21 }
 0x32c   :  { %10165 = vrcp.f32 %v1031_v12  ;;  %v1032_v16 = vadd.f32 1.0, %v10162_v25 }
 0x32d   :  { %10167 = vrcp.f32 %v1034_v11 }
 0x32e   :  { %10169 = vrcp.f32 %v1032_v16 }
 0x335   :  { %v10164_v23 = vpop.eup %10163 }
 0x336   :  { %v10166_v39 = vpop.eup %10165  ;;  %v11521_v36 = vmul.f32 %v10164_v23, %v884_v2 }
 0x337   :  { %v10168_v15 = vpop.eup %10167  ;;  %v11524_v46 = vmul.f32 %v10166_v39, %v876_v38 }
 0x338   :  { %13643 = vst [vmem:[#allocation8_spill] sm:$0xff] %v11521_v36  ;;  %v10170_v13 = vpop.eup %10169  ;;  %v11526_v41 = vmul.f32 %v10168_v15, %v887_v45 }
 0x339   :  { %13644 = vst [vmem:[#allocation9_spill] sm:$0xff] %v11524_v46  ;;  %v11528_v55 = vmul.f32 %v10170_v13, %v879_v63 }
 0x33a   :  { %13645 = vst [vmem:[#allocation10_spill] sm:$0xff] %v11526_v41 }
 0x33b   :  { %13646 = vst [vmem:[#allocation11_spill] sm:$0xff] %v11528_v55 }
 0x35d   :  { %v8844_v47 = vpop.f32.mrb[24].mxu1  ;;  %v8828_v48 = vpop.f32.mrb[24].mxu0 }
 0x35e   :  { %v1271_v30 = vadd.f32 %v8844_v47, %v11532_v43  ;;  %v1262_v61 = vpop.f32.mrb[25].mxu1  ;;  %v1165_v58 = vpop.f32.mrb[25].mxu0  ;;  %v1174_v62 = vadd.f32 %v8828_v48, %v11540_v8 }
 0x35f   :  { %v1263_v32 = vadd.f32 %v1262_v61, %v11532_v43  ;;  %v8845_v5 = vpop.f32.mrb[26].mxu1  ;;  %v8829_v49 = vpop.f32.mrb[26].mxu0  ;;  %v1166_v21 = vadd.f32 %v1165_v58, %v11540_v8 }
 0x360   :  { %v7960_v22 = vmul.f32 -1.442695, %v1271_v30  ;;  %v1274_v53 = vadd.f32 %v8845_v5, %v11532_v43  ;;  %v1265_v54 = vpop.f32.mrb[27].mxu1  ;;  %v1168_v6 = vpop.f32.mrb[27].mxu0  ;;  %v1177_v23 = vadd.f32 %v8829_v49, %v11540_v8 }
 0x361   :  { %v7958_v0 = vmul.f32 -1.442695, %v1263_v32  ;;  %v1266_v42 = vadd.f32 %v1265_v54, %v11532_v43  ;;  %v1169_v13 = vadd.f32 %v1168_v6, %v11540_v8 }
 0x362   :  { %10171 = vpow2.f32 %v7960_v22  ;;  %v7961_v51 = vmul.f32 -1.442695, %v1274_v53 }
 0x363   :  { %10173 = vpow2.f32 %v7958_v0  ;;  %v7959_v19 = vmul.f32 -1.442695, %v1266_v42 }
 0x364   :  { %10175 = vpow2.f32 %v7961_v51 }
 0x365   :  { %10177 = vpow2.f32 %v7959_v19 }
 0x36c   :  { %v10172_v56 = vpop.eup %10171 }
 0x36d   :  { %v10174_v28 = vpop.eup %10173  ;;  %v1347_v26 = vadd.f32 1.0, %v10172_v56 }
 0x36e   :  { %v10176_v57 = vpop.eup %10175  ;;  %v1345_v37 = vadd.f32 1.0, %v10174_v28 }
 0x36f   :  { %v10178_v50 = vpop.eup %10177  ;;  %10179 = vrcp.f32 %v1347_v26  ;;  %v1348_v33 = vadd.f32 1.0, %v10176_v57 }
 0x370   :  { %10181 = vrcp.f32 %v1345_v37  ;;  %v1346_v27 = vadd.f32 1.0, %v10178_v50 }
 0x371   :  { %10183 = vrcp.f32 %v1348_v33 }
 0x372   :  { %10185 = vrcp.f32 %v1346_v27 }
 0x378   :  { %v11543_v20 = vpop.f32.mrb[28].mxu0  ;;  %v8848_v10 = vpop.f32.mrb[28].mxu1 }
 0x379   :  { %v10180_v44 = vpop.eup %10179  ;;  %v1287_v12 = vadd.f32 %v8848_v10, %v11532_v43  ;;  %v11547_v25 = vpop.f32.mrb[29].mxu0 }
 0x37a   :  { %v1278_v11 = vpop.f32.mrb[29].mxu1  ;;  %v10182_v16 = vpop.eup %10181  ;;  %v11549_v2 = vmul.f32 %v10180_v44, %v1174_v62 }
 0x37b   :  { %v1279_v38 = vadd.f32 %v1278_v11, %v11532_v43  ;;  %v11553_v39 = vpop.f32.mrb[30].mxu0  ;;  %v8849_v45 = vpop.f32.mrb[30].mxu1  ;;  %v1381_v63 = vmul.f32 %v10182_v16, %v1166_v21  ;;  %v7964_v47 = vmul.f32 -1.442695, %v1287_v12 }
 0x37c   :  { %13647 = vst [vmem:[#allocation12_spill] sm:$0xff] %v11549_v2  ;;  %v10184_v15 = vpop.eup %10183  ;;  %v1290_v48 = vadd.f32 %v8849_v45, %v11532_v43  ;;  %v11557_v30 = vpop.f32.mrb[31].mxu0 }
 0x37d   :  { %v1281_v61 = vpop.f32.mrb[31].mxu1  ;;  %v10186_v58 = vpop.eup %10185  ;;  %v11559_v32 = vmul.f32 %v10184_v15, %v1177_v23  ;;  %v7962_v5 = vmul.f32 -1.442695, %v1279_v38  ;;  %10187 = vpow2.f32 %v7964_v47 }
 0x37e   :  { %v1282_v49 = vadd.f32 %v1281_v61, %v11532_v43  ;;  %v1382_v22 = vmul.f32 %v10186_v58, %v1169_v13  ;;  %v7965_v53 = vmul.f32 -1.442695, %v1290_v48  ;;  %v11584_v61 = vrot.slane %v11409_v29, %v10851_v18 }
 0x37f   :  { %13648 = vst [vmem:[#allocation13_spill] sm:$0xff] %v11559_v32  ;;  %10189 = vpow2.f32 %v7962_v5  ;;  %v9677_v6 = vpack.i.bf16 %v11559_v32, %v11549_v2 }
 0x380   :  { %v7963_v54 = vmul.f32 -1.442695, %v1282_v49  ;;  %10191 = vpow2.f32 %v7965_v53  ;;  %v9682_v0 = vpack.i.bf16 %v1382_v22, %v1381_v63 }
 0x381   :  { %9678 = vrot.lane.b32.xlu1 %v9677_v6, %s10783_s15 }
 0x382   :  { %10193 = vpow2.f32 %v7963_v54 }
 0x385   :  { %9683 = vrot.lane.b32.xlu1 %v9682_v0, %s10783_s15 }
 0x387   :  { %v10188_v42 = vpop.eup %10187 }
 0x388   :  { %v1351_v19 = vadd.f32 1.0, %v10188_v42  ;;  %v8836_v56 = vpop.f32.mrb[32].mxu0  ;;  %v8852_v28 = vpop.f32.mrb[32].mxu1 }
 0x389   :  { %v10190_v51 = vpop.eup %10189  ;;  %v11567_v37 = vadd.f32 %v8836_v56, %v11540_v8  ;;  %v1303_v50 = vadd.f32 %v8852_v28, %v11532_v43  ;;  %v1197_v33 = vpop.f32.mrb[33].mxu0 }
 0x38a   :  { %v10192_v26 = vpop.eup %10191  ;;  %v1349_v57 = vadd.f32 1.0, %v10190_v51  ;;  %v1294_v27 = vpop.f32.mrb[33].mxu1  ;;  %10195 = vrcp.f32 %v1351_v19  ;;  %v11571_v44 = vadd.f32 %v1197_v33, %v11540_v8  ;;  %v1190_v51 = vadd.f32 %v11543_v20, %v11540_v8 }
 0x38b   :  { %v1352_v10 = vadd.f32 1.0, %v10192_v26  ;;  %v1295_v21 = vadd.f32 %v1294_v27, %v11532_v43  ;;  %v8837_v12 = vpop.f32.mrb[34].mxu0  ;;  %v8853_v11 = vpop.f32.mrb[34].mxu1  ;;  %v7968_v23 = vmul.f32 -1.442695, %v1303_v50  ;;  %v1182_v50 = vadd.f32 %v11547_v25, %v11540_v8 }
 0x38c   :  { %v10194_v62 = vpop.eup %10193  ;;  %10197 = vrcp.f32 %v1349_v57  ;;  %v11575_v38 = vadd.f32 %v8837_v12, %v11540_v8  ;;  %v1200_v45 = vpop.f32.mrb[35].mxu0  ;;  %v1306_v13 = vadd.f32 %v8853_v11, %v11532_v43  ;;  %v1185_v11 = vadd.f32 %v11557_v30, %v11540_v8 }
 0x38d   :  { %v1350_v16 = vadd.f32 1.0, %v10194_v62  ;;  %v1297_v15 = vpop.f32.mrb[35].mxu1  ;;  %10199 = vrcp.f32 %v1352_v10  ;;  %v7966_v63 = vmul.f32 -1.442695, %v1295_v21  ;;  %v11579_v47 = vadd.f32 %v1200_v45, %v11540_v8 }
 0x38e   :  { %v1298_v48 = vadd.f32 %v1297_v15, %v11532_v43  ;;  %v7969_v58 = vmul.f32 -1.442695, %v1306_v13  ;;  %v1193_v10 = vadd.f32 %v11553_v39, %v11540_v8 }
 0x38f   :  { %10201 = vrcp.f32 %v1350_v16 }
 0x390   :  { %10203 = vpow2.f32 %v7968_v23  ;;  %v7967_v5 = vmul.f32 -1.442695, %v1298_v48  ;;  %v11586_v49 = vpop.f32.mrb[36].mxu0  ;;  %v8876_v22 = vpop.f32.mrb[36].mxu1 }
 0x391   :  { %10205 = vpow2.f32 %v7966_v63  ;;  %v1587_v53 = vadd.f32 %v8876_v22, %v11584_v61  ;;  %v11589_v54 = vpop.f32.mrb[37].mxu0  ;;  %v1578_v6 = vpop.f32.mrb[37].mxu1 }
 0x392   :  { %10207 = vpow2.f32 %v7969_v58  ;;  %v1579_v43 = vadd.f32 %v1578_v6, %v11584_v61  ;;  %v11592_v0 = vpop.f32.mrb[38].mxu0  ;;  %v8877_v42 = vpop.f32.mrb[38].mxu1 }
 0x393   :  { %10209 = vpow2.f32 %v7967_v5  ;;  %v7988_v19 = vmul.f32 -1.442695, %v1587_v53  ;;  %v1590_v56 = vadd.f32 %v8877_v42, %v11584_v61  ;;  %v11597_v28 = vpop.f32.mrb[39].mxu0  ;;  %v1581_v26 = vpop.f32.mrb[39].mxu1 }
 0x394   :  { %v10196_v57 = vpop.eup %10195  ;;  %v7986_v33 = vmul.f32 -1.442695, %v1579_v43  ;;  %v1582_v27 = vadd.f32 %v1581_v26, %v11584_v61 }
 0x395   :  { %10211 = vpow2.f32 %v7988_v19  ;;  %v7989_v21 = vmul.f32 -1.442695, %v1590_v56  ;;  %v1387_v20 = vmul.f32 %v10196_v57, %v1190_v51 }
 0x396   :  { %v10198_v62 = vpop.eup %10197  ;;  %10213 = vpow2.f32 %v7986_v33  ;;  %v7987_v16 = vmul.f32 -1.442695, %v1582_v27 }
 0x397   :  { %v10200_v12 = vpop.eup %10199  ;;  %v1385_v23 = vmul.f32 %v10198_v62, %v1182_v50  ;;  %10215 = vpow2.f32 %v7989_v21 }
 0x398   :  { %v1388_v25 = vmul.f32 %v10200_v12, %v1193_v10  ;;  %10217 = vpow2.f32 %v7987_v16  ;;  %v11606_v63 = vpop.f32.mrb[40].mxu0  ;;  %v8880_v13 = vpop.f32.mrb[40].mxu1 }
 0x399   :  { %v10202_v45 = vpop.eup %10201  ;;  %v1603_v5 = vadd.f32 %v8880_v13, %v11584_v61  ;;  %v11609_v22 = vpop.f32.mrb[41].mxu0 }
 0x39a   :  { %v10204_v15 = vpop.eup %10203  ;;  %v1386_v48 = vmul.f32 %v10202_v45, %v1185_v11  ;;  %v1594_v53 = vpop.f32.mrb[41].mxu1  ;;  %v9687_v8 = vpack.i.bf16 %v1388_v25, %v1387_v20  ;;  %v11622_v11 = vrot.slane %v11456_v17, %v10851_v18 }
 0x39b   :  { %v10206_v39 = vpop.eup %10205  ;;  %v1355_v58 = vadd.f32 1.0, %v10204_v15  ;;  %v1595_v43 = vadd.f32 %v1594_v53, %v11584_v61  ;;  %v11612_v42 = vpop.f32.mrb[42].mxu0  ;;  %v7992_v57 = vmul.f32 -1.442695, %v1603_v5 }
 0x39c   :  { %v10208_v30 = vpop.eup %10207  ;;  %v1353_v6 = vadd.f32 1.0, %v10206_v39  ;;  %v8881_v51 = vpop.f32.mrb[42].mxu1  ;;  %v9692_v19 = vpack.i.bf16 %v1386_v48, %v1385_v23  ;;  %9688 = vrot.lane.b32.xlu0 %v9687_v8, %s10783_s15 }
 0x39d   :  { %v10210_v56 = vpop.eup %10209  ;;  %10219 = vrcp.f32 %v1355_v58  ;;  %v1356_v26 = vadd.f32 1.0, %v10208_v30  ;;  %v1597_v50 = vpop.f32.mrb[43].mxu1  ;;  %v7990_v62 = vmul.f32 -1.442695, %v1595_v43  ;;  %v1606_v10 = vadd.f32 %v8881_v51, %v11584_v61 }
 0x39e   :  { %v11615_v33 = vpop.f32.mrb[43].mxu0  ;;  %10221 = vrcp.f32 %v1353_v6  ;;  %v1354_v27 = vadd.f32 1.0, %v10210_v56  ;;  %9693 = vrot.lane.b32.xlu1 %v9692_v19, %s10783_s15  ;;  %v1598_v20 = vadd.f32 %v1597_v50, %v11584_v61 }
 0x39f   :  { %10223 = vrcp.f32 %v1356_v26  ;;  %v7993_v21 = vmul.f32 -1.442695, %v1606_v10  ;;  %v10212_v12 = vpop.eup %10211 }
 0x3a0   :  { %10225 = vrcp.f32 %v1354_v27  ;;  %v10214_v16 = vpop.eup %10213  ;;  %v1663_v23 = vadd.f32 1.0, %v10212_v12  ;;  %v8868_v45 = vpop.f32.mrb[44].mxu0  ;;  %v7991_v30 = vmul.f32 -1.442695, %v1598_v20  ;;  %v11640_v20 = vrot.slane %v11409_v29, %v10882_v35 }
 0x3a1   :  { %10227 = vpow2.f32 %v7992_v57  ;;  %v8884_v25 = vpop.f32.mrb[44].mxu1  ;;  %v10216_v15 = vpop.eup %10215  ;;  %v1661_v13 = vadd.f32 1.0, %v10214_v16  ;;  %v11625_v48 = vadd.f32 %v8868_v45, %v11622_v11 }
 0x3a2   :  { %10229 = vpow2.f32 %v7990_v62  ;;  %v1619_v39 = vadd.f32 %v8884_v25, %v11584_v61  ;;  %v11628_v58 = vpop.f32.mrb[45].mxu0  ;;  %v1610_v5 = vpop.f32.mrb[45].mxu1  ;;  %v1664_v8 = vadd.f32 1.0, %v10216_v15 }
 0x3a3   :  { %10231 = vpow2.f32 %v7993_v21  ;;  %v10218_v53 = vpop.eup %10217  ;;  %v1611_v6 = vadd.f32 %v1610_v5, %v11584_v61  ;;  %v8869_v43 = vpop.f32.mrb[46].mxu0 }
 0x3a4   :  { %10233 = vrcp.f32 %v1663_v23  ;;  %v8885_v51 = vpop.f32.mrb[46].mxu1  ;;  %v1662_v19 = vadd.f32 1.0, %v10218_v53  ;;  %v7996_v56 = vmul.f32 -1.442695, %v1619_v39  ;;  %v11632_v26 = vadd.f32 %v8869_v43, %v11622_v11  ;;  %v11634_v57 = vpop.f32.mrb[47].mxu0 }
 0x3a5   :  { %10235 = vrcp.f32 %v1661_v13  ;;  %v1613_v50 = vpop.f32.mrb[47].mxu1  ;;  %v7994_v27 = vmul.f32 -1.442695, %v1611_v6  ;;  %v1622_v62 = vadd.f32 %v8885_v51, %v11584_v61  ;;  %v1490_v43 = vadd.f32 %v11586_v49, %v11622_v11 }
 0x3a6   :  { %10237 = vrcp.f32 %v1664_v8  ;;  %v1614_v21 = vadd.f32 %v1613_v50, %v11584_v61  ;;  %v1493_v49 = vadd.f32 %v11592_v0, %v11622_v11 }
 0x3a7   :  { %v10220_v10 = vpop.eup %10219  ;;  %10239 = vrcp.f32 %v1662_v19  ;;  %v7997_v16 = vmul.f32 -1.442695, %v1622_v62 }
 0x3a8   :  { %v10222_v12 = vpop.eup %10221  ;;  %10241 = vpow2.f32 %v7991_v30  ;;  %v11643_v23 = vmul.f32 %v10220_v10, %v11567_v37  ;;  %v7995_v25 = vmul.f32 -1.442695, %v1614_v21  ;;  %v11648_v39 = vpop.f32.mrb[48].mxu0 }
 0x3a9   :  { %v10224_v45 = vpop.eup %10223  ;;  %10243 = vpow2.f32 %v7996_v56  ;;  %v11646_v15 = vmul.f32 %v10222_v12, %v11571_v44  ;;  %v8908_v61 = vpop.f32.mrb[48].mxu1 }
 0x3aa   :  { %v10226_v13 = vpop.eup %10225  ;;  %10245 = vpow2.f32 %v7994_v27  ;;  %v11651_v5 = vmul.f32 %v10224_v45, %v11575_v38  ;;  %v1903_v8 = vadd.f32 %v8908_v61, %v11640_v20  ;;  %v11654_v37 = vpop.f32.mrb[49].mxu0  ;;  %v1482_v27 = vadd.f32 %v11589_v54, %v11622_v11 }
 0x3ab   :  { %v10228_v53 = vpop.eup %10227  ;;  %10247 = vpow2.f32 %v7997_v16  ;;  %v1894_v30 = vpop.f32.mrb[49].mxu1  ;;  %v11657_v6 = vmul.f32 %v10226_v13, %v11579_v47 }
 0x3ac   :  { %v10230_v44 = vpop.eup %10229  ;;  %v1667_v51 = vadd.f32 1.0, %v10228_v53  ;;  %10249 = vpow2.f32 %v7995_v25  ;;  %v1895_v19 = vadd.f32 %v1894_v30, %v11640_v20  ;;  %v11662_v38 = vpop.f32.mrb[50].mxu0  ;;  %v8016_v10 = vmul.f32 -1.442695, %v1903_v8 }
 0x3ad   :  { %v8909_v56 = vpop.f32.mrb[50].mxu1  ;;  %v10232_v50 = vpop.eup %10231  ;;  %v1665_v62 = vadd.f32 1.0, %v10230_v44  ;;  %v1485_v30 = vadd.f32 %v11597_v28, %v11622_v11 }
 0x3ae   :  { %v1906_v47 = vadd.f32 %v8909_v56, %v11640_v20  ;;  %v11667_v21 = vpop.f32.mrb[51].mxu0  ;;  %v1897_v12 = vpop.f32.mrb[51].mxu1  ;;  %10251 = vrcp.f32 %v1667_v51  ;;  %v1668_v45 = vadd.f32 1.0, %v10232_v50  ;;  %v8014_v25 = vmul.f32 -1.442695, %v1895_v19 }
 0x3af   :  { %v10234_v16 = vpop.eup %10233  ;;  %10253 = vrcp.f32 %v1665_v62  ;;  %v1898_v53 = vadd.f32 %v1897_v12, %v11640_v20 }
 0x3b0   :  { %v10236_v13 = vpop.eup %10235  ;;  %v8017_v61 = vmul.f32 -1.442695, %v1906_v47  ;;  %v11672_v54 = vmul.f32 %v10234_v16, %v1490_v43  ;;  %10255 = vrcp.f32 %v1668_v45  ;;  %v11682_v62 = vpop.f32.mrb[52].mxu0 }
 0x3b1   :  { %v10238_v8 = vpop.eup %10237  ;;  %v11676_v44 = vmul.f32 %v10236_v13, %v1482_v27  ;;  %10257 = vpow2.f32 %v8016_v10  ;;  %v8015_v19 = vmul.f32 -1.442695, %v1898_v53  ;;  %v8912_v43 = vpop.f32.mrb[52].mxu1 }
 0x3b2   :  { %13649 = vst [vmem:[#allocation14_spill] sm:$0xff] %v11672_v54  ;;  %v10240_v51 = vpop.eup %10239  ;;  %v11680_v56 = vmul.f32 %v10238_v8, %v1493_v49  ;;  %10259 = vpow2.f32 %v8014_v25  ;;  %v1919_v27 = vadd.f32 %v8912_v43, %v11640_v20  ;;  %v11687_v16 = vpop.f32.mrb[53].mxu0  ;;  %v11691_v49 = vrot.slane %v11456_v17, %v10882_v35 }
 0x3b3   :  { %v10242_v50 = vpop.eup %10241  ;;  %v11684_v47 = vmul.f32 %v10240_v51, %v1485_v30  ;;  %10261 = vpow2.f32 %v8017_v61  ;;  %v1910_v45 = vpop.f32.mrb[53].mxu1  ;;  %v1506_v61 = vadd.f32 %v11606_v63, %v11622_v11 }
 0x3b4   :  { %13650 = vst [vmem:[#allocation15_spill] sm:$0xff] %v11680_v56  ;;  %v10244_v12 = vpop.eup %10243  ;;  %v1666_v28 = vadd.f32 1.0, %v10242_v50  ;;  %10263 = vpow2.f32 %v8015_v19  ;;  %v1911_v25 = vadd.f32 %v1910_v45, %v11640_v20  ;;  %v11694_v53 = vpop.f32.mrb[54].mxu0  ;;  %v8020_v50 = vmul.f32 -1.442695, %v1919_v27 }
 0x3b5   :  { %v10246_v13 = vpop.eup %10245  ;;  %v1671_v10 = vadd.f32 1.0, %v10244_v12  ;;  %v8913_v8 = vpop.f32.mrb[54].mxu1  ;;  %v9697_v32 = vpack.i.bf16 %v11680_v56, %v11672_v54 }
 0x3b6   :  { %v10248_v30 = vpop.eup %10247  ;;  %10265 = vrcp.f32 %v1666_v28  ;;  %v1669_v51 = vadd.f32 1.0, %v10246_v13  ;;  %v1913_v43 = vpop.f32.mrb[55].mxu1  ;;  %v8018_v0 = vmul.f32 -1.442695, %v1911_v25  ;;  %v1922_v19 = vadd.f32 %v8913_v8, %v11640_v20 }
 0x3b7   :  { %v11698_v4 = vpop.f32.mrb[55].mxu0  ;;  %v10250_v12 = vpop.eup %10249  ;;  %10267 = vrcp.f32 %v1671_v10  ;;  %v1672_v17 = vadd.f32 1.0, %v10248_v30  ;;  %v1914_v35 = vadd.f32 %v1913_v43, %v11640_v20  ;;  %v1498_v28 = vadd.f32 %v11609_v22, %v11622_v11  ;;  %9698 = vrot.lane.b32.xlu0 %v9697_v32, %s10782_s14 }
 0x3b8   :  { %10269 = vrcp.f32 %v1669_v51  ;;  %v1670_v45 = vadd.f32 1.0, %v10250_v12  ;;  %v10252_v63 = vpop.eup %10251  ;;  %v8021_v27 = vmul.f32 -1.442695, %v1922_v19  ;;  %v9702_v13 = vpack.i.bf16 %v11684_v47, %v11676_v44  ;;  %v8900_v43 = vpop.f32.mrb[56].mxu0 }
 0x3b9   :  { %10271 = vrcp.f32 %v1672_v17  ;;  %v10254_v10 = vpop.eup %10253  ;;  %v1509_v25 = vadd.f32 %v11612_v42, %v11622_v11  ;;  %v8019_v8 = vmul.f32 -1.442695, %v1914_v35  ;;  %v1703_v30 = vmul.f32 %v10252_v63, %v1506_v61  ;;  %v8916_v12 = vpop.f32.mrb[56].mxu1 }
 0x3ba   :  { %10273 = vrcp.f32 %v1670_v45  ;;  %v10256_v51 = vpop.eup %10255  ;;  %v11711_v56 = vmul.f32 %v10254_v10, %v1498_v28  ;;  %v11715_v22 = vrot.slane %v11409_v29, %v10927_v7  ;;  %v11718_v47 = vadd.f32 %v8900_v43, %v11691_v49  ;;  %v11721_v42 = vpop.f32.mrb[57].mxu0 }
 0x3bb   :  { %10275 = vpow2.f32 %v8020_v50  ;;  %v10258_v44 = vpop.eup %10257  ;;  %v1935_v35 = vadd.f32 %v8916_v12, %v11640_v20  ;;  %v1926_v32 = vpop.f32.mrb[57].mxu1  ;;  %v1704_v61 = vmul.f32 %v10256_v51, %v1509_v25  ;;  %v1501_v17 = vadd.f32 %v11615_v33, %v11622_v11  ;;  %9703 = vrot.lane.b32.xlu0 %v9702_v13, %s10782_s14 }
 0x3bc   :  { %10277 = vpow2.f32 %v8018_v0  ;;  %v10260_v50 = vpop.eup %10259  ;;  %v1979_v19 = vadd.f32 1.0, %v10258_v44  ;;  %v1927_v29 = vadd.f32 %v1926_v32, %v11640_v20  ;;  %v8901_v45 = vpop.f32.mrb[58].mxu0  ;;  %v1514_v28 = vadd.f32 %v11628_v58, %v11622_v11 }
 0x3bd   :  { %10279 = vpow2.f32 %v8021_v27  ;;  %v8917_v63 = vpop.f32.mrb[58].mxu1  ;;  %v10262_v0 = vpop.eup %10261  ;;  %v1977_v10 = vadd.f32 1.0, %v10260_v50  ;;  %v11730_v25 = vadd.f32 %v8901_v45, %v11691_v49  ;;  %v8024_v12 = vmul.f32 -1.442695, %v1935_v35 }
 0x3be   :  { %10281 = vpow2.f32 %v8019_v8  ;;  %v11732_v51 = vpop.f32.mrb[59].mxu0  ;;  %v1929_v33 = vpop.f32.mrb[59].mxu1  ;;  %v1980_v27 = vadd.f32 1.0, %v10262_v0  ;;  %v1938_v44 = vadd.f32 %v8917_v63, %v11640_v20  ;;  %v8022_v58 = vmul.f32 -1.442695, %v1927_v29 }
 0x3bf   :  { %v10264_v43 = vpop.eup %10263  ;;  %10283 = vrcp.f32 %v1979_v19  ;;  %v1930_v8 = vadd.f32 %v1929_v33, %v11640_v20  ;;  %v9707_v2 = vpack.i.bf16 %v1704_v61, %v1703_v30  ;;  %v1517_v63 = vadd.f32 %v11634_v57, %v11622_v11 }
 0x3c0   :  { %v10266_v32 = vpop.eup %10265  ;;  %10285 = vrcp.f32 %v1977_v10  ;;  %v1978_v54 = vadd.f32 1.0, %v10264_v43  ;;  %v8025_v45 = vmul.f32 -1.442695, %v1938_v44  ;;  %v11743_v29 = vpop.f32.mrb[60].mxu0  ;;  %v1798_v44 = vadd.f32 %v11654_v37, %v11691_v49 }
 0x3c1   :  { %v10268_v50 = vpop.eup %10267  ;;  %v1702_v13 = vmul.f32 %v10266_v32, %v1501_v17  ;;  %10287 = vrcp.f32 %v1980_v27  ;;  %v8023_v31 = vmul.f32 -1.442695, %v1930_v8  ;;  %9708 = vrot.lane.b32.xlu1 %v9707_v2, %s10782_s14  ;;  %v8940_v17 = vpop.f32.mrb[60].mxu1  ;;  %v1809_v37 = vadd.f32 %v11662_v38, %v11691_v49 }
 0x3c2   :  { %v10270_v18 = vpop.eup %10269  ;;  %10289 = vrcp.f32 %v1978_v54  ;;  %v11737_v19 = vmul.f32 %v10268_v50, %v11625_v48  ;;  %v2213_v54 = vadd.f32 %v8940_v17, %v11715_v22  ;;  %v11748_v48 = vpop.f32.mrb[61].mxu0 }
 0x3c3   :  { %v10272_v35 = vpop.eup %10271  ;;  %10291 = vpow2.f32 %v8024_v12  ;;  %v9712_v20 = vpack.i.bf16 %v1702_v13, %v11711_v56  ;;  %v11745_v0 = vmul.f32 %v10270_v18, %v1514_v28  ;;  %v2204_v61 = vpop.f32.mrb[61].mxu1 }
 0x3c4   :  { %v10274_v30 = vpop.eup %10273  ;;  %10293 = vpow2.f32 %v8022_v58  ;;  %v11751_v10 = vmul.f32 %v10272_v35, %v11632_v26  ;;  %v2205_v2 = vadd.f32 %v2204_v61, %v11715_v22  ;;  %v11754_v57 = vpop.f32.mrb[62].mxu0  ;;  %v1806_v26 = vadd.f32 %v11648_v39, %v11691_v49 }
 0x3c5   :  { %13651 = vst [vmem:[#allocation16_spill] sm:$0xff] %v11745_v0  ;;  %v10276_v11 = vpop.eup %10275  ;;  %10295 = vpow2.f32 %v8025_v45  ;;  %v8941_v56 = vpop.f32.mrb[62].mxu1  ;;  %v11756_v33 = vmul.f32 %v10274_v30, %v1517_v63  ;;  %9713 = vrot.lane.b32.xlu1 %v9712_v20, %s10782_s14  ;;  %v8044_v13 = vmul.f32 -1.442695, %v2213_v54  ;;  %v1801_v54 = vadd.f32 %v11667_v21, %v11691_v49 }
 0x3c6   :  { %v10278_v18 = vpop.eup %10277  ;;  %v1983_v28 = vadd.f32 1.0, %v10276_v11  ;;  %10297 = vpow2.f32 %v8023_v31  ;;  %v11758_v43 = vpop.f32.mrb[63].mxu0  ;;  %v2216_v58 = vadd.f32 %v8941_v56, %v11715_v22  ;;  %v8042_v63 = vmul.f32 -1.442695, %v2205_v2 }
 0x3c7   :  { %13652 = vst [vmem:[#allocation17_spill] sm:$0xff] %v11756_v33  ;;  %v2207_v27 = vpop.f32.mrb[63].mxu1  ;;  %v10280_v12 = vpop.eup %10279  ;;  %v1981_v32 = vadd.f32 1.0, %v10278_v18 }
 0x3c8   :  { %v10282_v8 = vpop.eup %10281  ;;  %10299 = vrcp.f32 %v1983_v28  ;;  %v1984_v50 = vadd.f32 1.0, %v10280_v12  ;;  %v2208_v31 = vadd.f32 %v2207_v27, %v11715_v22  ;;  %v8045_v20 = vmul.f32 -1.442695, %v2216_v58  ;;  %v11775_v56 = vpop.f32.mrb[64].mxu0 }
 0x3c9   :  { %v10284_v45 = vpop.eup %10283  ;;  %10301 = vrcp.f32 %v1981_v32  ;;  %v1982_v35 = vadd.f32 1.0, %v10282_v8  ;;  %v8944_v2 = vpop.f32.mrb[64].mxu1 }
 0x3ca   :  { %v10286_v17 = vpop.eup %10285  ;;  %10303 = vrcp.f32 %v1984_v50  ;;  %v11771_v30 = vmul.f32 %v10284_v45, %v1806_v26  ;;  %v8043_v11 = vmul.f32 -1.442695, %v2208_v31  ;;  %v2229_v27 = vadd.f32 %v8944_v2, %v11715_v22  ;;  %v11780_v38 = vpop.f32.mrb[65].mxu0 }
 0x3cb   :  { %v10288_v61 = vpop.eup %10287  ;;  %10305 = vrcp.f32 %v1982_v35  ;;  %v11777_v18 = vmul.f32 %v10286_v17, %v1798_v44  ;;  %v2220_v12 = vpop.f32.mrb[65].mxu1  ;;  %v1822_v17 = vadd.f32 %v11682_v62, %v11691_v49  ;;  %v1814_v62 = vadd.f32 %v11687_v16, %v11691_v49 }
 0x3cc   :  { %13653 = vst [vmem:[#allocation18_spill] sm:$0xff] %v11771_v30  ;;  %v10290_v28 = vpop.eup %10289  ;;  %10307 = vpow2.f32 %v8044_v13  ;;  %v11782_v26 = vmul.f32 %v10288_v61, %v1809_v37  ;;  %v2221_v21 = vadd.f32 %v2220_v12, %v11715_v22  ;;  %v11785_v58 = vpop.f32.mrb[66].mxu0  ;;  %v8048_v12 = vmul.f32 -1.442695, %v2229_v27 }
 0x3cd   :  { %v10292_v32 = vpop.eup %10291  ;;  %10309 = vpow2.f32 %v8042_v63  ;;  %v8945_v8 = vpop.f32.mrb[66].mxu1  ;;  %v2014_v50 = vmul.f32 %v10290_v28, %v1801_v54  ;;  %v1825_v27 = vadd.f32 %v11694_v53, %v11691_v49  ;;  %v1817_v16 = vadd.f32 %v11698_v4, %v11691_v49 }
 0x3ce   :  { %13654 = vst [vmem:[#allocation19_spill] sm:$0xff] %v11782_v26  ;;  %v10294_v31 = vpop.eup %10293  ;;  %v1987_v44 = vadd.f32 1.0, %v10292_v32  ;;  %10311 = vpow2.f32 %v8045_v20  ;;  %v11787_v45 = vpop.f32.mrb[67].mxu0  ;;  %v2232_v63 = vadd.f32 %v8945_v8, %v11715_v22  ;;  %v8046_v20 = vmul.f32 -1.442695, %v2221_v21 }
 0x3cf   :  { %v2223_v13 = vpop.f32.mrb[67].mxu1  ;;  %v10296_v35 = vpop.eup %10295  ;;  %v1985_v37 = vadd.f32 1.0, %v10294_v31  ;;  %10313 = vpow2.f32 %v8043_v11  ;;  %v9717_v32 = vpack.i.bf16 %v11782_v26, %v11771_v30  ;;  %v9722_v8 = vpack.i.bf16 %v2014_v50, %v11777_v18 }
 0x3d0   :  { %v10298_v61 = vpop.eup %10297  ;;  %10315 = vrcp.f32 %v1987_v44  ;;  %v1988_v2 = vadd.f32 1.0, %v10296_v35  ;;  %v2224_v54 = vadd.f32 %v2223_v13, %v11715_v22  ;;  %v8049_v11 = vmul.f32 -1.442695, %v2232_v63  ;;  %v11801_v21 = vpop.f32.mrb[68].mxu0 }
 0x3d1   :  { %10317 = vrcp.f32 %v1985_v37  ;;  %v1986_v28 = vadd.f32 1.0, %v10298_v61  ;;  %9718 = vrot.lane.b32.xlu0 %v9717_v32, %s10784_s16  ;;  %v8948_v13 = vpop.f32.mrb[68].mxu1  ;;  %v11806_v18 = vpop.f32.mrb[69].mxu0 }
 0x3d2   :  { %v10300_v39 = vpop.eup %10299  ;;  %10319 = vrcp.f32 %v1988_v2  ;;  %v8047_v44 = vmul.f32 -1.442695, %v2224_v54  ;;  %v2245_v63 = vadd.f32 %v8948_v13, %v11715_v22  ;;  %v2236_v50 = vpop.f32.mrb[69].mxu1 }
 0x3d3   :  { %v10302_v31 = vpop.eup %10301  ;;  %10321 = vrcp.f32 %v1986_v28  ;;  %v2019_v35 = vmul.f32 %v10300_v39, %v1822_v17  ;;  %v2237_v2 = vadd.f32 %v2236_v50, %v11715_v22  ;;  %v11811_v54 = vpop.f32.mrb[70].mxu0 }
 0x3d4   :  { %v10304_v37 = vpop.eup %10303  ;;  %10323 = vpow2.f32 %v8048_v12  ;;  %v11808_v61 = vmul.f32 %v10302_v31, %v1814_v62  ;;  %v8949_v28 = vpop.f32.mrb[70].mxu1  ;;  %v8052_v4 = vmul.f32 -1.442695, %v2245_v63  ;;  %v10763_v62 = vld [vmem:[%s13599_s2 + $0x40] sm:$0x3f] }
 0x3d5   :  { %v10306_v53 = vpop.eup %10305  ;;  %10325 = vpow2.f32 %v8046_v20  ;;  %v2020_v39 = vmul.f32 %v10304_v37, %v1825_v27  ;;  %v11813_v12 = vpop.f32.mrb[71].mxu0  ;;  %9723 = vrot.lane.b32.xlu0 %v9722_v8, %s10784_s16  ;;  %v2248_v20 = vadd.f32 %v8949_v28, %v11715_v22  ;;  %v11821_v31 = vrot.slane %v10763_v62, %v10931_v9 }
 0x3d6   :  { %v10308_v17 = vpop.eup %10307  ;;  %v2018_v32 = vmul.f32 %v10306_v53, %v1817_v16  ;;  %10327 = vpow2.f32 %v8049_v11  ;;  %v2239_v13 = vpop.f32.mrb[71].mxu1  ;;  %v1830_v11 = vadd.f32 %v11721_v42, %v11691_v49  ;;  %v8050_v63 = vmul.f32 -1.442695, %v2237_v2 }
 0x3d7   :  { %v10310_v26 = vpop.eup %10309  ;;  %v2289_v30 = vadd.f32 1.0, %v10308_v17  ;;  %10329 = vpow2.f32 %v8047_v44  ;;  %v2240_v16 = vadd.f32 %v2239_v13, %v11715_v22  ;;  %v9727_v50 = vpack.i.bf16 %v2020_v39, %v2019_v35 }
 0x3d8   :  { %v10312_v27 = vpop.eup %10311  ;;  %v2287_v37 = vadd.f32 1.0, %v10310_v26  ;;  %10331 = vpow2.f32 %v8052_v4  ;;  %v8053_v17 = vmul.f32 -1.442695, %v2248_v20  ;;  %v9732_v62 = vpack.i.bf16 %v2018_v32, %v11808_v61  ;;  %v11828_v42 = vpop.f32.mrb[72].mxu0 }
 0x3d9   :  { %v10314_v44 = vpop.eup %10313  ;;  %10333 = vrcp.f32 %v2289_v30  ;;  %v2290_v8 = vadd.f32 1.0, %v10312_v27  ;;  %v8051_v36 = vmul.f32 -1.442695, %v2240_v16  ;;  %9728 = vrot.lane.b32.xlu0 %v9727_v50, %s10784_s16  ;;  %v8972_v26 = vpop.f32.mrb[72].mxu1 }
 0x3da   :  { %v10316_v53 = vpop.eup %10315  ;;  %10335 = vrcp.f32 %v2287_v37  ;;  %v2288_v28 = vadd.f32 1.0, %v10314_v44  ;;  %v2535_v35 = vadd.f32 %v8972_v26, %v11821_v31  ;;  %v11834_v2 = vpop.f32.mrb[73].mxu0  ;;  %v9752_v26 = vpack.i.bf16 %v11756_v33, %v11745_v0 }
 0x3db   :  { %v10318_v24 = vpop.eup %10317  ;;  %10337 = vrcp.f32 %v2290_v8  ;;  %v11831_v22 = vmul.f32 %v10316_v53, %v11718_v47  ;;  %v2526_v39 = vpop.f32.mrb[73].mxu1  ;;  %v11846_v47 = vld [vmem:[%s13599_s2 + $0x38] sm:$0x3f] }
 0x3dc   :  { %v10320_v30 = vpop.eup %10319  ;;  %10339 = vrcp.f32 %v2288_v28  ;;  %v11836_v4 = vmul.f32 %v10318_v24, %v1830_v11  ;;  %v11838_v32 = vpop.f32.mrb[74].mxu0  ;;  %v11850_v37 = vrot.slane %v11846_v47, %v10927_v7  ;;  %v8072_v24 = vmul.f32 -1.442695, %v2535_v35 }
 0x3dd   :  { %v10322_v61 = vpop.eup %10321  ;;  %10341 = vpow2.f32 %v8050_v63  ;;  %v8973_v13 = vpop.f32.mrb[74].mxu1  ;;  %v11841_v20 = vmul.f32 %v10320_v30, %v11730_v25  ;;  %v2527_v11 = vadd.f32 %v2526_v39, %v11821_v31  ;;  %v1833_v25 = vadd.f32 %v11732_v51, %v11691_v49  ;;  %9733 = vrot.lane.b32.xlu0 %v9732_v62, %s10784_s16 }
 0x3de   :  { %v10324_v27 = vpop.eup %10323  ;;  %10343 = vpow2.f32 %v8053_v17  ;;  %v11853_v16 = vpop.f32.mrb[75].mxu0  ;;  %v2538_v50 = vadd.f32 %v8973_v13, %v11821_v31  ;;  %v2116_v51 = vadd.f32 %v11743_v29, %v11850_v37  ;;  %v2132_v41 = vadd.f32 %v11775_v56, %v11850_v37 }
 0x3df   :  { %v2529_v44 = vpop.f32.mrb[75].mxu1  ;;  %v10326_v8 = vpop.eup %10325  ;;  %v2293_v63 = vadd.f32 1.0, %v10324_v27  ;;  %10345 = vpow2.f32 %v8051_v36  ;;  %v11862_v39 = vmul.f32 %v10322_v61, %v1833_v25  ;;  %v8070_v13 = vmul.f32 -1.442695, %v2527_v11 }
 0x3e0   :  { %v10328_v53 = vpop.eup %10327  ;;  %v2291_v28 = vadd.f32 1.0, %v10326_v8  ;;  %10347 = vpow2.f32 %v8072_v24  ;;  %v2530_v17 = vadd.f32 %v2529_v44, %v11821_v31  ;;  %v2108_v24 = vadd.f32 %v11748_v48, %v11850_v37  ;;  %v11871_v61 = vpop.f32.mrb[76].mxu0 }
 0x3e1   :  { %v10330_v30 = vpop.eup %10329  ;;  %10349 = vrcp.f32 %v2293_v63  ;;  %v2294_v35 = vadd.f32 1.0, %v10328_v53  ;;  %v8073_v8 = vmul.f32 -1.442695, %v2538_v50  ;;  %9753 = vrot.lane.b32.xlu0 %v9752_v26, %s10782_s14  ;;  %v8976_v25 = vpop.f32.mrb[76].mxu1 }
 0x3e2   :  { %v10332_v49 = vpop.eup %10331  ;;  %10351 = vrcp.f32 %v2291_v28  ;;  %v2292_v62 = vadd.f32 1.0, %v10330_v30  ;;  %v8071_v53 = vmul.f32 -1.442695, %v2530_v17  ;;  %v2551_v29 = vadd.f32 %v8976_v25, %v11821_v31  ;;  %v11874_v28 = vpop.f32.mrb[77].mxu0 }
 0x3e3   :  { %v10334_v27 = vpop.eup %10333  ;;  %10353 = vrcp.f32 %v2294_v35  ;;  %v2297_v44 = vadd.f32 1.0, %v10332_v49  ;;  %v2542_v11 = vpop.f32.mrb[77].mxu1  ;;  %v2111_v49 = vadd.f32 %v11758_v43, %v11850_v37 }
 0x3e4   :  { %v10336_v63 = vpop.eup %10335  ;;  %10355 = vrcp.f32 %v2292_v62  ;;  %v11876_v30 = vmul.f32 %v10334_v27, %v2116_v51  ;;  %v11878_v48 = vpop.f32.mrb[78].mxu0  ;;  %v8076_v17 = vmul.f32 -1.442695, %v2551_v29  ;;  %v2543_v62 = vadd.f32 %v2542_v11, %v11821_v31 }
 0x3e5   :  { %v10338_v36 = vpop.eup %10337  ;;  %10357 = vrcp.f32 %v2297_v44  ;;  %v8977_v50 = vpop.f32.mrb[78].mxu1  ;;  %v11880_v35 = vmul.f32 %v10336_v63, %v2108_v24  ;;  %v2119_v27 = vadd.f32 %v11754_v57, %v11850_v37 }
 0x3e6   :  { %v10340_v26 = vpop.eup %10339  ;;  %10359 = vpow2.f32 %v8070_v13  ;;  %v11885_v25 = vpop.f32.mrb[79].mxu0  ;;  %v2554_v44 = vadd.f32 %v8977_v50, %v11821_v31 }
 0x3e7   :  { %v2545_v33 = vpop.f32.mrb[79].mxu1  ;;  %v10342_v51 = vpop.eup %10341  ;;  %10361 = vpow2.f32 %v8073_v8  ;;  %v11891_v43 = vmul.f32 %v10340_v26, %v2111_v49  ;;  %v11893_v11 = vmul.f32 %v10338_v36, %v2119_v27  ;;  %v8074_v8 = vmul.f32 -1.442695, %v2543_v62 }
 0x3e8   :  { %v10344_v24 = vpop.eup %10343  ;;  %v2295_v63 = vadd.f32 1.0, %v10342_v51  ;;  %10363 = vpow2.f32 %v8071_v53  ;;  %v2546_v0 = vadd.f32 %v2545_v33, %v11821_v31  ;;  %v2124_v53 = vadd.f32 %v11780_v38, %v11850_v37  ;;  %v11899_v49 = vpop.f32.mrb[80].mxu0 }
 0x3e9   :  { %v10346_v13 = vpop.eup %10345  ;;  %v2298_v29 = vadd.f32 1.0, %v10344_v24  ;;  %10365 = vpow2.f32 %v8076_v17  ;;  %v8077_v26 = vmul.f32 -1.442695, %v2554_v44  ;;  %v8980_v51 = vpop.f32.mrb[80].mxu1 }
 0x3ea   :  { %v10348_v7 = vpop.eup %10347  ;;  %10367 = vrcp.f32 %v2295_v63  ;;  %v2296_v57 = vadd.f32 1.0, %v10346_v13  ;;  %v8075_v36 = vmul.f32 -1.442695, %v2546_v0  ;;  %v2567_v27 = vadd.f32 %v8980_v51, %v11821_v31  ;;  %v11902_v24 = vpop.f32.mrb[81].mxu0 }
 0x3eb   :  { %v10350_v50 = vpop.eup %10349  ;;  %10369 = vrcp.f32 %v2298_v29  ;;  %v2611_v33 = vadd.f32 1.0, %v10348_v7  ;;  %v2558_v56 = vpop.f32.mrb[81].mxu1  ;;  %v2135_v0 = vadd.f32 %v11785_v58, %v11850_v37 }
 0x3ec   :  { %v10352_v17 = vpop.eup %10351  ;;  %10371 = vrcp.f32 %v2296_v57  ;;  %v11904_v63 = vmul.f32 %v10350_v50, %v2132_v41  ;;  %v2559_v38 = vadd.f32 %v2558_v56, %v11821_v31  ;;  %v11907_v13 = vpop.f32.mrb[82].mxu0  ;;  %v2127_v57 = vadd.f32 %v11787_v45, %v11850_v37 }
 0x3ed   :  { %v10354_v62 = vpop.eup %10353  ;;  %10373 = vrcp.f32 %v2611_v33  ;;  %v8981_v7 = vpop.f32.mrb[82].mxu1  ;;  %v11909_v44 = vmul.f32 %v10352_v17, %v2124_v53  ;;  %v8080_v51 = vmul.f32 -1.442695, %v2567_v27  ;;  %v2148_v56 = vadd.f32 %v11801_v21, %v11850_v37 }
 0x3ee   :  { %13655 = vst [vmem:[#allocation20_spill] sm:$0xff] %v11904_v63  ;;  %v10356_v29 = vpop.eup %10355  ;;  %10375 = vpow2.f32 %v8074_v8  ;;  %v11915_v41 = vpop.f32.mrb[83].mxu0  ;;  %v8078_v55 = vmul.f32 -1.442695, %v2559_v38  ;;  %v2570_v53 = vadd.f32 %v8981_v7, %v11821_v31  ;;  %v11923_v45 = vmul.f32 %v10354_v62, %v2135_v0 }
 0x3ef   :  { %13656 = vst [vmem:[#allocation21_spill] sm:$0xff] %v11909_v44  ;;  %v2561_v50 = vpop.f32.mrb[83].mxu1  ;;  %v10358_v33 = vpop.eup %10357  ;;  %10377 = vpow2.f32 %v8077_v26  ;;  %v11921_v46 = vmul.f32 %v10356_v29, %v2127_v57  ;;  %v11929_v21 = vrot.slane %v11846_v47, %v10931_v9  ;;  %v2151_v29 = vadd.f32 %v11811_v54, %v11850_v37 }
 0x3f0   :  { %v10360_v17 = vpop.eup %10359  ;;  %10379 = vpow2.f32 %v8075_v36  ;;  %v2562_v58 = vadd.f32 %v2561_v50, %v11821_v31  ;;  %v11925_v63 = vmul.f32 %v10358_v33, %v2148_v56  ;;  %v2140_v31 = vadd.f32 %v11806_v18, %v11850_v37 }
 0x3f1   :  { %v10362_v8 = vpop.eup %10361  ;;  %v2609_v27 = vadd.f32 1.0, %v10360_v17  ;;  %10381 = vpow2.f32 %v8080_v51  ;;  %v8081_v62 = vmul.f32 -1.442695, %v2570_v53  ;;  %v2143_v47 = vadd.f32 %v11813_v12, %v11850_v37 }
 0x3f2   :  { %v10364_v44 = vpop.eup %10363  ;;  %v2612_v26 = vadd.f32 1.0, %v10362_v8  ;;  %10383 = vpow2.f32 %v8078_v55  ;;  %v8079_v57 = vmul.f32 -1.442695, %v2562_v58  ;;  %v2438_v18 = vadd.f32 %v11828_v42, %v11929_v21 }
 0x3f3   :  { %v10366_v38 = vpop.eup %10365  ;;  %10385 = vrcp.f32 %v2609_v27  ;;  %v2610_v36 = vadd.f32 1.0, %v10364_v44  ;;  %v2430_v42 = vadd.f32 %v11834_v2, %v11929_v21 }
 0x3f4   :  { %v10368_v7 = vpop.eup %10367  ;;  %10387 = vrcp.f32 %v2612_v26  ;;  %v2615_v0 = vadd.f32 1.0, %v10366_v38 }
 0x3f5   :  { %v10370_v51 = vpop.eup %10369  ;;  %10389 = vrcp.f32 %v2610_v36  ;;  %v11937_v55 = vmul.f32 %v10368_v7, %v2140_v31  ;;  %v2441_v36 = vadd.f32 %v11838_v32, %v11929_v21 }
 0x3f6   :  { %v10372_v50 = vpop.eup %10371  ;;  %10391 = vrcp.f32 %v2615_v0  ;;  %v11941_v44 = vmul.f32 %v10370_v51, %v2151_v29  ;;  %v2433_v29 = vadd.f32 %v11853_v16, %v11929_v21  ;;  %v2454_v51 = vadd.f32 %v11871_v61, %v11929_v21 }
 0x3f7   :  { %v10374_v33 = vpop.eup %10373  ;;  %10393 = vpow2.f32 %v8081_v62  ;;  %v11943_v54 = vmul.f32 %v10372_v50, %v2143_v47 }
 0x3f8   :  { %v10376_v56 = vpop.eup %10375  ;;  %10395 = vpow2.f32 %v8079_v57  ;;  %v11945_v53 = vmul.f32 %v10374_v33, %v2438_v18 }
 0x3f9   :  { %v10378_v17 = vpop.eup %10377  ;;  %v2613_v12 = vadd.f32 1.0, %v10376_v56 }
 0x3fa   :  { %v10380_v37 = vpop.eup %10379  ;;  %v2616_v58 = vadd.f32 1.0, %v10378_v17 }
 0x3fb   :  { %v10382_v8 = vpop.eup %10381  ;;  %10397 = vrcp.f32 %v2613_v12  ;;  %v2614_v27 = vadd.f32 1.0, %v10380_v37  ;;  %v2446_v37 = vadd.f32 %v11874_v28, %v11929_v21  ;;  %v2462_v28 = vadd.f32 %v11902_v24, %v11929_v21 }
 0x3fc   :  { %v10384_v26 = vpop.eup %10383  ;;  %10399 = vrcp.f32 %v2616_v58  ;;  %v2619_v38 = vadd.f32 1.0, %v10382_v8  ;;  %v2457_v58 = vadd.f32 %v11878_v48, %v11929_v21  ;;  %v9747_v48 = vpack.i.bf16 %v11657_v6, %v11646_v15 }
 0x3fd   :  { %v10386_v31 = vpop.eup %10385  ;;  %10401 = vrcp.f32 %v2614_v27  ;;  %v2617_v62 = vadd.f32 1.0, %v10384_v26  ;;  %v2449_v27 = vadd.f32 %v11885_v25, %v11929_v21  ;;  %v2465_v24 = vadd.f32 %v11915_v41, %v11929_v21 }
 0x3fe   :  { %v10388_v7 = vpop.eup %10387  ;;  %10403 = vrcp.f32 %v2619_v38  ;;  %v2645_v0 = vmul.f32 %v10386_v31, %v2430_v42  ;;  %v2470_v38 = vadd.f32 %v11899_v49, %v11929_v21  ;;  %v2473_v49 = vadd.f32 %v11907_v13, %v11929_v21 }
 0x3ff   :  { %v10390_v57 = vpop.eup %10389  ;;  %10405 = vrcp.f32 %v2617_v62  ;;  %v11955_v2 = vmul.f32 %v10388_v7, %v2441_v36  ;;  %v13657_v13 = vpack.i.bf16 %v11651_v5, %v11643_v23  ;;  %v13658_v41 = vpack.i.bf16 %v11751_v10, %v11737_v19  ;;  %v12003_v23 = vpop.permute.xlu1 %9678 }
 0x400   :  { %v10392_v47 = vpop.eup %10391  ;;  %v2646_v50 = vmul.f32 %v10390_v57, %v2433_v29 }
 0x401   :  { %v10394_v18 = vpop.eup %10393  ;;  %v9737_v32 = vpack.i.bf16 %v11955_v2, %v11945_v53  ;;  %v2651_v33 = vmul.f32 %v10392_v47, %v2454_v51  ;;  %v9767_v47 = vpack.i.bf16 %v11862_v39, %v11836_v4 }
 0x402   :  { %v10396_v56 = vpop.eup %10395  ;;  %v2620_v17 = vadd.f32 1.0, %v10394_v18  ;;  %v9742_v12 = vpack.i.bf16 %v2646_v50, %v2645_v0 }
 0x403   :  { %v2618_v16 = vadd.f32 1.0, %v10396_v56  ;;  %9738 = vrot.lane.b32.xlu1 %v9737_v32, %s10783_s15  ;;  %v13659_v56 = vpack.i.bf16 %v11841_v20, %v11831_v22 }
 0x404   :  { %10407 = vrcp.f32 %v2620_v17 }
 0x405   :  { %v10398_v61 = vpop.eup %10397  ;;  %10409 = vrcp.f32 %v2618_v16 }
 0x406   :  { %v10400_v8 = vpop.eup %10399  ;;  %v2649_v26 = vmul.f32 %v10398_v61, %v2446_v37 }
 0x407   :  { %v10402_v42 = vpop.eup %10401  ;;  %9743 = vrot.lane.b32.xlu1 %v9742_v12, %s10783_s15  ;;  %v2652_v31 = vmul.f32 %v10400_v8, %v2457_v58  ;;  %v9684_v12 = vpop.permute.xlu1 %9683 }
 0x408   :  { %v10404_v36 = vpop.eup %10403  ;;  %v2650_v62 = vmul.f32 %v10402_v42, %v2449_v27  ;;  %v9686_v16 = vunpack.i.h.bf16 %v9684_v12  ;;  %v9685_v37 = vunpack.i.l.bf16 %v9684_v12 }
 0x409   :  { %v10406_v7 = vpop.eup %10405  ;;  %v9757_v29 = vpack.i.bf16 %v2652_v31, %v2651_v33  ;;  %v2655_v0 = vmul.f32 %v10404_v36, %v2470_v38 }
 0x40a   :  { %v9762_v25 = vpack.i.bf16 %v2650_v62, %v2649_v26  ;;  %v11973_v57 = vmul.f32 %v10406_v7, %v2462_v28  ;;  %v2849_v22 = vsel %vm545_vm0, %v11478_v52, %v9685_v37  ;;  %v2850_v20 = vsel %vm545_vm0, %v11487_v14, %v9686_v16 }
 0x40b   :  { %9748 = vrot.lane.b32.xlu1 %v9747_v48, %s10783_s15 }
 0x40c   :  { %9763 = vrot.lane.b32.xlu0 %v9762_v25, %s10783_s15 }
 0x40e   :  { %v10408_v51 = vpop.eup %10407  ;;  %v9689_v17 = vpop.permute.xlu0 %9688 }
 0x40f   :  { %v10410_v50 = vpop.eup %10409  ;;  %9758 = vrot.lane.b32.xlu1 %v9757_v29, %s10783_s15  ;;  %v2656_v18 = vmul.f32 %v10408_v51, %v2473_v49  ;;  %v9691_v42 = vunpack.i.h.bf16 %v9689_v17  ;;  %v9690_v38 = vunpack.i.l.bf16 %v9689_v17 }
 0x410   :  { %9768 = vrot.lane.b32.xlu0 %v9767_v47, %s10784_s16  ;;  %v11985_v32 = vmul.f32 %v10410_v50, %v2465_v24  ;;  %v9694_v10 = vpop.permute.xlu1 %9693 }
 0x411   :  { %v9787_v33 = vpack.i.bf16 %v2656_v18, %v2655_v0  ;;  %v9696_v52 = vunpack.i.h.bf16 %v9694_v10  ;;  %v9695_v49 = vunpack.i.l.bf16 %v9694_v10  ;;  %v2856_v24 = vsel %vm545_vm0, %v11514_v1, %v9691_v42 }
 0x412   :  { %v9782_v21 = vpack.i.bf16 %v11985_v32, %v11973_v57  ;;  %v2855_v47 = vsel %vm545_vm0, %v11508_v59, %v9690_v38 }
 0x413   :  { %9773 = vrot.lane.b32.xlu1 %v13657_v13, %s10783_s15  ;;  %v2853_v59 = vsel %vm545_vm0, %v11512_v34, %v9695_v49 }
 0x414   :  { %9778 = vrot.lane.b32.xlu0 %v13658_v41, %s10782_s14 }
 0x417   :  { %9783 = vrot.lane.b32.xlu1 %v9782_v21, %s10783_s15 }
 0x418   :  { %9793 = vrot.lane.b32.xlu0 %v13659_v56, %s10784_s16 }
 0x41b   :  { %9788 = vrot.lane.b32.xlu1 %v9787_v33, %s10783_s15 }
 0x429   :  { %v12005_v5 = vpop.permute.xlu0 %9698 }
 0x42a   :  { %v9701_v38 = vunpack.i.h.bf16 %v12005_v5 }
 0x42d   :  { %v9704_v19 = vpop.permute.xlu0 %9703 }
 0x42e   :  { %v9706_v8 = vunpack.i.h.bf16 %v9704_v19  ;;  %v9705_v27 = vunpack.i.l.bf16 %v9704_v19  ;;  %v2854_v19 = vsel %vm545_vm0, %v11516_v3, %v9696_v52  ;;  %v9680_v3 = vunpack.i.l.bf16 %v12003_v23 }
 0x430   :  { %v2861_v28 = vsel %vm558_vm1, %v2849_v22, %v9705_v27  ;;  %v2862_v62 = vsel %vm558_vm1, %v2850_v20, %v9706_v8  ;;  %v2851_v49 = vsel %vm545_vm0, %v11472_v40, %v9680_v3 }
 0x433   :  { %v9709_v58 = vpop.permute.xlu1 %9708 }
 0x434   :  { %v9711_v7 = vunpack.i.h.bf16 %v9709_v58  ;;  %v9710_v48 = vunpack.i.l.bf16 %v9709_v58 }
 0x436   :  { %v2868_v33 = vsel %vm558_vm1, %v2856_v24, %v9711_v7  ;;  %v2867_v13 = vsel %vm558_vm1, %v2855_v47, %v9710_v48 }
 0x437   :  { %v9714_v29 = vpop.permute.xlu1 %9713 }
 0x438   :  { %v9716_v41 = vunpack.i.h.bf16 %v9714_v29  ;;  %v9715_v21 = vunpack.i.l.bf16 %v9714_v29 }
 0x43a   :  { %v2865_v37 = vsel %vm558_vm1, %v2853_v59, %v9715_v21  ;;  %v2866_v58 = vsel %vm558_vm1, %v2854_v19, %v9716_v41  ;;  %v13660_v21 = vld [vmem:[#allocation21_spill] sm:$0xff] }
 0x443   :  { %v12007_v61 = vpop.permute.xlu0 %9718 }
 0x447   :  { %v9724_v26 = vpop.permute.xlu0 %9723 }
 0x448   :  { %v9726_v31 = vunpack.i.h.bf16 %v9724_v26  ;;  %v9725_v36 = vunpack.i.l.bf16 %v9724_v26  ;;  %v9681_v26 = vunpack.i.h.bf16 %v12003_v23 }
 0x44a   :  { %v2873_v0 = vsel %vm571_vm2, %v2861_v28, %v9725_v36  ;;  %v2874_v25 = vsel %vm571_vm2, %v2862_v62, %v9726_v31  ;;  %v9700_v36 = vunpack.i.l.bf16 %v12005_v5  ;;  %v9721_v28 = vunpack.i.h.bf16 %v12007_v61 }
 0x44b   :  { %v9729_v51 = vpop.permute.xlu0 %9728  ;;  %v2897_v14 = vpack.c.bf16 %v2874_v25, %v2873_v0  ;;  %v2852_v29 = vsel %vm545_vm0, %v11484_v60, %v9681_v26  ;;  %v9720_v0 = vunpack.i.l.bf16 %v12007_v61 }
 0x44c   :  { %v9731_v50 = vunpack.i.h.bf16 %v9729_v51  ;;  %v9730_v18 = vunpack.i.l.bf16 %v9729_v51  ;;  %v2864_v51 = vsel %vm558_vm1, %v2852_v29, %v9701_v38  ;;  %v2863_v61 = vsel %vm558_vm1, %v2851_v49, %v9700_v36  ;;  %v13665_v49 = vld [vmem:[#allocation8_spill] sm:$0xff] }
 0x44e   :  { %v12024_v56 = vsel %vm571_vm2, %v2867_v13, %v9730_v18  ;;  %v12027_v17 = vsel %vm571_vm2, %v2868_v33, %v9731_v50 }
 0x44f   :  { %v9734_v12 = vpop.permute.xlu0 %9733  ;;  %v2966_v1 = vpack.c.bf16 %v12027_v17, %v12024_v56 }
 0x450   :  { %v9736_v10 = vunpack.i.h.bf16 %v9734_v12  ;;  %v9735_v16 = vunpack.i.l.bf16 %v9734_v12 }
 0x452   :  { %v12038_v8 = vsel %vm571_vm2, %v2865_v37, %v9735_v16  ;;  %v2878_v27 = vsel %vm571_vm2, %v2866_v58, %v9736_v10 }
 0x453   :  { %v2901_v22 = vpack.c.bf16 %v2878_v27, %v12038_v8  ;;  %v9754_v62 = vpop.permute.xlu0 %9753 }
 0x475   :  { %v9739_v20 = vpop.permute.xlu1 %9738 }
 0x476   :  { %v9741_v34 = vunpack.i.h.bf16 %v9739_v20  ;;  %v9740_v42 = vunpack.i.l.bf16 %v9739_v20  ;;  %v13661_v20 = vld [vmem:[#allocation20_spill] sm:$0xff] }
 0x478   :  { %v2887_v52 = vsel %vm545_vm0, %v11876_v30, %v9740_v42  ;;  %v2888_v5 = vsel %vm545_vm0, %v11893_v11, %v9741_v34 }
 0x479   :  { %v9744_v31 = vpop.permute.xlu1 %9743  ;;  %v2900_v13 = vpack.c.bf16 %v2888_v5, %v2887_v52 }
 0x47a   :  { %v9746_v7 = vunpack.i.h.bf16 %v9744_v31  ;;  %v9745_v48 = vunpack.i.l.bf16 %v9744_v31  ;;  %v13662_v31 = vld [vmem:[#allocation9_spill] sm:$0xff] }
 0x47c   :  { %v2885_v25 = vsel %vm545_vm0, %v11880_v35, %v9745_v48  ;;  %v2886_v23 = vsel %vm545_vm0, %v11891_v43, %v9746_v7  ;;  %v2876_v35 = vsel %vm571_vm2, %v2864_v51, %v9721_v28  ;;  %v2875_v43 = vsel %vm571_vm2, %v2863_v61, %v9720_v0  ;;  %v13663_v28 = vld [vmem:[#allocation11_spill] sm:$0xff] }
 0x47d   :  { %v9749_v24 = vpop.permute.xlu1 %9748  ;;  %v2898_v47 = vpack.c.bf16 %v2886_v23, %v2885_v25  ;;  %v2899_v37 = vpack.c.bf16 %v2876_v35, %v2875_v43  ;;  %v9756_v0 = vunpack.i.h.bf16 %v9754_v62  ;;  %v9755_v25 = vunpack.i.l.bf16 %v9754_v62 }
 0x47e   :  { %v9764_v50 = vpop.permute.xlu0 %9763  ;;  %v9751_v8 = vunpack.i.h.bf16 %v9749_v24  ;;  %v9750_v27 = vunpack.i.l.bf16 %v9749_v24 }
 0x47f   :  { %v9766_v18 = vunpack.i.h.bf16 %v9764_v50  ;;  %v9765_v33 = vunpack.i.l.bf16 %v9764_v50  ;;  %2903 = vmatprep.subr.bf16.mxu0 %v2898_v47 }
 0x480   :  { %2904 = vmatpush1.bf16.msra.mxu0 %v2897_v14  ;;  %v2857_v36 = vsel %vm545_vm0, %v13662_v31, %v9750_v27  ;;  %v2858_v7 = vsel %vm545_vm0, %v13663_v28, %v9751_v8 }
 0x481   :  { %v9759_v41 = vpop.permute.xlu1 %9758  ;;  %2905 = vmatprep.subr.bf16.mxu0 %v2900_v13  ;;  %v2889_v12 = vsel %vm545_vm0, %v13660_v21, %v9765_v33  ;;  %v2890_v59 = vsel %vm545_vm0, %v11921_v46, %v9766_v18  ;;  %v2869_v47 = vsel %vm558_vm1, %v2857_v36, %v9755_v25  ;;  %v2870_v61 = vsel %vm558_vm1, %v2858_v7, %v9756_v0 }
 0x482   :  { %v9761_v19 = vunpack.i.h.bf16 %v9759_v41  ;;  %v9760_v10 = vunpack.i.l.bf16 %v9759_v41  ;;  %v9769_v16 = vpop.permute.xlu0 %9768  ;;  %v2902_v58 = vpack.c.bf16 %v2890_v59, %v2889_v12  ;;  %v13666_v21 = vmov 0  }
 0x483   :  { %v9771_v48 = vunpack.i.h.bf16 %v9769_v16  ;;  %v9770_v29 = vunpack.i.l.bf16 %v9769_v16 }
 0x484   :  { %2906 = vmatpush1.bf16.msra.mxu0 %v2899_v37  ;;  %v2891_v26 = vsel %vm545_vm0, %v13661_v20, %v9760_v10  ;;  %v2892_v14 = vsel %vm545_vm0, %v11923_v45, %v9761_v19  ;;  %v13664_v45 = vld [vmem:[#allocation10_spill] sm:$0xff] }
 0x485   :  { %v9774_v34 = vpop.permute.xlu1 %9773  ;;  %2907 = vmatprep.subr.bf16.mxu0 %v2902_v58  ;;  %v2967_v42 = vpack.c.bf16 %v2892_v14, %v2891_v26  ;;  %v2882_v43 = vsel %vm571_vm2, %v2870_v61, %v9771_v48  ;;  %v10766_v14 = vld [vmem:[%s13600_s1 + $0x8] sm:$0xff]   ;;  %v10042_v61 = vld [vmem:[%s13601_s3 + $0x138] sm:$0xff]  }
 0x486   :  { %v9776_v3 = vunpack.i.h.bf16 %v9774_v34  ;;  %v9775_v38 = vunpack.i.l.bf16 %v9774_v34  ;;  %v9779_v46 = vpop.permute.xlu0 %9778  ;;  %v10036_v34 = vld [vmem:[%s13601_s3 + $0x120] sm:$0xff]  }
 0x487   :  { %2972 = vmatprep.subr.bf16.mxu1 %v2967_v42  ;;  %v9781_v23 = vunpack.i.h.bf16 %v9779_v46  ;;  %v9780_v52 = vunpack.i.l.bf16 %v9779_v46  ;;  %v10037_v42 = vld [vmem:[%s13601_s3 + $0xc8] sm:$0xff]   ;;  %v10040_v46 = vld [vmem:[%s13601_s3 + $0xd0] sm:$0xff]  }
 0x488   :  { %2908 = vmatpush1.bf16.msra.mxu0 %v2901_v22  ;;  %2973 = vmatpush1.bf16.msra.mxu1 %v2966_v1  ;;  %v2860_v5 = vsel %vm545_vm0, %v13664_v45, %v9776_v3  ;;  %v2859_v51 = vsel %vm545_vm0, %v13665_v49, %v9775_v38  ;;  %v2881_v22 = vsel %vm571_vm2, %v2869_v47, %v9770_v29  ;;  %v10765_v1 = vld [vmem:[%s13600_s1] sm:$0xff]   ;;  %v10038_v3 = vld [vmem:[%s13601_s3 + $0x128] sm:$0xff]   ;;  %v10039_v38 = vld [vmem:[%s13601_s3 + $0x130] sm:$0xff]  }
 0x489   :  { %v9784_v24 = vpop.permute.xlu1 %9783  ;;  %v2871_v18 = vsel %vm558_vm1, %v2859_v51, %v9780_v52  ;;  %v2872_v33 = vsel %vm558_vm1, %v2860_v5, %v9781_v23  ;;  %v2968_v58 = vpack.c.bf16 %v2882_v43, %v2881_v22  ;;  %v10041_v51 = vld [vmem:[%s13601_s3 + $0xd8] sm:$0xff]  }
 0x48a   :  { %v9786_v35 = vunpack.i.h.bf16 %v9784_v24  ;;  %v9785_v62 = vunpack.i.l.bf16 %v9784_v24  ;;  %v9794_v50 = vpop.permute.xlu0 %9793 }
 0x48b   :  { %v9796_v56 = vunpack.i.h.bf16 %v9794_v50  ;;  %v9795_v17 = vunpack.i.l.bf16 %v9794_v50  ;;  %8082 = vmatmul.mubr.msk.bf16.vlgmr.msra.gmra.mrb[84].mxu0 %vm617_vm3, %v10765_v1 }
 0x48c   :  { %v2893_v13 = vsel %vm545_vm0, %v11937_v55, %v9785_v62  ;;  %v2894_v41 = vsel %vm545_vm0, %v11943_v54, %v9786_v35  ;;  %2945 = vmatprep.mubr.bf16.mxu0 %v13666_v21 }
 0x48d   :  { %v2883_v12 = vsel %vm571_vm2, %v2871_v18, %v9795_v17  ;;  %v2884_v59 = vsel %vm571_vm2, %v2872_v33, %v9796_v56  ;;  %v9789_v19 = vpop.permute.xlu1 %9788  ;;  %v2969_v10 = vpack.c.bf16 %v2894_v41, %v2893_v13  ;;  %v10043_v17 = vld [vmem:[%s13601_s3 + $0x140] sm:$0xff]  }
 0x48e   :  { %v9791_v16 = vunpack.i.h.bf16 %v9789_v19  ;;  %v9790_v37 = vunpack.i.l.bf16 %v9789_v19  ;;  %v2970_v8 = vpack.c.bf16 %v2884_v59, %v2883_v12  ;;  %v10044_v59 = vld [vmem:[%s13601_s3 + $0xe0] sm:$0xff]  }
 0x48f   :  { %2974 = vmatprep.subr.bf16.mxu1 %v2969_v10 }
 0x490   :  { %2975 = vmatpush1.bf16.msra.mxu1 %v2968_v58  ;;  %v2895_v27 = vsel %vm545_vm0, %v11925_v63, %v9790_v37  ;;  %v2896_v20 = vsel %vm545_vm0, %v11941_v44, %v9791_v16  ;;  %v10767_v63 = vld [vmem:[%s13600_s1 + $0x10] sm:$0xff]   ;;  %v10035_v44 = vld [vmem:[%s13601_s3 + $0xc0] sm:$0xff]  }
 0x491   :  { %v2971_v26 = vpack.c.bf16 %v2896_v20, %v2895_v27  ;;  %8982 = vmatprep.subr.bf16.mxu0 %v10035_v44 }
 0x492   :  { %8983 = vmatpush3.bf16.msra.mxu0 %v10035_v44 }
 0x493   :  { %8083 = vmatmul.mubr.msk.bf16.gmra.mrb[88].mxu0 %vm617_vm3, %v10766_v14  ;;  %2976 = vmatprep.subr.bf16.mxu1 %v2971_v26 }
 0x494   :  { %2977 = vmatpush1.bf16.msra.mxu1 %v2970_v8  ;;  %2955 = vmatprep.mubr.bf16.mxu0 %v13666_v21 }
 0x495   :  { %8998 = vmatprep.subr.bf16.mxu1 %v10036_v34  ;;  %8984 = vmatprep.subr.bf16.mxu0 %v10037_v42 }
 0x496   :  { %8985 = vmatpush3.bf16.msra.mxu0 %v10037_v42  ;;  %v10046_v42 = vld [vmem:[%s13601_s3 + $0x148] sm:$0xff]  }
 0x497   :  { %8085 = vmatmul.mubr.msk.bf16.vlgmr.msra.gmra.mrb[84].mxu1 %vm617_vm3, %v10765_v1  ;;  %9014 = vmatprep.subr.bf16.mxu0 %v10040_v46 }
 0x498   :  { %3014 = vmatprep.mubr.bf16.mxu1 %v13666_v21  ;;  %8999 = vmatpush3.bf16.msra.mxu1 %v10036_v34  ;;  %v10045_v34 = vld [vmem:[%s13601_s3 + $0xe8] sm:$0xff]  }
 0x499   :  { %9000 = vmatprep.subr.bf16.mxu1 %v10038_v3 }
 0x49b   :  { %8084 = vmatmul.mubr.msk.bf16.gmra.mrb[92].mxu0 %vm617_vm3, %v10767_v63 }
 0x49c   :  { %9001 = vmatpush3.bf16.msra.mxu1 %v10038_v3 }
 0x49d   :  { %9030 = vmatprep.subr.bf16.mxu1 %v10039_v38 }
 0x49f   :  { %8086 = vmatmul.mubr.msk.bf16.gmra.mrb[88].mxu1 %vm617_vm3, %v10766_v14 }
 0x4a0   :  { %3024 = vmatprep.mubr.bf16.mxu1 %v13666_v21 }
 0x4a7   :  { %8087 = vmatmul.mubr.msk.bf16.gmra.mrb[92].mxu1 %vm617_vm3, %v10767_v63 }
 0x55e   :  { %v2937_v36 = vpop.f32.mrb[84].mxu0 }
 0x55f   :  { %v2939_v7 = vpop.f32.mrb[85].mxu0 }
 0x560   :  { %v2941_v48 = vpop.f32.mrb[86].mxu0 }
 0x561   :  { %v12136_v29 = vpack.c.bf16 %v2941_v48, %v2937_v36  ;;  %v2943_v0 = vpop.f32.mrb[87].mxu0 }
 0x562   :  { %v12138_v25 = vpack.c.bf16 %v2943_v0, %v2939_v7 }
 0x563   :  { %3297 = vrot.lane.b32.xlu1 %v12136_v29, %s10784_s16  ;;  %8986 = vmatprep.mubr.msk.bf16.mxu0 %vm545_vm0, %v12136_v29 }
 0x564   :  { %9002 = vmatprep.mubr.msk.bf16.mxu1 %vm545_vm0, %v12136_v29 }
 0x566   :  { %v2947_v23 = vpop.f32.mrb[88].mxu0 }
 0x567   :  { %v2949_v52 = vpop.f32.mrb[89].mxu0 }
 0x568   :  { %v2951_v45 = vpop.f32.mrb[90].mxu0 }
 0x569   :  { %v3038_v5 = vpack.c.bf16 %v2951_v45, %v2947_v23  ;;  %v2953_v49 = vpop.f32.mrb[91].mxu0  ;;  %v10050_v45 = vld [vmem:[%s13601_s3 + $0x158] sm:$0xff]  }
 0x56a   :  { %v12149_v24 = vpack.c.bf16 %v2953_v49, %v2949_v52  ;;  %v3006_v47 = vpop.f32.mrb[84].mxu1  ;;  %v10049_v52 = vld [vmem:[%s13601_s3 + $0xf8] sm:$0xff]   ;;  %v10051_v49 = vld [vmem:[%s13601_s3 + $0x160] sm:$0xff]  }
 0x56b   :  { %v3008_v35 = vpop.f32.mrb[85].mxu1  ;;  %3299 = vrot.lane.b32.xlu0 %v3038_v5, %s10784_s16  ;;  %8987 = vmatmul.mubr.msk.bf16.vlgmr.msra.gmra.mrb[96].mxu0 %vm545_vm0, %v3038_v5 }
 0x56c   :  { %9003 = vmatmul.mubr.msk.bf16.vlgmr.msra.gmra.mrb[96].mxu1 %vm545_vm0, %v3038_v5  ;;  %v3010_v62 = vpop.f32.mrb[86].mxu1  ;;  %9015 = vmatpush3.bf16.msra.mxu0 %v10040_v46  ;;  %v10048_v46 = vld [vmem:[%s13601_s3 + $0xf0] sm:$0xff]  }
 0x56d   :  { %v3040_v50 = vpack.c.bf16 %v3010_v62, %v3006_v47  ;;  %v3012_v22 = vpop.f32.mrb[87].mxu1  ;;  %9031 = vmatpush3.bf16.msra.mxu1 %v10039_v38  ;;  %9016 = vmatprep.subr.bf16.mxu0 %v10041_v51  ;;  %v10047_v38 = vld [vmem:[%s13601_s3 + $0x150] sm:$0xff]  }
 0x56e   :  { %v12157_v43 = vpack.c.bf16 %v3012_v22, %v3008_v35  ;;  %v2957_v56 = vpop.f32.mrb[92].mxu0  ;;  %9032 = vmatprep.subr.bf16.mxu1 %v10042_v61  ;;  %v10053_v22 = vld [vmem:[%s13601_s3 + $0x108] sm:$0xff]  }
 0x56f   :  { %3303 = vrot.lane.b32.xlu0 %v3040_v50, %s10784_s16  ;;  %v2959_v1 = vpop.f32.mrb[93].mxu0 }
 0x570   :  { %v2961_v18 = vpop.f32.mrb[94].mxu0  ;;  %9017 = vmatpush3.bf16.msra.mxu0 %v10041_v51  ;;  %v10052_v51 = vld [vmem:[%s13601_s3 + $0x100] sm:$0xff]  }
 0x571   :  { %v3039_v33 = vpack.c.bf16 %v2961_v18, %v2957_v56  ;;  %v2963_v13 = vpop.f32.mrb[95].mxu0  ;;  %9033 = vmatpush3.bf16.msra.mxu1 %v10042_v61  ;;  %9046 = vmatprep.subr.bf16.mxu0 %v10044_v59  ;;  %v10054_v56 = vld [vmem:[%s13601_s3 + $0x168] sm:$0xff]   ;;  %v10056_v18 = vld [vmem:[%s13601_s3 + $0x110] sm:$0xff]  }
 0x572   :  { %v12163_v41 = vpack.c.bf16 %v2963_v13, %v2959_v1  ;;  %v3016_v12 = vpop.f32.mrb[88].mxu1  ;;  %9062 = vmatprep.subr.bf16.mxu1 %v10043_v17  ;;  %v10055_v1 = vld [vmem:[%s13601_s3 + $0x170] sm:$0xff]  }
 0x573   :  { %v3018_v19 = vpop.f32.mrb[89].mxu1  ;;  %3301 = vrot.lane.b32.xlu1 %v3039_v33, %s10784_s16  ;;  %8990 = vmatprep.mubr.msk.bf16.mxu0 %vm545_vm0, %v3039_v33 }
 0x574   :  { %9006 = vmatprep.mubr.msk.bf16.mxu1 %vm545_vm0, %v3039_v33  ;;  %v3020_v10 = vpop.f32.mrb[90].mxu1  ;;  %8991 = vmatmul.mubr.msk.bf16.gmra.mrb[100].mxu0 %vm545_vm0, %v3040_v50 }
 0x575   :  { %v3041_v16 = vpack.c.bf16 %v3020_v10, %v3016_v12  ;;  %9007 = vmatmul.mubr.msk.bf16.gmra.mrb[100].mxu1 %vm545_vm0, %v3040_v50  ;;  %v3022_v37 = vpop.f32.mrb[91].mxu1 }
 0x576   :  { %v12173_v58 = vpack.c.bf16 %v3022_v37, %v3018_v19  ;;  %v10058_v19 = vld [vmem:[%s13601_s3 + $0x178] sm:$0xff]  }
 0x577   :  { %3305 = vrot.lane.b32.xlu1 %v3041_v16, %s10784_s16  ;;  %8994 = vmatprep.mubr.msk.bf16.mxu0 %vm545_vm0, %v3041_v16 }
 0x578   :  { %9010 = vmatprep.mubr.msk.bf16.mxu1 %vm545_vm0, %v3041_v16 }
 0x57a   :  { %v3026_v8 = vpop.f32.mrb[92].mxu1 }
 0x57b   :  { %v3028_v27 = vpop.f32.mrb[93].mxu1  ;;  %3545 = vrot.lane.b32.xlu1 %v12136_v29, %s10782_s14 }
 0x57c   :  { %v3030_v20 = vpop.f32.mrb[94].mxu1 }
 0x57d   :  { %v3042_v26 = vpack.c.bf16 %v3030_v20, %v3026_v8  ;;  %v3032_v14 = vpop.f32.mrb[95].mxu1 }
 0x57e   :  { %v12180_v63 = vpack.c.bf16 %v3032_v14, %v3028_v27 }
 0x57f   :  { %3307 = vrot.lane.b32.xlu0 %v3042_v26, %s10784_s16  ;;  %3549 = vrot.lane.b32.xlu1 %v3039_v33, %s10782_s14 }
 0x580   :  { %8995 = vmatmul.mubr.msk.bf16.gmra.mrb[104].mxu0 %vm545_vm0, %v3042_v26  ;;  %9011 = vmatmul.mubr.msk.bf16.gmra.mrb[104].mxu1 %vm545_vm0, %v3042_v26 }
 0x583   :  { %3547 = vrot.lane.b32.xlu0 %v3038_v5, %s10782_s14  ;;  %3553 = vrot.lane.b32.xlu1 %v3041_v16, %s10782_s14 }
 0x587   :  { %3551 = vrot.lane.b32.xlu0 %v3040_v50, %s10782_s14  ;;  %3793 = vrot.lane.b32.xlu1 %v12136_v29, %s10783_s15 }
 0x58b   :  { %3555 = vrot.lane.b32.xlu0 %v3042_v26, %s10782_s14  ;;  %3797 = vrot.lane.b32.xlu1 %v3039_v33, %s10783_s15 }
 0x58f   :  { %3795 = vrot.lane.b32.xlu0 %v3038_v5, %s10783_s15  ;;  %3801 = vrot.lane.b32.xlu1 %v3041_v16, %s10783_s15 }
 0x593   :  { %3799 = vrot.lane.b32.xlu0 %v3040_v50, %s10783_s15  ;;  %4289 = vrot.lane.b32.xlu1 %v12138_v25, %s10784_s16 }
 0x597   :  { %3803 = vrot.lane.b32.xlu0 %v3042_v26, %s10783_s15  ;;  %4293 = vrot.lane.b32.xlu1 %v12163_v41, %s10784_s16 }
 0x59b   :  { %4291 = vrot.lane.b32.xlu0 %v12149_v24, %s10784_s16  ;;  %4297 = vrot.lane.b32.xlu1 %v12173_v58, %s10784_s16 }
 0x59f   :  { %4295 = vrot.lane.b32.xlu0 %v12157_v43, %s10784_s16 }
 0x5a3   :  { %4299 = vrot.lane.b32.xlu0 %v12180_v63, %s10784_s16 }
 0x5d5   :  { %v3298_v44 = vpop.permute.xlu1 %3297 }
 0x5d6   :  { %9018 = vmatprep.mubr.msk.bf16.mxu0 %vm545_vm0, %v3298_v44  ;;  %9034 = vmatprep.mubr.msk.bf16.mxu1 %vm545_vm0, %v3298_v44 }
 0x5dd   :  { %v3300_v3 = vpop.permute.xlu0 %3299 }
 0x5de   :  { %9019 = vmatmul.mubr.msk.bf16.vlgmr.msra.gmra.mrb[108].mxu0 %vm545_vm0, %v3300_v3  ;;  %9035 = vmatmul.mubr.msk.bf16.vlgmr.msra.gmra.mrb[108].mxu1 %vm545_vm0, %v3300_v3 }
 0x5df   :  { %9063 = vmatpush3.bf16.msra.mxu1 %v10043_v17  ;;  %9047 = vmatpush3.bf16.msra.mxu0 %v10044_v59  ;;  %v10057_v59 = vld [vmem:[%s13601_s3 + $0x118] sm:$0xff]  }
 0x5e0   :  { %9048 = vmatprep.subr.bf16.mxu0 %v10045_v34  ;;  %9064 = vmatprep.subr.bf16.mxu1 %v10046_v42 }
 0x5e1   :  { %v3304_v7 = vpop.permute.xlu0 %3303 }
 0x5e3   :  { %9049 = vmatpush3.bf16.msra.mxu0 %v10045_v34  ;;  %9065 = vmatpush3.bf16.msra.mxu1 %v10046_v42 }
 0x5e4   :  { %9094 = vmatprep.subr.bf16.mxu1 %v10047_v38  ;;  %9078 = vmatprep.subr.bf16.mxu0 %v10048_v46 }
 0x5e5   :  { %v3302_v36 = vpop.permute.xlu1 %3301 }
 0x5e6   :  { %9022 = vmatprep.mubr.msk.bf16.mxu0 %vm545_vm0, %v3302_v36  ;;  %9038 = vmatprep.mubr.msk.bf16.mxu1 %vm545_vm0, %v3302_v36 }
 0x5e7   :  { %9023 = vmatmul.mubr.msk.bf16.gmra.mrb[112].mxu0 %vm545_vm0, %v3304_v7  ;;  %9039 = vmatmul.mubr.msk.bf16.gmra.mrb[112].mxu1 %vm545_vm0, %v3304_v7 }
 0x5e9   :  { %v3306_v48 = vpop.permute.xlu1 %3305 }
 0x5ea   :  { %9026 = vmatprep.mubr.msk.bf16.mxu0 %vm545_vm0, %v3306_v48  ;;  %9042 = vmatprep.mubr.msk.bf16.mxu1 %vm545_vm0, %v3306_v48 }
 0x5ed   :  { %v3546_v0 = vpop.permute.xlu1 %3545 }
 0x5f1   :  { %v3308_v29 = vpop.permute.xlu0 %3307  ;;  %v3550_v5 = vpop.permute.xlu1 %3549 }
 0x5f2   :  { %9027 = vmatmul.mubr.msk.bf16.gmra.mrb[116].mxu0 %vm545_vm0, %v3308_v29  ;;  %9043 = vmatmul.mubr.msk.bf16.gmra.mrb[116].mxu1 %vm545_vm0, %v3308_v29 }
 0x5f3   :  { %9050 = vmatprep.mubr.msk.bf16.mxu0 %vm545_vm0, %v3546_v0  ;;  %9066 = vmatprep.mubr.msk.bf16.mxu1 %vm545_vm0, %v3546_v0 }
 0x5f5   :  { %v3548_v23 = vpop.permute.xlu0 %3547  ;;  %v3554_v61 = vpop.permute.xlu1 %3553 }
 0x5f9   :  { %v3552_v47 = vpop.permute.xlu0 %3551  ;;  %v3794_v62 = vpop.permute.xlu1 %3793 }
 0x5fa   :  { %9051 = vmatmul.mubr.msk.bf16.vlgmr.msra.gmra.mrb[120].mxu0 %vm545_vm0, %v3548_v23  ;;  %9067 = vmatmul.mubr.msk.bf16.vlgmr.msra.gmra.mrb[120].mxu1 %vm545_vm0, %v3548_v23 }
 0x5fb   :  { %9054 = vmatprep.mubr.msk.bf16.mxu0 %vm545_vm0, %v3550_v5  ;;  %9070 = vmatprep.mubr.msk.bf16.mxu1 %vm545_vm0, %v3550_v5 }
 0x5fc   :  { %9095 = vmatpush3.bf16.msra.mxu1 %v10047_v38  ;;  %9079 = vmatpush3.bf16.msra.mxu0 %v10048_v46 }
 0x5fd   :  { %9080 = vmatprep.subr.bf16.mxu0 %v10049_v52  ;;  %9096 = vmatprep.subr.bf16.mxu1 %v10050_v45  ;;  %v3556_v35 = vpop.permute.xlu0 %3555  ;;  %v3798_v17 = vpop.permute.xlu1 %3797 }
 0x600   :  { %9081 = vmatpush3.bf16.msra.mxu0 %v10049_v52  ;;  %9097 = vmatpush3.bf16.msra.mxu1 %v10050_v45 }
 0x601   :  { %9126 = vmatprep.subr.bf16.mxu1 %v10051_v49  ;;  %9110 = vmatprep.subr.bf16.mxu0 %v10052_v51  ;;  %v3796_v50 = vpop.permute.xlu0 %3795  ;;  %v3802_v13 = vpop.permute.xlu1 %3801 }
 0x602   :  { %9055 = vmatmul.mubr.msk.bf16.gmra.mrb[124].mxu0 %vm545_vm0, %v3552_v47  ;;  %9071 = vmatmul.mubr.msk.bf16.gmra.mrb[124].mxu1 %vm545_vm0, %v3552_v47 }
 0x603   :  { %9058 = vmatprep.mubr.msk.bf16.mxu0 %vm545_vm0, %v3554_v61  ;;  %9074 = vmatprep.mubr.msk.bf16.mxu1 %vm545_vm0, %v3554_v61 }
 0x605   :  { %v3800_v33 = vpop.permute.xlu0 %3799 }
 0x609   :  { %v3804_v12 = vpop.permute.xlu0 %3803 }
 0x60a   :  { %9059 = vmatmul.mubr.msk.bf16.gmra.mrb[128].mxu0 %vm545_vm0, %v3556_v35  ;;  %9075 = vmatmul.mubr.msk.bf16.gmra.mrb[128].mxu1 %vm545_vm0, %v3556_v35  ;;  %v12333_v35 = vld [vmem:[%s13599_s2 + $0x48] sm:$0x3f] }
 0x60b   :  { %9082 = vmatprep.mubr.msk.bf16.mxu0 %vm545_vm0, %v3794_v62  ;;  %9098 = vmatprep.mubr.msk.bf16.mxu1 %vm545_vm0, %v3794_v62 }
 0x60d   :  { %v4292_v16 = vpop.permute.xlu0 %4291 }
 0x611   :  { %v4296_v46 = vpop.permute.xlu0 %4295 }
 0x612   :  { %9083 = vmatmul.mubr.msk.bf16.vlgmr.msra.gmra.mrb[132].mxu0 %vm545_vm0, %v3796_v50  ;;  %9099 = vmatmul.mubr.msk.bf16.vlgmr.msra.gmra.mrb[132].mxu1 %vm545_vm0, %v3796_v50 }
 0x613   :  { %9086 = vmatprep.mubr.msk.bf16.mxu0 %vm545_vm0, %v3798_v17  ;;  %9102 = vmatprep.mubr.msk.bf16.mxu1 %vm545_vm0, %v3798_v17 }
 0x614   :  { %9127 = vmatpush3.bf16.msra.mxu1 %v10051_v49  ;;  %9111 = vmatpush3.bf16.msra.mxu0 %v10052_v51 }
 0x615   :  { %9112 = vmatprep.subr.bf16.mxu0 %v10053_v22  ;;  %9128 = vmatprep.subr.bf16.mxu1 %v10054_v56  ;;  %v4300_v47 = vpop.permute.xlu0 %4299 }
 0x618   :  { %9113 = vmatpush3.bf16.msra.mxu0 %v10053_v22  ;;  %9129 = vmatpush3.bf16.msra.mxu1 %v10054_v56 }
 0x619   :  { %9158 = vmatprep.subr.bf16.mxu1 %v10055_v1  ;;  %9142 = vmatprep.subr.bf16.mxu0 %v10056_v18 }
 0x61a   :  { %9087 = vmatmul.mubr.msk.bf16.gmra.mrb[136].mxu0 %vm545_vm0, %v3800_v33  ;;  %9103 = vmatmul.mubr.msk.bf16.gmra.mrb[136].mxu1 %vm545_vm0, %v3800_v33 }
 0x61b   :  { %9090 = vmatprep.mubr.msk.bf16.mxu0 %vm545_vm0, %v3802_v13  ;;  %9106 = vmatprep.mubr.msk.bf16.mxu1 %vm545_vm0, %v3802_v13 }
 0x622   :  { %9091 = vmatmul.mubr.msk.bf16.gmra.mrb[140].mxu0 %vm545_vm0, %v3804_v12  ;;  %9107 = vmatmul.mubr.msk.bf16.gmra.mrb[140].mxu1 %vm545_vm0, %v3804_v12 }
 0x623   :  { %9114 = vmatprep.mubr.msk.bf16.mxu0 %vm545_vm0, %v12138_v25  ;;  %9130 = vmatprep.mubr.msk.bf16.mxu1 %vm545_vm0, %v12138_v25  ;;  %v4290_v25 = vpop.permute.xlu1 %4289 }
 0x627   :  { %v4294_v10 = vpop.permute.xlu1 %4293 }
 0x62a   :  { %9115 = vmatmul.mubr.msk.bf16.vlgmr.msra.gmra.mrb[144].mxu0 %vm545_vm0, %v12149_v24  ;;  %9131 = vmatmul.mubr.msk.bf16.vlgmr.msra.gmra.mrb[144].mxu1 %vm545_vm0, %v12149_v24  ;;  %v12310_v24 = vld [vmem:[%s13599_s2 + $0x50] sm:$0x3f] }
 0x62b   :  { %9118 = vmatprep.mubr.msk.bf16.mxu0 %vm545_vm0, %v12163_v41  ;;  %9134 = vmatprep.mubr.msk.bf16.mxu1 %vm545_vm0, %v12163_v41  ;;  %v4298_v38 = vpop.permute.xlu1 %4297 }
 0x62c   :  { %9159 = vmatpush3.bf16.msra.mxu1 %v10055_v1  ;;  %9143 = vmatpush3.bf16.msra.mxu0 %v10056_v18 }
 0x62d   :  { %9144 = vmatprep.subr.bf16.mxu0 %v10057_v59  ;;  %9160 = vmatprep.subr.bf16.mxu1 %v10058_v19 }
 0x630   :  { %9145 = vmatpush3.bf16.msra.mxu0 %v10057_v59  ;;  %9161 = vmatpush3.bf16.msra.mxu1 %v10058_v19 }
 0x632   :  { %9119 = vmatmul.mubr.msk.bf16.gmra.mrb[148].mxu0 %vm545_vm0, %v12157_v43  ;;  %9135 = vmatmul.mubr.msk.bf16.gmra.mrb[148].mxu1 %vm545_vm0, %v12157_v43  ;;  %v13667_v43 = vld [vmem:[#allocation7_spill] sm:$0xff] }
 0x633   :  { %9122 = vmatprep.mubr.msk.bf16.mxu0 %vm545_vm0, %v12173_v58  ;;  %9138 = vmatprep.mubr.msk.bf16.mxu1 %vm545_vm0, %v12173_v58  ;;  %v3161_v41 = vrot.slane %v12310_v24, %v13667_v43  ;;  %v3054_v33 = vrot.slane %v12333_v35, %v13667_v43 }
 0x63a   :  { %9123 = vmatmul.mubr.msk.bf16.gmra.mrb[152].mxu0 %vm545_vm0, %v12180_v63  ;;  %9139 = vmatmul.mubr.msk.bf16.gmra.mrb[152].mxu1 %vm545_vm0, %v12180_v63 }
 0x63b   :  { %9146 = vmatprep.mubr.msk.bf16.mxu0 %vm545_vm0, %v4290_v25  ;;  %9162 = vmatprep.mubr.msk.bf16.mxu1 %vm545_vm0, %v4290_v25 }
 0x63e   :  { %v8988_v37 = vpop.f32.mrb[96].mxu0 }
 0x63f   :  { %v9004_v58 = vpop.f32.mrb[96].mxu1  ;;  %v3119_v8 = vpop.f32.mrb[97].mxu0 }
 0x640   :  { %v3215_v27 = vadd.f32 %v9004_v58, %v3161_v41  ;;  %v3208_v20 = vpop.f32.mrb[97].mxu1  ;;  %v8989_v26 = vpop.f32.mrb[98].mxu0 }
 0x641   :  { %v9005_v14 = vpop.f32.mrb[98].mxu1  ;;  %v3121_v44 = vpop.f32.mrb[99].mxu0  ;;  %v3129_v8 = vadd.f32 %v8989_v26, %v3054_v33 }
 0x642   :  { %v8104_v34 = vmul.f32 -1.442695, %v3215_v27  ;;  %v3218_v42 = vadd.f32 %v9005_v14, %v3161_v41  ;;  %v3210_v63 = vpop.f32.mrb[99].mxu1  ;;  %9147 = vmatmul.mubr.msk.bf16.vlgmr.msra.gmra.mrb[156].mxu0 %vm545_vm0, %v4292_v16  ;;  %9163 = vmatmul.mubr.msk.bf16.vlgmr.msra.gmra.mrb[156].mxu1 %vm545_vm0, %v4292_v16 }
 0x643   :  { %9150 = vmatprep.mubr.msk.bf16.mxu0 %vm545_vm0, %v4294_v10  ;;  %9166 = vmatprep.mubr.msk.bf16.mxu1 %vm545_vm0, %v4294_v10  ;;  %v3126_v10 = vadd.f32 %v8988_v37, %v3054_v33 }
 0x644   :  { %10411 = vpow2.f32 %v8104_v34  ;;  %v8105_v3 = vmul.f32 -1.442695, %v3218_v42 }
 0x646   :  { %10413 = vpow2.f32 %v8105_v3 }
 0x647   :  { %v8992_v36 = vpop.f32.mrb[100].mxu0 }
 0x648   :  { %v9008_v7 = vpop.f32.mrb[100].mxu1  ;;  %v3133_v48 = vpop.f32.mrb[101].mxu0  ;;  %v13668_v36 = vld [vmem:[#allocation3_spill] sm:$0xff] }
 0x649   :  { %v3222_v29 = vpop.f32.mrb[101].mxu1  ;;  %v8993_v0 = vpop.f32.mrb[102].mxu0  ;;  %v3415_v26 = vrot.slane %v12310_v24, %v13668_v36 }
 0x64a   :  { %v9009_v23 = vpop.f32.mrb[102].mxu1  ;;  %v3135_v52 = vpop.f32.mrb[103].mxu0  ;;  %9151 = vmatmul.mubr.msk.bf16.gmra.mrb[160].mxu0 %vm545_vm0, %v4296_v46  ;;  %9167 = vmatmul.mubr.msk.bf16.gmra.mrb[160].mxu1 %vm545_vm0, %v4296_v46 }
 0x64b   :  { %v3224_v45 = vpop.f32.mrb[103].mxu1  ;;  %9154 = vmatprep.mubr.msk.bf16.mxu0 %vm545_vm0, %v4298_v38  ;;  %9170 = vmatprep.mubr.msk.bf16.mxu1 %vm545_vm0, %v4298_v38 }
 0x64e   :  { %v10412_v5 = vpop.eup %10411 }
 0x64f   :  { %v3259_v49 = vadd.f32 1.0, %v10412_v5 }
 0x650   :  { %v10414_v51 = vpop.eup %10413 }
 0x651   :  { %10415 = vrcp.f32 %v3259_v49  ;;  %v3260_v61 = vadd.f32 1.0, %v10414_v51 }
 0x652   :  { %9155 = vmatmul.mubr.msk.bf16.gmra.mrb[164].mxu0 %vm545_vm0, %v4300_v47  ;;  %9171 = vmatmul.mubr.msk.bf16.gmra.mrb[164].mxu1 %vm545_vm0, %v4300_v47 }
 0x653   :  { %10417 = vrcp.f32 %v3260_v61  ;;  %v8996_v62 = vpop.f32.mrb[104].mxu0  ;;  %v9012_v50 = vpop.f32.mrb[104].mxu1 }
 0x654   :  { %v3145_v22 = vpop.f32.mrb[105].mxu0  ;;  %v3234_v56 = vpop.f32.mrb[105].mxu1 }
 0x655   :  { %v3235_v17 = vadd.f32 %v3234_v56, %v3161_v41  ;;  %v8997_v1 = vpop.f32.mrb[106].mxu0  ;;  %v9013_v18 = vpop.f32.mrb[106].mxu1  ;;  %v3146_v63 = vadd.f32 %v3145_v22, %v3054_v33 }
 0x656   :  { %v3148_v13 = vpop.f32.mrb[107].mxu0  ;;  %v3237_v12 = vpop.f32.mrb[107].mxu1 }
 0x657   :  { %v8106_v59 = vmul.f32 -1.442695, %v3235_v17  ;;  %v3238_v19 = vadd.f32 %v3237_v12, %v3161_v41  ;;  %v3149_v38 = vadd.f32 %v3148_v13, %v3054_v33 }
 0x659   :  { %10419 = vpow2.f32 %v8106_v59  ;;  %v8107_v25 = vmul.f32 -1.442695, %v3238_v19 }
 0x65b   :  { %v10416_v16 = vpop.eup %10415  ;;  %10421 = vpow2.f32 %v8107_v25 }
 0x65c   :  { %v12337_v58 = vmul.f32 %v10416_v16, %v3126_v10 }
 0x65d   :  { %v10418_v27 = vpop.eup %10417 }
 0x65e   :  { %v12339_v20 = vmul.f32 %v10418_v27, %v3129_v8 }
 0x663   :  { %v10420_v14 = vpop.eup %10419 }
 0x664   :  { %v3261_v44 = vadd.f32 1.0, %v10420_v14 }
 0x665   :  { %v10422_v34 = vpop.eup %10421 }
 0x666   :  { %10423 = vrcp.f32 %v3261_v44  ;;  %v3262_v42 = vadd.f32 1.0, %v10422_v34  ;;  %v12351_v34 = vrot.slane %v12333_v35, %v13668_v36 }
 0x668   :  { %10425 = vrcp.f32 %v3262_v42 }
 0x670   :  { %v10424_v3 = vpop.eup %10423 }
 0x671   :  { %v12341_v41 = vmul.f32 %v10424_v3, %v3146_v63 }
 0x672   :  { %v10426_v37 = vpop.eup %10425 }
 0x673   :  { %v12343_v46 = vmul.f32 %v10426_v37, %v3149_v38  ;;  %v13669_v37 = vld [vmem:[#allocation2_spill] sm:$0xff] }
 0x6b1   :  { %v9020_v7 = vpop.f32.mrb[108].mxu0  ;;  %v9036_v48 = vpop.f32.mrb[108].mxu1 }
 0x6b2   :  { %v3469_v29 = vadd.f32 %v9036_v48, %v3415_v26  ;;  %v3373_v0 = vpop.f32.mrb[109].mxu0  ;;  %v3462_v23 = vpop.f32.mrb[109].mxu1  ;;  %v12357_v48 = vrot.slane %v12310_v24, %v13669_v37 }
 0x6b3   :  { %v9021_v52 = vpop.f32.mrb[110].mxu0  ;;  %v9037_v45 = vpop.f32.mrb[110].mxu1  ;;  %v3380_v0 = vadd.f32 %v9020_v7, %v12351_v34 }
 0x6b4   :  { %v8124_v5 = vmul.f32 -1.442695, %v3469_v29  ;;  %v3472_v49 = vadd.f32 %v9037_v45, %v3415_v26  ;;  %v3375_v51 = vpop.f32.mrb[111].mxu0  ;;  %v3464_v47 = vpop.f32.mrb[111].mxu1 }
 0x6b6   :  { %10427 = vpow2.f32 %v8124_v5  ;;  %v8125_v61 = vmul.f32 -1.442695, %v3472_v49  ;;  %v3383_v49 = vadd.f32 %v9021_v52, %v12351_v34 }
 0x6b8   :  { %10429 = vpow2.f32 %v8125_v61 }
 0x6ba   :  { %v9024_v62 = vpop.f32.mrb[112].mxu0  ;;  %v9040_v50 = vpop.f32.mrb[112].mxu1 }
 0x6bb   :  { %v3387_v22 = vpop.f32.mrb[113].mxu0  ;;  %v3476_v56 = vpop.f32.mrb[113].mxu1  ;;  %v12367_v62 = vld [vmem:[%s13599_s2 + $0x58] sm:$0x3f] }
 0x6bc   :  { %v9025_v17 = vpop.f32.mrb[114].mxu0  ;;  %v9041_v1 = vpop.f32.mrb[114].mxu1  ;;  %v12373_v56 = vrot.slane %v12367_v62, %v13668_v36 }
 0x6bd   :  { %v3389_v18 = vpop.f32.mrb[115].mxu0  ;;  %v3478_v33 = vpop.f32.mrb[115].mxu1 }
 0x6c0   :  { %v10428_v13 = vpop.eup %10427 }
 0x6c1   :  { %v3513_v12 = vadd.f32 1.0, %v10428_v13  ;;  %v13670_v13 = vld [vmem:[#allocation12_spill] sm:$0xff] }
 0x6c2   :  { %v10430_v59 = vpop.eup %10429 }
 0x6c3   :  { %10431 = vrcp.f32 %v3513_v12  ;;  %v3514_v19 = vadd.f32 1.0, %v10430_v59 }
 0x6c5   :  { %10433 = vrcp.f32 %v3514_v19  ;;  %v9028_v25 = vpop.f32.mrb[116].mxu0  ;;  %v9044_v10 = vpop.f32.mrb[116].mxu1  ;;  %v13671_v19 = vld [vmem:[#allocation13_spill] sm:$0xff] }
 0x6c6   :  { %v12347_v16 = vpop.f32.mrb[117].mxu0  ;;  %v3488_v8 = vpop.f32.mrb[117].mxu1 }
 0x6c7   :  { %v3489_v27 = vadd.f32 %v3488_v8, %v3415_v26  ;;  %v9029_v14 = vpop.f32.mrb[118].mxu0  ;;  %v9045_v44 = vpop.f32.mrb[118].mxu1 }
 0x6c8   :  { %v12353_v42 = vpop.f32.mrb[119].mxu0  ;;  %v3491_v63 = vpop.f32.mrb[119].mxu1 }
 0x6c9   :  { %v8126_v3 = vmul.f32 -1.442695, %v3489_v27  ;;  %v3492_v38 = vadd.f32 %v3491_v63, %v3415_v26  ;;  %v12383_v63 = vld [vmem:[%s13599_s2 + $0x60] sm:$0xff] }
 0x6cb   :  { %10435 = vpow2.f32 %v8126_v3  ;;  %v8127_v29 = vmul.f32 -1.442695, %v3492_v38  ;;  %v12388_v3 = vld [vmem:[%s13599_s2 + $0x68] sm:$0xff] }
 0x6cd   :  { %v10432_v23 = vpop.eup %10431  ;;  %10437 = vpow2.f32 %v8127_v29  ;;  %v12360_v45 = vpop.f32.mrb[120].mxu0 }
 0x6ce   :  { %v9068_v5 = vpop.f32.mrb[120].mxu1  ;;  %v3621_v47 = vpop.f32.mrb[121].mxu0  ;;  %v3525_v26 = vmul.f32 %v10432_v23, %v3380_v0 }
 0x6cf   :  { %v3717_v51 = vadd.f32 %v9068_v5, %v12357_v48  ;;  %v3710_v61 = vpop.f32.mrb[121].mxu1  ;;  %v10434_v50 = vpop.eup %10433 }
 0x6d0   :  { %v12369_v22 = vpop.f32.mrb[122].mxu0  ;;  %v9069_v7 = vpop.f32.mrb[122].mxu1  ;;  %v3526_v33 = vmul.f32 %v10434_v50, %v3383_v49  ;;  %v3529_v12 = vmax.f32 %v13670_v13, %v3525_v26 }
 0x6d1   :  { %v8144_v17 = vmul.f32 -1.442695, %v3717_v51  ;;  %v3720_v52 = vadd.f32 %v9069_v7, %v12357_v48  ;;  %v3623_v1 = vpop.f32.mrb[123].mxu0  ;;  %v3712_v18 = vpop.f32.mrb[123].mxu1 }
 0x6d2   :  { %v3530_v25 = vmax.f32 %v13671_v19, %v3526_v33  ;;  %v4546_v10 = vadd.f32 %v12373_v56, %v3529_v12 }
 0x6d3   :  { %10439 = vpow2.f32 %v8144_v17  ;;  %v8145_v59 = vmul.f32 -1.442695, %v3720_v52 }
 0x6d4   :  { %v4547_v8 = vadd.f32 %v12373_v56, %v3530_v25  ;;  %v12391_v23 = vadd.f32 %v4546_v10, %v12383_v63 }
 0x6d5   :  { %10441 = vpow2.f32 %v8145_v59  ;;  %v10436_v27 = vpop.eup %10435  ;;  %v9056_v14 = vpop.f32.mrb[124].mxu0 }
 0x6d6   :  { %v9072_v44 = vpop.f32.mrb[124].mxu1  ;;  %v3515_v38 = vadd.f32 1.0, %v10436_v27  ;;  %v3635_v29 = vpop.f32.mrb[125].mxu0  ;;  %v12394_v5 = vadd.f32 %v4547_v8, %v12388_v3  ;;  %v3400_v14 = vadd.f32 %v12347_v16, %v12351_v34 }
 0x6d7   :  { %v3724_v0 = vpop.f32.mrb[125].mxu1  ;;  %v10438_v49 = vpop.eup %10437 }
 0x6d8   :  { %v9057_v51 = vpop.f32.mrb[126].mxu0  ;;  %v9073_v47 = vpop.f32.mrb[126].mxu1  ;;  %10443 = vrcp.f32 %v3515_v38  ;;  %v3516_v61 = vadd.f32 1.0, %v10438_v49  ;;  %v9797_v7 = vpack.i.bf16 %v12394_v5, %v12391_v23  ;;  %v13672_v0 = vld [vmem:[#allocation4_spill] sm:$0xff] }
 0x6d9   :  { %v3637_v26 = vpop.f32.mrb[127].mxu0  ;;  %v3726_v50 = vpop.f32.mrb[127].mxu1  ;;  %v12409_v49 = vrot.slane %v12310_v24, %v13672_v0  ;;  %v3403_v51 = vadd.f32 %v12353_v42, %v12351_v34 }
 0x6da   :  { %10445 = vrcp.f32 %v3516_v61  ;;  %9798 = vrot.lane.b32.xlu1 %v9797_v7, %s10783_s15  ;;  %v12415_v50 = vrot.slane %v12333_v35, %v13669_v37 }
 0x6dd   :  { %v10440_v17 = vpop.eup %10439  ;;  %v9060_v1 = vpop.f32.mrb[128].mxu0 }
 0x6de   :  { %v3761_v52 = vadd.f32 1.0, %v10440_v17  ;;  %v9076_v18 = vpop.f32.mrb[128].mxu1  ;;  %v12399_v13 = vpop.f32.mrb[129].mxu0 }
 0x6df   :  { %v10442_v33 = vpop.eup %10441  ;;  %v3736_v12 = vpop.f32.mrb[129].mxu1 }
 0x6e0   :  { %10447 = vrcp.f32 %v3761_v52  ;;  %v3762_v59 = vadd.f32 1.0, %v10442_v33  ;;  %v3737_v19 = vadd.f32 %v3736_v12, %v12357_v48  ;;  %v9061_v25 = vpop.f32.mrb[130].mxu0  ;;  %v9077_v10 = vpop.f32.mrb[130].mxu1 }
 0x6e1   :  { %v12402_v8 = vpop.f32.mrb[131].mxu0  ;;  %v3739_v27 = vpop.f32.mrb[131].mxu1 }
 0x6e2   :  { %10449 = vrcp.f32 %v3762_v59  ;;  %v8146_v44 = vmul.f32 -1.442695, %v3737_v19  ;;  %v3740_v38 = vadd.f32 %v3739_v27, %v12357_v48  ;;  %v10444_v29 = vpop.eup %10443  ;;  %v3628_v59 = vadd.f32 %v12360_v45, %v12415_v50  ;;  %v12438_v45 = vld [vmem:[%s13599_s2 + $0x70] sm:$0xff] }
 0x6e3   :  { %v3527_v61 = vmul.f32 %v10444_v29, %v3400_v14 }
 0x6e4   :  { %10451 = vpow2.f32 %v8146_v44  ;;  %v8147_v47 = vmul.f32 -1.442695, %v3740_v38  ;;  %v10446_v26 = vpop.eup %10445  ;;  %v12431_v44 = vrot.slane %v12367_v62, %v13669_v37 }
 0x6e5   :  { %v12417_v16 = vpop.f32.mrb[132].mxu0  ;;  %v9100_v48 = vpop.f32.mrb[132].mxu1  ;;  %v3528_v7 = vmul.f32 %v10446_v26, %v3403_v51  ;;  %v3531_v17 = vmax.f32 %v11646_v15, %v3527_v61  ;;  %v12443_v51 = vld [vmem:[%s13599_s2 + $0x78] sm:$0xff]  ;;  %v13673_v26 = vld [vmem:[#allocation14_spill] sm:$0xff] }
 0x6e6   :  { %10453 = vpow2.f32 %v8147_v47  ;;  %v3965_v52 = vadd.f32 %v9100_v48, %v12409_v49  ;;  %v3869_v1 = vpop.f32.mrb[133].mxu0  ;;  %v3958_v18 = vpop.f32.mrb[133].mxu1 }
 0x6e7   :  { %v12421_v34 = vpop.f32.mrb[134].mxu0  ;;  %v9101_v42 = vpop.f32.mrb[134].mxu1  ;;  %v3532_v33 = vmax.f32 %v11657_v6, %v3528_v7  ;;  %v4548_v12 = vadd.f32 %v12373_v56, %v3531_v17  ;;  %v3631_v6 = vadd.f32 %v12369_v22, %v12415_v50 }
 0x6e8   :  { %v8164_v19 = vmul.f32 -1.442695, %v3965_v52  ;;  %v3968_v25 = vadd.f32 %v9101_v42, %v12409_v49  ;;  %v3871_v10 = vpop.f32.mrb[135].mxu0  ;;  %v3960_v27 = vpop.f32.mrb[135].mxu1 }
 0x6e9   :  { %v4549_v14 = vadd.f32 %v12373_v56, %v3532_v33  ;;  %v12446_v47 = vadd.f32 %v4548_v12, %v12438_v45 }
 0x6ea   :  { %v10448_v15 = vpop.eup %10447  ;;  %10455 = vpow2.f32 %v8164_v19  ;;  %v8165_v29 = vmul.f32 -1.442695, %v3968_v25 }
 0x6eb   :  { %v3773_v38 = vmul.f32 %v10448_v15, %v3628_v59  ;;  %v12449_v61 = vadd.f32 %v4549_v14, %v12443_v51  ;;  %v13674_v59 = vld [vmem:[#allocation15_spill] sm:$0xff] }
 0x6ec   :  { %v10450_v56 = vpop.eup %10449  ;;  %10457 = vpow2.f32 %v8165_v29 }
 0x6ed   :  { %v3774_v22 = vmul.f32 %v10450_v56, %v3631_v6  ;;  %v3777_v48 = vmax.f32 %v13673_v26, %v3773_v38  ;;  %v9088_v17 = vpop.f32.mrb[136].mxu0  ;;  %v9104_v52 = vpop.f32.mrb[136].mxu1  ;;  %v9802_v1 = vpack.i.bf16 %v12449_v61, %v12446_v47 }
 0x6ee   :  { %v10452_v7 = vpop.eup %10451  ;;  %v3883_v42 = vpop.f32.mrb[137].mxu0 }
 0x6ef   :  { %v3763_v18 = vadd.f32 1.0, %v10452_v7  ;;  %v3972_v33 = vpop.f32.mrb[137].mxu1  ;;  %v3778_v19 = vmax.f32 %v13674_v59, %v3774_v22  ;;  %v4558_v12 = vadd.f32 %v12431_v44, %v3777_v48  ;;  %v9089_v10 = vpop.f32.mrb[138].mxu0  ;;  %9803 = vrot.lane.b32.xlu0 %v9802_v1, %s10783_s15 }
 0x6f0   :  { %v10454_v25 = vpop.eup %10453  ;;  %v9105_v27 = vpop.f32.mrb[138].mxu1  ;;  %v3648_v10 = vadd.f32 %v12399_v13, %v12415_v50  ;;  %v12484_v13 = vrot.slane %v12333_v35, %v13672_v0 }
 0x6f1   :  { %10459 = vrcp.f32 %v3763_v18  ;;  %v3764_v15 = vadd.f32 1.0, %v10454_v25  ;;  %v3885_v14 = vpop.f32.mrb[139].mxu0  ;;  %v3974_v38 = vpop.f32.mrb[139].mxu1  ;;  %v4559_v6 = vadd.f32 %v12431_v44, %v3778_v19  ;;  %v12459_v29 = vadd.f32 %v4558_v12, %v12383_v63 }
 0x6f2   :  { %v13675_v38 = vld [vmem:[#allocation5_spill] sm:$0xff] }
 0x6f3   :  { %10461 = vrcp.f32 %v3764_v15  ;;  %v12462_v56 = vadd.f32 %v4559_v6, %v12388_v3  ;;  %v12478_v6 = vrot.slane %v12310_v24, %v13675_v38 }
 0x6f4   :  { %v10456_v22 = vpop.eup %10455 }
 0x6f5   :  { %v9807_v26 = vpack.i.bf16 %v12462_v56, %v12459_v29  ;;  %v4009_v48 = vadd.f32 1.0, %v10456_v22  ;;  %v9092_v7 = vpop.f32.mrb[140].mxu0  ;;  %v9108_v17 = vpop.f32.mrb[140].mxu1 }
 0x6f6   :  { %v10458_v52 = vpop.eup %10457  ;;  %v12466_v1 = vpop.f32.mrb[141].mxu0 }
 0x6f7   :  { %v3984_v18 = vpop.f32.mrb[141].mxu1  ;;  %9808 = vrot.lane.b32.xlu0 %v9807_v26, %s10782_s14  ;;  %10463 = vrcp.f32 %v4009_v48  ;;  %v4010_v42 = vadd.f32 1.0, %v10458_v52  ;;  %v9093_v59 = vpop.f32.mrb[142].mxu0  ;;  %v3651_v48 = vadd.f32 %v12402_v8, %v12415_v50  ;;  %v13677_v50 = vld [vmem:[#allocation17_spill] sm:$0xff] }
 0x6f8   :  { %v3985_v33 = vadd.f32 %v3984_v18, %v12409_v49  ;;  %v9109_v19 = vpop.f32.mrb[142].mxu1  ;;  %v12470_v12 = vpop.f32.mrb[143].mxu0  ;;  %v13676_v18 = vld [vmem:[#allocation16_spill] sm:$0xff] }
 0x6f9   :  { %v3987_v25 = vpop.f32.mrb[143].mxu1  ;;  %10465 = vrcp.f32 %v4010_v42 }
 0x6fa   :  { %v8166_v27 = vmul.f32 -1.442695, %v3985_v33  ;;  %v3988_v15 = vadd.f32 %v3987_v25, %v12409_v49 }
 0x6fb   :  { %v10460_v14 = vpop.eup %10459  ;;  %9813 = vrot.lane.b32.xlu0 %v9807_v26, %s10783_s15 }
 0x6fc   :  { %v3775_v22 = vmul.f32 %v10460_v14, %v3648_v10  ;;  %10467 = vpow2.f32 %v8166_v27  ;;  %v8167_v7 = vmul.f32 -1.442695, %v3988_v15  ;;  %v3876_v15 = vadd.f32 %v12417_v16, %v12484_v13 }
 0x6fd   :  { %v10462_v17 = vpop.eup %10461  ;;  %v12486_v49 = vpop.f32.mrb[144].mxu0 }
 0x6fe   :  { %v3776_v52 = vmul.f32 %v10462_v17, %v3651_v48  ;;  %10469 = vpow2.f32 %v8167_v7  ;;  %v9132_v26 = vpop.f32.mrb[144].mxu1  ;;  %v3779_v42 = vmax.f32 %v13676_v18, %v3775_v22  ;;  %v4111_v59 = vpop.f32.mrb[145].mxu0  ;;  %v12500_v18 = vrot.slane %v12367_v62, %v13672_v0 }
 0x6ff   :  { %v4207_v33 = vadd.f32 %v9132_v26, %v12478_v6  ;;  %v4200_v19 = vpop.f32.mrb[145].mxu1  ;;  %v12490_v25 = vpop.f32.mrb[146].mxu0 }
 0x700   :  { %v9133_v8 = vpop.f32.mrb[146].mxu1  ;;  %v3780_v10 = vmax.f32 %v13677_v50, %v3776_v52  ;;  %v4560_v27 = vadd.f32 %v12431_v44, %v3779_v42  ;;  %v4113_v7 = vpop.f32.mrb[147].mxu0  ;;  %v3879_v52 = vadd.f32 %v12421_v34, %v12484_v13 }
 0x701   :  { %v8184_v14 = vmul.f32 -1.442695, %v4207_v33  ;;  %v4210_v48 = vadd.f32 %v9133_v8, %v12478_v6  ;;  %v4202_v17 = vpop.f32.mrb[147].mxu1  ;;  %v10464_v22 = vpop.eup %10463 }
 0x702   :  { %v4561_v26 = vadd.f32 %v12431_v44, %v3780_v10  ;;  %v4021_v59 = vmul.f32 %v10464_v22, %v3876_v15  ;;  %v12505_v16 = vadd.f32 %v4560_v27, %v12438_v45  ;;  %v13678_v44 = vld [vmem:[#allocation18_spill] sm:$0xff]  ;;  %v13679_v22 = vld [vmem:[#allocation19_spill] sm:$0xff] }
 0x703   :  { %10471 = vpow2.f32 %v8184_v14  ;;  %v8185_v42 = vmul.f32 -1.442695, %v4210_v48  ;;  %v10466_v19 = vpop.eup %10465 }
 0x704   :  { %v12508_v33 = vadd.f32 %v4561_v26, %v12443_v51  ;;  %v4022_v8 = vmul.f32 %v10466_v19, %v3879_v52  ;;  %v4025_v50 = vmax.f32 %v13678_v44, %v4021_v59  ;;  %v13629_v59 = vmov 0.0  }
 0x705   :  { %10473 = vpow2.f32 %v8185_v42  ;;  %v9120_v7 = vpop.f32.mrb[148].mxu0  ;;  %v9136_v17 = vpop.f32.mrb[148].mxu1  ;;  %9174 = vmatprep.subr.bf16.mxu0 %v13629_v59  ;;  %9192 = vmatprep.subr.bf16.mxu1 %v13629_v59 }
 0x706   :  { %v10468_v10 = vpop.eup %10467  ;;  %v12513_v15 = vpack.i.bf16 %v12508_v33, %v12505_v16  ;;  %v4125_v14 = vpop.f32.mrb[149].mxu0  ;;  %v4026_v27 = vmax.f32 %v13679_v22, %v4022_v8  ;;  %v4570_v21 = vadd.f32 %v12500_v18, %v4025_v50  ;;  %9180 = vmatprep.mubr.msk.bf16.mxu0 %vm10786_vm4, %v13629_v59  ;;  %9198 = vmatprep.mubr.msk.bf16.mxu1 %vm10786_vm4, %v13629_v59 }
 0x707   :  { %v4011_v34 = vadd.f32 1.0, %v10468_v10  ;;  %v4214_v48 = vpop.f32.mrb[149].mxu1  ;;  %v9121_v0 = vpop.f32.mrb[150].mxu0 }
 0x708   :  { %v10470_v26 = vpop.eup %10469  ;;  %v9137_v52 = vpop.f32.mrb[150].mxu1  ;;  %9818 = vrot.lane.b32.xlu0 %v12513_v15, %s10782_s14  ;;  %v4571_v10 = vadd.f32 %v12500_v18, %v4026_v27  ;;  %v4574_v8 = vadd.f32 %v4570_v21, %v12383_v63 }
 0x709   :  { %10475 = vrcp.f32 %v4011_v34  ;;  %v4012_v42 = vadd.f32 1.0, %v10470_v26  ;;  %v4127_v19 = vpop.f32.mrb[151].mxu0  ;;  %v4216_v44 = vpop.f32.mrb[151].mxu1 }
 0x70a   :  { %v4575_v0 = vadd.f32 %v4571_v10, %v12388_v3  ;;  %v3896_v10 = vadd.f32 %v12466_v1, %v12484_v13  ;;  %v12542_v1 = vrot.slane %v12333_v35, %v13675_v38 }
 0x70b   :  { %10477 = vrcp.f32 %v4012_v42 }
 0x70c   :  { %v9822_v7 = vpack.i.bf16 %v4575_v0, %v4574_v8 }
 0x70d   :  { %v10472_v50 = vpop.eup %10471  ;;  %v9124_v14 = vpop.f32.mrb[152].mxu0 }
 0x70e   :  { %v4251_v17 = vadd.f32 1.0, %v10472_v50  ;;  %v9140_v48 = vpop.f32.mrb[152].mxu1  ;;  %9823 = vrot.lane.b32.xlu1 %v9822_v7, %s10784_s16  ;;  %v12525_v34 = vpop.f32.mrb[153].mxu0 }
 0x70f   :  { %v10474_v22 = vpop.eup %10473  ;;  %v4226_v52 = vpop.f32.mrb[153].mxu1  ;;  %v3899_v48 = vadd.f32 %v12470_v12, %v12484_v13 }
 0x710   :  { %10479 = vrcp.f32 %v4251_v17  ;;  %v4252_v27 = vadd.f32 1.0, %v10474_v22  ;;  %v4227_v26 = vadd.f32 %v4226_v52, %v12478_v6  ;;  %v9125_v42 = vpop.f32.mrb[154].mxu0  ;;  %v9141_v19 = vpop.f32.mrb[154].mxu1  ;;  %v12536_v17 = vrot.slane %v12310_v24, %v10931_v9 }
 0x711   :  { %v12528_v21 = vpop.f32.mrb[155].mxu0  ;;  %v4229_v44 = vpop.f32.mrb[155].mxu1 }
 0x712   :  { %10481 = vrcp.f32 %v4252_v27  ;;  %v8186_v8 = vmul.f32 -1.442695, %v4227_v26  ;;  %v4230_v0 = vadd.f32 %v4229_v44, %v12478_v6  ;;  %9828 = vrot.lane.b32.xlu1 %v9822_v7, %s10782_s14 }
 0x713   :  { %v10476_v50 = vpop.eup %10475 }
 0x714   :  { %v4023_v14 = vmul.f32 %v10476_v50, %v3896_v10  ;;  %10483 = vpow2.f32 %v8186_v8  ;;  %v8187_v22 = vmul.f32 -1.442695, %v4230_v0  ;;  %v4118_v0 = vadd.f32 %v12486_v49, %v12542_v1 }
 0x715   :  { %v10478_v52 = vpop.eup %10477  ;;  %v12544_v6 = vpop.f32.mrb[156].mxu0 }
 0x716   :  { %v4024_v27 = vmul.f32 %v10478_v52, %v3899_v48  ;;  %10485 = vpow2.f32 %v8187_v22  ;;  %v9164_v26 = vpop.f32.mrb[156].mxu1  ;;  %v4027_v42 = vmax.f32 %v11836_v4, %v4023_v14  ;;  %9833 = vrot.lane.b32.xlu1 %v9822_v7, %s10783_s15  ;;  %v4365_v12 = vpop.f32.mrb[157].mxu0  ;;  %v12558_v7 = vrot.slane %v12367_v62, %v13675_v38 }
 0x717   :  { %v4461_v24 = vadd.f32 %v9164_v26, %v12536_v17  ;;  %v4454_v19 = vpop.f32.mrb[157].mxu1  ;;  %v12549_v13 = vpop.f32.mrb[158].mxu0 }
 0x718   :  { %v9165_v44 = vpop.f32.mrb[158].mxu1  ;;  %v4028_v10 = vmax.f32 %v11862_v39, %v4024_v27  ;;  %v4572_v8 = vadd.f32 %v12500_v18, %v4027_v42  ;;  %v4367_v4 = vpop.f32.mrb[159].mxu0  ;;  %v4121_v39 = vadd.f32 %v12490_v25, %v12542_v1 }
 0x719   :  { %v8204_v50 = vmul.f32 -1.442695, %v4461_v24  ;;  %v4464_v48 = vadd.f32 %v9165_v44, %v12536_v17  ;;  %v4456_v14 = vpop.f32.mrb[159].mxu1 }
 0x71a   :  { %v10480_v22 = vpop.eup %10479  ;;  %v4573_v52 = vadd.f32 %v12500_v18, %v4028_v10  ;;  %9848 = vrot.lane.b32.xlu1 %v12513_v15, %s10783_s15  ;;  %v4576_v42 = vadd.f32 %v4572_v8, %v12438_v45 }
 0x71b   :  { %10487 = vpow2.f32 %v8204_v50  ;;  %v8205_v27 = vmul.f32 -1.442695, %v4464_v48  ;;  %v4263_v49 = vmul.f32 %v10480_v22, %v4118_v0 }
 0x71c   :  { %v10482_v26 = vpop.eup %10481  ;;  %v4577_v24 = vadd.f32 %v4573_v52, %v12443_v51 }
 0x71d   :  { %10489 = vpow2.f32 %v8205_v27  ;;  %v4264_v19 = vmul.f32 %v10482_v26, %v4121_v39  ;;  %v4267_v12 = vmax.f32 %v11876_v30, %v4263_v49  ;;  %v9152_v18 = vpop.f32.mrb[160].mxu0  ;;  %v9168_v10 = vpop.f32.mrb[160].mxu1 }
 0x71e   :  { %v10484_v44 = vpop.eup %10483  ;;  %v9842_v4 = vpack.i.bf16 %v4577_v24, %v4576_v42  ;;  %v4379_v50 = vpop.f32.mrb[161].mxu0 }
 0x71f   :  { %v4253_v25 = vadd.f32 1.0, %v10484_v44  ;;  %v4468_v48 = vpop.f32.mrb[161].mxu1  ;;  %v4268_v14 = vmax.f32 %v11893_v11, %v4264_v19  ;;  %v4582_v15 = vadd.f32 %v12558_v7, %v4267_v12  ;;  %v9153_v22 = vpop.f32.mrb[162].mxu0 }
 0x720   :  { %v10486_v0 = vpop.eup %10485  ;;  %v9169_v8 = vpop.f32.mrb[162].mxu1  ;;  %v4138_v22 = vadd.f32 %v12525_v34, %v12542_v1 }
 0x721   :  { %10491 = vrcp.f32 %v4253_v25  ;;  %v4254_v52 = vadd.f32 1.0, %v10486_v0  ;;  %v4381_v27 = vpop.f32.mrb[163].mxu0  ;;  %v4470_v39 = vpop.f32.mrb[163].mxu1  ;;  %v4583_v30 = vadd.f32 %v12558_v7, %v4268_v14  ;;  %v4586_v49 = vadd.f32 %v4582_v15, %v12383_v63 }
 0x723   :  { %10493 = vrcp.f32 %v4254_v52  ;;  %v4587_v26 = vadd.f32 %v4583_v30, %v12388_v3  ;;  %v4141_v30 = vadd.f32 %v12528_v21, %v12542_v1 }
 0x725   :  { %v10488_v42 = vpop.eup %10487  ;;  %v9857_v24 = vpack.i.bf16 %v4587_v26, %v4586_v49  ;;  %v9156_v11 = vpop.f32.mrb[164].mxu0 }
 0x726   :  { %v4505_v44 = vadd.f32 1.0, %v10488_v42  ;;  %v9172_v19 = vpop.f32.mrb[164].mxu1  ;;  %v4391_v18 = vpop.f32.mrb[165].mxu0  ;;  %v4282_v42 = vrot.slane %v12333_v35, %v10931_v9 }
 0x727   :  { %v10490_v12 = vpop.eup %10489  ;;  %v4480_v10 = vpop.f32.mrb[165].mxu1  ;;  %9858 = vrot.lane.b32.xlu1 %v9857_v24, %s10782_s14  ;;  %9838 = vrot.lane.b32.xlu0 %v9857_v24, %s10784_s16 }
 0x728   :  { %10495 = vrcp.f32 %v4505_v44  ;;  %v4506_v25 = vadd.f32 1.0, %v10490_v12  ;;  %v4481_v50 = vadd.f32 %v4480_v10, %v12536_v17  ;;  %v9157_v48 = vpop.f32.mrb[166].mxu0  ;;  %v9173_v14 = vpop.f32.mrb[166].mxu1  ;;  %v4372_v11 = vadd.f32 %v12544_v6, %v4282_v42 }
 0x729   :  { %v4394_v15 = vpop.f32.mrb[167].mxu0  ;;  %v4483_v0 = vpop.f32.mrb[167].mxu1  ;;  %v4375_v1 = vadd.f32 %v12549_v13, %v4282_v42 }
 0x72a   :  { %10497 = vrcp.f32 %v4506_v25  ;;  %v8206_v8 = vmul.f32 -1.442695, %v4481_v50  ;;  %v4484_v52 = vadd.f32 %v4483_v0, %v12536_v17 }
 0x72b   :  { %v10492_v27 = vpop.eup %10491  ;;  %9843 = vrot.lane.b32.xlu0 %v9842_v4, %s10784_s16 }
 0x72c   :  { %v4265_v39 = vmul.f32 %v10492_v27, %v4138_v22  ;;  %10499 = vpow2.f32 %v8206_v8  ;;  %v8207_v49 = vmul.f32 -1.442695, %v4484_v52 }
 0x72d   :  { %v10494_v26 = vpop.eup %10493 }
 0x72e   :  { %v4269_v24 = vmax.f32 %v11937_v55, %v4265_v39  ;;  %10501 = vpow2.f32 %v8207_v49  ;;  %v4266_v34 = vmul.f32 %v10494_v26, %v4141_v30  ;;  %v4593_v55 = vrot.slane %v12367_v62, %v10931_v9 }
 0x72f   :  { %9853 = vrot.lane.b32.xlu0 %v9842_v4, %s10782_s14  ;;  %v4395_v39 = vadd.f32 %v4394_v15, %v4282_v42  ;;  %v3275_v15 = vmax.f32 %v11472_v40, %v12337_v58 }
 0x730   :  { %v4584_v17 = vadd.f32 %v12558_v7, %v4269_v24  ;;  %v4270_v44 = vmax.f32 %v11943_v54, %v4266_v34 }
 0x732   :  { %v10496_v19 = vpop.eup %10495  ;;  %v4585_v21 = vadd.f32 %v12558_v7, %v4270_v44  ;;  %v4588_v10 = vadd.f32 %v4584_v17, %v12438_v45 }
 0x733   :  { %9873 = vrot.lane.b32.xlu0 %v9842_v4, %s10783_s15  ;;  %v4517_v35 = vmul.f32 %v10496_v19, %v4372_v11 }
 0x734   :  { %v10498_v12 = vpop.eup %10497  ;;  %v4589_v25 = vadd.f32 %v4585_v21, %v12443_v51 }
 0x735   :  { %v4518_v50 = vmul.f32 %v10498_v12, %v4375_v1  ;;  %v4521_v54 = vmax.f32 %v11945_v53, %v4517_v35 }
 0x736   :  { %v10500_v6 = vpop.eup %10499  ;;  %v9867_v48 = vpack.i.bf16 %v4589_v25, %v4588_v10 }
 0x737   :  { %v4507_v14 = vadd.f32 1.0, %v10500_v6  ;;  %v4522_v7 = vmax.f32 %v11955_v2, %v4518_v50  ;;  %v4594_v13 = vadd.f32 %v4593_v55, %v4521_v54  ;;  %v4392_v2 = vadd.f32 %v4391_v18, %v4282_v42 }
 0x738   :  { %v10502_v0 = vpop.eup %10501  ;;  %v3276_v42 = vmax.f32 %v11484_v60, %v12339_v20 }
 0x739   :  { %10503 = vrcp.f32 %v4507_v14  ;;  %v4508_v4 = vadd.f32 1.0, %v10502_v0  ;;  %v4595_v22 = vadd.f32 %v4593_v55, %v4522_v7  ;;  %v4598_v8 = vadd.f32 %v4594_v13, %v12383_v63 }
 0x73b   :  { %10505 = vrcp.f32 %v4508_v4  ;;  %v4599_v52 = vadd.f32 %v4595_v22, %v12388_v3  ;;  %v3278_v4 = vmax.f32 %v13663_v28, %v12343_v46 }
 0x73d   :  { %v9862_v53 = vpack.i.bf16 %v4599_v52, %v4598_v8 }
 0x73f   :  { %9863 = vrot.lane.b32.xlu1 %v9862_v53, %s10784_s16 }
 0x743   :  { %v10504_v27 = vpop.eup %10503  ;;  %9868 = vrot.lane.b32.xlu1 %v9867_v48, %s10784_s16 }
 0x744   :  { %v4519_v30 = vmul.f32 %v10504_v27, %v4392_v2 }
 0x745   :  { %v10506_v49 = vpop.eup %10505 }
 0x746   :  { %v4520_v26 = vmul.f32 %v10506_v49, %v4395_v39  ;;  %v4523_v24 = vmax.f32 %v11973_v57, %v4519_v30  ;;  %v4533_v57 = vrot.slane %v12367_v62, %v13667_v43 }
 0x747   :  { %9878 = vrot.lane.b32.xlu1 %v9867_v48, %s10782_s14 }
 0x748   :  { %v4524_v34 = vmax.f32 %v11985_v32, %v4520_v26  ;;  %v4596_v17 = vadd.f32 %v4593_v55, %v4523_v24  ;;  %v4534_v1 = vadd.f32 %v4533_v57, %v3275_v15  ;;  %v4535_v35 = vadd.f32 %v4533_v57, %v3276_v42 }
 0x749   :  { %v4537_v30 = vadd.f32 %v4533_v57, %v3278_v4 }
 0x74a   :  { %v4597_v44 = vadd.f32 %v4593_v55, %v4524_v34  ;;  %v4600_v11 = vadd.f32 %v4596_v17, %v12438_v45  ;;  %v4538_v54 = vadd.f32 %v4534_v1, %v12383_v63  ;;  %v4539_v6 = vadd.f32 %v4535_v35, %v12388_v3 }
 0x74b   :  { %v3277_v3 = vmax.f32 %v13662_v31, %v12341_v41 }
 0x74c   :  { %v4601_v19 = vadd.f32 %v4597_v44, %v12443_v51  ;;  %v9799_v32 = vpop.permute.xlu1 %9798 }
 0x74d   :  { %v9801_v12 = vunpack.i.h.bf16 %v9799_v32  ;;  %v9800_v10 = vunpack.i.l.bf16 %v9799_v32  ;;  %v4536_v39 = vadd.f32 %v4533_v57, %v3277_v3 }
 0x74e   :  { %v9882_v18 = vpack.i.bf16 %v4601_v19, %v4600_v11 }
 0x74f   :  { %v4731_v58 = vsel %vm545_vm0, %v4539_v6, %v9801_v12  ;;  %v4730_v60 = vsel %vm545_vm0, %v4538_v54, %v9800_v10  ;;  %v4540_v19 = vadd.f32 %v4536_v39, %v12438_v45 }
 0x750   :  { %9883 = vrot.lane.b32.xlu0 %v9882_v18, %s10784_s16  ;;  %v4541_v18 = vadd.f32 %v4537_v30, %v12443_v51 }
 0x761   :  { %v9804_v21 = vpop.permute.xlu0 %9803 }
 0x762   :  { %v9806_v49 = vunpack.i.h.bf16 %v9804_v21  ;;  %v9805_v26 = vunpack.i.l.bf16 %v9804_v21 }
 0x764   :  { %v4737_v21 = vsel %vm545_vm0, %v4541_v18, %v9806_v49 }
 0x769   :  { %v9809_v55 = vpop.permute.xlu0 %9808 }
 0x76a   :  { %v9811_v25 = vunpack.i.h.bf16 %v9809_v55  ;;  %v9810_v50 = vunpack.i.l.bf16 %v9809_v55 }
 0x76c   :  { %v4743_v48 = vsel %vm558_vm1, %v4731_v58, %v9811_v25  ;;  %v4742_v14 = vsel %vm558_vm1, %v4730_v60, %v9810_v50 }
 0x76d   :  { %v9814_v63 = vpop.permute.xlu0 %9813 }
 0x76e   :  { %v9816_v52 = vunpack.i.h.bf16 %v9814_v63  ;;  %v9815_v53 = vunpack.i.l.bf16 %v9814_v63 }
 0x770   :  { %v4733_v34 = vsel %vm545_vm0, %v12394_v5, %v9816_v52  ;;  %v4732_v31 = vsel %vm545_vm0, %v12391_v23, %v9815_v53  ;;  %v4736_v23 = vsel %vm545_vm0, %v4540_v19, %v9805_v26 }
 0x77a   :  { %v9819_v8 = vpop.permute.xlu0 %9818 }
 0x77b   :  { %v9821_v28 = vunpack.i.h.bf16 %v9819_v8  ;;  %v9820_v46 = vunpack.i.l.bf16 %v9819_v8 }
 0x77d   :  { %v4748_v35 = vsel %vm558_vm1, %v4736_v23, %v9820_v46  ;;  %v4749_v55 = vsel %vm558_vm1, %v4737_v21, %v9821_v28 }
 0x780   :  { %v9824_v40 = vpop.permute.xlu1 %9823 }
 0x781   :  { %v9826_v20 = vunpack.i.h.bf16 %v9824_v40  ;;  %v9825_v62 = vunpack.i.l.bf16 %v9824_v40 }
 0x783   :  { %v4754_v7 = vsel %vm571_vm2, %v4742_v14, %v9825_v62  ;;  %v4755_v13 = vsel %vm571_vm2, %v4743_v48, %v9826_v20 }
 0x784   :  { %v4766_v0 = vpack.c.bf16 %v4755_v13, %v4754_v7  ;;  %v9829_v22 = vpop.permute.xlu1 %9828 }
 0x785   :  { %v9831_v2 = vunpack.i.h.bf16 %v9829_v22  ;;  %v9830_v27 = vunpack.i.l.bf16 %v9829_v22 }
 0x786   :  { %9175 = vmatpush3.bf16.msra.mxu0 %v4766_v0 }
 0x787   :  { %9176 = vmatprep.subr.bf16.mxu0 %v13629_v59  ;;  %v4744_v44 = vsel %vm558_vm1, %v4732_v31, %v9830_v27  ;;  %v4745_v11 = vsel %vm558_vm1, %v4733_v34, %v9831_v2  ;;  %v10768_v31 = vld [vmem:[%s13600_s1] sm:$0xff]  }
 0x788   :  { %v9834_v10 = vpop.permute.xlu1 %9833 }
 0x789   :  { %v9836_v54 = vunpack.i.h.bf16 %v9834_v10  ;;  %v9835_v6 = vunpack.i.l.bf16 %v9834_v10 }
 0x78b   :  { %v4735_v20 = vsel %vm545_vm0, %v12462_v56, %v9836_v54  ;;  %v4734_v62 = vsel %vm545_vm0, %v12459_v29, %v9835_v6 }
 0x78c   :  { %v9849_v25 = vpop.permute.xlu1 %9848 }
 0x78d   :  { %v9851_v14 = vunpack.i.h.bf16 %v9849_v25  ;;  %v9850_v7 = vunpack.i.l.bf16 %v9849_v25 }
 0x78f   :  { %v4738_v29 = vsel %vm545_vm0, %v12446_v47, %v9850_v7  ;;  %v4739_v2 = vsel %vm545_vm0, %v12449_v61, %v9851_v14 }
 0x799   :  { %v9839_v24 = vpop.permute.xlu0 %9838  ;;  %v9859_v50 = vpop.permute.xlu1 %9858 }
 0x79a   :  { %v9841_v41 = vunpack.i.h.bf16 %v9839_v24  ;;  %v9840_v17 = vunpack.i.l.bf16 %v9839_v24  ;;  %v9861_v40 = vunpack.i.h.bf16 %v9859_v50  ;;  %v9860_v58 = vunpack.i.l.bf16 %v9859_v50 }
 0x79c   :  { %v4756_v15 = vsel %vm571_vm2, %v4744_v44, %v9840_v17  ;;  %v4757_v42 = vsel %vm571_vm2, %v4745_v11, %v9841_v41  ;;  %v4747_v63 = vsel %vm558_vm1, %v4735_v20, %v9861_v40  ;;  %v4746_v3 = vsel %vm558_vm1, %v4734_v62, %v9860_v58  ;;  %v10769_v11 = vld [vmem:[%s13600_s1 + $0x8] sm:$0xff]   ;;  %v10065_v62 = vld [vmem:[%s13601_s3 + $0x1d8] sm:$0xff]  }
 0x79d   :  { %v4767_v5 = vpack.c.bf16 %v4757_v42, %v4756_v15  ;;  %v9844_v57 = vpop.permute.xlu0 %9843 }
 0x79e   :  { %v9846_v32 = vunpack.i.h.bf16 %v9844_v57  ;;  %v9845_v1 = vunpack.i.l.bf16 %v9844_v57 }
 0x79f   :  { %9177 = vmatpush3.bf16.msra.mxu0 %v4767_v5 }
 0x7a0   :  { %v4760_v45 = vsel %vm571_vm2, %v4748_v35, %v9845_v1  ;;  %v4761_v51 = vsel %vm571_vm2, %v4749_v55, %v9846_v32  ;;  %9178 = vmatprep.subr.bf16.mxu0 %v13629_v59  ;;  %v10060_v1 = vld [vmem:[%s13601_s3 + $0x180] sm:$0xff]   ;;  %v10061_v35 = vld [vmem:[%s13601_s3 + $0x1c8] sm:$0xff]  }
 0x7a1   :  { %v4826_v12 = vpack.c.bf16 %v4761_v51, %v4760_v45  ;;  %v9854_v60 = vpop.permute.xlu0 %9853  ;;  %v10062_v55 = vld [vmem:[%s13601_s3 + $0x188] sm:$0xff]   ;;  %v10063_v45 = vld [vmem:[%s13601_s3 + $0x1d0] sm:$0xff]  }
 0x7a2   :  { %v9856_v4 = vunpack.i.h.bf16 %v9854_v60  ;;  %v9855_v22 = vunpack.i.l.bf16 %v9854_v60  ;;  %v10064_v51 = vld [vmem:[%s13601_s3 + $0x190] sm:$0xff]  }
 0x7a3   :  { %9193 = vmatpush3.bf16.msra.mxu1 %v4826_v12 }
 0x7a4   :  { %9194 = vmatprep.subr.bf16.mxu1 %v13629_v59  ;;  %v4751_v30 = vsel %vm558_vm1, %v4739_v2, %v9856_v4  ;;  %v4750_v49 = vsel %vm558_vm1, %v4738_v29, %v9855_v22  ;;  %v10068_v29 = vld [vmem:[%s13601_s3 + $0x1a0] sm:$0xff]  }
 0x7a5   :  { %v9874_v47 = vpop.permute.xlu0 %9873 }
 0x7a6   :  { %v9876_v41 = vunpack.i.h.bf16 %v9874_v47  ;;  %v9875_v17 = vunpack.i.l.bf16 %v9874_v47 }
 0x7a8   :  { %v4741_v19 = vsel %vm545_vm0, %v12508_v33, %v9876_v41  ;;  %v4740_v18 = vsel %vm545_vm0, %v12505_v16, %v9875_v17  ;;  %v10770_v33 = vld [vmem:[%s13600_s1 + $0x10] sm:$0xff]   ;;  %v10059_v16 = vld [vmem:[%s13601_s3 + $0x1c0] sm:$0xff]   ;;  %v10070_v41 = vld [vmem:[%s13601_s3 + $0x1e8] sm:$0xff]  }
 0x7b1   :  { %v9864_v48 = vpop.permute.xlu1 %9863 }
 0x7b2   :  { %v9866_v13 = vunpack.i.h.bf16 %v9864_v48  ;;  %v9865_v0 = vunpack.i.l.bf16 %v9864_v48  ;;  %v10066_v48 = vld [vmem:[%s13601_s3 + $0x198] sm:$0xff]  }
 0x7b4   :  { %v4758_v8 = vsel %vm571_vm2, %v4746_v3, %v9865_v0  ;;  %v4759_v52 = vsel %vm571_vm2, %v4747_v63, %v9866_v13  ;;  %v10067_v0 = vld [vmem:[%s13601_s3 + $0x1e0] sm:$0xff]  }
 0x7b5   :  { %v4768_v53 = vpack.c.bf16 %v4759_v52, %v4758_v8  ;;  %v9869_v56 = vpop.permute.xlu1 %9868 }
 0x7b6   :  { %v9871_v27 = vunpack.i.h.bf16 %v9869_v56  ;;  %v9870_v39 = vunpack.i.l.bf16 %v9869_v56 }
 0x7b7   :  { %9179 = vmatpush3.bf16.msra.mxu0 %v4768_v53 }
 0x7b8   :  { %v4762_v26 = vsel %vm571_vm2, %v4750_v49, %v9870_v39  ;;  %v4763_v24 = vsel %vm571_vm2, %v4751_v30, %v9871_v27  ;;  %9210 = vmatprep.subr.bf16.mxu0 %v10060_v1 }
 0x7b9   :  { %v4827_v34 = vpack.c.bf16 %v4763_v24, %v4762_v26  ;;  %v9879_v61 = vpop.permute.xlu1 %9878 }
 0x7ba   :  { %9181 = vmatmul.mubr.msk.bf16.vlgmr.msra.gmra.mrb[168].mxu0 %vm617_vm3, %v10768_v31  ;;  %v9881_v28 = vunpack.i.h.bf16 %v9879_v61  ;;  %v9880_v46 = vunpack.i.l.bf16 %v9879_v61  ;;  %v10069_v61 = vld [vmem:[%s13601_s3 + $0x1a8] sm:$0xff]  }
 0x7bb   :  { %9195 = vmatpush3.bf16.msra.mxu1 %v4827_v34  ;;  %9184 = vmatprep.mubr.msk.bf16.mxu0 %vm10786_vm4, %v13629_v59 }
 0x7bc   :  { %9196 = vmatprep.subr.bf16.mxu1 %v13629_v59  ;;  %v4752_v5 = vsel %vm558_vm1, %v4740_v18, %v9880_v46  ;;  %v4753_v57 = vsel %vm558_vm1, %v4741_v19, %v9881_v28  ;;  %9211 = vmatpush3.bf16.msra.mxu0 %v10060_v1  ;;  %v10071_v28 = vld [vmem:[%s13601_s3 + $0x1f0] sm:$0xff]  }
 0x7bd   :  { %9212 = vmatprep.subr.bf16.mxu0 %v10062_v55  ;;  %v10072_v46 = vld [vmem:[%s13601_s3 + $0x1b0] sm:$0xff]  }
 0x7c0   :  { %9213 = vmatpush3.bf16.msra.mxu0 %v10062_v55 }
 0x7c1   :  { %9242 = vmatprep.subr.bf16.mxu0 %v10064_v51 }
 0x7c2   :  { %v9884_v44 = vpop.permute.xlu0 %9883  ;;  %9185 = vmatmul.mubr.msk.bf16.gmra.mrb[172].mxu0 %vm617_vm3, %v10769_v11 }
 0x7c3   :  { %v9886_v15 = vunpack.i.h.bf16 %v9884_v44  ;;  %v9885_v42 = vunpack.i.l.bf16 %v9884_v44  ;;  %9188 = vmatprep.mubr.msk.bf16.mxu0 %vm10786_vm4, %v13629_v59 }
 0x7c5   :  { %v4764_v23 = vsel %vm571_vm2, %v4752_v5, %v9885_v42  ;;  %v4765_v21 = vsel %vm571_vm2, %v4753_v57, %v9886_v15  ;;  %v10073_v5 = vld [vmem:[%s13601_s3 + $0x1b8] sm:$0xff]  }
 0x7c6   :  { %v4828_v32 = vpack.c.bf16 %v4765_v21, %v4764_v23  ;;  %v10074_v57 = vld [vmem:[%s13601_s3 + $0x1f8] sm:$0xff]  }
 0x7c8   :  { %9197 = vmatpush3.bf16.msra.mxu1 %v4828_v32 }
 0x7c9   :  { %9226 = vmatprep.subr.bf16.mxu1 %v10059_v16 }
 0x7ca   :  { %9189 = vmatmul.mubr.msk.bf16.gmra.mrb[176].mxu0 %vm617_vm3, %v10770_v33 }
 0x7cb   :  { %9199 = vmatmul.mubr.msk.bf16.vlgmr.msra.gmra.mrb[168].mxu1 %vm617_vm3, %v10768_v31 }
 0x7cc   :  { %9202 = vmatprep.mubr.msk.bf16.mxu1 %vm10786_vm4, %v13629_v59  ;;  %9227 = vmatpush3.bf16.msra.mxu1 %v10059_v16 }
 0x7cd   :  { %9228 = vmatprep.subr.bf16.mxu1 %v10061_v35 }
 0x7d0   :  { %9229 = vmatpush3.bf16.msra.mxu1 %v10061_v35 }
 0x7d1   :  { %9258 = vmatprep.subr.bf16.mxu1 %v10063_v45 }
 0x7d3   :  { %9203 = vmatmul.mubr.msk.bf16.gmra.mrb[172].mxu1 %vm617_vm3, %v10769_v11 }
 0x7d4   :  { %9206 = vmatprep.mubr.msk.bf16.mxu1 %vm10786_vm4, %v13629_v59 }
 0x7db   :  { %9207 = vmatmul.mubr.msk.bf16.gmra.mrb[176].mxu1 %vm617_vm3, %v10770_v33 }
 0x88d   :  { %v4803_v12 = vpop.f32.mrb[168].mxu0 }
 0x88e   :  { %v9182_v10 = vpop.f32.mrb[169].mxu0 }
 0x88f   :  { %v4806_v25 = vpop.f32.mrb[170].mxu0 }
 0x890   :  { %v4888_v50 = vpack.c.bf16 %v4806_v25, %v4803_v12  ;;  %v9183_v54 = vpop.f32.mrb[171].mxu0  ;;  %v12820_v12 = vld [vmem:[%s13599_s2 + $0x88] sm:$0xf] }
 0x891   :  { %v12824_v10 = vrot.slane %v12820_v12, %v13667_v43 }
 0x892   :  { %5216 = vrot.lane.b32.xlu1 %v4888_v50, %s10784_s16  ;;  %9214 = vmatprep.mubr.msk.bf16.mxu0 %vm545_vm0, %v4888_v50 }
 0x893   :  { %9230 = vmatprep.mubr.msk.bf16.mxu1 %vm545_vm0, %v4888_v50 }
 0x895   :  { %v4811_v6 = vpop.f32.mrb[172].mxu0 }
 0x896   :  { %v9186_v40 = vpop.f32.mrb[173].mxu0 }
 0x897   :  { %v4814_v58 = vpop.f32.mrb[174].mxu0 }
 0x898   :  { %v4889_v60 = vpack.c.bf16 %v4814_v58, %v4811_v6  ;;  %v9187_v20 = vpop.f32.mrb[175].mxu0 }
 0x89a   :  { %5218 = vrot.lane.b32.xlu0 %v4889_v60, %s10784_s16  ;;  %9231 = vmatmul.mubr.msk.bf16.vlgmr.msra.gmra.mrb[180].mxu1 %vm545_vm0, %v4889_v60 }
 0x89b   :  { %9215 = vmatmul.mubr.msk.bf16.vlgmr.msra.gmra.mrb[180].mxu0 %vm545_vm0, %v4889_v60  ;;  %9259 = vmatpush3.bf16.msra.mxu1 %v10063_v45 }
 0x89c   :  { %9243 = vmatpush3.bf16.msra.mxu0 %v10064_v51  ;;  %9260 = vmatprep.subr.bf16.mxu1 %v10065_v62 }
 0x89d   :  { %v4819_v14 = vpop.f32.mrb[176].mxu0  ;;  %9244 = vmatprep.subr.bf16.mxu0 %v10066_v48 }
 0x89e   :  { %v9190_v7 = vpop.f32.mrb[177].mxu0  ;;  %v4863_v13 = vpop.f32.mrb[168].mxu1 }
 0x89f   :  { %v4822_v63 = vpop.f32.mrb[178].mxu0  ;;  %v9200_v3 = vpop.f32.mrb[169].mxu1  ;;  %9261 = vmatpush3.bf16.msra.mxu1 %v10065_v62 }
 0x8a0   :  { %v4890_v4 = vpack.c.bf16 %v4822_v63, %v4819_v14  ;;  %v4866_v22 = vpop.f32.mrb[170].mxu1  ;;  %v9191_v8 = vpop.f32.mrb[179].mxu0  ;;  %9245 = vmatpush3.bf16.msra.mxu0 %v10066_v48  ;;  %9290 = vmatprep.subr.bf16.mxu1 %v10067_v0 }
 0x8a1   :  { %v4891_v52 = vpack.c.bf16 %v4866_v22, %v4863_v13  ;;  %v9201_v53 = vpop.f32.mrb[171].mxu1  ;;  %9274 = vmatprep.subr.bf16.mxu0 %v10068_v29 }
 0x8a2   :  { %5220 = vrot.lane.b32.xlu1 %v4890_v4, %s10784_s16  ;;  %9218 = vmatprep.mubr.msk.bf16.mxu0 %vm545_vm0, %v4890_v4 }
 0x8a3   :  { %9234 = vmatprep.mubr.msk.bf16.mxu1 %vm545_vm0, %v4890_v4  ;;  %5222 = vrot.lane.b32.xlu0 %v4891_v52, %s10784_s16 }
 0x8a4   :  { %9219 = vmatmul.mubr.msk.bf16.gmra.mrb[184].mxu0 %vm545_vm0, %v4891_v52  ;;  %9235 = vmatmul.mubr.msk.bf16.gmra.mrb[184].mxu1 %vm545_vm0, %v4891_v52 }
 0x8a6   :  { %v4871_v56 = vpop.f32.mrb[172].mxu1 }
 0x8a7   :  { %v9204_v2 = vpop.f32.mrb[173].mxu1 }
 0x8a8   :  { %v4874_v27 = vpop.f32.mrb[174].mxu1 }
 0x8a9   :  { %v4892_v39 = vpack.c.bf16 %v4874_v27, %v4871_v56  ;;  %v9205_v30 = vpop.f32.mrb[175].mxu1 }
 0x8ab   :  { %5224 = vrot.lane.b32.xlu1 %v4892_v39, %s10784_s16  ;;  %9222 = vmatprep.mubr.msk.bf16.mxu0 %vm545_vm0, %v4892_v39 }
 0x8ac   :  { %9238 = vmatprep.mubr.msk.bf16.mxu1 %vm545_vm0, %v4892_v39 }
 0x8ae   :  { %v4879_v49 = vpop.f32.mrb[176].mxu1 }
 0x8af   :  { %5532 = vrot.lane.b32.xlu1 %v4888_v50, %s10782_s14  ;;  %v9208_v26 = vpop.f32.mrb[177].mxu1 }
 0x8b0   :  { %v4882_v24 = vpop.f32.mrb[178].mxu1 }
 0x8b1   :  { %v4893_v34 = vpack.c.bf16 %v4882_v24, %v4879_v49  ;;  %v9209_v31 = vpop.f32.mrb[179].mxu1 }
 0x8b3   :  { %5536 = vrot.lane.b32.xlu1 %v4890_v4, %s10782_s14  ;;  %5226 = vrot.lane.b32.xlu0 %v4893_v34, %s10784_s16 }
 0x8b4   :  { %9223 = vmatmul.mubr.msk.bf16.gmra.mrb[188].mxu0 %vm545_vm0, %v4893_v34  ;;  %9239 = vmatmul.mubr.msk.bf16.gmra.mrb[188].mxu1 %vm545_vm0, %v4893_v34 }
 0x8b7   :  { %5540 = vrot.lane.b32.xlu1 %v4892_v39, %s10782_s14  ;;  %5534 = vrot.lane.b32.xlu0 %v4889_v60, %s10782_s14 }
 0x8bb   :  { %5848 = vrot.lane.b32.xlu1 %v4888_v50, %s10783_s15  ;;  %5538 = vrot.lane.b32.xlu0 %v4891_v52, %s10782_s14 }
 0x8bf   :  { %5852 = vrot.lane.b32.xlu1 %v4890_v4, %s10783_s15  ;;  %5542 = vrot.lane.b32.xlu0 %v4893_v34, %s10782_s14 }
 0x8c3   :  { %5856 = vrot.lane.b32.xlu1 %v4892_v39, %s10783_s15  ;;  %5850 = vrot.lane.b32.xlu0 %v4889_v60, %s10783_s15 }
 0x8c7   :  { %5854 = vrot.lane.b32.xlu0 %v4891_v52, %s10783_s15 }
 0x8cb   :  { %5858 = vrot.lane.b32.xlu0 %v4893_v34, %s10783_s15 }
 0x904   :  { %v5217_v47 = vpop.permute.xlu1 %5216 }
 0x905   :  { %9246 = vmatprep.mubr.msk.bf16.mxu0 %vm545_vm0, %v5217_v47  ;;  %9262 = vmatprep.mubr.msk.bf16.mxu1 %vm545_vm0, %v5217_v47 }
 0x90c   :  { %v5219_v17 = vpop.permute.xlu0 %5218 }
 0x90d   :  { %9263 = vmatmul.mubr.msk.bf16.vlgmr.msra.gmra.mrb[192].mxu1 %vm545_vm0, %v5219_v17  ;;  %9247 = vmatmul.mubr.msk.bf16.vlgmr.msra.gmra.mrb[192].mxu0 %vm545_vm0, %v5219_v17 }
 0x90e   :  { %9291 = vmatpush3.bf16.msra.mxu1 %v10067_v0  ;;  %9275 = vmatpush3.bf16.msra.mxu0 %v10068_v29 }
 0x90f   :  { %9276 = vmatprep.subr.bf16.mxu0 %v10069_v61  ;;  %9292 = vmatprep.subr.bf16.mxu1 %v10070_v41 }
 0x912   :  { %9277 = vmatpush3.bf16.msra.mxu0 %v10069_v61  ;;  %9293 = vmatpush3.bf16.msra.mxu1 %v10070_v41 }
 0x913   :  { %9322 = vmatprep.subr.bf16.mxu1 %v10071_v28  ;;  %9306 = vmatprep.subr.bf16.mxu0 %v10072_v46 }
 0x914   :  { %v5221_v44 = vpop.permute.xlu1 %5220 }
 0x915   :  { %v5223_v11 = vpop.permute.xlu0 %5222  ;;  %9250 = vmatprep.mubr.msk.bf16.mxu0 %vm545_vm0, %v5221_v44  ;;  %9266 = vmatprep.mubr.msk.bf16.mxu1 %vm545_vm0, %v5221_v44 }
 0x916   :  { %9251 = vmatmul.mubr.msk.bf16.gmra.mrb[196].mxu0 %vm545_vm0, %v5223_v11  ;;  %9267 = vmatmul.mubr.msk.bf16.gmra.mrb[196].mxu1 %vm545_vm0, %v5223_v11 }
 0x91d   :  { %v5225_v19 = vpop.permute.xlu1 %5224 }
 0x91e   :  { %9254 = vmatprep.mubr.msk.bf16.mxu0 %vm545_vm0, %v5225_v19  ;;  %9270 = vmatprep.mubr.msk.bf16.mxu1 %vm545_vm0, %v5225_v19  ;;  %v12845_v19 = vld [vmem:[%s13599_s2 + $0x80] sm:$0xf] }
 0x921   :  { %v5533_v15 = vpop.permute.xlu1 %5532 }
 0x925   :  { %v5227_v18 = vpop.permute.xlu0 %5226  ;;  %v5537_v23 = vpop.permute.xlu1 %5536 }
 0x926   :  { %9255 = vmatmul.mubr.msk.bf16.gmra.mrb[200].mxu0 %vm545_vm0, %v5227_v18  ;;  %9271 = vmatmul.mubr.msk.bf16.gmra.mrb[200].mxu1 %vm545_vm0, %v5227_v18  ;;  %v12849_v18 = vrot.slane %v12845_v19, %v13667_v43 }
 0x927   :  { %9278 = vmatprep.mubr.msk.bf16.mxu0 %vm545_vm0, %v5533_v15  ;;  %9294 = vmatprep.mubr.msk.bf16.mxu1 %vm545_vm0, %v5533_v15 }
 0x929   :  { %v5535_v42 = vpop.permute.xlu0 %5534  ;;  %v5541_v32 = vpop.permute.xlu1 %5540 }
 0x92d   :  { %v5539_v21 = vpop.permute.xlu0 %5538  ;;  %v5849_v16 = vpop.permute.xlu1 %5848 }
 0x92e   :  { %9279 = vmatmul.mubr.msk.bf16.vlgmr.msra.gmra.mrb[204].mxu0 %vm545_vm0, %v5535_v42  ;;  %9295 = vmatmul.mubr.msk.bf16.vlgmr.msra.gmra.mrb[204].mxu1 %vm545_vm0, %v5535_v42 }
 0x92f   :  { %9282 = vmatprep.mubr.msk.bf16.mxu0 %vm545_vm0, %v5537_v23  ;;  %9298 = vmatprep.mubr.msk.bf16.mxu1 %vm545_vm0, %v5537_v23 }
 0x930   :  { %9323 = vmatpush3.bf16.msra.mxu1 %v10071_v28  ;;  %9307 = vmatpush3.bf16.msra.mxu0 %v10072_v46 }
 0x931   :  { %9308 = vmatprep.subr.bf16.mxu0 %v10073_v5  ;;  %9324 = vmatprep.subr.bf16.mxu1 %v10074_v57  ;;  %v5543_v33 = vpop.permute.xlu0 %5542  ;;  %v5853_v35 = vpop.permute.xlu1 %5852 }
 0x934   :  { %9309 = vmatpush3.bf16.msra.mxu0 %v10073_v5  ;;  %9325 = vmatpush3.bf16.msra.mxu1 %v10074_v57 }
 0x935   :  { %9338 = vmatprep.subr.bf16.mxu0 %v13629_v59  ;;  %9356 = vmatprep.subr.bf16.mxu1 %v13629_v59  ;;  %v5851_v1 = vpop.permute.xlu0 %5850  ;;  %v5857_v45 = vpop.permute.xlu1 %5856 }
 0x936   :  { %9283 = vmatmul.mubr.msk.bf16.gmra.mrb[208].mxu0 %vm545_vm0, %v5539_v21  ;;  %9299 = vmatmul.mubr.msk.bf16.gmra.mrb[208].mxu1 %vm545_vm0, %v5539_v21 }
 0x937   :  { %9286 = vmatprep.mubr.msk.bf16.mxu0 %vm545_vm0, %v5541_v32  ;;  %9302 = vmatprep.mubr.msk.bf16.mxu1 %vm545_vm0, %v5541_v32 }
 0x939   :  { %v5855_v55 = vpop.permute.xlu0 %5854 }
 0x93d   :  { %v5859_v51 = vpop.permute.xlu0 %5858 }
 0x93e   :  { %9287 = vmatmul.mubr.msk.bf16.gmra.mrb[212].mxu0 %vm545_vm0, %v5543_v33  ;;  %9303 = vmatmul.mubr.msk.bf16.gmra.mrb[212].mxu1 %vm545_vm0, %v5543_v33 }
 0x93f   :  { %9310 = vmatprep.mubr.msk.bf16.mxu0 %vm545_vm0, %v5849_v16  ;;  %9326 = vmatprep.mubr.msk.bf16.mxu1 %vm545_vm0, %v5849_v16 }
 0x946   :  { %9311 = vmatmul.mubr.msk.bf16.vlgmr.msra.gmra.mrb[216].mxu0 %vm545_vm0, %v5851_v1  ;;  %9327 = vmatmul.mubr.msk.bf16.vlgmr.msra.gmra.mrb[216].mxu1 %vm545_vm0, %v5851_v1 }
 0x947   :  { %9314 = vmatprep.mubr.msk.bf16.mxu0 %vm545_vm0, %v5853_v35  ;;  %9330 = vmatprep.mubr.msk.bf16.mxu1 %vm545_vm0, %v5853_v35 }
 0x94e   :  { %9315 = vmatmul.mubr.msk.bf16.gmra.mrb[220].mxu0 %vm545_vm0, %v5855_v55  ;;  %9331 = vmatmul.mubr.msk.bf16.gmra.mrb[220].mxu1 %vm545_vm0, %v5855_v55 }
 0x94f   :  { %9318 = vmatprep.mubr.msk.bf16.mxu0 %vm545_vm0, %v5857_v45  ;;  %9334 = vmatprep.mubr.msk.bf16.mxu1 %vm545_vm0, %v5857_v45 }
 0x956   :  { %9319 = vmatmul.mubr.msk.bf16.gmra.mrb[224].mxu0 %vm545_vm0, %v5859_v51  ;;  %9335 = vmatmul.mubr.msk.bf16.gmra.mrb[224].mxu1 %vm545_vm0, %v5859_v51 }
 0x957   :  { %9344 = vmatprep.mubr.msk.bf16.mxu0 %vm10786_vm4, %v13629_v59  ;;  %9362 = vmatprep.mubr.msk.bf16.mxu1 %vm10786_vm4, %v13629_v59 }
 0x96d   :  { %v9232_v25 = vpop.f32.mrb[180].mxu1 }
 0x96e   :  { %v5076_v50 = vadd.f32 %v9232_v25, %v12824_v10  ;;  %v5067_v54 = vpop.f32.mrb[181].mxu1  ;;  %v9216_v6 = vpop.f32.mrb[180].mxu0 }
 0x96f   :  { %v5068_v40 = vadd.f32 %v5067_v54, %v12824_v10  ;;  %v9233_v58 = vpop.f32.mrb[182].mxu1  ;;  %v4970_v60 = vpop.f32.mrb[181].mxu0  ;;  %v4979_v32 = vadd.f32 %v9216_v6, %v12849_v18 }
 0x970   :  { %v8232_v20 = vmul.f32 -1.442695, %v5076_v50  ;;  %v5079_v62 = vadd.f32 %v9233_v58, %v12824_v10  ;;  %v5070_v48 = vpop.f32.mrb[183].mxu1  ;;  %v9217_v14 = vpop.f32.mrb[182].mxu0  ;;  %v4971_v33 = vadd.f32 %v4970_v60, %v12849_v18 }
 0x971   :  { %v8230_v7 = vmul.f32 -1.442695, %v5068_v40  ;;  %v5071_v13 = vadd.f32 %v5070_v48, %v12824_v10  ;;  %v4973_v0 = vpop.f32.mrb[183].mxu0  ;;  %v4982_v51 = vadd.f32 %v9217_v14, %v12849_v18 }
 0x972   :  { %10507 = vpow2.f32 %v8232_v20  ;;  %v8233_v63 = vmul.f32 -1.442695, %v5079_v62  ;;  %v4974_v6 = vadd.f32 %v4973_v0, %v12849_v18 }
 0x973   :  { %10509 = vpow2.f32 %v8230_v7  ;;  %v8231_v3 = vmul.f32 -1.442695, %v5071_v13 }
 0x974   :  { %10511 = vpow2.f32 %v8233_v63 }
 0x975   :  { %10513 = vpow2.f32 %v8231_v3 }
 0x977   :  { %v12830_v4 = vpop.f32.mrb[184].mxu0  ;;  %v9236_v22 = vpop.f32.mrb[184].mxu1 }
 0x978   :  { %v5092_v8 = vadd.f32 %v9236_v22, %v12824_v10  ;;  %v12833_v52 = vpop.f32.mrb[185].mxu0  ;;  %v5083_v53 = vpop.f32.mrb[185].mxu1 }
 0x979   :  { %v5084_v56 = vadd.f32 %v5083_v53, %v12824_v10  ;;  %v12836_v29 = vpop.f32.mrb[186].mxu0  ;;  %v9237_v2 = vpop.f32.mrb[186].mxu1 }
 0x97a   :  { %v8236_v27 = vmul.f32 -1.442695, %v5092_v8  ;;  %v5095_v39 = vadd.f32 %v9237_v2, %v12824_v10  ;;  %v12839_v30 = vpop.f32.mrb[187].mxu0  ;;  %v5086_v49 = vpop.f32.mrb[187].mxu1 }
 0x97b   :  { %v8234_v26 = vmul.f32 -1.442695, %v5084_v56  ;;  %v5087_v24 = vadd.f32 %v5086_v49, %v12824_v10 }
 0x97c   :  { %v10508_v34 = vpop.eup %10507  ;;  %10515 = vpow2.f32 %v8236_v27  ;;  %v8237_v31 = vmul.f32 -1.442695, %v5095_v39  ;;  %v4995_v39 = vadd.f32 %v12830_v4, %v12849_v18 }
 0x97d   :  { %v10510_v47 = vpop.eup %10509  ;;  %v5152_v61 = vadd.f32 1.0, %v10508_v34  ;;  %10517 = vpow2.f32 %v8234_v26  ;;  %v8235_v44 = vmul.f32 -1.442695, %v5087_v24  ;;  %v4987_v26 = vadd.f32 %v12833_v52, %v12849_v18 }
 0x97e   :  { %v10512_v41 = vpop.eup %10511  ;;  %v5150_v17 = vadd.f32 1.0, %v10510_v47  ;;  %10519 = vpow2.f32 %v8237_v31 }
 0x97f   :  { %v10514_v28 = vpop.eup %10513  ;;  %10521 = vrcp.f32 %v5152_v61  ;;  %v5153_v46 = vadd.f32 1.0, %v10512_v41 }
 0x980   :  { %10523 = vrcp.f32 %v5150_v17  ;;  %v5151_v11 = vadd.f32 1.0, %v10514_v28 }
 0x981   :  { %10525 = vrcp.f32 %v5153_v46 }
 0x982   :  { %10527 = vrcp.f32 %v5151_v11 }
 0x983   :  { %10529 = vpow2.f32 %v8235_v44  ;;  %v4990_v44 = vadd.f32 %v12839_v30, %v12849_v18 }
 0x986   :  { %v10516_v15 = vpop.eup %10515 }
 0x987   :  { %v10518_v42 = vpop.eup %10517  ;;  %v5156_v5 = vadd.f32 1.0, %v10516_v15  ;;  %v12851_v57 = vpop.f32.mrb[188].mxu0 }
 0x988   :  { %v9240_v23 = vpop.f32.mrb[188].mxu1  ;;  %v10520_v21 = vpop.eup %10519  ;;  %v5154_v16 = vadd.f32 1.0, %v10518_v42 }
 0x989   :  { %v5108_v1 = vadd.f32 %v9240_v23, %v12824_v10  ;;  %v5002_v35 = vpop.f32.mrb[189].mxu0  ;;  %v5099_v55 = vpop.f32.mrb[189].mxu1  ;;  %10531 = vrcp.f32 %v5156_v5  ;;  %v5157_v25 = vadd.f32 1.0, %v10520_v21  ;;  %v5011_v5 = vadd.f32 %v12851_v57, %v12849_v18 }
 0x98a   :  { %v10522_v45 = vpop.eup %10521  ;;  %v5100_v50 = vadd.f32 %v5099_v55, %v12824_v10  ;;  %v9225_v54 = vpop.f32.mrb[190].mxu0  ;;  %10533 = vrcp.f32 %v5154_v16  ;;  %v5003_v21 = vadd.f32 %v5002_v35, %v12849_v18  ;;  %v12900_v57 = vrot.slane %v12820_v12, %v13668_v36 }
 0x98b   :  { %v9241_v40 = vpop.f32.mrb[190].mxu1  ;;  %v10524_v58 = vpop.eup %10523  ;;  %v12858_v20 = vmul.f32 %v10522_v45, %v4979_v32  ;;  %v8240_v60 = vmul.f32 -1.442695, %v5108_v1  ;;  %10535 = vrcp.f32 %v5157_v25  ;;  %v5014_v30 = vadd.f32 %v9225_v54, %v12849_v18 }
 0x98c   :  { %v5005_v62 = vpop.f32.mrb[191].mxu0  ;;  %v5102_v48 = vpop.f32.mrb[191].mxu1  ;;  %v12861_v13 = vmul.f32 %v10524_v58, %v4971_v33  ;;  %v8238_v14 = vmul.f32 -1.442695, %v5100_v50  ;;  %v5111_v63 = vadd.f32 %v9241_v40, %v12824_v10 }
 0x98d   :  { %v10526_v7 = vpop.eup %10525  ;;  %10537 = vpow2.f32 %v8240_v60  ;;  %v5103_v8 = vadd.f32 %v5102_v48, %v12824_v10  ;;  %v4998_v10 = vadd.f32 %v12836_v29, %v12849_v18  ;;  %v5006_v55 = vadd.f32 %v5005_v62, %v12849_v18 }
 0x98e   :  { %v10528_v3 = vpop.eup %10527  ;;  %v12864_v22 = vmul.f32 %v10526_v7, %v4982_v51  ;;  %10539 = vpow2.f32 %v8238_v14  ;;  %v8241_v0 = vmul.f32 -1.442695, %v5111_v63 }
 0x98f   :  { %v10530_v53 = vpop.eup %10529  ;;  %v12867_v56 = vmul.f32 %v10528_v3, %v4974_v6  ;;  %v8239_v27 = vmul.f32 -1.442695, %v5103_v8 }
 0x990   :  { %v5155_v2 = vadd.f32 1.0, %v10530_v53  ;;  %10541 = vpow2.f32 %v8241_v0 }
 0x992   :  { %10543 = vrcp.f32 %v5155_v2 }
 0x993   :  { %10545 = vpow2.f32 %v8239_v27  ;;  %v10532_v49 = vpop.eup %10531 }
 0x994   :  { %v10534_v24 = vpop.eup %10533  ;;  %v12875_v34 = vmul.f32 %v10532_v49, %v4995_v39 }
 0x995   :  { %v10536_v31 = vpop.eup %10535  ;;  %v12877_v47 = vmul.f32 %v10534_v24, %v4987_v26 }
 0x996   :  { %v12879_v41 = vmul.f32 %v10536_v31, %v4998_v10 }
 0x997   :  { %v10538_v61 = vpop.eup %10537 }
 0x998   :  { %v10540_v17 = vpop.eup %10539  ;;  %v5160_v28 = vadd.f32 1.0, %v10538_v61 }
 0x999   :  { %v5158_v46 = vadd.f32 1.0, %v10540_v17 }
 0x99a   :  { %v10542_v4 = vpop.eup %10541  ;;  %10547 = vrcp.f32 %v5160_v28 }
 0x99b   :  { %10549 = vrcp.f32 %v5158_v46  ;;  %v5161_v11 = vadd.f32 1.0, %v10542_v4 }
 0x99c   :  { %v10544_v52 = vpop.eup %10543 }
 0x99d   :  { %v10546_v29 = vpop.eup %10545  ;;  %v12883_v15 = vmul.f32 %v10544_v52, %v4990_v44  ;;  %10551 = vrcp.f32 %v5161_v11 }
 0x99e   :  { %v5159_v42 = vadd.f32 1.0, %v10546_v29 }
 0x9a0   :  { %10553 = vrcp.f32 %v5159_v42 }
 0x9a4   :  { %v10548_v23 = vpop.eup %10547 }
 0x9a5   :  { %v10550_v32 = vpop.eup %10549  ;;  %v12888_v33 = vmul.f32 %v10548_v23, %v5011_v5 }
 0x9a6   :  { %v12891_v16 = vmul.f32 %v10550_v32, %v5003_v21 }
 0x9a7   :  { %v10552_v1 = vpop.eup %10551 }
 0x9a8   :  { %v12894_v45 = vmul.f32 %v10552_v1, %v5014_v30  ;;  %v12920_v1 = vrot.slane %v12845_v19, %v13668_v36 }
 0x9aa   :  { %v10554_v51 = vpop.eup %10553 }
 0x9ab   :  { %v12896_v25 = vmul.f32 %v10554_v51, %v5006_v55  ;;  %v12924_v51 = vrot.slane %v12820_v12, %v13669_v37 }
 0x9e0   :  { %v9264_v35 = vpop.f32.mrb[192].mxu1  ;;  %v9248_v50 = vpop.f32.mrb[192].mxu0 }
 0x9e1   :  { %v5398_v40 = vadd.f32 %v9264_v35, %v12900_v57  ;;  %v5389_v58 = vpop.f32.mrb[193].mxu1  ;;  %v5292_v54 = vpop.f32.mrb[193].mxu0 }
 0x9e2   :  { %v5390_v6 = vadd.f32 %v5389_v58, %v12900_v57  ;;  %v9265_v60 = vpop.f32.mrb[194].mxu1  ;;  %v9249_v48 = vpop.f32.mrb[194].mxu0  ;;  %v5293_v58 = vadd.f32 %v5292_v54, %v12920_v1 }
 0x9e3   :  { %v8260_v18 = vmul.f32 -1.442695, %v5398_v40  ;;  %v5401_v62 = vadd.f32 %v9265_v60, %v12900_v57  ;;  %v5392_v7 = vpop.f32.mrb[195].mxu1  ;;  %v5295_v14 = vpop.f32.mrb[195].mxu0  ;;  %v5301_v40 = vadd.f32 %v9248_v50, %v12920_v1 }
 0x9e4   :  { %v8258_v63 = vmul.f32 -1.442695, %v5390_v6  ;;  %v5393_v3 = vadd.f32 %v5392_v7, %v12900_v57  ;;  %v5304_v6 = vadd.f32 %v9249_v48, %v12920_v1 }
 0x9e5   :  { %10555 = vpow2.f32 %v8260_v18  ;;  %v8261_v8 = vmul.f32 -1.442695, %v5401_v62 }
 0x9e6   :  { %10557 = vpow2.f32 %v8258_v63  ;;  %v8259_v53 = vmul.f32 -1.442695, %v5393_v3  ;;  %v5296_v63 = vadd.f32 %v5295_v14, %v12920_v1 }
 0x9e7   :  { %10559 = vpow2.f32 %v8261_v8 }
 0x9e8   :  { %10561 = vpow2.f32 %v8259_v53 }
 0x9e9   :  { %v12906_v0 = vpop.f32.mrb[196].mxu0  ;;  %v9268_v2 = vpop.f32.mrb[196].mxu1 }
 0x9ea   :  { %v5414_v27 = vadd.f32 %v9268_v2, %v12900_v57  ;;  %v12909_v39 = vpop.f32.mrb[197].mxu0  ;;  %v5405_v49 = vpop.f32.mrb[197].mxu1 }
 0x9eb   :  { %v5406_v26 = vadd.f32 %v5405_v49, %v12900_v57  ;;  %v12912_v24 = vpop.f32.mrb[198].mxu0  ;;  %v9269_v10 = vpop.f32.mrb[198].mxu1 }
 0x9ec   :  { %v8264_v31 = vmul.f32 -1.442695, %v5414_v27  ;;  %v5417_v61 = vadd.f32 %v9269_v10, %v12900_v57  ;;  %v12915_v17 = vpop.f32.mrb[199].mxu0  ;;  %v5408_v28 = vpop.f32.mrb[199].mxu1 }
 0x9ed   :  { %v8262_v46 = vmul.f32 -1.442695, %v5406_v26  ;;  %v5409_v4 = vadd.f32 %v5408_v28, %v12900_v57 }
 0x9ee   :  { %10563 = vpow2.f32 %v8264_v31  ;;  %v8265_v44 = vmul.f32 -1.442695, %v5417_v61 }
 0x9ef   :  { %v10556_v52 = vpop.eup %10555  ;;  %10565 = vpow2.f32 %v8262_v46  ;;  %v8263_v11 = vmul.f32 -1.442695, %v5409_v4 }
 0x9f0   :  { %v10558_v29 = vpop.eup %10557  ;;  %v5474_v42 = vadd.f32 1.0, %v10556_v52  ;;  %10567 = vpow2.f32 %v8265_v44 }
 0x9f1   :  { %v10560_v5 = vpop.eup %10559  ;;  %v5472_v23 = vadd.f32 1.0, %v10558_v29  ;;  %10569 = vpow2.f32 %v8263_v11 }
 0x9f2   :  { %v10562_v21 = vpop.eup %10561  ;;  %10571 = vrcp.f32 %v5474_v42  ;;  %v5475_v32 = vadd.f32 1.0, %v10560_v5 }
 0x9f3   :  { %10573 = vrcp.f32 %v5472_v23  ;;  %v5473_v30 = vadd.f32 1.0, %v10562_v21 }
 0x9f4   :  { %10575 = vrcp.f32 %v5475_v32 }
 0x9f5   :  { %10577 = vrcp.f32 %v5473_v30 }
 0x9f8   :  { %v10564_v55 = vpop.eup %10563 }
 0x9f9   :  { %v10566_v35 = vpop.eup %10565  ;;  %v5478_v60 = vadd.f32 1.0, %v10564_v55  ;;  %v9256_v18 = vpop.f32.mrb[200].mxu0 }
 0x9fa   :  { %v9272_v62 = vpop.f32.mrb[200].mxu1  ;;  %v10568_v7 = vpop.eup %10567  ;;  %v5476_v3 = vadd.f32 1.0, %v10566_v35  ;;  %v12931_v8 = vadd.f32 %v9256_v18, %v12920_v1 }
 0x9fb   :  { %v5430_v53 = vadd.f32 %v9272_v62, %v12900_v57  ;;  %v5324_v2 = vpop.f32.mrb[201].mxu0  ;;  %v5421_v27 = vpop.f32.mrb[201].mxu1  ;;  %10579 = vrcp.f32 %v5478_v60  ;;  %v5479_v50 = vadd.f32 1.0, %v10568_v7 }
 0x9fc   :  { %v10570_v49 = vpop.eup %10569  ;;  %v12935_v54 = vadd.f32 %v5324_v2, %v12920_v1  ;;  %v5422_v48 = vadd.f32 %v5421_v27, %v12900_v57  ;;  %v9257_v26 = vpop.f32.mrb[202].mxu0  ;;  %10581 = vrcp.f32 %v5476_v3  ;;  %v5317_v2 = vadd.f32 %v12906_v0, %v12920_v1 }
 0x9fd   :  { %v9273_v10 = vpop.f32.mrb[202].mxu1  ;;  %v10572_v31 = vpop.eup %10571  ;;  %v5477_v14 = vadd.f32 1.0, %v10570_v49  ;;  %v8268_v61 = vmul.f32 -1.442695, %v5430_v53  ;;  %v12939_v28 = vadd.f32 %v9257_v26, %v12920_v1  ;;  %10583 = vrcp.f32 %v5479_v50 }
 0x9fe   :  { %v5327_v46 = vpop.f32.mrb[203].mxu0  ;;  %v5424_v4 = vpop.f32.mrb[203].mxu1  ;;  %v12941_v52 = vmul.f32 %v10572_v31, %v5301_v40  ;;  %v8266_v11 = vmul.f32 -1.442695, %v5422_v48  ;;  %v5433_v29 = vadd.f32 %v9273_v10, %v12900_v57  ;;  %v5309_v10 = vadd.f32 %v12909_v39, %v12920_v1 }
 0x9ff   :  { %v10574_v44 = vpop.eup %10573  ;;  %10585 = vrcp.f32 %v5477_v14  ;;  %v12945_v23 = vadd.f32 %v5327_v46, %v12920_v1  ;;  %v5425_v21 = vadd.f32 %v5424_v4, %v12900_v57  ;;  %v5320_v46 = vadd.f32 %v12912_v24, %v12920_v1 }
 0xa00   :  { %13680 = vst [vmem:[#allocation21_spill] sm:$0xff] %v12941_v52  ;;  %v10576_v42 = vpop.eup %10575  ;;  %v5508_v5 = vmul.f32 %v10574_v44, %v5293_v58  ;;  %10587 = vpow2.f32 %v8268_v61  ;;  %v8269_v55 = vmul.f32 -1.442695, %v5433_v29 }
 0xa01   :  { %v10578_v32 = vpop.eup %10577  ;;  %v12948_v30 = vmul.f32 %v10576_v42, %v5304_v6  ;;  %10589 = vpow2.f32 %v8266_v11  ;;  %v8267_v40 = vmul.f32 -1.442695, %v5425_v21  ;;  %v12952_v18 = vpop.f32.mrb[204].mxu0  ;;  %v5312_v11 = vadd.f32 %v12915_v17, %v12920_v1 }
 0xa02   :  { %v5509_v35 = vmul.f32 %v10578_v32, %v5296_v63  ;;  %10591 = vpow2.f32 %v8269_v55  ;;  %v9296_v58 = vpop.f32.mrb[204].mxu1  ;;  %v12955_v57 = vpop.f32.mrb[205].mxu0 }
 0xa03   :  { %13681 = vst [vmem:[#allocation20_spill] sm:$0xff] %v12948_v30  ;;  %v9887_v60 = vpack.i.bf16 %v12948_v30, %v12941_v52  ;;  %10593 = vpow2.f32 %v8267_v40  ;;  %v5714_v7 = vadd.f32 %v9296_v58, %v12924_v51  ;;  %v5705_v6 = vpop.f32.mrb[205].mxu1  ;;  %v12958_v53 = vpop.f32.mrb[206].mxu0 }
 0xa04   :  { %v9892_v62 = vpack.i.bf16 %v5509_v35, %v5508_v5  ;;  %v5706_v3 = vadd.f32 %v5705_v6, %v12924_v51  ;;  %v9297_v63 = vpop.f32.mrb[206].mxu1  ;;  %v12964_v50 = vpop.f32.mrb[207].mxu0 }
 0xa05   :  { %9888 = vrot.lane.b32.xlu0 %v9887_v60, %s10783_s15  ;;  %v8288_v27 = vmul.f32 -1.442695, %v5714_v7  ;;  %v5717_v49 = vadd.f32 %v9297_v63, %v12924_v51  ;;  %v5708_v48 = vpop.f32.mrb[207].mxu1  ;;  %v10580_v26 = vpop.eup %10579 }
 0xa06   :  { %9893 = vrot.lane.b32.xlu1 %v9892_v62, %s10783_s15  ;;  %v8286_v31 = vmul.f32 -1.442695, %v5706_v3  ;;  %v5709_v14 = vadd.f32 %v5708_v48, %v12924_v51  ;;  %v10582_v61 = vpop.eup %10581  ;;  %v5514_v4 = vmul.f32 %v10580_v26, %v5317_v2 }
 0xa07   :  { %10595 = vpow2.f32 %v8288_v27  ;;  %v8289_v0 = vmul.f32 -1.442695, %v5717_v49  ;;  %v10584_v44 = vpop.eup %10583  ;;  %v5512_v42 = vmul.f32 %v10582_v61, %v5309_v10 }
 0xa08   :  { %10597 = vpow2.f32 %v8286_v31  ;;  %v8287_v29 = vmul.f32 -1.442695, %v5709_v14  ;;  %v5515_v39 = vmul.f32 %v10584_v44, %v5320_v46 }
 0xa09   :  { %v10586_v5 = vpop.eup %10585  ;;  %10599 = vpow2.f32 %v8289_v0  ;;  %v12974_v32 = vpop.f32.mrb[208].mxu0 }
 0xa0a   :  { %v10588_v21 = vpop.eup %10587  ;;  %10601 = vpow2.f32 %v8287_v29  ;;  %v9300_v55 = vpop.f32.mrb[208].mxu1  ;;  %v5513_v35 = vmul.f32 %v10586_v5, %v5312_v11  ;;  %v9897_v17 = vpack.i.bf16 %v5515_v39, %v5514_v4 }
 0xa0b   :  { %v10590_v24 = vpop.eup %10589  ;;  %v5482_v40 = vadd.f32 1.0, %v10588_v21  ;;  %v5730_v60 = vadd.f32 %v9300_v55, %v12924_v51  ;;  %v12977_v58 = vpop.f32.mrb[209].mxu0 }
 0xa0c   :  { %v5721_v62 = vpop.f32.mrb[209].mxu1  ;;  %v10592_v1 = vpop.eup %10591  ;;  %v5480_v7 = vadd.f32 1.0, %v10590_v24  ;;  %v9902_v2 = vpack.i.bf16 %v5513_v35, %v5512_v42  ;;  %9898 = vrot.lane.b32.xlu0 %v9897_v17, %s10783_s15 }
 0xa0d   :  { %v5722_v6 = vadd.f32 %v5721_v62, %v12924_v51  ;;  %v12980_v3 = vpop.f32.mrb[210].mxu0  ;;  %v9301_v63 = vpop.f32.mrb[210].mxu1  ;;  %10603 = vrcp.f32 %v5482_v40  ;;  %v5483_v49 = vadd.f32 1.0, %v10592_v1  ;;  %v8292_v48 = vmul.f32 -1.442695, %v5730_v60 }
 0xa0e   :  { %v10594_v27 = vpop.eup %10593  ;;  %v12982_v26 = vpop.f32.mrb[211].mxu0  ;;  %10605 = vrcp.f32 %v5480_v7  ;;  %v5733_v61 = vadd.f32 %v9301_v63, %v12924_v51  ;;  %9903 = vrot.lane.b32.xlu1 %v9902_v2, %s10783_s15 }
 0xa0f   :  { %v5724_v10 = vpop.f32.mrb[211].mxu1  ;;  %v5481_v31 = vadd.f32 1.0, %v10594_v27  ;;  %v8290_v14 = vmul.f32 -1.442695, %v5722_v6  ;;  %10607 = vrcp.f32 %v5483_v49 }
 0xa10   :  { %v8293_v46 = vmul.f32 -1.442695, %v5733_v61  ;;  %v5725_v0 = vadd.f32 %v5724_v10, %v12924_v51 }
 0xa11   :  { %10609 = vrcp.f32 %v5481_v31  ;;  %v10596_v4 = vpop.eup %10595  ;;  %v12988_v29 = vpop.f32.mrb[212].mxu0  ;;  %v13682_v31 = vld [vmem:[#allocation4_spill] sm:$0xff] }
 0xa12   :  { %10611 = vpow2.f32 %v8292_v48  ;;  %v10598_v44 = vpop.eup %10597  ;;  %v5790_v11 = vadd.f32 1.0, %v10596_v4  ;;  %v9304_v42 = vpop.f32.mrb[212].mxu1  ;;  %v8291_v60 = vmul.f32 -1.442695, %v5725_v0 }
 0xa13   :  { %10613 = vpow2.f32 %v8290_v14  ;;  %v10600_v5 = vpop.eup %10599  ;;  %v5788_v39 = vadd.f32 1.0, %v10598_v44  ;;  %v5746_v21 = vadd.f32 %v9304_v42, %v12924_v51  ;;  %v12991_v55 = vpop.f32.mrb[213].mxu0  ;;  %v13002_v14 = vrot.slane %v12820_v12, %v13682_v31 }
 0xa14   :  { %10615 = vpow2.f32 %v8293_v46  ;;  %v5737_v35 = vpop.f32.mrb[213].mxu1  ;;  %v10602_v24 = vpop.eup %10601  ;;  %v5791_v40 = vadd.f32 1.0, %v10600_v5  ;;  %v13006_v46 = vrot.slane %v12845_v19, %v13669_v37 }
 0xa15   :  { %10617 = vrcp.f32 %v5790_v11  ;;  %v5738_v62 = vadd.f32 %v5737_v35, %v12924_v51  ;;  %v12994_v17 = vpop.f32.mrb[214].mxu0  ;;  %v9305_v1 = vpop.f32.mrb[214].mxu1  ;;  %v5789_v7 = vadd.f32 1.0, %v10602_v24  ;;  %v8296_v6 = vmul.f32 -1.442695, %v5746_v21 }
 0xa16   :  { %10619 = vrcp.f32 %v5788_v39  ;;  %v12996_v63 = vpop.f32.mrb[215].mxu0  ;;  %v5740_v2 = vpop.f32.mrb[215].mxu1  ;;  %v5749_v49 = vadd.f32 %v9305_v1, %v12924_v51  ;;  %v5652_v52 = vadd.f32 %v12994_v17, %v13006_v46 }
 0xa17   :  { %10621 = vrcp.f32 %v5791_v40  ;;  %v8294_v27 = vmul.f32 -1.442695, %v5738_v62  ;;  %v10604_v48 = vpop.eup %10603  ;;  %v5741_v10 = vadd.f32 %v5740_v2, %v12924_v51  ;;  %v5609_v2 = vadd.f32 %v12955_v57, %v13006_v46 }
 0xa18   :  { %10623 = vrcp.f32 %v5789_v7  ;;  %v10606_v61 = vpop.eup %10605  ;;  %v8297_v0 = vmul.f32 -1.442695, %v5749_v49  ;;  %v13009_v4 = vmul.f32 %v10604_v48, %v12931_v8 }
 0xa19   :  { %10625 = vpow2.f32 %v8291_v60  ;;  %v10608_v44 = vpop.eup %10607  ;;  %v8295_v11 = vmul.f32 -1.442695, %v5741_v10  ;;  %v13012_v42 = vmul.f32 %v10606_v61, %v12935_v54  ;;  %v13014_v12 = vpop.f32.mrb[216].mxu0  ;;  %v5617_v60 = vadd.f32 %v12952_v18, %v13006_v46 }
 0xa1a   :  { %10627 = vpow2.f32 %v8296_v6  ;;  %v9328_v5 = vpop.f32.mrb[216].mxu1  ;;  %v13017_v39 = vmul.f32 %v10608_v44, %v12939_v28  ;;  %v13020_v8 = vpop.f32.mrb[217].mxu0  ;;  %v5620_v18 = vadd.f32 %v12958_v53, %v13006_v46 }
 0xa1b   :  { %v10610_v51 = vpop.eup %10609  ;;  %10629 = vpow2.f32 %v8294_v27  ;;  %v6030_v35 = vadd.f32 %v9328_v5, %v13002_v14  ;;  %v6021_v24 = vpop.f32.mrb[217].mxu1 }
 0xa1c   :  { %v10612_v21 = vpop.eup %10611  ;;  %10631 = vpow2.f32 %v8297_v0  ;;  %v13023_v40 = vmul.f32 %v10610_v51, %v12945_v23  ;;  %v6022_v1 = vadd.f32 %v6021_v24, %v13002_v14  ;;  %v13028_v28 = vpop.f32.mrb[218].mxu0 }
 0xa1d   :  { %v10614_v54 = vpop.eup %10613  ;;  %v5794_v62 = vadd.f32 1.0, %v10612_v21  ;;  %10633 = vpow2.f32 %v8295_v11  ;;  %v9329_v7 = vpop.f32.mrb[218].mxu1  ;;  %v8316_v49 = vmul.f32 -1.442695, %v6030_v35  ;;  %v5612_v35 = vadd.f32 %v12964_v50, %v13006_v46 }
 0xa1e   :  { %v10616_v6 = vpop.eup %10615  ;;  %v5792_v27 = vadd.f32 1.0, %v10614_v54  ;;  %v6033_v23 = vadd.f32 %v9329_v7, %v13002_v14  ;;  %v13033_v48 = vpop.f32.mrb[219].mxu0  ;;  %v8314_v44 = vmul.f32 -1.442695, %v6022_v1 }
 0xa1f   :  { %v6024_v10 = vpop.f32.mrb[219].mxu1  ;;  %v10618_v61 = vpop.eup %10617  ;;  %10635 = vrcp.f32 %v5794_v62  ;;  %v5795_v0 = vadd.f32 1.0, %v10616_v6 }
 0xa20   :  { %v10620_v11 = vpop.eup %10619  ;;  %10637 = vrcp.f32 %v5792_v27  ;;  %v8317_v51 = vmul.f32 -1.442695, %v6033_v23  ;;  %v6025_v5 = vadd.f32 %v6024_v10, %v13002_v14  ;;  %v13038_v57 = vmul.f32 %v10618_v61, %v5617_v60 }
 0xa21   :  { %v10622_v21 = vpop.eup %10621  ;;  %10639 = vrcp.f32 %v5795_v0  ;;  %v5824_v24 = vmul.f32 %v10620_v11, %v5609_v2  ;;  %v13046_v6 = vpop.f32.mrb[220].mxu0 }
 0xa22   :  { %13683 = vst [vmem:[#allocation9_spill] sm:$0xff] %v13038_v57  ;;  %v10624_v53 = vpop.eup %10623  ;;  %10641 = vpow2.f32 %v8316_v49  ;;  %v8315_v62 = vmul.f32 -1.442695, %v6025_v5  ;;  %v13044_v1 = vmul.f32 %v10622_v21, %v5620_v18  ;;  %v9332_v60 = vpop.f32.mrb[220].mxu1  ;;  %v5633_v21 = vadd.f32 %v12974_v32, %v13006_v46 }
 0xa23   :  { %v10626_v7 = vpop.eup %10625  ;;  %10643 = vpow2.f32 %v8314_v44  ;;  %v5825_v27 = vmul.f32 %v10624_v53, %v5612_v35  ;;  %v6046_v50 = vadd.f32 %v9332_v60, %v13002_v14  ;;  %v13049_v2 = vpop.f32.mrb[221].mxu0 }
 0xa24   :  { %13684 = vst [vmem:[#allocation11_spill] sm:$0xff] %v13044_v1  ;;  %v10628_v23 = vpop.eup %10627  ;;  %v5793_v10 = vadd.f32 1.0, %v10626_v7  ;;  %10645 = vpow2.f32 %v8317_v51  ;;  %v6037_v61 = vpop.f32.mrb[221].mxu1  ;;  %v5625_v51 = vadd.f32 %v12977_v58, %v13006_v46  ;;  %v9907_v58 = vpack.i.bf16 %v13044_v1, %v13038_v57 }
 0xa25   :  { %v10630_v0 = vpop.eup %10629  ;;  %v5798_v11 = vadd.f32 1.0, %v10628_v23  ;;  %10647 = vpow2.f32 %v8315_v62  ;;  %v6038_v49 = vadd.f32 %v6037_v61, %v13002_v14  ;;  %v13052_v18 = vpop.f32.mrb[222].mxu0  ;;  %v8320_v23 = vmul.f32 -1.442695, %v6046_v50 }
 0xa26   :  { %v9333_v44 = vpop.f32.mrb[222].mxu1  ;;  %v10632_v5 = vpop.eup %10631  ;;  %10649 = vrcp.f32 %v5793_v10  ;;  %v5796_v35 = vadd.f32 1.0, %v10630_v0  ;;  %v9912_v10 = vpack.i.bf16 %v5825_v27, %v5824_v24  ;;  %9908 = vrot.lane.b32.xlu1 %v9907_v58, %s10782_s14  ;;  %v5641_v58 = vadd.f32 %v12991_v55, %v13006_v46 }
 0xa27   :  { %v13058_v53 = vpop.f32.mrb[223].mxu0  ;;  %v6040_v7 = vpop.f32.mrb[223].mxu1  ;;  %10651 = vrcp.f32 %v5798_v11  ;;  %v5799_v62 = vadd.f32 1.0, %v10632_v5  ;;  %v6049_v61 = vadd.f32 %v9333_v44, %v13002_v14  ;;  %v8318_v54 = vmul.f32 -1.442695, %v6038_v49 }
 0xa28   :  { %v10634_v60 = vpop.eup %10633  ;;  %10653 = vrcp.f32 %v5796_v35  ;;  %v6041_v9 = vadd.f32 %v6040_v7, %v13002_v14  ;;  %v5636_v11 = vadd.f32 %v12980_v3, %v13006_v46  ;;  %9913 = vrot.lane.b32.xlu0 %v9912_v10, %s10782_s14 }
 0xa29   :  { %v5797_v59 = vadd.f32 1.0, %v10634_v60  ;;  %v10636_v32 = vpop.eup %10635  ;;  %10655 = vrcp.f32 %v5799_v62  ;;  %v8321_v38 = vmul.f32 -1.442695, %v6049_v61  ;;  %v13068_v49 = vpop.f32.mrb[224].mxu0 }
 0xa2a   :  { %v10638_v0 = vpop.eup %10637  ;;  %v8319_v50 = vmul.f32 -1.442695, %v6041_v9  ;;  %v5830_v5 = vmul.f32 %v10636_v32, %v5633_v21  ;;  %v9336_v35 = vpop.f32.mrb[224].mxu1  ;;  %v5628_v21 = vadd.f32 %v12982_v26, %v13006_v46 }
 0xa2b   :  { %10657 = vrcp.f32 %v5797_v59  ;;  %v10640_v44 = vpop.eup %10639  ;;  %v5828_v7 = vmul.f32 %v10638_v0, %v5625_v51  ;;  %v6062_v24 = vadd.f32 %v9336_v35, %v13002_v14  ;;  %v13071_v27 = vpop.f32.mrb[225].mxu0 }
 0xa2c   :  { %10659 = vpow2.f32 %v8320_v23  ;;  %v10642_v60 = vpop.eup %10641  ;;  %v6053_v3 = vpop.f32.mrb[225].mxu1  ;;  %v5831_v59 = vmul.f32 %v10640_v44, %v5636_v11 }
 0xa2d   :  { %10661 = vpow2.f32 %v8318_v54  ;;  %v10644_v9 = vpop.eup %10643  ;;  %v6106_v62 = vadd.f32 1.0, %v10642_v60  ;;  %v6054_v23 = vadd.f32 %v6053_v3, %v13002_v14  ;;  %v13076_v61 = vpop.f32.mrb[226].mxu0  ;;  %v5649_v54 = vadd.f32 %v12988_v29, %v13006_v46 }
 0xa2e   :  { %10663 = vpow2.f32 %v8321_v38  ;;  %v9337_v32 = vpop.f32.mrb[226].mxu1  ;;  %v10646_v51 = vpop.eup %10645  ;;  %v6104_v10 = vadd.f32 1.0, %v10644_v9  ;;  %v8324_v44 = vmul.f32 -1.442695, %v6062_v24  ;;  %v9917_v9 = vpack.i.bf16 %v5831_v59, %v5830_v5 }
 0xa2f   :  { %10665 = vpow2.f32 %v8319_v50  ;;  %v13082_v0 = vpop.f32.mrb[227].mxu0  ;;  %v6056_v11 = vpop.f32.mrb[227].mxu1  ;;  %v6107_v38 = vadd.f32 1.0, %v10646_v51  ;;  %v6065_v35 = vadd.f32 %v9337_v32, %v13002_v14  ;;  %v8322_v1 = vmul.f32 -1.442695, %v6054_v23 }
 0xa30   :  { %v10648_v26 = vpop.eup %10647  ;;  %10667 = vrcp.f32 %v6106_v62  ;;  %v6057_v29 = vadd.f32 %v6056_v11, %v13002_v14  ;;  %v5644_v51 = vadd.f32 %v12996_v63, %v13006_v46  ;;  %9918 = vrot.lane.b32.xlu0 %v9917_v9, %s10782_s14  ;;  %v13097_v59 = vrot.slane %v12845_v19, %v13682_v31 }
 0xa31   :  { %v10650_v60 = vpop.eup %10649  ;;  %10669 = vrcp.f32 %v6104_v10  ;;  %v6105_v3 = vadd.f32 1.0, %v10648_v26  ;;  %v8325_v55 = vmul.f32 -1.442695, %v6065_v35 }
 0xa32   :  { %v10652_v57 = vpop.eup %10651  ;;  %10671 = vrcp.f32 %v6107_v38  ;;  %v5829_v50 = vmul.f32 %v10650_v60, %v5628_v21  ;;  %v8323_v62 = vmul.f32 -1.442695, %v6057_v29  ;;  %v5933_v19 = vadd.f32 %v13014_v12, %v13097_v59 }
 0xa33   :  { %v10654_v30 = vpop.eup %10653  ;;  %10673 = vrcp.f32 %v6105_v3  ;;  %v13088_v24 = vmul.f32 %v10652_v57, %v5649_v54  ;;  %v5925_v10 = vadd.f32 %v13020_v8, %v13097_v59  ;;  %v5936_v38 = vadd.f32 %v13028_v28, %v13097_v59 }
 0xa34   :  { %v10656_v32 = vpop.eup %10655  ;;  %10675 = vpow2.f32 %v8324_v44  ;;  %v9922_v14 = vpack.i.bf16 %v5829_v50, %v5828_v7  ;;  %v13093_v23 = vmul.f32 %v10654_v30, %v5641_v58  ;;  %v5928_v60 = vadd.f32 %v13033_v48, %v13097_v59 }
 0xa35   :  { %v10658_v5 = vpop.eup %10657  ;;  %10677 = vpow2.f32 %v8322_v1  ;;  %v13099_v17 = vmul.f32 %v10656_v32, %v5652_v52  ;;  %v5949_v48 = vadd.f32 %v13046_v6, %v13097_v59  ;;  %v9937_v6 = vpack.i.bf16 %v13023_v40, %v13012_v42 }
 0xa36   :  { %v10660_v57 = vpop.eup %10659  ;;  %10679 = vpow2.f32 %v8325_v55  ;;  %9923 = vrot.lane.b32.xlu1 %v9922_v14, %s10782_s14  ;;  %v13102_v21 = vmul.f32 %v10658_v5, %v5644_v51 }
 0xa37   :  { %v10662_v63 = vpop.eup %10661  ;;  %v6110_v46 = vadd.f32 1.0, %v10660_v57  ;;  %10681 = vpow2.f32 %v8323_v62  ;;  %v9967_v30 = vpack.i.bf16 %v13099_v17, %v13088_v24 }
 0xa38   :  { %v10664_v7 = vpop.eup %10663  ;;  %v6108_v54 = vadd.f32 1.0, %v10662_v63 }
 0xa39   :  { %v10666_v58 = vpop.eup %10665  ;;  %10683 = vrcp.f32 %v6110_v46  ;;  %v6111_v52 = vadd.f32 1.0, %v10664_v7  ;;  %v5941_v46 = vadd.f32 %v13049_v2, %v13097_v59  ;;  %v9942_v7 = vpack.i.bf16 %v13102_v21, %v13093_v23 }
 0xa3a   :  { %v10668_v1 = vpop.eup %10667  ;;  %10685 = vrcp.f32 %v6108_v54  ;;  %v6109_v11 = vadd.f32 1.0, %v10666_v58  ;;  %v5952_v58 = vadd.f32 %v13052_v18, %v13097_v59  ;;  %v5965_v18 = vadd.f32 %v13068_v49, %v13097_v59 }
 0xa3b   :  { %v10670_v26 = vpop.eup %10669  ;;  %10687 = vrcp.f32 %v6111_v52  ;;  %v13112_v44 = vmul.f32 %v10668_v1, %v5933_v19  ;;  %v5944_v1 = vadd.f32 %v13058_v53, %v13097_v59 }
 0xa3c   :  { %v10672_v35 = vpop.eup %10671  ;;  %10689 = vrcp.f32 %v6109_v11  ;;  %v6140_v12 = vmul.f32 %v10670_v26, %v5925_v10 }
 0xa3d   :  { %v10674_v3 = vpop.eup %10673  ;;  %v13116_v29 = vmul.f32 %v10672_v35, %v5936_v38 }
 0xa3e   :  { %v10676_v55 = vpop.eup %10675  ;;  %v6141_v8 = vmul.f32 %v10674_v3, %v5928_v60  ;;  %v5968_v3 = vadd.f32 %v13076_v61, %v13097_v59 }
 0xa3f   :  { %v10678_v9 = vpop.eup %10677  ;;  %v6114_v50 = vadd.f32 1.0, %v10676_v55  ;;  %v9927_v62 = vpack.i.bf16 %v13116_v29, %v13112_v44 }
 0xa40   :  { %v10680_v28 = vpop.eup %10679  ;;  %v6112_v32 = vadd.f32 1.0, %v10678_v9  ;;  %v9932_v51 = vpack.i.bf16 %v6141_v8, %v6140_v12  ;;  %v5957_v12 = vadd.f32 %v13071_v27, %v13097_v59  ;;  %v5960_v9 = vadd.f32 %v13082_v0, %v13097_v59 }
 0xa41   :  { %v10682_v14 = vpop.eup %10681  ;;  %10691 = vrcp.f32 %v6114_v50  ;;  %v6115_v5 = vadd.f32 1.0, %v10680_v28  ;;  %9928 = vrot.lane.b32.xlu0 %v9927_v62, %s10784_s16  ;;  %v13685_v62 = vpack.i.bf16 %v13017_v39, %v13009_v4 }
 0xa42   :  { %10693 = vrcp.f32 %v6112_v32  ;;  %v6113_v57 = vadd.f32 1.0, %v10682_v14  ;;  %9933 = vrot.lane.b32.xlu1 %v9932_v51, %s10784_s16 }
 0xa43   :  { %v10684_v63 = vpop.eup %10683  ;;  %10695 = vrcp.f32 %v6115_v5 }
 0xa44   :  { %v10686_v54 = vpop.eup %10685  ;;  %10697 = vrcp.f32 %v6113_v57  ;;  %v6146_v19 = vmul.f32 %v10684_v63, %v5949_v48 }
 0xa45   :  { %v10688_v52 = vpop.eup %10687  ;;  %9943 = vrot.lane.b32.xlu0 %v9942_v7, %s10782_s14  ;;  %v6144_v2 = vmul.f32 %v10686_v54, %v5941_v46 }
 0xa46   :  { %v10690_v10 = vpop.eup %10689  ;;  %9938 = vrot.lane.b32.xlu1 %v9937_v6, %s10783_s15  ;;  %v6147_v11 = vmul.f32 %v10688_v52, %v5952_v58 }
 0xa47   :  { %v6145_v26 = vmul.f32 %v10690_v10, %v5944_v1 }
 0xa48   :  { %v9947_v38 = vpack.i.bf16 %v6147_v11, %v6146_v19 }
 0xa49   :  { %v9957_v35 = vpack.i.bf16 %v6145_v26, %v6144_v2 }
 0xa4a   :  { %9948 = vrot.lane.b32.xlu0 %v9947_v38, %s10784_s16 }
 0xa4b   :  { %v10692_v60 = vpop.eup %10691  ;;  %9958 = vrot.lane.b32.xlu1 %v9957_v35, %s10784_s16 }
 0xa4c   :  { %v10694_v53 = vpop.eup %10693  ;;  %v6150_v55 = vmul.f32 %v10692_v60, %v5965_v18 }
 0xa4d   :  { %v10696_v8 = vpop.eup %10695  ;;  %v13146_v50 = vmul.f32 %v10694_v53, %v5957_v12 }
 0xa4e   :  { %v10698_v49 = vpop.eup %10697  ;;  %9953 = vrot.lane.b32.xlu0 %v13685_v62, %s10783_s15  ;;  %v6151_v27 = vmul.f32 %v10696_v8, %v5968_v3 }
 0xa4f   :  { %v13152_v28 = vmul.f32 %v10698_v49, %v5960_v9 }
 0xa50   :  { %v9972_v32 = vpack.i.bf16 %v6151_v27, %v6150_v55 }
 0xa51   :  { %v9962_v61 = vpack.i.bf16 %v13152_v28, %v13146_v50 }
 0xa52   :  { %9973 = vrot.lane.b32.xlu0 %v9972_v32, %s10784_s16 }
 0xa53   :  { %9963 = vrot.lane.b32.xlu1 %v9962_v61, %s10784_s16 }
 0xa57   :  { %9968 = vrot.lane.b32.xlu1 %v9967_v30, %s10782_s14 }
 0xa77   :  { %v9889_v0 = vpop.permute.xlu0 %9888 }
 0xa78   :  { %v9894_v59 = vpop.permute.xlu1 %9893  ;;  %v9891_v46 = vunpack.i.h.bf16 %v9889_v0  ;;  %v9890_v7 = vunpack.i.l.bf16 %v9889_v0 }
 0xa79   :  { %v9896_v48 = vunpack.i.h.bf16 %v9894_v59  ;;  %v9895_v57 = vunpack.i.l.bf16 %v9894_v59 }
 0xa7a   :  { %v6299_v26 = vsel %vm545_vm0, %v12864_v22, %v9891_v46  ;;  %v6298_v38 = vsel %vm545_vm0, %v12858_v20, %v9890_v7 }
 0xa7b   :  { %v6296_v19 = vsel %vm545_vm0, %v12861_v13, %v9895_v57  ;;  %v6297_v24 = vsel %vm545_vm0, %v12867_v56, %v9896_v48 }
 0xa7e   :  { %v9899_v4 = vpop.permute.xlu0 %9898 }
 0xa7f   :  { %v9901_v18 = vunpack.i.h.bf16 %v9899_v4  ;;  %v9900_v60 = vunpack.i.l.bf16 %v9899_v4 }
 0xa80   :  { %v9904_v39 = vpop.permute.xlu1 %9903 }
 0xa81   :  { %v9905_v3 = vunpack.i.l.bf16 %v9904_v39  ;;  %v9906_v62 = vunpack.i.h.bf16 %v9904_v39  ;;  %v6302_v48 = vsel %vm545_vm0, %v12875_v34, %v9900_v60 }
 0xa83   :  { %v6300_v39 = vsel %vm545_vm0, %v12877_v47, %v9905_v3  ;;  %v6301_v7 = vsel %vm545_vm0, %v12883_v15, %v9906_v62 }
 0xa98   :  { %v9909_v14 = vpop.permute.xlu1 %9908 }
 0xa99   :  { %v9911_v17 = vunpack.i.h.bf16 %v9909_v14  ;;  %v9910_v30 = vunpack.i.l.bf16 %v9909_v14  ;;  %v6303_v14 = vsel %vm545_vm0, %v12879_v41, %v9901_v18 }
 0xa9a   :  { %v9914_v51 = vpop.permute.xlu0 %9913 }
 0xa9b   :  { %v9916_v54 = vunpack.i.h.bf16 %v9914_v51  ;;  %v9915_v58 = vunpack.i.l.bf16 %v9914_v51  ;;  %v6311_v55 = vsel %vm558_vm1, %v6299_v26, %v9911_v17  ;;  %v6310_v8 = vsel %vm558_vm1, %v6298_v38, %v9910_v30 }
 0xa9c   :  { %v13686_v51 = vmov 0.0  }
 0xa9d   :  { %v6308_v35 = vsel %vm558_vm1, %v6296_v19, %v9915_v58  ;;  %v6309_v13 = vsel %vm558_vm1, %v6297_v24, %v9916_v54 }
 0xaa2   :  { %v9919_v5 = vpop.permute.xlu0 %9918 }
 0xaa3   :  { %v9921_v27 = vunpack.i.h.bf16 %v9919_v5  ;;  %v9920_v0 = vunpack.i.l.bf16 %v9919_v5 }
 0xaa5   :  { %v6315_v5 = vsel %vm558_vm1, %v6303_v14, %v9921_v27 }
 0xaa8   :  { %v9924_v63 = vpop.permute.xlu1 %9923 }
 0xaa9   :  { %v9925_v59 = vunpack.i.l.bf16 %v9924_v63  ;;  %v9926_v4 = vunpack.i.h.bf16 %v9924_v63 }
 0xaab   :  { %v6312_v41 = vsel %vm558_vm1, %v6300_v39, %v9925_v59  ;;  %v6313_v34 = vsel %vm558_vm1, %v6301_v7, %v9926_v4 }
 0xab3   :  { %v9929_v6 = vpop.permute.xlu0 %9928 }
 0xab4   :  { %v9934_v52 = vpop.permute.xlu1 %9933  ;;  %v9931_v1 = vunpack.i.h.bf16 %v9929_v6  ;;  %v9930_v2 = vunpack.i.l.bf16 %v9929_v6  ;;  %v6314_v6 = vsel %vm558_vm1, %v6302_v48, %v9920_v0 }
 0xab5   :  { %v9936_v10 = vunpack.i.h.bf16 %v9934_v52  ;;  %v9935_v11 = vunpack.i.l.bf16 %v9934_v52 }
 0xab6   :  { %v6322_v32 = vsel %vm571_vm2, %v6310_v8, %v9930_v2  ;;  %v6323_v61 = vsel %vm571_vm2, %v6311_v55, %v9931_v1 }
 0xab7   :  { %v6320_v56 = vsel %vm571_vm2, %v6308_v35, %v9935_v11  ;;  %v6321_v12 = vsel %vm571_vm2, %v6309_v13, %v9936_v10  ;;  %v9944_v53 = vpop.permute.xlu0 %9943  ;;  %v6333_v57 = vpack.c.bf16 %v6323_v61, %v6322_v32 }
 0xab8   :  { %v6332_v9 = vpack.c.bf16 %v6321_v12, %v6320_v56  ;;  %v9939_v49 = vpop.permute.xlu1 %9938  ;;  %v9946_v35 = vunpack.i.h.bf16 %v9944_v53  ;;  %v9945_v13 = vunpack.i.l.bf16 %v9944_v53  ;;  %v10771_v12 = vld [vmem:[%s13600_s1] sm:$0xff]  }
 0xab9   :  { %v9941_v47 = vunpack.i.h.bf16 %v9939_v49  ;;  %v9940_v15 = vunpack.i.l.bf16 %v9939_v49 }
 0xaba   :  { %9339 = vmatpush3.bf16.msra.mxu0 %v6332_v9 }
 0xabb   :  { %9340 = vmatprep.subr.bf16.mxu0 %v13686_v51  ;;  %v6304_v26 = vsel %vm545_vm0, %v12891_v16, %v9940_v15  ;;  %v6305_v38 = vsel %vm545_vm0, %v12896_v25, %v9941_v47 }
 0xabc   :  { %v9949_v46 = vpop.permute.xlu0 %9948  ;;  %v6316_v8 = vsel %vm558_vm1, %v6304_v26, %v9945_v13  ;;  %v6317_v9 = vsel %vm558_vm1, %v6305_v38, %v9946_v35  ;;  %v10083_v13 = vld [vmem:[%s13601_s3 + $0x260] sm:$0xff]  }
 0xabd   :  { %v9951_v54 = vunpack.i.h.bf16 %v9949_v46  ;;  %v9950_v63 = vunpack.i.l.bf16 %v9949_v46  ;;  %v9959_v58 = vpop.permute.xlu1 %9958 }
 0xabe   :  { %v9961_v19 = vunpack.i.h.bf16 %v9959_v58  ;;  %v9960_v24 = vunpack.i.l.bf16 %v9959_v58  ;;  %9341 = vmatpush3.bf16.msra.mxu0 %v6333_v57  ;;  %v10077_v58 = vld [vmem:[%s13601_s3 + $0x248] sm:$0xff]  }
 0xabf   :  { %v6326_v17 = vsel %vm571_vm2, %v6314_v6, %v9950_v63  ;;  %v6327_v30 = vsel %vm571_vm2, %v6315_v5, %v9951_v54  ;;  %9342 = vmatprep.subr.bf16.mxu0 %v13686_v51  ;;  %v10773_v5 = vld [vmem:[%s13600_s1 + $0x10] sm:$0xff]   ;;  %v10075_v54 = vld [vmem:[%s13601_s3 + $0x240] sm:$0xff]  }
 0xac0   :  { %v6392_v52 = vpack.c.bf16 %v6327_v30, %v6326_v17  ;;  %v6324_v1 = vsel %vm571_vm2, %v6312_v41, %v9960_v24  ;;  %v6325_v2 = vsel %vm571_vm2, %v6313_v34, %v9961_v19  ;;  %v9954_v11 = vpop.permute.xlu0 %9953  ;;  %v10076_v63 = vld [vmem:[%s13601_s3 + $0x200] sm:$0xff]   ;;  %v10079_v6 = vld [vmem:[%s13601_s3 + $0x250] sm:$0xff]  }
 0xac1   :  { %v6334_v10 = vpack.c.bf16 %v6325_v2, %v6324_v1  ;;  %v9956_v3 = vunpack.i.h.bf16 %v9954_v11  ;;  %v9955_v55 = vunpack.i.l.bf16 %v9954_v11  ;;  %v10080_v41 = vld [vmem:[%s13601_s3 + $0x210] sm:$0xff]   ;;  %v10082_v11 = vld [vmem:[%s13601_s3 + $0x218] sm:$0xff]  }
 0xac2   :  { %9357 = vmatpush3.bf16.msra.mxu1 %v6392_v52 }
 0xac3   :  { %9343 = vmatpush3.bf16.msra.mxu0 %v6334_v10  ;;  %9358 = vmatprep.subr.bf16.mxu1 %v13686_v51  ;;  %v6307_v59 = vsel %vm545_vm0, %v12894_v45, %v9956_v3  ;;  %v6306_v4 = vsel %vm545_vm0, %v12888_v33, %v9955_v55  ;;  %v10772_v45 = vld [vmem:[%s13600_s1 + $0x8] sm:$0xff]   ;;  %v10081_v10 = vld [vmem:[%s13601_s3 + $0x258] sm:$0xff]  }
 0xac4   :  { %v9974_v49 = vpop.permute.xlu0 %9973  ;;  %9374 = vmatprep.subr.bf16.mxu0 %v10076_v63 }
 0xac5   :  { %v9964_v18 = vpop.permute.xlu1 %9963  ;;  %v9976_v14 = vunpack.i.h.bf16 %v9974_v49  ;;  %v9975_v48 = vunpack.i.l.bf16 %v9974_v49  ;;  %v10084_v49 = vld [vmem:[%s13601_s3 + $0x220] sm:$0xff]  }
 0xac6   :  { %v9966_v60 = vunpack.i.h.bf16 %v9964_v18  ;;  %v9965_v56 = vunpack.i.l.bf16 %v9964_v18  ;;  %9345 = vmatmul.mubr.msk.bf16.vlgmr.msra.gmra.mrb[228].mxu0 %vm617_vm3, %v10771_v12 }
 0xac7   :  { %9348 = vmatprep.mubr.msk.bf16.mxu0 %vm10786_vm4, %v13686_v51  ;;  %9375 = vmatpush3.bf16.msra.mxu0 %v10076_v63 }
 0xac8   :  { %v6328_v53 = vsel %vm571_vm2, %v6316_v8, %v9965_v56  ;;  %v6329_v62 = vsel %vm571_vm2, %v6317_v9, %v9966_v60 }
 0xac9   :  { %v6393_v27 = vpack.c.bf16 %v6329_v62, %v6328_v53  ;;  %v9969_v32 = vpop.permute.xlu1 %9968 }
 0xaca   :  { %v9971_v61 = vunpack.i.h.bf16 %v9969_v32  ;;  %v9970_v0 = vunpack.i.l.bf16 %v9969_v32 }
 0xacb   :  { %9359 = vmatpush3.bf16.msra.mxu1 %v6393_v27 }
 0xacc   :  { %v6319_v39 = vsel %vm558_vm1, %v6307_v59, %v9971_v61  ;;  %v6318_v57 = vsel %vm558_vm1, %v6306_v4, %v9970_v0  ;;  %9360 = vmatprep.subr.bf16.mxu1 %v13686_v51 }
 0xacd   :  { %v6330_v46 = vsel %vm571_vm2, %v6318_v57, %v9975_v48  ;;  %v6331_v7 = vsel %vm571_vm2, %v6319_v39, %v9976_v14  ;;  %v10085_v39 = vld [vmem:[%s13601_s3 + $0x228] sm:$0xff]  }
 0xace   :  { %9349 = vmatmul.mubr.msk.bf16.gmra.mrb[232].mxu0 %vm617_vm3, %v10772_v45  ;;  %v6394_v33 = vpack.c.bf16 %v6331_v7, %v6330_v46  ;;  %v10086_v57 = vld [vmem:[%s13601_s3 + $0x268] sm:$0xff]   ;;  %v10087_v7 = vld [vmem:[%s13601_s3 + $0x270] sm:$0xff]  }
 0xacf   :  { %9352 = vmatprep.mubr.msk.bf16.mxu0 %vm10786_vm4, %v13686_v51 }
 0xad0   :  { %9361 = vmatpush3.bf16.msra.mxu1 %v6394_v33 }
 0xad1   :  { %9390 = vmatprep.subr.bf16.mxu1 %v10075_v54 }
 0xad3   :  { %9363 = vmatmul.mubr.msk.bf16.vlgmr.msra.gmra.mrb[228].mxu1 %vm617_vm3, %v10771_v12 }
 0xad4   :  { %9366 = vmatprep.mubr.msk.bf16.mxu1 %vm10786_vm4, %v13686_v51  ;;  %9391 = vmatpush3.bf16.msra.mxu1 %v10075_v54 }
 0xad5   :  { %9392 = vmatprep.subr.bf16.mxu1 %v10077_v58 }
 0xad6   :  { %9353 = vmatmul.mubr.msk.bf16.gmra.mrb[236].mxu0 %vm617_vm3, %v10773_v5 }
 0xad8   :  { %9393 = vmatpush3.bf16.msra.mxu1 %v10077_v58 }
 0xad9   :  { %9422 = vmatprep.subr.bf16.mxu1 %v10079_v6 }
 0xadb   :  { %9367 = vmatmul.mubr.msk.bf16.gmra.mrb[232].mxu1 %vm617_vm3, %v10772_v45  ;;  %v10088_v45 = vld [vmem:[%s13601_s3 + $0x230] sm:$0xff]  }
 0xadc   :  { %9370 = vmatprep.mubr.msk.bf16.mxu1 %vm10786_vm4, %v13686_v51  ;;  %v10078_v51 = vld [vmem:[%s13601_s3 + $0x208] sm:$0xff]  }
 0xadd   :  { %9376 = vmatprep.subr.bf16.mxu0 %v10078_v51 }
 0xade   :  { %9377 = vmatpush3.bf16.msra.mxu0 %v10078_v51 }
 0xadf   :  { %9406 = vmatprep.subr.bf16.mxu0 %v10080_v41 }
 0xae3   :  { %9371 = vmatmul.mubr.msk.bf16.gmra.mrb[236].mxu1 %vm617_vm3, %v10773_v5 }
 0xb99   :  { %v6369_v19 = vpop.f32.mrb[228].mxu0 }
 0xb9a   :  { %v9346_v24 = vpop.f32.mrb[229].mxu0 }
 0xb9b   :  { %v6372_v34 = vpop.f32.mrb[230].mxu0 }
 0xb9c   :  { %v6454_v47 = vpack.c.bf16 %v6372_v34, %v6369_v19  ;;  %v9347_v17 = vpop.f32.mrb[231].mxu0 }
 0xb9e   :  { %6714 = vrot.lane.b32.xlu1 %v6454_v47, %s10784_s16  ;;  %9394 = vmatprep.mubr.msk.bf16.mxu1 %vm545_vm0, %v6454_v47 }
 0xb9f   :  { %9378 = vmatprep.mubr.msk.bf16.mxu0 %vm545_vm0, %v6454_v47 }
 0xba1   :  { %v6377_v30 = vpop.f32.mrb[232].mxu0 }
 0xba2   :  { %v9350_v15 = vpop.f32.mrb[233].mxu0 }
 0xba3   :  { %v6380_v52 = vpop.f32.mrb[234].mxu0 }
 0xba4   :  { %v6455_v1 = vpack.c.bf16 %v6380_v52, %v6377_v30  ;;  %v9351_v2 = vpop.f32.mrb[235].mxu0 }
 0xba6   :  { %6716 = vrot.lane.b32.xlu0 %v6455_v1, %s10784_s16  ;;  %9395 = vmatmul.mubr.msk.bf16.vlgmr.msra.gmra.mrb[240].mxu1 %vm545_vm0, %v6455_v1  ;;  %v6429_v26 = vpop.f32.mrb[228].mxu1 }
 0xba7   :  { %9379 = vmatmul.mubr.msk.bf16.vlgmr.msra.gmra.mrb[240].mxu0 %vm545_vm0, %v6455_v1  ;;  %v9364_v38 = vpop.f32.mrb[229].mxu1  ;;  %9423 = vmatpush3.bf16.msra.mxu1 %v10079_v6  ;;  %v10089_v6 = vld [vmem:[%s13601_s3 + $0x238] sm:$0xff]  }
 0xba8   :  { %v6432_v35 = vpop.f32.mrb[230].mxu1  ;;  %9407 = vmatpush3.bf16.msra.mxu0 %v10080_v41  ;;  %9424 = vmatprep.subr.bf16.mxu1 %v10081_v10  ;;  %v10090_v41 = vld [vmem:[%s13601_s3 + $0x278] sm:$0xff]  }
 0xba9   :  { %v6385_v18 = vpop.f32.mrb[236].mxu0  ;;  %v6457_v60 = vpack.c.bf16 %v6432_v35, %v6429_v26  ;;  %v9365_v56 = vpop.f32.mrb[231].mxu1  ;;  %9408 = vmatprep.subr.bf16.mxu0 %v10082_v11 }
 0xbaa   :  { %v9354_v12 = vpop.f32.mrb[237].mxu0 }
 0xbab   :  { %v6388_v3 = vpop.f32.mrb[238].mxu0  ;;  %6720 = vrot.lane.b32.xlu0 %v6457_v60, %s10784_s16  ;;  %9425 = vmatpush3.bf16.msra.mxu1 %v10081_v10  ;;  %v13687_v10 = vmov 0  }
 0xbac   :  { %v6456_v55 = vpack.c.bf16 %v6388_v3, %v6385_v18  ;;  %v9355_v8 = vpop.f32.mrb[239].mxu0  ;;  %9409 = vmatpush3.bf16.msra.mxu0 %v10082_v11  ;;  %9454 = vmatprep.subr.bf16.mxu1 %v10083_v13  ;;  %v13355_v11 = vld [vmem:[%s13599_s2 + $0x98] sm:$0xf] }
 0xbad   :  { %9438 = vmatprep.subr.bf16.mxu0 %v10084_v49  ;;  %v6578_v26 = vrot.slane %v13355_v11, %v13667_v43 }
 0xbae   :  { %v6437_v9 = vpop.f32.mrb[232].mxu1  ;;  %6718 = vrot.lane.b32.xlu1 %v6456_v55, %s10784_s16  ;;  %9382 = vmatprep.mubr.msk.bf16.mxu0 %vm545_vm0, %v6456_v55 }
 0xbaf   :  { %v9368_v53 = vpop.f32.mrb[233].mxu1  ;;  %9398 = vmatprep.mubr.msk.bf16.mxu1 %vm545_vm0, %v6456_v55  ;;  %9383 = vmatmul.mubr.msk.bf16.gmra.mrb[244].mxu0 %vm545_vm0, %v6457_v60 }
 0xbb0   :  { %v6440_v62 = vpop.f32.mrb[234].mxu1  ;;  %9399 = vmatmul.mubr.msk.bf16.gmra.mrb[244].mxu1 %vm545_vm0, %v6457_v60 }
 0xbb1   :  { %v6458_v27 = vpack.c.bf16 %v6440_v62, %v6437_v9  ;;  %v9369_v32 = vpop.f32.mrb[235].mxu1 }
 0xbb3   :  { %6722 = vrot.lane.b32.xlu1 %v6458_v27, %s10784_s16  ;;  %9402 = vmatprep.mubr.msk.bf16.mxu1 %vm545_vm0, %v6458_v27 }
 0xbb4   :  { %9386 = vmatprep.mubr.msk.bf16.mxu0 %vm545_vm0, %v6458_v27 }
 0xbb6   :  { %v6445_v61 = vpop.f32.mrb[236].mxu1 }
 0xbb7   :  { %v9372_v0 = vpop.f32.mrb[237].mxu1  ;;  %6962 = vrot.lane.b32.xlu1 %v6454_v47, %s10782_s14 }
 0xbb8   :  { %v6448_v59 = vpop.f32.mrb[238].mxu1 }
 0xbb9   :  { %v6459_v4 = vpack.c.bf16 %v6448_v59, %v6445_v61  ;;  %v9373_v14 = vpop.f32.mrb[239].mxu1 }
 0xbbb   :  { %6724 = vrot.lane.b32.xlu0 %v6459_v4, %s10784_s16  ;;  %6966 = vrot.lane.b32.xlu1 %v6456_v55, %s10782_s14 }
 0xbbc   :  { %9403 = vmatmul.mubr.msk.bf16.gmra.mrb[248].mxu1 %vm545_vm0, %v6459_v4  ;;  %9387 = vmatmul.mubr.msk.bf16.gmra.mrb[248].mxu0 %vm545_vm0, %v6459_v4 }
 0xbbf   :  { %6964 = vrot.lane.b32.xlu0 %v6455_v1, %s10782_s14  ;;  %6970 = vrot.lane.b32.xlu1 %v6458_v27, %s10782_s14 }
 0xbc3   :  { %6968 = vrot.lane.b32.xlu0 %v6457_v60, %s10782_s14  ;;  %7210 = vrot.lane.b32.xlu1 %v6454_v47, %s10783_s15 }
 0xbc7   :  { %6972 = vrot.lane.b32.xlu0 %v6459_v4, %s10782_s14  ;;  %7214 = vrot.lane.b32.xlu1 %v6456_v55, %s10783_s15 }
 0xbcb   :  { %7212 = vrot.lane.b32.xlu0 %v6455_v1, %s10783_s15  ;;  %7218 = vrot.lane.b32.xlu1 %v6458_v27, %s10783_s15 }
 0xbcf   :  { %7216 = vrot.lane.b32.xlu0 %v6457_v60, %s10783_s15 }
 0xbd3   :  { %7220 = vrot.lane.b32.xlu0 %v6459_v4, %s10783_s15 }
 0xc10   :  { %v6715_v48 = vpop.permute.xlu1 %6714 }
 0xc11   :  { %9426 = vmatprep.mubr.msk.bf16.mxu1 %vm545_vm0, %v6715_v48  ;;  %9410 = vmatprep.mubr.msk.bf16.mxu0 %vm545_vm0, %v6715_v48 }
 0xc18   :  { %v6717_v46 = vpop.permute.xlu0 %6716 }
 0xc19   :  { %9427 = vmatmul.mubr.msk.bf16.vlgmr.msra.gmra.mrb[252].mxu1 %vm545_vm0, %v6717_v46  ;;  %9411 = vmatmul.mubr.msk.bf16.vlgmr.msra.gmra.mrb[252].mxu0 %vm545_vm0, %v6717_v46  ;;  %v13362_v46 = vld [vmem:[%s13599_s2 + $0x90] sm:$0xf] }
 0xc1a   :  { %9455 = vmatpush3.bf16.msra.mxu1 %v10083_v13  ;;  %9439 = vmatpush3.bf16.msra.mxu0 %v10084_v49 }
 0xc1b   :  { %9440 = vmatprep.subr.bf16.mxu0 %v10085_v39  ;;  %9456 = vmatprep.subr.bf16.mxu1 %v10086_v57 }
 0xc1d   :  { %v6721_v5 = vpop.permute.xlu0 %6720 }
 0xc1e   :  { %9441 = vmatpush3.bf16.msra.mxu0 %v10085_v39  ;;  %9457 = vmatpush3.bf16.msra.mxu1 %v10086_v57 }
 0xc1f   :  { %9486 = vmatprep.subr.bf16.mxu1 %v10087_v7  ;;  %9470 = vmatprep.subr.bf16.mxu0 %v10088_v45 }
 0xc20   :  { %v6719_v33 = vpop.permute.xlu1 %6718 }
 0xc21   :  { %9414 = vmatprep.mubr.msk.bf16.mxu0 %vm545_vm0, %v6719_v33  ;;  %9430 = vmatprep.mubr.msk.bf16.mxu1 %vm545_vm0, %v6719_v33  ;;  %v6471_v33 = vrot.slane %v13362_v46, %v13667_v43 }
 0xc22   :  { %9415 = vmatmul.mubr.msk.bf16.gmra.mrb[0].mxu0 %vm545_vm0, %v6721_v5  ;;  %9431 = vmatmul.mubr.msk.bf16.gmra.mrb[0].mxu1 %vm545_vm0, %v6721_v5 }
 0xc25   :  { %v6723_v54 = vpop.permute.xlu1 %6722 }
 0xc26   :  { %9418 = vmatprep.mubr.msk.bf16.mxu0 %vm545_vm0, %v6723_v54  ;;  %9434 = vmatprep.mubr.msk.bf16.mxu1 %vm545_vm0, %v6723_v54 }
 0xc29   :  { %v6963_v58 = vpop.permute.xlu1 %6962 }
 0xc2d   :  { %v6725_v63 = vpop.permute.xlu0 %6724  ;;  %v6967_v19 = vpop.permute.xlu1 %6966 }
 0xc2e   :  { %9419 = vmatmul.mubr.msk.bf16.gmra.mrb[4].mxu0 %vm545_vm0, %v6725_v63  ;;  %9435 = vmatmul.mubr.msk.bf16.gmra.mrb[4].mxu1 %vm545_vm0, %v6725_v63 }
 0xc2f   :  { %9442 = vmatprep.mubr.msk.bf16.mxu0 %vm545_vm0, %v6963_v58  ;;  %9458 = vmatprep.mubr.msk.bf16.mxu1 %vm545_vm0, %v6963_v58 }
 0xc31   :  { %v6965_v51 = vpop.permute.xlu0 %6964  ;;  %v6971_v34 = vpop.permute.xlu1 %6970 }
 0xc35   :  { %v6969_v24 = vpop.permute.xlu0 %6968  ;;  %v7211_v17 = vpop.permute.xlu1 %7210 }
 0xc36   :  { %9443 = vmatmul.mubr.msk.bf16.vlgmr.msra.gmra.mrb[8].mxu0 %vm545_vm0, %v6965_v51  ;;  %9459 = vmatmul.mubr.msk.bf16.vlgmr.msra.gmra.mrb[8].mxu1 %vm545_vm0, %v6965_v51 }
 0xc37   :  { %9446 = vmatprep.mubr.msk.bf16.mxu0 %vm545_vm0, %v6967_v19  ;;  %9462 = vmatprep.mubr.msk.bf16.mxu1 %vm545_vm0, %v6967_v19 }
 0xc38   :  { %9487 = vmatpush3.bf16.msra.mxu1 %v10087_v7  ;;  %9471 = vmatpush3.bf16.msra.mxu0 %v10088_v45 }
 0xc39   :  { %9472 = vmatprep.subr.bf16.mxu0 %v10089_v6  ;;  %9488 = vmatprep.subr.bf16.mxu1 %v10090_v41  ;;  %v6973_v47 = vpop.permute.xlu0 %6972  ;;  %v7215_v15 = vpop.permute.xlu1 %7214 }
 0xc3c   :  { %9473 = vmatpush3.bf16.msra.mxu0 %v10089_v6  ;;  %9489 = vmatpush3.bf16.msra.mxu1 %v10090_v41 }
 0xc3d   :  { %v7213_v30 = vpop.permute.xlu0 %7212  ;;  %v7219_v1 = vpop.permute.xlu1 %7218 }
 0xc3e   :  { %9447 = vmatmul.mubr.msk.bf16.gmra.mrb[12].mxu0 %vm545_vm0, %v6969_v24  ;;  %9463 = vmatmul.mubr.msk.bf16.gmra.mrb[12].mxu1 %vm545_vm0, %v6969_v24 }
 0xc3f   :  { %9450 = vmatprep.mubr.msk.bf16.mxu0 %vm545_vm0, %v6971_v34  ;;  %9466 = vmatprep.mubr.msk.bf16.mxu1 %vm545_vm0, %v6971_v34 }
 0xc41   :  { %v7217_v52 = vpop.permute.xlu0 %7216 }
 0xc45   :  { %v7221_v2 = vpop.permute.xlu0 %7220 }
 0xc46   :  { %9451 = vmatmul.mubr.msk.bf16.gmra.mrb[16].mxu0 %vm545_vm0, %v6973_v47  ;;  %9467 = vmatmul.mubr.msk.bf16.gmra.mrb[16].mxu1 %vm545_vm0, %v6973_v47 }
 0xc47   :  { %9474 = vmatprep.mubr.msk.bf16.mxu0 %vm545_vm0, %v7211_v17  ;;  %9490 = vmatprep.mubr.msk.bf16.mxu1 %vm545_vm0, %v7211_v17 }
 0xc4e   :  { %9475 = vmatmul.mubr.msk.bf16.vlgmr.msra.gmra.mrb[20].mxu0 %vm545_vm0, %v7213_v30  ;;  %9491 = vmatmul.mubr.msk.bf16.vlgmr.msra.gmra.mrb[20].mxu1 %vm545_vm0, %v7213_v30 }
 0xc4f   :  { %9478 = vmatprep.mubr.msk.bf16.mxu0 %vm545_vm0, %v7215_v15  ;;  %9494 = vmatprep.mubr.msk.bf16.mxu1 %vm545_vm0, %v7215_v15 }
 0xc56   :  { %9479 = vmatmul.mubr.msk.bf16.gmra.mrb[24].mxu0 %vm545_vm0, %v7217_v52  ;;  %9495 = vmatmul.mubr.msk.bf16.gmra.mrb[24].mxu1 %vm545_vm0, %v7217_v52 }
 0xc57   :  { %9482 = vmatprep.mubr.msk.bf16.mxu0 %vm545_vm0, %v7219_v1  ;;  %9498 = vmatprep.mubr.msk.bf16.mxu1 %vm545_vm0, %v7219_v1 }
 0xc5e   :  { %9483 = vmatmul.mubr.msk.bf16.gmra.mrb[28].mxu0 %vm545_vm0, %v7221_v2  ;;  %9499 = vmatmul.mubr.msk.bf16.gmra.mrb[28].mxu1 %vm545_vm0, %v7221_v2 }
 0xc5f   :  { %7731 = vmatprep.mubr.bf16.mxu0 %v13687_v10 }
 0xc79   :  { %v9396_v38 = vpop.f32.mrb[240].mxu1 }
 0xc7a   :  { %v6632_v35 = vadd.f32 %v9396_v38, %v6578_v26  ;;  %v6625_v13 = vpop.f32.mrb[241].mxu1  ;;  %v9380_v18 = vpop.f32.mrb[240].mxu0 }
 0xc7b   :  { %v9397_v60 = vpop.f32.mrb[242].mxu1  ;;  %v6536_v56 = vpop.f32.mrb[241].mxu0  ;;  %v6543_v34 = vadd.f32 %v9380_v18, %v6471_v33 }
 0xc7c   :  { %v8348_v12 = vmul.f32 -1.442695, %v6632_v35  ;;  %v6635_v3 = vadd.f32 %v9397_v60, %v6578_v26  ;;  %v9381_v55 = vpop.f32.mrb[242].mxu0  ;;  %v6627_v8 = vpop.f32.mrb[243].mxu1 }
 0xc7d   :  { %v6538_v9 = vpop.f32.mrb[243].mxu0  ;;  %v6546_v15 = vadd.f32 %v9381_v55, %v6471_v33  ;;  %v6832_v55 = vrot.slane %v13355_v11, %v13668_v36 }
 0xc7e   :  { %10699 = vpow2.f32 %v8348_v12  ;;  %v8349_v49 = vmul.f32 -1.442695, %v6635_v3 }
 0xc80   :  { %10701 = vpow2.f32 %v8349_v49 }
 0xc82   :  { %v9384_v53 = vpop.f32.mrb[244].mxu0 }
 0xc83   :  { %v9400_v62 = vpop.f32.mrb[244].mxu1  ;;  %v6550_v27 = vpop.f32.mrb[245].mxu0 }
 0xc84   :  { %v6639_v32 = vpop.f32.mrb[245].mxu1  ;;  %v9385_v61 = vpop.f32.mrb[246].mxu0 }
 0xc85   :  { %v9401_v0 = vpop.f32.mrb[246].mxu1  ;;  %v6552_v59 = vpop.f32.mrb[247].mxu0 }
 0xc86   :  { %v6641_v4 = vpop.f32.mrb[247].mxu1 }
 0xc88   :  { %v10700_v14 = vpop.eup %10699 }
 0xc89   :  { %v6676_v48 = vadd.f32 1.0, %v10700_v14 }
 0xc8a   :  { %v10702_v39 = vpop.eup %10701 }
 0xc8b   :  { %10703 = vrcp.f32 %v6676_v48  ;;  %v6677_v57 = vadd.f32 1.0, %v10702_v39 }
 0xc8d   :  { %10705 = vrcp.f32 %v6677_v57 }
 0xc8f   :  { %v9404_v7 = vpop.f32.mrb[248].mxu1  ;;  %v9388_v45 = vpop.f32.mrb[248].mxu0 }
 0xc90   :  { %v6651_v5 = vpop.f32.mrb[249].mxu1  ;;  %v6562_v54 = vpop.f32.mrb[249].mxu0 }
 0xc91   :  { %v6652_v63 = vadd.f32 %v6651_v5, %v6578_v26  ;;  %v9405_v58 = vpop.f32.mrb[250].mxu1  ;;  %v9389_v51 = vpop.f32.mrb[250].mxu0  ;;  %v6563_v60 = vadd.f32 %v6562_v54, %v6471_v33 }
 0xc92   :  { %v6654_v6 = vpop.f32.mrb[251].mxu1  ;;  %v6565_v41 = vpop.f32.mrb[251].mxu0 }
 0xc93   :  { %v8350_v19 = vmul.f32 -1.442695, %v6652_v63  ;;  %v6655_v24 = vadd.f32 %v6654_v6, %v6578_v26  ;;  %v6566_v18 = vadd.f32 %v6565_v41, %v6471_v33 }
 0xc95   :  { %v10704_v47 = vpop.eup %10703  ;;  %10707 = vpow2.f32 %v8350_v19  ;;  %v8351_v17 = vmul.f32 -1.442695, %v6655_v24 }
 0xc96   :  { %v13366_v30 = vmul.f32 %v10704_v47, %v6543_v34  ;;  %v13380_v47 = vrot.slane %v13362_v46, %v13668_v36 }
 0xc97   :  { %v10706_v52 = vpop.eup %10705  ;;  %10709 = vpow2.f32 %v8351_v17 }
 0xc98   :  { %v13368_v1 = vmul.f32 %v10706_v52, %v6546_v15 }
 0xc9f   :  { %v10708_v2 = vpop.eup %10707 }
 0xca0   :  { %v6678_v38 = vadd.f32 1.0, %v10708_v2 }
 0xca1   :  { %v10710_v35 = vpop.eup %10709 }
 0xca2   :  { %10711 = vrcp.f32 %v6678_v38  ;;  %v6679_v13 = vadd.f32 1.0, %v10710_v35 }
 0xca4   :  { %10713 = vrcp.f32 %v6679_v13 }
 0xcac   :  { %v10712_v56 = vpop.eup %10711 }
 0xcad   :  { %v13370_v26 = vmul.f32 %v10712_v56, %v6563_v60  ;;  %v13386_v60 = vrot.slane %v13355_v11, %v13669_v37 }
 0xcae   :  { %v10714_v12 = vpop.eup %10713 }
 0xcaf   :  { %v13372_v3 = vmul.f32 %v10714_v12, %v6566_v18  ;;  %v10091_v12 = vld [vmem:[%s13602_s4] ss:$12 sps:$4 sm:$0xff]  }
 0xcec   :  { %v9428_v8 = vpop.f32.mrb[252].mxu1  ;;  %v9412_v9 = vpop.f32.mrb[252].mxu0 }
 0xced   :  { %v6886_v49 = vadd.f32 %v9428_v8, %v6832_v55  ;;  %v6879_v53 = vpop.f32.mrb[253].mxu1  ;;  %v6790_v62 = vpop.f32.mrb[253].mxu0  ;;  %v6797_v56 = vadd.f32 %v9412_v9, %v13380_v47 }
 0xcee   :  { %v9429_v27 = vpop.f32.mrb[254].mxu1  ;;  %v9413_v32 = vpop.f32.mrb[254].mxu0 }
 0xcef   :  { %v8368_v61 = vmul.f32 -1.442695, %v6886_v49  ;;  %v6889_v0 = vadd.f32 %v9429_v27, %v6832_v55  ;;  %v6792_v59 = vpop.f32.mrb[255].mxu0  ;;  %v6881_v4 = vpop.f32.mrb[255].mxu1  ;;  %v10093_v49 = vld [vmem:[%s13602_s4 + $0x4] ss:$12 sps:$4 sm:$0xff]  }
 0xcf0   :  { %7699 = vmatprep.subr.bf16.mxu0 %v10093_v49 }
 0xcf1   :  { %10715 = vpow2.f32 %v8368_v61  ;;  %v8369_v14 = vmul.f32 -1.442695, %v6889_v0  ;;  %7700 = vmatpush1.bf16.msra.mxu0 %v10091_v12 }
 0xcf3   :  { %10717 = vpow2.f32 %v8369_v14 }
 0xcf5   :  { %v9416_v48 = vpop.f32.mrb[0].mxu0  ;;  %v9432_v39 = vpop.f32.mrb[0].mxu1 }
 0xcf6   :  { %v6804_v57 = vpop.f32.mrb[1].mxu0  ;;  %v6893_v7 = vpop.f32.mrb[1].mxu1 }
 0xcf7   :  { %v9417_v45 = vpop.f32.mrb[2].mxu0  ;;  %v9433_v33 = vpop.f32.mrb[2].mxu1 }
 0xcf8   :  { %v6806_v5 = vpop.f32.mrb[3].mxu0  ;;  %v6895_v54 = vpop.f32.mrb[3].mxu1  ;;  %v13688_v45 = vld [vmem:[#allocation21_spill] sm:$0xff] }
 0xcf9   :  { %v13689_v5 = vld [vmem:[#allocation20_spill] sm:$0xff] }
 0xcfb   :  { %v10716_v63 = vpop.eup %10715 }
 0xcfc   :  { %v6930_v58 = vadd.f32 1.0, %v10716_v63 }
 0xcfd   :  { %v10718_v51 = vpop.eup %10717 }
 0xcfe   :  { %10719 = vrcp.f32 %v6930_v58  ;;  %v6931_v6 = vadd.f32 1.0, %v10718_v51 }
 0xd00   :  { %10721 = vrcp.f32 %v6931_v6 }
 0xd01   :  { %v9436_v41 = vpop.f32.mrb[4].mxu1  ;;  %v9420_v19 = vpop.f32.mrb[4].mxu0 }
 0xd02   :  { %v6905_v24 = vpop.f32.mrb[5].mxu1  ;;  %v13376_v34 = vpop.f32.mrb[5].mxu0 }
 0xd03   :  { %v6906_v17 = vadd.f32 %v6905_v24, %v6832_v55  ;;  %v9437_v15 = vpop.f32.mrb[6].mxu1  ;;  %v9421_v52 = vpop.f32.mrb[6].mxu0 }
 0xd04   :  { %v6908_v2 = vpop.f32.mrb[7].mxu1  ;;  %v13382_v38 = vpop.f32.mrb[7].mxu0 }
 0xd05   :  { %v8370_v35 = vmul.f32 -1.442695, %v6906_v17  ;;  %v6909_v13 = vadd.f32 %v6908_v2, %v6832_v55  ;;  %v6800_v55 = vadd.f32 %v9413_v32, %v13380_v47 }
 0xd07   :  { %10723 = vpow2.f32 %v8370_v35  ;;  %v8371_v18 = vmul.f32 -1.442695, %v6909_v13 }
 0xd08   :  { %v10720_v8 = vpop.eup %10719 }
 0xd09   :  { %v6942_v53 = vmul.f32 %v10720_v8, %v6797_v56  ;;  %10725 = vpow2.f32 %v8371_v18  ;;  %v13396_v62 = vpop.f32.mrb[8].mxu0  ;;  %v9460_v27 = vpop.f32.mrb[8].mxu1 }
 0xd0a   :  { %v10722_v61 = vpop.eup %10721  ;;  %v7134_v9 = vadd.f32 %v9460_v27, %v13386_v60  ;;  %v7038_v0 = vpop.f32.mrb[9].mxu0 }
 0xd0b   :  { %v7127_v59 = vpop.f32.mrb[9].mxu1  ;;  %v6943_v4 = vmul.f32 %v10722_v61, %v6800_v55  ;;  %v13399_v14 = vpop.f32.mrb[10].mxu0  ;;  %v6946_v33 = vmax.f32 %v13688_v45, %v6942_v53  ;;  %v13415_v45 = vrot.slane %v13355_v11, %v13682_v31 }
 0xd0c   :  { %v9461_v48 = vpop.f32.mrb[10].mxu1  ;;  %v8388_v39 = vmul.f32 -1.442695, %v7134_v9  ;;  %v7040_v7 = vpop.f32.mrb[11].mxu0 }
 0xd0d   :  { %v7137_v57 = vadd.f32 %v9461_v48, %v13386_v60  ;;  %v7129_v32 = vpop.f32.mrb[11].mxu1  ;;  %v6947_v54 = vmax.f32 %v13689_v5, %v6943_v4  ;;  %v6820_v5 = vadd.f32 %v13382_v38, %v13380_v47 }
 0xd0e   :  { %10727 = vpow2.f32 %v8388_v39  ;;  %v6817_v39 = vadd.f32 %v13376_v34, %v13380_v47 }
 0xd0f   :  { %v8389_v63 = vmul.f32 -1.442695, %v7137_v57  ;;  %v9977_v58 = vpack.i.bf16 %v6947_v54, %v6946_v33 }
 0xd11   :  { %10729 = vpow2.f32 %v8389_v63  ;;  %v10724_v51 = vpop.eup %10723  ;;  %v9464_v6 = vpop.f32.mrb[12].mxu1  ;;  %9978 = vrot.lane.b32.xlu1 %v9977_v58, %s10783_s15  ;;  %v13421_v58 = vrot.slane %v13362_v46, %v13669_v37 }
 0xd12   :  { %v9448_v41 = vpop.f32.mrb[12].mxu0  ;;  %v6932_v19 = vadd.f32 1.0, %v10724_v51  ;;  %v7141_v17 = vpop.f32.mrb[13].mxu1 }
 0xd13   :  { %v7052_v24 = vpop.f32.mrb[13].mxu0  ;;  %v10726_v15 = vpop.eup %10725  ;;  %v10094_v17 = vld [vmem:[%s13602_s4 + $0x18] ss:$12 sps:$4 sm:$0xff]  }
 0xd14   :  { %v9449_v52 = vpop.f32.mrb[14].mxu0  ;;  %v9465_v2 = vpop.f32.mrb[14].mxu1  ;;  %10731 = vrcp.f32 %v6932_v19  ;;  %v6933_v35 = vadd.f32 1.0, %v10726_v15  ;;  %v10096_v15 = vld [vmem:[%s13602_s4 + $0x1c] ss:$12 sps:$4 sm:$0xff]  }
 0xd15   :  { %v7054_v13 = vpop.f32.mrb[15].mxu0  ;;  %v7143_v56 = vpop.f32.mrb[15].mxu1  ;;  %v7045_v52 = vadd.f32 %v13396_v62, %v13421_v58  ;;  %7701 = vmatprep.subr.bf16.mxu0 %v10096_v15  ;;  %v10097_v62 = vld [vmem:[%s13602_s4 + $0x30] ss:$12 sps:$4 sm:$0xff]   ;;  %v10103_v15 = vld [vmem:[%s13602_s4 + $0x60] ss:$12 sps:$4 sm:$0xff]  }
 0xd16   :  { %10733 = vrcp.f32 %v6933_v35  ;;  %7702 = vmatpush1.bf16.msra.mxu0 %v10094_v17  ;;  %v10114_v17 = vld [vmem:[%s13602_s4 + $0x38] ss:$12 sps:$4 sm:$0xff]  }
 0xd18   :  { %v10728_v18 = vpop.eup %10727 }
 0xd19   :  { %v7178_v12 = vadd.f32 1.0, %v10728_v18  ;;  %v9452_v8 = vpop.f32.mrb[16].mxu0  ;;  %v9468_v49 = vpop.f32.mrb[16].mxu1  ;;  %v7048_v18 = vadd.f32 %v13399_v14, %v13421_v58 }
 0xd1a   :  { %v13405_v55 = vpop.f32.mrb[17].mxu0  ;;  %v7153_v27 = vpop.f32.mrb[17].mxu1 }
 0xd1b   :  { %v10730_v53 = vpop.eup %10729  ;;  %10735 = vrcp.f32 %v7178_v12  ;;  %v7154_v9 = vadd.f32 %v7153_v27, %v13386_v60  ;;  %v9453_v0 = vpop.f32.mrb[18].mxu0 }
 0xd1c   :  { %v7179_v61 = vadd.f32 1.0, %v10730_v53  ;;  %v9469_v59 = vpop.f32.mrb[18].mxu1  ;;  %v13408_v4 = vpop.f32.mrb[19].mxu0  ;;  %v10099_v53 = vld [vmem:[%s13602_s4 + $0x34] ss:$12 sps:$4 sm:$0xff]  }
 0xd1d   :  { %v7156_v48 = vpop.f32.mrb[19].mxu1  ;;  %v8390_v57 = vmul.f32 -1.442695, %v7154_v9  ;;  %7703 = vmatprep.subr.bf16.mxu0 %v10099_v53  ;;  %v10106_v59 = vld [vmem:[%s13602_s4 + $0x8] ss:$12 sps:$4 sm:$0xff]  }
 0xd1e   :  { %10737 = vrcp.f32 %v7179_v61  ;;  %v7157_v7 = vadd.f32 %v7156_v48, %v13386_v60  ;;  %v10732_v32 = vpop.eup %10731  ;;  %v10102_v61 = vld [vmem:[%s13602_s4 + $0x4c] ss:$12 sps:$4 sm:$0xff]   ;;  %7704 = vmatpush1.bf16.msra.mxu0 %v10097_v62  ;;  %9502 = vmatprep.subr.bf16.mxu1 %v10106_v59 }
 0xd1f   :  { %v6944_v33 = vmul.f32 %v10732_v32, %v6817_v39  ;;  %10739 = vpow2.f32 %v8390_v57  ;;  %7705 = vmatprep.subr.bf16.mxu0 %v10102_v61  ;;  %9503 = vmatpush3.bf16.msra.mxu1 %v10106_v59  ;;  %v10113_v61 = vld [vmem:[%s13602_s4 + $0x94] ss:$12 sps:$4 sm:$0xff]  }
 0xd20   :  { %v8391_v54 = vmul.f32 -1.442695, %v7157_v7  ;;  %v10734_v63 = vpop.eup %10733  ;;  %v13690_v7 = vld [vmem:[#allocation9_spill] sm:$0xff] }
 0xd21   :  { %v6945_v34 = vmul.f32 %v10734_v63, %v6820_v5  ;;  %v13423_v51 = vpop.f32.mrb[20].mxu0  ;;  %v9492_v60 = vpop.f32.mrb[20].mxu1  ;;  %v6948_v19 = vmax.f32 %v13012_v42, %v6944_v33  ;;  %v13691_v33 = vld [vmem:[#allocation11_spill] sm:$0xff] }
 0xd22   :  { %10741 = vpow2.f32 %v8391_v54  ;;  %v7382_v6 = vadd.f32 %v9492_v60, %v13415_v45  ;;  %v7286_v11 = vpop.f32.mrb[21].mxu0  ;;  %v7375_v41 = vpop.f32.mrb[21].mxu1  ;;  %v10100_v54 = vld [vmem:[%s13602_s4 + $0x48] ss:$12 sps:$4 sm:$0xff]  }
 0xd23   :  { %v6949_v47 = vmax.f32 %v13023_v40, %v6945_v34  ;;  %v13428_v38 = vpop.f32.mrb[22].mxu0  ;;  %v9493_v24 = vpop.f32.mrb[22].mxu1  ;;  %v10110_v11 = vld [vmem:[%s13602_s4 + $0x20] ss:$12 sps:$4 sm:$0xff]   ;;  %7706 = vmatpush1.bf16.msra.mxu0 %v10100_v54 }
 0xd24   :  { %v8408_v2 = vmul.f32 -1.442695, %v7382_v6  ;;  %v7385_v35 = vadd.f32 %v9493_v24, %v13415_v45  ;;  %v7288_v42 = vpop.f32.mrb[23].mxu0  ;;  %v7377_v13 = vpop.f32.mrb[23].mxu1  ;;  %v10105_v6 = vld [vmem:[%s13602_s4 + $0x64] ss:$12 sps:$4 sm:$0xff]   ;;  %9504 = vmatprep.subr.bf16.mxu1 %v10110_v11 }
 0xd25   :  { %v10736_v40 = vpop.eup %10735  ;;  %v9992_v56 = vpack.i.bf16 %v6949_v47, %v6948_v19  ;;  %7707 = vmatprep.subr.bf16.mxu0 %v10105_v6  ;;  %9505 = vmatpush3.bf16.msra.mxu1 %v10110_v11  ;;  %v10120_v11 = vld [vmem:[%s13602_s4 + $0x80] ss:$12 sps:$4 sm:$0xff]  }
 0xd26   :  { %10743 = vpow2.f32 %v8408_v2  ;;  %v8409_v12 = vmul.f32 -1.442695, %v7385_v35  ;;  %v7190_v8 = vmul.f32 %v10736_v40, %v7045_v52  ;;  %v10109_v52 = vld [vmem:[%s13602_s4 + $0x7c] ss:$12 sps:$4 sm:$0xff]   ;;  %9506 = vmatprep.subr.bf16.mxu1 %v10114_v17 }
 0xd27   :  { %7708 = vmatpush1.bf16.msra.mxu0 %v10103_v15 }
 0xd28   :  { %v10738_v49 = vpop.eup %10737  ;;  %10745 = vpow2.f32 %v8409_v12  ;;  %v7194_v32 = vmax.f32 %v13690_v7, %v7190_v8  ;;  %v10107_v8 = vld [vmem:[%s13602_s4 + $0x78] ss:$12 sps:$4 sm:$0xff]   ;;  %7709 = vmatprep.subr.bf16.mxu0 %v10109_v52 }
 0xd29   :  { %v7191_v27 = vmul.f32 %v10738_v49, %v7048_v18  ;;  %v10740_v14 = vpop.eup %10739  ;;  %v9480_v9 = vpop.f32.mrb[24].mxu0  ;;  %9507 = vmatpush3.bf16.msra.mxu1 %v10114_v17  ;;  %v10121_v52 = vld [vmem:[%s13602_s4 + $0x98] ss:$12 sps:$4 sm:$0xff]  }
 0xd2a   :  { %v9496_v0 = vpop.f32.mrb[24].mxu1  ;;  %v7180_v48 = vadd.f32 1.0, %v10740_v14  ;;  %v7300_v39 = vpop.f32.mrb[25].mxu0 }
 0xd2b   :  { %v7389_v57 = vpop.f32.mrb[25].mxu1  ;;  %v7195_v5 = vmax.f32 %v13691_v33, %v7191_v27  ;;  %v9481_v34 = vpop.f32.mrb[26].mxu0  ;;  %7710 = vmatpush1.bf16.msra.mxu0 %v10107_v8  ;;  %v10111_v39 = vld [vmem:[%s13602_s4 + $0x90] ss:$12 sps:$4 sm:$0xff]  }
 0xd2c   :  { %v10742_v63 = vpop.eup %10741  ;;  %v9497_v60 = vpop.f32.mrb[26].mxu1  ;;  %10747 = vrcp.f32 %v7180_v48  ;;  %v7068_v57 = vadd.f32 %v13408_v4, %v13421_v58  ;;  %7711 = vmatprep.subr.bf16.mxu0 %v10113_v61 }
 0xd2d   :  { %v7181_v41 = vadd.f32 1.0, %v10742_v63  ;;  %v7302_v19 = vpop.f32.mrb[27].mxu0  ;;  %v7391_v47 = vpop.f32.mrb[27].mxu1  ;;  %v9982_v24 = vpack.i.bf16 %v7195_v5, %v7194_v32  ;;  %v10117_v63 = vld [vmem:[%s13602_s4 + $0xac] ss:$12 sps:$4 sm:$0xff]  }
 0xd2f   :  { %10749 = vrcp.f32 %v7181_v41  ;;  %9983 = vrot.lane.b32.xlu0 %v9982_v24, %s10782_s14  ;;  %7712 = vmatpush1.bf16.msra.mxu0 %v10111_v39 }
 0xd30   :  { %v10744_v2 = vpop.eup %10743  ;;  %7713 = vmatprep.subr.bf16.mxu0 %v10117_v63 }
 0xd31   :  { %v7426_v35 = vadd.f32 1.0, %v10744_v2  ;;  %v9484_v42 = vpop.f32.mrb[28].mxu0  ;;  %v9500_v13 = vpop.f32.mrb[28].mxu1 }
 0xd32   :  { %v10746_v40 = vpop.eup %10745  ;;  %v13474_v18 = vpop.f32.mrb[29].mxu0 }
 0xd33   :  { %v7401_v12 = vpop.f32.mrb[29].mxu1  ;;  %9993 = vrot.lane.b32.xlu0 %v9992_v56, %s10783_s15  ;;  %10751 = vrcp.f32 %v7426_v35  ;;  %v7427_v49 = vadd.f32 1.0, %v10746_v40  ;;  %v9485_v53 = vpop.f32.mrb[30].mxu0  ;;  %v7065_v56 = vadd.f32 %v13405_v55, %v13421_v58  ;;  %v7209_v55 = vrot.slane %v13362_v46, %v13682_v31  ;;  %v10115_v58 = vld [vmem:[%s13602_s4 + $0xa8] ss:$12 sps:$4 sm:$0xff]  }
 0xd34   :  { %v7402_v62 = vadd.f32 %v7401_v12, %v13415_v45  ;;  %v9501_v27 = vpop.f32.mrb[30].mxu1  ;;  %v7315_v14 = vpop.f32.mrb[31].mxu0  ;;  %v10118_v31 = vld [vmem:[%s13602_s4 + $0x50] ss:$12 sps:$4 sm:$0xff]   ;;  %7714 = vmatpush1.bf16.msra.mxu0 %v10115_v58 }
 0xd35   :  { %v7404_v9 = vpop.f32.mrb[31].mxu1  ;;  %10753 = vrcp.f32 %v7427_v49  ;;  %v7293_v4 = vadd.f32 %v13423_v51, %v7209_v55  ;;  %9508 = vmatprep.subr.bf16.mxu1 %v10118_v31  ;;  %v10119_v51 = vld [vmem:[%s13602_s4 + $0x68] ss:$12 sps:$4 sm:$0xff]   ;;  %v7316_v35 = vadd.f32 %v7315_v14, %v7209_v55  ;;  %v6692_v14 = vmax.f32 %v12858_v20, %v13366_v30 }
 0xd36   :  { %v8410_v0 = vmul.f32 -1.442695, %v7402_v62  ;;  %v7405_v59 = vadd.f32 %v7404_v9, %v13415_v45  ;;  %v10748_v48 = vpop.eup %10747  ;;  %9509 = vmatpush3.bf16.msra.mxu1 %v10118_v31 }
 0xd37   :  { %v7192_v32 = vmul.f32 %v10748_v48, %v7065_v56  ;;  %9510 = vmatprep.subr.bf16.mxu1 %v10119_v51  ;;  %v6693_v56 = vmax.f32 %v12864_v22, %v13368_v1 }
 0xd38   :  { %10755 = vpow2.f32 %v8410_v0  ;;  %v8411_v7 = vmul.f32 -1.442695, %v7405_v59 }
 0xd39   :  { %v10750_v33 = vpop.eup %10749  ;;  %v7196_v45 = vmax.f32 %v13093_v23, %v7192_v32  ;;  %v7296_v23 = vadd.f32 %v13428_v38, %v7209_v55 }
 0xd3a   :  { %10757 = vpow2.f32 %v8411_v7  ;;  %v7193_v5 = vmul.f32 %v10750_v33, %v7068_v57  ;;  %9511 = vmatpush3.bf16.msra.mxu1 %v10119_v51 }
 0xd3b   :  { %9512 = vmatprep.subr.bf16.mxu1 %v10120_v11 }
 0xd3c   :  { %v7197_v54 = vmax.f32 %v13102_v21, %v7193_v5 }
 0xd3d   :  { %v10752_v46 = vpop.eup %10751 }
 0xd3e   :  { %v9997_v34 = vpack.i.bf16 %v7197_v54, %v7196_v45  ;;  %v7438_v21 = vmul.f32 %v10752_v46, %v7293_v4  ;;  %9513 = vmatpush3.bf16.msra.mxu1 %v10120_v11  ;;  %v6694_v45 = vmax.f32 %v12891_v16, %v13370_v26  ;;  %v6695_v54 = vmax.f32 %v12896_v25, %v13372_v3  ;;  %v13551_v16 = vld [vmem:[%s13603_s5] sm:$0x77]  ;;  %v13692_v26 = vld [vmem:[#allocation5_spill] sm:$0xff] }
 0xd3f   :  { %v10754_v60 = vpop.eup %10753  ;;  %9514 = vmatprep.subr.bf16.mxu1 %v10121_v52  ;;  %v7547_v25 = vrot.slane %v13551_v16, %v13667_v43  ;;  %v7551_v3 = vrot.slane %v13551_v16, %v13692_v26 }
 0xd40   :  { %v7439_v6 = vmul.f32 %v10754_v60, %v7296_v23  ;;  %v7442_v47 = vmax.f32 %v13112_v44, %v7438_v21  ;;  %v10122_v44 = vld [vmem:[%s13602_s4 + $0xb0] ss:$12 sps:$4 sm:$0xff]  }
 0xd41   :  { %v7562_v51 = vrot.slane %v7547_v25, %v13667_v43  ;;  %v7566_v11 = vrot.slane %v7551_v3, %v13667_v43 }
 0xd42   :  { %v10756_v41 = vpop.eup %10755  ;;  %v7443_v38 = vmax.f32 %v13116_v29, %v7439_v6  ;;  %9515 = vmatpush3.bf16.msra.mxu1 %v10121_v52  ;;  %v7313_v29 = vadd.f32 %v13474_v18, %v7209_v55  ;;  %v7816_v6 = vrot.slane %v13551_v16, %v13668_v36 }
 0xd43   :  { %v7428_v19 = vadd.f32 1.0, %v10756_v41  ;;  %9516 = vmatprep.subr.bf16.mxu1 %v10122_v44  ;;  %v13693_v41 = vld [vmem:[#allocation6_spill] sm:$0xff] }
 0xd44   :  { %v10758_v24 = vpop.eup %10757  ;;  %v9987_v15 = vpack.i.bf16 %v7443_v38, %v7442_v47 }
 0xd45   :  { %10759 = vrcp.f32 %v7428_v19  ;;  %v7429_v17 = vadd.f32 1.0, %v10758_v24  ;;  %v7820_v19 = vrot.slane %v13551_v16, %v13693_v41  ;;  %v7831_v24 = vrot.slane %v7816_v6, %v13668_v36 }
 0xd46   :  { %9988 = vrot.lane.b32.xlu1 %v9987_v15, %s10784_s16  ;;  %9517 = vmatpush3.bf16.msra.mxu1 %v10122_v44 }
 0xd47   :  { %10761 = vrcp.f32 %v7429_v17  ;;  %v7835_v52 = vrot.slane %v7820_v19, %v13668_v36 }
 0xd4a   :  { %9998 = vrot.lane.b32.xlu1 %v9997_v34, %s10782_s14 }
 0xd4f   :  { %v10760_v2 = vpop.eup %10759 }
 0xd50   :  { %v7440_v42 = vmul.f32 %v10760_v2, %v7313_v29 }
 0xd51   :  { %v10762_v13 = vpop.eup %10761 }
 0xd52   :  { %v7441_v40 = vmul.f32 %v10762_v13, %v7316_v35  ;;  %v7444_v12 = vmax.f32 %v13146_v50, %v7440_v42 }
 0xd54   :  { %v7445_v8 = vmax.f32 %v13152_v28, %v7441_v40 }
 0xd56   :  { %v10002_v49 = vpack.i.bf16 %v7445_v8, %v7444_v12 }
 0xd58   :  { %10003 = vrot.lane.b32.xlu0 %v10002_v49, %s10784_s16 }
 0xd83   :  { %v9979_v62 = vpop.permute.xlu1 %9978 }
 0xd84   :  { %v9981_v27 = vunpack.i.h.bf16 %v9979_v62  ;;  %v9980_v61 = vunpack.i.l.bf16 %v9979_v62 }
 0xd86   :  { %v7497_v50 = vsel %vm545_vm0, %v6693_v56, %v9981_v27  ;;  %v7496_v28 = vsel %vm545_vm0, %v6692_v14, %v9980_v61  ;;  %v7447_v27 = vld [vmem:[%s13603_s5 + $0x8] sm:$0x7] }
 0xd87   :  { %v7555_v61 = vrot.slane %v7447_v27, %v13667_v43 }
 0xd89   :  { %v7570_v56 = vrot.slane %v7555_v61, %v13667_v43 }
 0xda1   :  { %v9984_v53 = vpop.permute.xlu0 %9983 }
 0xda2   :  { %v9986_v9 = vunpack.i.h.bf16 %v9984_v53  ;;  %v9985_v18 = vunpack.i.l.bf16 %v9984_v53 }
 0xda4   :  { %v7501_v39 = vsel %vm558_vm1, %v7497_v50, %v9986_v9  ;;  %v7500_v57 = vsel %vm558_vm1, %v7496_v28, %v9985_v18 }
 0xda5   :  { %v9994_v20 = vpop.permute.xlu0 %9993 }
 0xda6   :  { %v9996_v30 = vunpack.i.h.bf16 %v9994_v20  ;;  %v9995_v1 = vunpack.i.l.bf16 %v9994_v20 }
 0xda8   :  { %v7498_v4 = vsel %vm545_vm0, %v6694_v45, %v9995_v1  ;;  %v7499_v58 = vsel %vm545_vm0, %v6695_v54, %v9996_v30 }
 0xdb8   :  { %v9989_v0 = vpop.permute.xlu1 %9988 }
 0xdb9   :  { %v9991_v59 = vunpack.i.h.bf16 %v9989_v0  ;;  %v9990_v48 = vunpack.i.l.bf16 %v9989_v0 }
 0xdbb   :  { %v7505_v7 = vsel %vm571_vm2, %v7501_v39, %v9991_v59  ;;  %v7504_v32 = vsel %vm571_vm2, %v7500_v57, %v9990_v48 }
 0xdbc   :  { %v7508_v33 = vpack.c.bf16 %v7505_v7, %v7504_v32  ;;  %v9999_v22 = vpop.permute.xlu1 %9998 }
 0xdbd   :  { %v10001_v55 = vunpack.i.h.bf16 %v9999_v22  ;;  %v10000_v5 = vunpack.i.l.bf16 %v9999_v22 }
 0xdbe   :  { %7732 = vmatmul.mubr.bf16.vlgmr.msra.gmra.mrb[32].mxu0 %v7508_v33  ;;  %9518 = vmatprep.mubr.bf16.mxu1 %v7508_v33  ;;  %v7824_v33 = vrot.slane %v7447_v27, %v13668_v36 }
 0xdbf   :  { %7741 = vmatprep.mubr.bf16.mxu0 %v13687_v10  ;;  %v7502_v10 = vsel %vm558_vm1, %v7498_v4, %v10000_v5  ;;  %v7503_v34 = vsel %vm558_vm1, %v7499_v58, %v10001_v55 }
 0xdca   :  { %v10004_v63 = vpop.permute.xlu0 %10003 }
 0xdcb   :  { %v10006_v31 = vunpack.i.h.bf16 %v10004_v63  ;;  %v10005_v46 = vunpack.i.l.bf16 %v10004_v63  ;;  %v7839_v63 = vrot.slane %v7824_v33, %v13668_v36 }
 0xdcd   :  { %v7506_v23 = vsel %vm571_vm2, %v7502_v10, %v10005_v46  ;;  %v7507_v21 = vsel %vm571_vm2, %v7503_v34, %v10006_v31 }
 0xdce   :  { %v7509_v60 = vpack.c.bf16 %v7507_v21, %v7506_v23 }
 0xdd0   :  { %7742 = vmatmul.mubr.bf16.gmra.mrb[36].mxu0 %v7509_v60  ;;  %9519 = vmatmul.mubr.bf16.vlgmr.msra.gmra.mrb[32].mxu1 %v7509_v60 }
 0xe91   :  { %v7733_v47 = vpop.f32.mrb[32].mxu0 }
 0xe92   :  { %v7734_v38 = vadd.f32 %v7733_v47, %v7562_v51  ;;  %v7735_v17 = vpop.f32.mrb[33].mxu0 }
 0xe93   :  { %v7736_v15 = vadd.f32 %v7735_v17, %v7566_v11  ;;  %v7737_v44 = vpop.f32.mrb[34].mxu0 }
 0xe94   :  { %v7801_v29 = vmax.f32 %v7734_v38, 0.0  ;;  %v7738_v2 = vadd.f32 %v7737_v44, %v7562_v51  ;;  %v7739_v35 = vpop.f32.mrb[35].mxu0  ;;  %v7889_v38 = vrot.slane %v13551_v16, %v13669_v37 }
 0xe95   :  { %v7802_v42 = vmax.f32 %v7736_v15, 0.0  ;;  %v7740_v13 = vadd.f32 %v7739_v35, %v7566_v11 }
 0xe96   :  { %v7840_v40 = vmul.f32 %v7831_v24, %v7801_v29  ;;  %v7804_v8 = vmax.f32 %v7738_v2, 0.0 }
 0xe97   :  { %v7841_v12 = vmul.f32 %v7835_v52, %v7802_v42  ;;  %v7805_v49 = vmax.f32 %v7740_v13, 0.0 }
 0xe98   :  { %7852 = vadd.xlane.f32.xlu1 %v7840_v40  ;;  %v7843_v53 = vmul.f32 %v7831_v24, %v7804_v8 }
 0xe99   :  { %v7844_v62 = vmul.f32 %v7835_v52, %v7805_v49  ;;  %7860 = vadd.xlane.f32.xlu0 %v7841_v12 }
 0xe9c   :  { %7862 = vadd.xlane.f32.xlu1 %v7844_v62 }
 0xe9d   :  { %7854 = vadd.xlane.f32.xlu0 %v7843_v53 }
 0xea3   :  { %v7743_v9 = vpop.f32.mrb[36].mxu0  ;;  %v9520_v18 = vpop.f32.mrb[32].mxu1 }
 0xea4   :  { %v7744_v14 = vadd.f32 %v7743_v9, %v7562_v51  ;;  %v7745_v0 = vpop.f32.mrb[37].mxu0  ;;  %v7786_v50 = vpop.f32.mrb[33].mxu1  ;;  %v7795_v43 = vadd.f32 %v9520_v18, %v7570_v56 }
 0xea5   :  { %v7746_v28 = vadd.f32 %v7745_v0, %v7566_v11  ;;  %v7747_v59 = vpop.f32.mrb[38].mxu0  ;;  %v9521_v48 = vpop.f32.mrb[34].mxu1  ;;  %v7787_v1 = vadd.f32 %v7786_v50, %v7570_v56 }
 0xea6   :  { %v7807_v39 = vmax.f32 %v7744_v14, 0.0  ;;  %v7748_v57 = vadd.f32 %v7747_v59, %v7562_v51  ;;  %v7749_v7 = vpop.f32.mrb[39].mxu0  ;;  %v7789_v32 = vpop.f32.mrb[35].mxu1  ;;  %v7798_v31 = vadd.f32 %v9521_v48, %v7570_v56  ;;  %v7809_v34 = vmax.f32 %v7795_v43, 0.0 }
 0xea7   :  { %v7750_v20 = vadd.f32 %v7749_v7, %v7566_v11  ;;  %v7808_v30 = vmax.f32 %v7746_v28, 0.0  ;;  %v7790_v54 = vadd.f32 %v7789_v32, %v7570_v56  ;;  %v7803_v58 = vmax.f32 %v7787_v1, 0.0 }
 0xea8   :  { %v7846_v22 = vmul.f32 %v7831_v24, %v7807_v39  ;;  %v7810_v55 = vmax.f32 %v7748_v57, 0.0  ;;  %v7812_v21 = vmax.f32 %v7798_v31, 0.0  ;;  %v7848_v25 = vmul.f32 %v7839_v63, %v7809_v34 }
 0xea9   :  { %v7811_v45 = vmax.f32 %v7750_v20, 0.0  ;;  %v7847_v4 = vmul.f32 %v7835_v52, %v7808_v30  ;;  %v7806_v10 = vmax.f32 %v7790_v54, 0.0  ;;  %v7842_v23 = vmul.f32 %v7839_v63, %v7803_v58 }
 0xeaa   :  { %v7849_v5 = vmul.f32 %v7831_v24, %v7810_v55  ;;  %7856 = vadd.xlane.f32.xlu0 %v7846_v22  ;;  %v7851_v26 = vmul.f32 %v7839_v63, %v7812_v21 }
 0xeab   :  { %v7850_v46 = vmul.f32 %v7835_v52, %v7811_v45  ;;  %v7845_v60 = vmul.f32 %v7839_v63, %v7806_v10 }
 0xeac   :  { %7858 = vadd.xlane.f32.xlu1 %v7849_v5 }
 0xeae   :  { %7864 = vadd.xlane.f32.xlu0 %v7847_v4 }
 0xeb0   :  { %7866 = vadd.xlane.f32.xlu1 %v7850_v46 }
 0xeb2   :  { %7868 = vadd.xlane.f32.xlu0 %v7842_v23 }
 0xeb4   :  { %7870 = vadd.xlane.f32.xlu1 %v7845_v60 }
 0xeb6   :  { %7872 = vadd.xlane.f32.xlu0 %v7848_v25 }
 0xeb8   :  { %7874 = vadd.xlane.f32.xlu1 %v7851_v26 }
 0xf25   :  { %v7853_v36 = vpop.xlane.xlu1 %7852 }
 0xf26   :  { %v7861_v3 = vpop.xlane.xlu0 %7860 }
 0xf27   :  { %v7877_v24 = vsel %vm7876_vm5, %v7853_v36, %v7861_v3 }
 0xf29   :  { %v7863_v6 = vpop.xlane.xlu1 %7862 }
 0xf2a   :  { %v7855_v51 = vpop.xlane.xlu0 %7854 }
 0xf2b   :  { %v7878_v52 = vsel %vm7876_vm5, %v7855_v51, %v7863_v6 }
 0xf37   :  { %v7857_v11 = vpop.xlane.xlu0 %7856 }
 0xf39   :  { %v7859_v41 = vpop.xlane.xlu1 %7858 }
 0xf3b   :  { %v7865_v19 = vpop.xlane.xlu0 %7864 }
 0xf3c   :  { %v7879_v35 = vsel %vm7876_vm5, %v7857_v11, %v7865_v19 }
 0xf3d   :  { %v7867_v47 = vpop.xlane.xlu1 %7866 }
 0xf3e   :  { %v7880_v13 = vsel %vm7876_vm5, %v7859_v41, %v7867_v47 }
 0xf3f   :  { %v7869_v17 = vpop.xlane.xlu0 %7868 }
 0xf40   :  { %v7882_v15 = vsel %vm7881_vm6, %v7877_v24, %v7869_v17 }
 0xf41   :  { %v7890_v44 = vadd.f32 %v7889_v38, %v7882_v15  ;;  %v7871_v29 = vpop.xlane.xlu1 %7870 }
 0xf42   :  { %v7883_v2 = vsel %vm7881_vm6, %v7878_v52, %v7871_v29 }
 0xf43   :  { %7895 = vst.msk [vmem:[%s13604_s6] sm:$0xff] %vm7894_vm7, %v7890_v44  ;;  %v7891_v37 = vadd.f32 %v7889_v38, %v7883_v2  ;;  %v7873_v16 = vpop.xlane.xlu0 %7872 }
 0xf44   :  { %v7884_v42 = vsel %vm7881_vm6, %v7879_v35, %v7873_v16 }
 0xf45   :  { %7896 = vst.msk [vmem:[%s13604_s6 + $0x8] sm:$0xff] %vm7894_vm7, %v7891_v37  ;;  %v7892_v40 = vadd.f32 %v7889_v38, %v7884_v42  ;;  %v7875_v12 = vpop.xlane.xlu1 %7874 }
 0xf46   :  { %v7885_v8 = vsel %vm7881_vm6, %v7880_v13, %v7875_v12 }
 0xf47   :  { %7897 = vst.msk [vmem:[%s13604_s6 + $0x10] sm:$0xff] %vm7894_vm7, %v7892_v40  ;;  %v7893_v49 = vadd.f32 %v7889_v38, %v7885_v8 }
 0xf49   :  { %7898 = vst.msk [vmem:[%s13604_s6 + $0x18] sm:$0xff] %vm7894_vm7, %v7893_v49 }

</bundles_post_ra>
